<compile_context>
chip_gen: v7x
topology: tpu7x:2x2x1
jax: 0.10.0
libtpu: 0.0.40
codegen_flags: <defaults>
</compile_context>

<pallas_src>
import functools

import jax
import jax.numpy as jnp
from jax.experimental import pallas as pl
from jax.experimental.pallas import tpu as pltpu

CHANNEL = 64  # the module hardcodes channel = 64


# ---------------------------------------------------------------------------
# fused kernel: cov1 -> cov2 (both branches) -> the three sigmoid heads
# ---------------------------------------------------------------------------
def _ind_decoder_kernel(xbdz_ref, f2z_ref, f1r_ref,
                        w1_ref, s1_ref, b1_ref,
                        w2a_ref, w2b_ref, s2_ref, b2_ref,
                        alpha_ref, whT_ref, sh_ref, bh_ref,
                        o_ref,
                        pa_ref, pb_ref, pf2_ref, hp_ref, o1p_ref, o2p_ref,
                        *, N, H, W, C):
    M = N * H * W
    K = 9 * C
    bf16 = jnp.bfloat16

    # ---- in-VMEM im2col of the external padded activations -> bf16 patches.
    #      (taps written once; each conv then is a single big-K MXU matmul)
    for k in range(9):
        dy, dx = divmod(k, 3)
        pa_ref[:, k * C:(k + 1) * C] = (
            xbdz_ref[:, :, dy:dy + H, dx:dx + W, :].reshape(2 * M, C).astype(bf16))
        pf2_ref[:, k * C:(k + 1) * C] = (
            f2z_ref[:, dy:dy + H, dx:dx + W, :].reshape(M, C).astype(bf16))

    # ---- cov1: (2M, 9C) @ (9C, C) + folded BN + tanh (branch folded into M).
    o1 = jnp.tanh(
        jnp.dot(pa_ref[...], w1_ref[...], preferred_element_type=jnp.float32)
        * s1_ref[...] + b1_ref[...])                                    # (2M, C) f32

    # ---- zero-pad o1 into VMEM: zero only the 1-pixel halo, write the interior.
    zrow = jnp.zeros((2, N, W + 2, C), jnp.float32)
    zcol = jnp.zeros((2, N, H, C), jnp.float32)
    o1p_ref[:, :, 0, :, :] = zrow
    o1p_ref[:, :, H + 1, :, :] = zrow
    o1p_ref[:, :, 1:H + 1, 0, :] = zcol
    o1p_ref[:, :, 1:H + 1, W + 1, :] = zcol
    o1p_ref[:, :, 1:H + 1, 1:W + 1, :] = o1.reshape(2, N, H, W, C)

    # ---- im2col of o1 (VMEM-resident) -> bf16 patches.
    for k in range(9):
        dy, dx = divmod(k, 3)
        pb_ref[:, k * C:(k + 1) * C] = (
            o1p_ref[:, :, dy:dy + H, dx:dx + W, :].reshape(2 * M, C).astype(bf16))

    # ---- cov2: o1 half as one big-K dot; shared feature_2 half as one dot
    #      broadcast over both branches (replaces the channel concat).
    acc2 = jnp.dot(pb_ref[...], w2a_ref[...],
                   preferred_element_type=jnp.float32).reshape(2, M, C)
    f2c = jnp.dot(pf2_ref[...], w2b_ref[...], preferred_element_type=jnp.float32)
    y2 = (acc2 + f2c[None]) * s2_ref[...] + b2_ref[...]
    a = alpha_ref[0]                                                    # PReLU slope (SMEM scalar)
    o2 = jnp.where(y2 >= 0.0, y2, a * y2)                               # (2, M, C) f32

    # ---- reflection-pad o2 into VMEM (interior, then W edges, then H edges
    #      which also fill the corners from the already-padded columns).
    o2p_ref[:, :, 1:H + 1, 1:W + 1, :] = o2.reshape(2, N, H, W, C)
    o2p_ref[:, :, 1:H + 1, 0, :] = o2p_ref[:, :, 1:H + 1, 2, :]
    o2p_ref[:, :, 1:H + 1, W + 1, :] = o2p_ref[:, :, 1:H + 1, W - 1, :]
    o2p_ref[:, :, 0, :, :] = o2p_ref[:, :, 2, :, :]
    o2p_ref[:, :, H + 1, :, :] = o2p_ref[:, :, H - 1, :, :]

    # ---- im2col of [o2_2 | o2_1 | f1] into one (M, 3*9C) bf16 patch matrix.
    for k in range(9):
        dy, dx = divmod(k, 3)
        hp_ref[:, 0 * K + k * C:0 * K + (k + 1) * C] = (
            o2p_ref[1, :, dy:dy + H, dx:dx + W, :].reshape(M, C).astype(bf16))   # o2_2 (feature_D branch)
        hp_ref[:, 1 * K + k * C:1 * K + (k + 1) * C] = (
            o2p_ref[0, :, dy:dy + H, dx:dx + W, :].reshape(M, C).astype(bf16))   # o2_1 (feature_B branch)
        hp_ref[:, 2 * K + k * C:2 * K + (k + 1) * C] = (
            f1r_ref[:, dy:dy + H, dx:dx + W, :].reshape(M, C).astype(bf16))      # feature_1 (reflect pad)

    # ---- all three sigmoid heads as ONE MXU matmul over the concatenated K axis.
    pre = jnp.dot(hp_ref[...], whT_ref[...], preferred_element_type=jnp.float32)  # (M, 8)
    o_ref[...] = jax.nn.sigmoid(pre * sh_ref[...] + bh_ref[...])


def _fused_forward_call(xbdz, f2z, f1r, p, *, N, H, W):
    C = CHANNEL
    K = 9 * C
    M = N * H * W
    Hp, Wp = H + 2, W + 2
    kernel = functools.partial(_ind_decoder_kernel, N=N, H=H, W=W, C=C)
    return pl.pallas_call(
        kernel,
        out_shape=jax.ShapeDtypeStruct((M, 8), jnp.float32),
        grid_spec=pltpu.PrefetchScalarGridSpec(
            num_scalar_prefetch=0,
            grid=(1,),
            in_specs=[
                pl.BlockSpec((2, N, Hp, Wp, C), lambda i: (0, 0, 0, 0, 0)),  # padded [feature_B, feature_D]
                pl.BlockSpec((N, Hp, Wp, C), lambda i: (0, 0, 0, 0)),        # zero-padded feature_2
                pl.BlockSpec((N, Hp, Wp, C), lambda i: (0, 0, 0, 0)),        # reflect-padded feature_1
                pl.BlockSpec((K, C), lambda i: (0, 0)),                      # cov1 weights (im2col, bf16)
                pl.BlockSpec((1, C), lambda i: (0, 0)),                      # cov1 folded BN scale
                pl.BlockSpec((1, C), lambda i: (0, 0)),                      # cov1 folded BN bias
                pl.BlockSpec((K, C), lambda i: (0, 0)),                      # cov2 weights, o1 half (bf16)
                pl.BlockSpec((K, C), lambda i: (0, 0)),                      # cov2 weights, feature_2 half (bf16)
                pl.BlockSpec((1, C), lambda i: (0, 0)),                      # cov2 BN scale
                pl.BlockSpec((1, C), lambda i: (0, 0)),                      # cov2 BN bias
                pl.BlockSpec(memory_space=pltpu.MemorySpace.SMEM),           # PReLU alpha (scalar)
                pl.BlockSpec((3 * K, 8), lambda i: (0, 0)),                  # stacked head weights^T (bf16)
                pl.BlockSpec((1, 8), lambda i: (0, 0)),                      # per-head BN scale
                pl.BlockSpec((1, 8), lambda i: (0, 0)),                      # per-head BN bias
            ],
            out_specs=pl.BlockSpec((M, 8), lambda i: (0, 0)),
            scratch_shapes=[
                pltpu.VMEM((2 * M, K), jnp.bfloat16),          # cov1 patches (both branches)
                pltpu.VMEM((2 * M, K), jnp.bfloat16),          # o1 patches
                pltpu.VMEM((M, K), jnp.bfloat16),              # feature_2 patches
                pltpu.VMEM((M, 3 * K), jnp.bfloat16),          # head patches [o2_2 | o2_1 | f1]
                pltpu.VMEM((2, N, Hp, Wp, C), jnp.float32),    # zero-padded o1
                pltpu.VMEM((2, N, Hp, Wp, C), jnp.float32),    # reflect-padded o2
            ],
        ),
        compiler_params=pltpu.CompilerParams(dimension_semantics=("arbitrary",)),
    )(xbdz, f2z, f1r, p["w1"], p["s1"], p["b1"], p["w2a"], p["w2b"],
      p["s2"], p["b2"], p["alpha"], p["whT"], p["sh"], p["bh"])


# ---------------------------------------------------------------------------
# parameters
# ---------------------------------------------------------------------------
def _init_conv_bn(key, cin, cout):
    """Conv2d(cin, cout, 3) + BatchNorm2d(cout) folded into (w[9,cin,cout], scale, bias)."""
    k1, k2, k3, k4 = jax.random.split(key, 4)
    eps = 1e-5
    w = jax.random.normal(k1, (3, 3, cin, cout), jnp.float32) * 0.05
    b = jax.random.normal(k2, (cout,), jnp.float32) * 0.05
    gamma = 1.0 + 0.1 * jax.random.normal(k3, (cout,), jnp.float32)
    beta = 0.1 * jax.random.normal(k4, (cout,), jnp.float32)
    running_mean = jnp.zeros((cout,), jnp.float32)
    running_var = jnp.ones((cout,), jnp.float32)
    scale = gamma / jnp.sqrt(running_var + eps)
    bias = beta + scale * (b - running_mean)
    return dict(w=w.reshape(9, cin, cout), scale=scale, bias=bias)


def init_params(key):
    ks = jax.random.split(key, 5)
    return {
        "cov1": _init_conv_bn(ks[0], CHANNEL, CHANNEL),        # Conv(64->64)+BN+Tanh
        "cov2": _init_conv_bn(ks[1], CHANNEL * 2, CHANNEL),    # Conv(128->64)+BN+PReLU
        "out_1": _init_conv_bn(ks[2], CHANNEL * 2, 1),         # ReflPad+Conv(128->1)+BN+Sigmoid
        "out_2": _init_conv_bn(ks[3], CHANNEL * 2, 1),
        "out_3": _init_conv_bn(ks[4], CHANNEL * 3, 1),
        "prelu_alpha": jnp.full((1,), 0.25, jnp.float32),      # PReLU default init
    }


def pack_params(raw):
    """Repack per-block weights into the fused-kernel layouts (weights pre-cast to bf16)."""
    C = CHANNEL
    K = 9 * C
    bf16 = jnp.bfloat16
    w2 = raw["cov2"]["w"]                                      # (9, 2C, C); input channels = [o1 | feature_2]
    w1h, w2h, w3h = raw["out_1"]["w"], raw["out_2"]["w"], raw["out_3"]["w"]
    z = jnp.zeros((K,), jnp.float32)
    flat = lambda wpart: wpart.reshape(K)                      # (9, C, 1) -> (9*C,) tap-major
    # Head columns over the in-kernel K layout [o2_2 | o2_1 | f1] (tap-major, channel-minor).
    col1 = jnp.concatenate([z, flat(w1h[:, :C]), flat(w1h[:, C:])])                        # out_1(cat(o2_1, f1))
    col2 = jnp.concatenate([flat(w2h[:, :C]), z, flat(w2h[:, C:])])                        # out_2(cat(o2_2, f1))
    col3 = jnp.concatenate([flat(w3h[:, :C]), flat(w3h[:, C:2 * C]), flat(w3h[:, 2 * C:])])  # out_3
    zcol = jnp.zeros((3 * K,), jnp.float32)
    whT = jnp.stack([col1, col2, col3, zcol, zcol, zcol, zcol, zcol], axis=1)              # (3*9C, 8)
    zeros5 = jnp.zeros((5,), jnp.float32)
    return {
        "w1": raw["cov1"]["w"].reshape(K, C).astype(bf16),
        "s1": raw["cov1"]["scale"].reshape(1, C),
        "b1": raw["cov1"]["bias"].reshape(1, C),
        "w2a": w2[:, :C, :].reshape(K, C).astype(bf16),        # o1 half, im2col layout
        "w2b": w2[:, C:, :].reshape(K, C).astype(bf16),        # feature_2 half, im2col layout
        "s2": raw["cov2"]["scale"].reshape(1, C),
        "b2": raw["cov2"]["bias"].reshape(1, C),
        "alpha": raw["prelu_alpha"],
        "whT": whT.astype(bf16),
        "sh": jnp.concatenate([raw["out_1"]["scale"], raw["out_2"]["scale"],
                               raw["out_3"]["scale"], zeros5]).reshape(1, 8),
        "bh": jnp.concatenate([raw["out_1"]["bias"], raw["out_2"]["bias"],
                               raw["out_3"]["bias"], zeros5]).reshape(1, 8),
    }


# ---------------------------------------------------------------------------
# forward
# ---------------------------------------------------------------------------
def ind_decoder_forward(packed, feature_1, feature_2, feature_B, feature_D):
    N, _, H, W = feature_1.shape
    to_nhwc = lambda x: jnp.transpose(x, (0, 2, 3, 1))
    f1, f2, fB, fD = (to_nhwc(x) for x in (feature_1, feature_2, feature_B, feature_D))

    # Only the padded NHWC activations (9x smaller than im2col) go to the kernel;
    # taps are formed in-kernel.  Activations stay f32 and are cast in-kernel.
    xbd = jnp.stack([fB, fD], axis=0)                                         # (2, N, H, W, C)
    xbdz = jnp.pad(xbd, ((0, 0), (0, 0), (1, 1), (1, 1), (0, 0)))             # zero pad (cov1)
    f2z = jnp.pad(f2, ((0, 0), (1, 1), (1, 1), (0, 0)))                       # zero pad (cov2)
    f1r = jnp.pad(f1, ((0, 0), (1, 1), (1, 1), (0, 0)), mode="reflect")       # reflection pad (heads)

    heads = _fused_forward_call(xbdz, f2z, f1r, packed, N=N, H=H, W=W)        # (N*H*W, 8) f32

    pool = lambda x: x.reshape(N, H // 2, 2, W // 2, 2).mean(axis=(2, 4))
    h1 = heads[:, 0].reshape(N, H, W)   # out_1 on (o2_1, f1) -> output3
    h2 = heads[:, 1].reshape(N, H, W)   # out_2 on (o2_2, f1) -> output4
    h3 = heads[:, 2].reshape(N, H, W)   # out_3 on (o2_2, o2_1, f1) -> output5
    out3 = pool(h1)[:, None, :, :]      # AvgPool2d(2, 2) AFTER sigmoid, as in the module
    out4 = pool(h2)[:, None, :, :]
    out5 = h3[:, None, :, :]
    return out3, out4, out5


# ---------------------------------------------------------------------------
# plain-JAX reference (XLA convs, f32) for validation
# ---------------------------------------------------------------------------
def _reference_forward(raw, feature_1, feature_2, feature_B, feature_D):
    to_nhwc = lambda x: jnp.transpose(x, (0, 2, 3, 1))
    f1, f2, fB, fD = (to_nhwc(x) for x in (feature_1, feature_2, feature_B, feature_D))

    def block(x, blk, act, pad_mode):
        cin = blk["w"].shape[1]
        w = blk["w"].reshape(3, 3, cin, -1)
        mode = "reflect" if pad_mode == "reflect" else "constant"
        xp = jnp.pad(x, ((0, 0), (1, 1), (1, 1), (0, 0)), mode=mode)
        y = jax.lax.conv_general_dilated(
            xp, w, (1, 1), "VALID", dimension_numbers=("NHWC", "HWIO", "NHWC"))
        y = y * blk["scale"] + blk["bias"]
        if act == "tanh":
            return jnp.tanh(y)
        if act == "prelu":
            a = raw["prelu_alpha"][0]
            return jnp.where(y >= 0.0, y, a * y)
        return jax.nn.sigmoid(y)

    o1_1 = block(fB, raw["cov1"], "tanh", "zero")
    o2_1 = block(jnp.concatenate([o1_1, f2], -1), raw["cov2"], "prelu", "zero")
    o3 = block(jnp.concatenate([o2_1, f1], -1), raw["out_1"], "sigmoid", "reflect")
    o1_2 = block(fD, raw["cov1"], "tanh", "zero")
    o2_2 = block(jnp.concatenate([o1_2, f2], -1), raw["cov2"], "prelu", "zero")
    o4 = block(jnp.concatenate([o2_2, f1], -1), raw["out_2"], "sigmoid", "reflect")
    o5 = block(jnp.concatenate([o2_2, o2_1, f1], -1), raw["out_3"], "sigmoid", "reflect")

    N, H, W, _ = f1.shape
    pool = lambda x: x.reshape(N, H // 2, 2, W // 2, 2, 1).mean(axis=(2, 4))
    tr = lambda x: jnp.transpose(x, (0, 3, 1, 2))
    return tr(pool(o3)), tr(pool(o4)), tr(o5)


if __name__ == "__main__":
    key = jax.random.PRNGKey(0)
    kp, k1, k2, k3, k4 = jax.random.split(key, 5)
    raw = init_params(kp)
    packed = pack_params(raw)

    N, C, H, W = 2, CHANNEL, 8, 8   # channel must be 64 per the module definition
    feature_1 = jax.random.normal(k1, (N, C, H, W), jnp.float32)
    feature_2 = jax.random.normal(k2, (N, C, H, W), jnp.float32)
    feature_B = jax.random.normal(k3, (N, C, H, W), jnp.float32)
    feature_D = jax.random.normal(k4, (N, C, H, W), jnp.float32)

    fwd = jax.jit(functools.partial(ind_decoder_forward, packed))
    out3, out4, out5 = fwd(feature_1, feature_2, feature_B, feature_D)
    jax.block_until_ready((out3, out4, out5))

    assert out3.shape == (N, 1, H // 2, W // 2)
    assert out4.shape == (N, 1, H // 2, W // 2)
    assert out5.shape == (N, 1, H, W)
    assert bool(jnp.all((out5 >= 0.0) & (out5 <= 1.0)))

    # Validate against a plain-JAX (XLA conv, f32) reference of the same forward.
    r3, r4, r5 = jax.jit(functools.partial(_reference_forward, raw))(
        feature_1, feature_2, feature_B, feature_D)
    for got, ref in ((out3, r3), (out4, r4), (out5, r5)):
        err = float(jnp.max(jnp.abs(got - ref)))
        assert err < 5e-2, f"mismatch vs reference: {err}"

    print("KERNEL_OK")
</pallas_src>

<mosaic_0001>
module attributes {stable_mosaic.version = 11 : i64} {
  func.func @_ind_decoder_kernel(%arg0: i32, %arg1: memref<2x2x10x10x64xf32, #tpu.memory_space<vmem>>, %arg2: memref<2x10x10x64xf32, #tpu.memory_space<vmem>>, %arg3: memref<2x10x10x64xf32, #tpu.memory_space<vmem>>, %arg4: memref<576x64xbf16, #tpu.memory_space<vmem>>, %arg5: memref<1x64xf32, #tpu.memory_space<vmem>>, %arg6: memref<1x64xf32, #tpu.memory_space<vmem>>, %arg7: memref<576x64xbf16, #tpu.memory_space<vmem>>, %arg8: memref<576x64xbf16, #tpu.memory_space<vmem>>, %arg9: memref<1x64xf32, #tpu.memory_space<vmem>>, %arg10: memref<1x64xf32, #tpu.memory_space<vmem>>, %arg11: memref<1xf32, #tpu.memory_space<smem>>, %arg12: memref<1728x8xbf16, #tpu.memory_space<vmem>>, %arg13: memref<1x8xf32, #tpu.memory_space<vmem>>, %arg14: memref<1x8xf32, #tpu.memory_space<vmem>>, %arg15: memref<128x8xf32, #tpu.memory_space<vmem>>, %arg16: memref<256x576xbf16, #tpu.memory_space<vmem>>, %arg17: memref<256x576xbf16, #tpu.memory_space<vmem>>, %arg18: memref<128x576xbf16, #tpu.memory_space<vmem>>, %arg19: memref<128x1728xbf16, #tpu.memory_space<vmem>>, %arg20: memref<2x2x10x10x64xf32, #tpu.memory_space<vmem>>, %arg21: memref<2x2x10x10x64xf32, #tpu.memory_space<vmem>>) attributes {dimension_semantics = [#tpu.dimension_semantics<arbitrary>], iteration_bounds = array<i64: 1>, scalar_prefetch = 0 : i64, scratch_operands = 6 : i64, tpu.core_type = #tpu.core_type<tc>, window_params = [{pipeline_mode = #tpu.pipeline_mode<synchronous>, transform_indices = @transform_0, window_bounds = array<i64: 2, 2, 10, 10, 64>}, {pipeline_mode = #tpu.pipeline_mode<synchronous>, transform_indices = @transform_1, window_bounds = array<i64: 2, 10, 10, 64>}, {pipeline_mode = #tpu.pipeline_mode<synchronous>, transform_indices = @transform_2, window_bounds = array<i64: 2, 10, 10, 64>}, {pipeline_mode = #tpu.pipeline_mode<synchronous>, transform_indices = @transform_3, window_bounds = array<i64: 576, 64>}, {pipeline_mode = #tpu.pipeline_mode<synchronous>, transform_indices = @transform_4, window_bounds = array<i64: 1, 64>}, {pipeline_mode = #tpu.pipeline_mode<synchronous>, transform_indices = @transform_5, window_bounds = array<i64: 1, 64>}, {pipeline_mode = #tpu.pipeline_mode<synchronous>, transform_indices = @transform_6, window_bounds = array<i64: 576, 64>}, {pipeline_mode = #tpu.pipeline_mode<synchronous>, transform_indices = @transform_7, window_bounds = array<i64: 576, 64>}, {pipeline_mode = #tpu.pipeline_mode<synchronous>, transform_indices = @transform_8, window_bounds = array<i64: 1, 64>}, {pipeline_mode = #tpu.pipeline_mode<synchronous>, transform_indices = @transform_9, window_bounds = array<i64: 1, 64>}, {transform_indices = @transform_10, window_bounds = array<i64: 1>}, {pipeline_mode = #tpu.pipeline_mode<synchronous>, transform_indices = @transform_11, window_bounds = array<i64: 1728, 8>}, {pipeline_mode = #tpu.pipeline_mode<synchronous>, transform_indices = @transform_12, window_bounds = array<i64: 1, 8>}, {pipeline_mode = #tpu.pipeline_mode<synchronous>, transform_indices = @transform_13, window_bounds = array<i64: 1, 8>}, {pipeline_mode = #tpu.pipeline_mode<synchronous>, transform_indices = @transform_14, window_bounds = array<i64: 128, 8>}]} {
    %c0 = arith.constant 0 : index
    %c0_0 = arith.constant 0 : index
    %c0_1 = arith.constant 0 : index
    %c0_2 = arith.constant 0 : index
    %c0_3 = arith.constant 0 : index
    %0 = vector.load %arg1[%c0, %c0_0, %c0_1, %c0_2, %c0_3] : memref<2x2x10x10x64xf32, #tpu.memory_space<vmem>>, vector<2x2x8x8x64xf32>
    %1 = vector.shape_cast %0 : vector<2x2x8x8x64xf32> to vector<256x64xf32>
    %2 = arith.truncf %1 : vector<256x64xf32> to vector<256x64xbf16>
    %c0_4 = arith.constant 0 : index
    %c0_5 = arith.constant 0 : index
    %3 = vector.load %arg16[%c0_4, %c0_5] : memref<256x576xbf16, #tpu.memory_space<vmem>>, vector<256x64xbf16>
    tpu.vector_store %arg16[%c0_4, %c0_5], %2 {strides = array<i32>} : memref<256x576xbf16, #tpu.memory_space<vmem>>, vector<256x64xbf16>,
    %c0_6 = arith.constant 0 : index
    %c0_7 = arith.constant 0 : index
    %c0_8 = arith.constant 0 : index
    %c0_9 = arith.constant 0 : index
    %4 = vector.load %arg2[%c0_6, %c0_7, %c0_8, %c0_9] : memref<2x10x10x64xf32, #tpu.memory_space<vmem>>, vector<2x8x8x64xf32>
    %5 = vector.shape_cast %4 : vector<2x8x8x64xf32> to vector<128x64xf32>
    %6 = arith.truncf %5 : vector<128x64xf32> to vector<128x64xbf16>
    %c0_10 = arith.constant 0 : index
    %c0_11 = arith.constant 0 : index
    %7 = vector.load %arg18[%c0_10, %c0_11] : memref<128x576xbf16, #tpu.memory_space<vmem>>, vector<128x64xbf16>
    tpu.vector_store %arg18[%c0_10, %c0_11], %6 {strides = array<i32>} : memref<128x576xbf16, #tpu.memory_space<vmem>>, vector<128x64xbf16>,
    %c0_12 = arith.constant 0 : index
    %c0_13 = arith.constant 0 : index
    %c0_14 = arith.constant 0 : index
    %c1 = arith.constant 1 : index
    %c0_15 = arith.constant 0 : index
    %8 = vector.load %arg1[%c0_12, %c0_13, %c0_14, %c1, %c0_15] : memref<2x2x10x10x64xf32, #tpu.memory_space<vmem>>, vector<2x2x8x8x64xf32>
    %9 = vector.shape_cast %8 : vector<2x2x8x8x64xf32> to vector<256x64xf32>
    %10 = arith.truncf %9 : vector<256x64xf32> to vector<256x64xbf16>
    %c0_16 = arith.constant 0 : index
    %c64 = arith.constant 64 : index
    %11 = vector.load %arg16[%c0_16, %c64] : memref<256x576xbf16, #tpu.memory_space<vmem>>, vector<256x64xbf16>
    tpu.vector_store %arg16[%c0_16, %c64], %10 {strides = array<i32>} : memref<256x576xbf16, #tpu.memory_space<vmem>>, vector<256x64xbf16>,
    %c0_17 = arith.constant 0 : index
    %c0_18 = arith.constant 0 : index
    %c1_19 = arith.constant 1 : index
    %c0_20 = arith.constant 0 : index
    %12 = vector.load %arg2[%c0_17, %c0_18, %c1_19, %c0_20] : memref<2x10x10x64xf32, #tpu.memory_space<vmem>>, vector<2x8x8x64xf32>
    %13 = vector.shape_cast %12 : vector<2x8x8x64xf32> to vector<128x64xf32>
    %14 = arith.truncf %13 : vector<128x64xf32> to vector<128x64xbf16>
    %c0_21 = arith.constant 0 : index
    %c64_22 = arith.constant 64 : index
    %15 = vector.load %arg18[%c0_21, %c64_22] : memref<128x576xbf16, #tpu.memory_space<vmem>>, vector<128x64xbf16>
    tpu.vector_store %arg18[%c0_21, %c64_22], %14 {strides = array<i32>} : memref<128x576xbf16, #tpu.memory_space<vmem>>, vector<128x64xbf16>,
    %c0_23 = arith.constant 0 : index
    %c0_24 = arith.constant 0 : index
    %c0_25 = arith.constant 0 : index
    %c2 = arith.constant 2 : index
    %c0_26 = arith.constant 0 : index
    %16 = vector.load %arg1[%c0_23, %c0_24, %c0_25, %c2, %c0_26] : memref<2x2x10x10x64xf32, #tpu.memory_space<vmem>>, vector<2x2x8x8x64xf32>
    %17 = vector.shape_cast %16 : vector<2x2x8x8x64xf32> to vector<256x64xf32>
    %18 = arith.truncf %17 : vector<256x64xf32> to vector<256x64xbf16>
    %c0_27 = arith.constant 0 : index
    %c128 = arith.constant 128 : index
    %19 = vector.load %arg16[%c0_27, %c128] : memref<256x576xbf16, #tpu.memory_space<vmem>>, vector<256x64xbf16>
    tpu.vector_store %arg16[%c0_27, %c128], %18 {strides = array<i32>} : memref<256x576xbf16, #tpu.memory_space<vmem>>, vector<256x64xbf16>,
    %c0_28 = arith.constant 0 : index
    %c0_29 = arith.constant 0 : index
    %c2_30 = arith.constant 2 : index
    %c0_31 = arith.constant 0 : index
    %20 = vector.load %arg2[%c0_28, %c0_29, %c2_30, %c0_31] : memref<2x10x10x64xf32, #tpu.memory_space<vmem>>, vector<2x8x8x64xf32>
    %21 = vector.shape_cast %20 : vector<2x8x8x64xf32> to vector<128x64xf32>
    %22 = arith.truncf %21 : vector<128x64xf32> to vector<128x64xbf16>
    %c0_32 = arith.constant 0 : index
    %c128_33 = arith.constant 128 : index
    %23 = vector.load %arg18[%c0_32, %c128_33] : memref<128x576xbf16, #tpu.memory_space<vmem>>, vector<128x64xbf16>
    tpu.vector_store %arg18[%c0_32, %c128_33], %22 {strides = array<i32>} : memref<128x576xbf16, #tpu.memory_space<vmem>>, vector<128x64xbf16>,
    %c0_34 = arith.constant 0 : index
    %c0_35 = arith.constant 0 : index
    %c1_36 = arith.constant 1 : index
    %c0_37 = arith.constant 0 : index
    %c0_38 = arith.constant 0 : index
    %24 = vector.load %arg1[%c0_34, %c0_35, %c1_36, %c0_37, %c0_38] : memref<2x2x10x10x64xf32, #tpu.memory_space<vmem>>, vector<2x2x8x8x64xf32>
    %25 = vector.shape_cast %24 : vector<2x2x8x8x64xf32> to vector<256x64xf32>
    %26 = arith.truncf %25 : vector<256x64xf32> to vector<256x64xbf16>
    %c0_39 = arith.constant 0 : index
    %c192 = arith.constant 192 : index
    %27 = vector.load %arg16[%c0_39, %c192] : memref<256x576xbf16, #tpu.memory_space<vmem>>, vector<256x64xbf16>
    tpu.vector_store %arg16[%c0_39, %c192], %26 {strides = array<i32>} : memref<256x576xbf16, #tpu.memory_space<vmem>>, vector<256x64xbf16>,
    %c0_40 = arith.constant 0 : index
    %c1_41 = arith.constant 1 : index
    %c0_42 = arith.constant 0 : index
    %c0_43 = arith.constant 0 : index
    %28 = vector.load %arg2[%c0_40, %c1_41, %c0_42, %c0_43] : memref<2x10x10x64xf32, #tpu.memory_space<vmem>>, vector<2x8x8x64xf32>
    %29 = vector.shape_cast %28 : vector<2x8x8x64xf32> to vector<128x64xf32>
    %30 = arith.truncf %29 : vector<128x64xf32> to vector<128x64xbf16>
    %c0_44 = arith.constant 0 : index
    %c192_45 = arith.constant 192 : index
    %31 = vector.load %arg18[%c0_44, %c192_45] : memref<128x576xbf16, #tpu.memory_space<vmem>>, vector<128x64xbf16>
    tpu.vector_store %arg18[%c0_44, %c192_45], %30 {strides = array<i32>} : memref<128x576xbf16, #tpu.memory_space<vmem>>, vector<128x64xbf16>,
    %c0_46 = arith.constant 0 : index
    %c0_47 = arith.constant 0 : index
    %c1_48 = arith.constant 1 : index
    %c1_49 = arith.constant 1 : index
    %c0_50 = arith.constant 0 : index
    %32 = vector.load %arg1[%c0_46, %c0_47, %c1_48, %c1_49, %c0_50] : memref<2x2x10x10x64xf32, #tpu.memory_space<vmem>>, vector<2x2x8x8x64xf32>
    %33 = vector.shape_cast %32 : vector<2x2x8x8x64xf32> to vector<256x64xf32>
    %34 = arith.truncf %33 : vector<256x64xf32> to vector<256x64xbf16>
    %c0_51 = arith.constant 0 : index
    %c256 = arith.constant 256 : index
    %35 = vector.load %arg16[%c0_51, %c256] : memref<256x576xbf16, #tpu.memory_space<vmem>>, vector<256x64xbf16>
    tpu.vector_store %arg16[%c0_51, %c256], %34 {strides = array<i32>} : memref<256x576xbf16, #tpu.memory_space<vmem>>, vector<256x64xbf16>,
    %c0_52 = arith.constant 0 : index
    %c1_53 = arith.constant 1 : index
    %c1_54 = arith.constant 1 : index
    %c0_55 = arith.constant 0 : index
    %36 = vector.load %arg2[%c0_52, %c1_53, %c1_54, %c0_55] : memref<2x10x10x64xf32, #tpu.memory_space<vmem>>, vector<2x8x8x64xf32>
    %37 = vector.shape_cast %36 : vector<2x8x8x64xf32> to vector<128x64xf32>
    %38 = arith.truncf %37 : vector<128x64xf32> to vector<128x64xbf16>
    %c0_56 = arith.constant 0 : index
    %c256_57 = arith.constant 256 : index
    %39 = vector.load %arg18[%c0_56, %c256_57] : memref<128x576xbf16, #tpu.memory_space<vmem>>, vector<128x64xbf16>
    tpu.vector_store %arg18[%c0_56, %c256_57], %38 {strides = array<i32>} : memref<128x576xbf16, #tpu.memory_space<vmem>>, vector<128x64xbf16>,
    %c0_58 = arith.constant 0 : index
    %c0_59 = arith.constant 0 : index
    %c1_60 = arith.constant 1 : index
    %c2_61 = arith.constant 2 : index
    %c0_62 = arith.constant 0 : index
    %40 = vector.load %arg1[%c0_58, %c0_59, %c1_60, %c2_61, %c0_62] : memref<2x2x10x10x64xf32, #tpu.memory_space<vmem>>, vector<2x2x8x8x64xf32>
    %41 = vector.shape_cast %40 : vector<2x2x8x8x64xf32> to vector<256x64xf32>
    %42 = arith.truncf %41 : vector<256x64xf32> to vector<256x64xbf16>
    %c0_63 = arith.constant 0 : index
    %c320 = arith.constant 320 : index
    %43 = vector.load %arg16[%c0_63, %c320] : memref<256x576xbf16, #tpu.memory_space<vmem>>, vector<256x64xbf16>
    tpu.vector_store %arg16[%c0_63, %c320], %42 {strides = array<i32>} : memref<256x576xbf16, #tpu.memory_space<vmem>>, vector<256x64xbf16>,
    %c0_64 = arith.constant 0 : index
    %c1_65 = arith.constant 1 : index
    %c2_66 = arith.constant 2 : index
    %c0_67 = arith.constant 0 : index
    %44 = vector.load %arg2[%c0_64, %c1_65, %c2_66, %c0_67] : memref<2x10x10x64xf32, #tpu.memory_space<vmem>>, vector<2x8x8x64xf32>
    %45 = vector.shape_cast %44 : vector<2x8x8x64xf32> to vector<128x64xf32>
    %46 = arith.truncf %45 : vector<128x64xf32> to vector<128x64xbf16>
    %c0_68 = arith.constant 0 : index
    %c320_69 = arith.constant 320 : index
    %47 = vector.load %arg18[%c0_68, %c320_69] : memref<128x576xbf16, #tpu.memory_space<vmem>>, vector<128x64xbf16>
    tpu.vector_store %arg18[%c0_68, %c320_69], %46 {strides = array<i32>} : memref<128x576xbf16, #tpu.memory_space<vmem>>, vector<128x64xbf16>,
    %c0_70 = arith.constant 0 : index
    %c0_71 = arith.constant 0 : index
    %c2_72 = arith.constant 2 : index
    %c0_73 = arith.constant 0 : index
    %c0_74 = arith.constant 0 : index
    %48 = vector.load %arg1[%c0_70, %c0_71, %c2_72, %c0_73, %c0_74] : memref<2x2x10x10x64xf32, #tpu.memory_space<vmem>>, vector<2x2x8x8x64xf32>
    %49 = vector.shape_cast %48 : vector<2x2x8x8x64xf32> to vector<256x64xf32>
    %50 = arith.truncf %49 : vector<256x64xf32> to vector<256x64xbf16>
    %c0_75 = arith.constant 0 : index
    %c384 = arith.constant 384 : index
    %51 = vector.load %arg16[%c0_75, %c384] : memref<256x576xbf16, #tpu.memory_space<vmem>>, vector<256x64xbf16>
    tpu.vector_store %arg16[%c0_75, %c384], %50 {strides = array<i32>} : memref<256x576xbf16, #tpu.memory_space<vmem>>, vector<256x64xbf16>,
    %c0_76 = arith.constant 0 : index
    %c2_77 = arith.constant 2 : index
    %c0_78 = arith.constant 0 : index
    %c0_79 = arith.constant 0 : index
    %52 = vector.load %arg2[%c0_76, %c2_77, %c0_78, %c0_79] : memref<2x10x10x64xf32, #tpu.memory_space<vmem>>, vector<2x8x8x64xf32>
    %53 = vector.shape_cast %52 : vector<2x8x8x64xf32> to vector<128x64xf32>
    %54 = arith.truncf %53 : vector<128x64xf32> to vector<128x64xbf16>
    %c0_80 = arith.constant 0 : index
    %c384_81 = arith.constant 384 : index
    %55 = vector.load %arg18[%c0_80, %c384_81] : memref<128x576xbf16, #tpu.memory_space<vmem>>, vector<128x64xbf16>
    tpu.vector_store %arg18[%c0_80, %c384_81], %54 {strides = array<i32>} : memref<128x576xbf16, #tpu.memory_space<vmem>>, vector<128x64xbf16>,
    %c0_82 = arith.constant 0 : index
    %c0_83 = arith.constant 0 : index
    %c2_84 = arith.constant 2 : index
    %c1_85 = arith.constant 1 : index
    %c0_86 = arith.constant 0 : index
    %56 = vector.load %arg1[%c0_82, %c0_83, %c2_84, %c1_85, %c0_86] : memref<2x2x10x10x64xf32, #tpu.memory_space<vmem>>, vector<2x2x8x8x64xf32>
    %57 = vector.shape_cast %56 : vector<2x2x8x8x64xf32> to vector<256x64xf32>
    %58 = arith.truncf %57 : vector<256x64xf32> to vector<256x64xbf16>
    %c0_87 = arith.constant 0 : index
    %c448 = arith.constant 448 : index
    %59 = vector.load %arg16[%c0_87, %c448] : memref<256x576xbf16, #tpu.memory_space<vmem>>, vector<256x64xbf16>
    tpu.vector_store %arg16[%c0_87, %c448], %58 {strides = array<i32>} : memref<256x576xbf16, #tpu.memory_space<vmem>>, vector<256x64xbf16>,
    %c0_88 = arith.constant 0 : index
    %c2_89 = arith.constant 2 : index
    %c1_90 = arith.constant 1 : index
    %c0_91 = arith.constant 0 : index
    %60 = vector.load %arg2[%c0_88, %c2_89, %c1_90, %c0_91] : memref<2x10x10x64xf32, #tpu.memory_space<vmem>>, vector<2x8x8x64xf32>
    %61 = vector.shape_cast %60 : vector<2x8x8x64xf32> to vector<128x64xf32>
    %62 = arith.truncf %61 : vector<128x64xf32> to vector<128x64xbf16>
    %c0_92 = arith.constant 0 : index
    %c448_93 = arith.constant 448 : index
    %63 = vector.load %arg18[%c0_92, %c448_93] : memref<128x576xbf16, #tpu.memory_space<vmem>>, vector<128x64xbf16>
    tpu.vector_store %arg18[%c0_92, %c448_93], %62 {strides = array<i32>} : memref<128x576xbf16, #tpu.memory_space<vmem>>, vector<128x64xbf16>,
    %c0_94 = arith.constant 0 : index
    %c0_95 = arith.constant 0 : index
    %c2_96 = arith.constant 2 : index
    %c2_97 = arith.constant 2 : index
    %c0_98 = arith.constant 0 : index
    %64 = vector.load %arg1[%c0_94, %c0_95, %c2_96, %c2_97, %c0_98] : memref<2x2x10x10x64xf32, #tpu.memory_space<vmem>>, vector<2x2x8x8x64xf32>
    %65 = vector.shape_cast %64 : vector<2x2x8x8x64xf32> to vector<256x64xf32>
    %66 = arith.truncf %65 : vector<256x64xf32> to vector<256x64xbf16>
    %c0_99 = arith.constant 0 : index
    %c512 = arith.constant 512 : index
    %67 = vector.load %arg16[%c0_99, %c512] : memref<256x576xbf16, #tpu.memory_space<vmem>>, vector<256x64xbf16>
    tpu.vector_store %arg16[%c0_99, %c512], %66 {strides = array<i32>} : memref<256x576xbf16, #tpu.memory_space<vmem>>, vector<256x64xbf16>,
    %c0_100 = arith.constant 0 : index
    %c2_101 = arith.constant 2 : index
    %c2_102 = arith.constant 2 : index
    %c0_103 = arith.constant 0 : index
    %68 = vector.load %arg2[%c0_100, %c2_101, %c2_102, %c0_103] : memref<2x10x10x64xf32, #tpu.memory_space<vmem>>, vector<2x8x8x64xf32>
    %69 = vector.shape_cast %68 : vector<2x8x8x64xf32> to vector<128x64xf32>
    %70 = arith.truncf %69 : vector<128x64xf32> to vector<128x64xbf16>
    %c0_104 = arith.constant 0 : index
    %c512_105 = arith.constant 512 : index
    %71 = vector.load %arg18[%c0_104, %c512_105] : memref<128x576xbf16, #tpu.memory_space<vmem>>, vector<128x64xbf16>
    tpu.vector_store %arg18[%c0_104, %c512_105], %70 {strides = array<i32>} : memref<128x576xbf16, #tpu.memory_space<vmem>>, vector<128x64xbf16>,
    %c0_106 = arith.constant 0 : index
    %c0_107 = arith.constant 0 : index
    %72 = vector.load %arg16[%c0_106, %c0_107] : memref<256x576xbf16, #tpu.memory_space<vmem>>, vector<256x576xbf16>
    %c0_108 = arith.constant 0 : index
    %c0_109 = arith.constant 0 : index
    %73 = vector.load %arg4[%c0_108, %c0_109] : memref<576x64xbf16, #tpu.memory_space<vmem>>, vector<576x64xbf16>
    %cst = arith.constant dense<0.000000e+00> : vector<256x64xf32>
    %74 = tpu.matmul %72, %73, %cst {dimension_numbers = #tpu.dot_dimension_numbers<[1], [0], [0], [1], [0, 0, 1, 1], [], []>} : vector<256x576xbf16>, vector<576x64xbf16>, vector<256x64xf32> -> vector<256x64xf32>
    %c0_110 = arith.constant 0 : index
    %c0_111 = arith.constant 0 : index
    %75 = vector.load %arg5[%c0_110, %c0_111] : memref<1x64xf32, #tpu.memory_space<vmem>>, vector<1x64xf32>
    %76 = vector.broadcast %75 : vector<1x64xf32> to vector<256x64xf32>
    %77 = arith.mulf %74, %76 : vector<256x64xf32>
    %c0_112 = arith.constant 0 : index
    %c0_113 = arith.constant 0 : index
    %78 = vector.load %arg6[%c0_112, %c0_113] : memref<1x64xf32, #tpu.memory_space<vmem>>, vector<1x64xf32>
    %79 = vector.broadcast %78 : vector<1x64xf32> to vector<256x64xf32>
    %80 = arith.addf %77, %79 : vector<256x64xf32>
    %81 = math.tanh %80 : vector<256x64xf32>
    %cst_114 = arith.constant 0.000000e+00 : f32
    %82 = vector.broadcast %cst_114 : f32 to vector<2x2x10x64xf32>
    %cst_115 = arith.constant 0.000000e+00 : f32
    %83 = vector.broadcast %cst_115 : f32 to vector<2x2x8x64xf32>
    %c0_116 = arith.constant 0 : index
    %c0_117 = arith.constant 0 : index
    %c0_118 = arith.constant 0 : index
    %c0_119 = arith.constant 0 : index
    %c0_120 = arith.constant 0 : index
    %84 = vector.load %arg20[%c0_116, %c0_117, %c0_118, %c0_119, %c0_120] : memref<2x2x10x10x64xf32, #tpu.memory_space<vmem>>, vector<2x2x1x10x64xf32>
    %85 = vector.shape_cast %84 : vector<2x2x1x10x64xf32> to vector<2x2x10x64xf32>
    %86 = vector.shape_cast %82 : vector<2x2x10x64xf32> to vector<2x2x1x10x64xf32>
    tpu.vector_store %arg20[%c0_116, %c0_117, %c0_118, %c0_119, %c0_120], %86 {strides = array<i32>} : memref<2x2x10x10x64xf32, #tpu.memory_space<vmem>>, vector<2x2x1x10x64xf32>,
    %c0_121 = arith.constant 0 : index
    %c0_122 = arith.constant 0 : index
    %c9 = arith.constant 9 : index
    %c0_123 = arith.constant 0 : index
    %c0_124 = arith.constant 0 : index
    %87 = vector.load %arg20[%c0_121, %c0_122, %c9, %c0_123, %c0_124] : memref<2x2x10x10x64xf32, #tpu.memory_space<vmem>>, vector<2x2x1x10x64xf32>
    %88 = vector.shape_cast %87 : vector<2x2x1x10x64xf32> to vector<2x2x10x64xf32>
    %89 = vector.shape_cast %82 : vector<2x2x10x64xf32> to vector<2x2x1x10x64xf32>
    tpu.vector_store %arg20[%c0_121, %c0_122, %c9, %c0_123, %c0_124], %89 {strides = array<i32>} : memref<2x2x10x10x64xf32, #tpu.memory_space<vmem>>, vector<2x2x1x10x64xf32>,
    %c0_125 = arith.constant 0 : index
    %c0_126 = arith.constant 0 : index
    %c1_127 = arith.constant 1 : index
    %c0_128 = arith.constant 0 : index
    %c0_129 = arith.constant 0 : index
    %90 = vector.load %arg20[%c0_125, %c0_126, %c1_127, %c0_128, %c0_129] : memref<2x2x10x10x64xf32, #tpu.memory_space<vmem>>, vector<2x2x8x1x64xf32>
    %91 = vector.shape_cast %90 : vector<2x2x8x1x64xf32> to vector<2x2x8x64xf32>
    %92 = vector.shape_cast %83 : vector<2x2x8x64xf32> to vector<2x2x8x1x64xf32>
    tpu.vector_store %arg20[%c0_125, %c0_126, %c1_127, %c0_128, %c0_129], %92 {strides = array<i32>} : memref<2x2x10x10x64xf32, #tpu.memory_space<vmem>>, vector<2x2x8x1x64xf32>,
    %c0_130 = arith.constant 0 : index
    %c0_131 = arith.constant 0 : index
    %c1_132 = arith.constant 1 : index
    %c9_133 = arith.constant 9 : index
    %c0_134 = arith.constant 0 : index
    %93 = vector.load %arg20[%c0_130, %c0_131, %c1_132, %c9_133, %c0_134] : memref<2x2x10x10x64xf32, #tpu.memory_space<vmem>>, vector<2x2x8x1x64xf32>
    %94 = vector.shape_cast %93 : vector<2x2x8x1x64xf32> to vector<2x2x8x64xf32>
    %95 = vector.shape_cast %83 : vector<2x2x8x64xf32> to vector<2x2x8x1x64xf32>
    tpu.vector_store %arg20[%c0_130, %c0_131, %c1_132, %c9_133, %c0_134], %95 {strides = array<i32>} : memref<2x2x10x10x64xf32, #tpu.memory_space<vmem>>, vector<2x2x8x1x64xf32>,
    %96 = vector.shape_cast %81 : vector<256x64xf32> to vector<2x2x8x8x64xf32>
    %c0_135 = arith.constant 0 : index
    %c0_136 = arith.constant 0 : index
    %c1_137 = arith.constant 1 : index
    %c1_138 = arith.constant 1 : index
    %c0_139 = arith.constant 0 : index
    %97 = vector.load %arg20[%c0_135, %c0_136, %c1_137, %c1_138, %c0_139] : memref<2x2x10x10x64xf32, #tpu.memory_space<vmem>>, vector<2x2x8x8x64xf32>
    tpu.vector_store %arg20[%c0_135, %c0_136, %c1_137, %c1_138, %c0_139], %96 {strides = array<i32>} : memref<2x2x10x10x64xf32, #tpu.memory_space<vmem>>, vector<2x2x8x8x64xf32>,
    %c0_140 = arith.constant 0 : index
    %c0_141 = arith.constant 0 : index
    %c0_142 = arith.constant 0 : index
    %c0_143 = arith.constant 0 : index
    %c0_144 = arith.constant 0 : index
    %98 = vector.load %arg20[%c0_140, %c0_141, %c0_142, %c0_143, %c0_144] : memref<2x2x10x10x64xf32, #tpu.memory_space<vmem>>, vector<2x2x8x8x64xf32>
    %99 = vector.shape_cast %98 : vector<2x2x8x8x64xf32> to vector<256x64xf32>
    %100 = arith.truncf %99 : vector<256x64xf32> to vector<256x64xbf16>
    %c0_145 = arith.constant 0 : index
    %c0_146 = arith.constant 0 : index
    %101 = vector.load %arg17[%c0_145, %c0_146] : memref<256x576xbf16, #tpu.memory_space<vmem>>, vector<256x64xbf16>
    tpu.vector_store %arg17[%c0_145, %c0_146], %100 {strides = array<i32>} : memref<256x576xbf16, #tpu.memory_space<vmem>>, vector<256x64xbf16>,
    %c0_147 = arith.constant 0 : index
    %c0_148 = arith.constant 0 : index
    %c0_149 = arith.constant 0 : index
    %c1_150 = arith.constant 1 : index
    %c0_151 = arith.constant 0 : index
    %102 = vector.load %arg20[%c0_147, %c0_148, %c0_149, %c1_150, %c0_151] : memref<2x2x10x10x64xf32, #tpu.memory_space<vmem>>, vector<2x2x8x8x64xf32>
    %103 = vector.shape_cast %102 : vector<2x2x8x8x64xf32> to vector<256x64xf32>
    %104 = arith.truncf %103 : vector<256x64xf32> to vector<256x64xbf16>
    %c0_152 = arith.constant 0 : index
    %c64_153 = arith.constant 64 : index
    %105 = vector.load %arg17[%c0_152, %c64_153] : memref<256x576xbf16, #tpu.memory_space<vmem>>, vector<256x64xbf16>
    tpu.vector_store %arg17[%c0_152, %c64_153], %104 {strides = array<i32>} : memref<256x576xbf16, #tpu.memory_space<vmem>>, vector<256x64xbf16>,
    %c0_154 = arith.constant 0 : index
    %c0_155 = arith.constant 0 : index
    %c0_156 = arith.constant 0 : index
    %c2_157 = arith.constant 2 : index
    %c0_158 = arith.constant 0 : index
    %106 = vector.load %arg20[%c0_154, %c0_155, %c0_156, %c2_157, %c0_158] : memref<2x2x10x10x64xf32, #tpu.memory_space<vmem>>, vector<2x2x8x8x64xf32>
    %107 = vector.shape_cast %106 : vector<2x2x8x8x64xf32> to vector<256x64xf32>
    %108 = arith.truncf %107 : vector<256x64xf32> to vector<256x64xbf16>
    %c0_159 = arith.constant 0 : index
    %c128_160 = arith.constant 128 : index
    %109 = vector.load %arg17[%c0_159, %c128_160] : memref<256x576xbf16, #tpu.memory_space<vmem>>, vector<256x64xbf16>
    tpu.vector_store %arg17[%c0_159, %c128_160], %108 {strides = array<i32>} : memref<256x576xbf16, #tpu.memory_space<vmem>>, vector<256x64xbf16>,
    %c0_161 = arith.constant 0 : index
    %c0_162 = arith.constant 0 : index
    %c1_163 = arith.constant 1 : index
    %c0_164 = arith.constant 0 : index
    %c0_165 = arith.constant 0 : index
    %110 = vector.load %arg20[%c0_161, %c0_162, %c1_163, %c0_164, %c0_165] : memref<2x2x10x10x64xf32, #tpu.memory_space<vmem>>, vector<2x2x8x8x64xf32>
    %111 = vector.shape_cast %110 : vector<2x2x8x8x64xf32> to vector<256x64xf32>
    %112 = arith.truncf %111 : vector<256x64xf32> to vector<256x64xbf16>
    %c0_166 = arith.constant 0 : index
    %c192_167 = arith.constant 192 : index
    %113 = vector.load %arg17[%c0_166, %c192_167] : memref<256x576xbf16, #tpu.memory_space<vmem>>, vector<256x64xbf16>
    tpu.vector_store %arg17[%c0_166, %c192_167], %112 {strides = array<i32>} : memref<256x576xbf16, #tpu.memory_space<vmem>>, vector<256x64xbf16>,
    %c0_168 = arith.constant 0 : index
    %c0_169 = arith.constant 0 : index
    %c1_170 = arith.constant 1 : index
    %c1_171 = arith.constant 1 : index
    %c0_172 = arith.constant 0 : index
    %114 = vector.load %arg20[%c0_168, %c0_169, %c1_170, %c1_171, %c0_172] : memref<2x2x10x10x64xf32, #tpu.memory_space<vmem>>, vector<2x2x8x8x64xf32>
    %115 = vector.shape_cast %114 : vector<2x2x8x8x64xf32> to vector<256x64xf32>
    %116 = arith.truncf %115 : vector<256x64xf32> to vector<256x64xbf16>
    %c0_173 = arith.constant 0 : index
    %c256_174 = arith.constant 256 : index
    %117 = vector.load %arg17[%c0_173, %c256_174] : memref<256x576xbf16, #tpu.memory_space<vmem>>, vector<256x64xbf16>
    tpu.vector_store %arg17[%c0_173, %c256_174], %116 {strides = array<i32>} : memref<256x576xbf16, #tpu.memory_space<vmem>>, vector<256x64xbf16>,
    %c0_175 = arith.constant 0 : index
    %c0_176 = arith.constant 0 : index
    %c1_177 = arith.constant 1 : index
    %c2_178 = arith.constant 2 : index
    %c0_179 = arith.constant 0 : index
    %118 = vector.load %arg20[%c0_175, %c0_176, %c1_177, %c2_178, %c0_179] : memref<2x2x10x10x64xf32, #tpu.memory_space<vmem>>, vector<2x2x8x8x64xf32>
    %119 = vector.shape_cast %118 : vector<2x2x8x8x64xf32> to vector<256x64xf32>
    %120 = arith.truncf %119 : vector<256x64xf32> to vector<256x64xbf16>
    %c0_180 = arith.constant 0 : index
    %c320_181 = arith.constant 320 : index
    %121 = vector.load %arg17[%c0_180, %c320_181] : memref<256x576xbf16, #tpu.memory_space<vmem>>, vector<256x64xbf16>
    tpu.vector_store %arg17[%c0_180, %c320_181], %120 {strides = array<i32>} : memref<256x576xbf16, #tpu.memory_space<vmem>>, vector<256x64xbf16>,
    %c0_182 = arith.constant 0 : index
    %c0_183 = arith.constant 0 : index
    %c2_184 = arith.constant 2 : index
    %c0_185 = arith.constant 0 : index
    %c0_186 = arith.constant 0 : index
    %122 = vector.load %arg20[%c0_182, %c0_183, %c2_184, %c0_185, %c0_186] : memref<2x2x10x10x64xf32, #tpu.memory_space<vmem>>, vector<2x2x8x8x64xf32>
    %123 = vector.shape_cast %122 : vector<2x2x8x8x64xf32> to vector<256x64xf32>
    %124 = arith.truncf %123 : vector<256x64xf32> to vector<256x64xbf16>
    %c0_187 = arith.constant 0 : index
    %c384_188 = arith.constant 384 : index
    %125 = vector.load %arg17[%c0_187, %c384_188] : memref<256x576xbf16, #tpu.memory_space<vmem>>, vector<256x64xbf16>
    tpu.vector_store %arg17[%c0_187, %c384_188], %124 {strides = array<i32>} : memref<256x576xbf16, #tpu.memory_space<vmem>>, vector<256x64xbf16>,
    %c0_189 = arith.constant 0 : index
    %c0_190 = arith.constant 0 : index
    %c2_191 = arith.constant 2 : index
    %c1_192 = arith.constant 1 : index
    %c0_193 = arith.constant 0 : index
    %126 = vector.load %arg20[%c0_189, %c0_190, %c2_191, %c1_192, %c0_193] : memref<2x2x10x10x64xf32, #tpu.memory_space<vmem>>, vector<2x2x8x8x64xf32>
    %127 = vector.shape_cast %126 : vector<2x2x8x8x64xf32> to vector<256x64xf32>
    %128 = arith.truncf %127 : vector<256x64xf32> to vector<256x64xbf16>
    %c0_194 = arith.constant 0 : index
    %c448_195 = arith.constant 448 : index
    %129 = vector.load %arg17[%c0_194, %c448_195] : memref<256x576xbf16, #tpu.memory_space<vmem>>, vector<256x64xbf16>
    tpu.vector_store %arg17[%c0_194, %c448_195], %128 {strides = array<i32>} : memref<256x576xbf16, #tpu.memory_space<vmem>>, vector<256x64xbf16>,
    %c0_196 = arith.constant 0 : index
    %c0_197 = arith.constant 0 : index
    %c2_198 = arith.constant 2 : index
    %c2_199 = arith.constant 2 : index
    %c0_200 = arith.constant 0 : index
    %130 = vector.load %arg20[%c0_196, %c0_197, %c2_198, %c2_199, %c0_200] : memref<2x2x10x10x64xf32, #tpu.memory_space<vmem>>, vector<2x2x8x8x64xf32>
    %131 = vector.shape_cast %130 : vector<2x2x8x8x64xf32> to vector<256x64xf32>
    %132 = arith.truncf %131 : vector<256x64xf32> to vector<256x64xbf16>
    %c0_201 = arith.constant 0 : index
    %c512_202 = arith.constant 512 : index
    %133 = vector.load %arg17[%c0_201, %c512_202] : memref<256x576xbf16, #tpu.memory_space<vmem>>, vector<256x64xbf16>
    tpu.vector_store %arg17[%c0_201, %c512_202], %132 {strides = array<i32>} : memref<256x576xbf16, #tpu.memory_space<vmem>>, vector<256x64xbf16>,
    %c0_203 = arith.constant 0 : index
    %c0_204 = arith.constant 0 : index
    %134 = vector.load %arg17[%c0_203, %c0_204] : memref<256x576xbf16, #tpu.memory_space<vmem>>, vector<256x576xbf16>
    %c0_205 = arith.constant 0 : index
    %c0_206 = arith.constant 0 : index
    %135 = vector.load %arg7[%c0_205, %c0_206] : memref<576x64xbf16, #tpu.memory_space<vmem>>, vector<576x64xbf16>
    %cst_207 = arith.constant dense<0.000000e+00> : vector<256x64xf32>
    %136 = tpu.matmul %134, %135, %cst_207 {dimension_numbers = #tpu.dot_dimension_numbers<[1], [0], [0], [1], [0, 0, 1, 1], [], []>} : vector<256x576xbf16>, vector<576x64xbf16>, vector<256x64xf32> -> vector<256x64xf32>
    %137 = vector.shape_cast %136 : vector<256x64xf32> to vector<2x128x64xf32>
    %c0_208 = arith.constant 0 : index
    %c0_209 = arith.constant 0 : index
    %138 = vector.load %arg18[%c0_208, %c0_209] : memref<128x576xbf16, #tpu.memory_space<vmem>>, vector<128x576xbf16>
    %c0_210 = arith.constant 0 : index
    %c0_211 = arith.constant 0 : index
    %139 = vector.load %arg8[%c0_210, %c0_211] : memref<576x64xbf16, #tpu.memory_space<vmem>>, vector<576x64xbf16>
    %cst_212 = arith.constant dense<0.000000e+00> : vector<128x64xf32>
    %140 = tpu.matmul %138, %139, %cst_212 {dimension_numbers = #tpu.dot_dimension_numbers<[1], [0], [0], [1], [0, 0, 1, 1], [], []>} : vector<128x576xbf16>, vector<576x64xbf16>, vector<128x64xf32> -> vector<128x64xf32>
    %141 = vector.shape_cast %140 : vector<128x64xf32> to vector<1x128x64xf32>
    %142 = vector.broadcast %141 : vector<1x128x64xf32> to vector<2x128x64xf32>
    %143 = arith.addf %137, %142 : vector<2x128x64xf32>
    %c0_213 = arith.constant 0 : index
    %c0_214 = arith.constant 0 : index
    %144 = vector.load %arg9[%c0_213, %c0_214] : memref<1x64xf32, #tpu.memory_space<vmem>>, vector<1x64xf32>
    %145 = vector.shape_cast %144 : vector<1x64xf32> to vector<1x1x64xf32>
    %146 = vector.broadcast %145 : vector<1x1x64xf32> to vector<2x128x64xf32>
    %147 = arith.mulf %143, %146 : vector<2x128x64xf32>
    %c0_215 = arith.constant 0 : index
    %c0_216 = arith.constant 0 : index
    %148 = vector.load %arg10[%c0_215, %c0_216] : memref<1x64xf32, #tpu.memory_space<vmem>>, vector<1x64xf32>
    %149 = vector.shape_cast %148 : vector<1x64xf32> to vector<1x1x64xf32>
    %150 = vector.broadcast %149 : vector<1x1x64xf32> to vector<2x128x64xf32>
    %151 = arith.addf %147, %150 : vector<2x128x64xf32>
    %c0_217 = arith.constant 0 : index
    %152 = memref.load %arg11[%c0_217] : memref<1xf32, #tpu.memory_space<smem>>
    %cst_218 = arith.constant 0.000000e+00 : f32
    %153 = vector.broadcast %cst_218 : f32 to vector<2x128x64xf32>
    %154 = arith.cmpf oge, %151, %153 : vector<2x128x64xf32>
    %155 = vector.broadcast %152 : f32 to vector<2x128x64xf32>
    %156 = arith.mulf %155, %151 : vector<2x128x64xf32>
    %157 = arith.select %154, %151, %156 : vector<2x128x64xi1>, vector<2x128x64xf32>
    %158 = vector.shape_cast %157 : vector<2x128x64xf32> to vector<2x2x8x8x64xf32>
    %c0_219 = arith.constant 0 : index
    %c0_220 = arith.constant 0 : index
    %c1_221 = arith.constant 1 : index
    %c1_222 = arith.constant 1 : index
    %c0_223 = arith.constant 0 : index
    %159 = vector.load %arg21[%c0_219, %c0_220, %c1_221, %c1_222, %c0_223] : memref<2x2x10x10x64xf32, #tpu.memory_space<vmem>>, vector<2x2x8x8x64xf32>
    tpu.vector_store %arg21[%c0_219, %c0_220, %c1_221, %c1_222, %c0_223], %158 {strides = array<i32>} : memref<2x2x10x10x64xf32, #tpu.memory_space<vmem>>, vector<2x2x8x8x64xf32>,
    %c0_224 = arith.constant 0 : index
    %c0_225 = arith.constant 0 : index
    %c1_226 = arith.constant 1 : index
    %c2_227 = arith.constant 2 : index
    %c0_228 = arith.constant 0 : index
    %160 = vector.load %arg21[%c0_224, %c0_225, %c1_226, %c2_227, %c0_228] : memref<2x2x10x10x64xf32, #tpu.memory_space<vmem>>, vector<2x2x8x1x64xf32>
    %161 = vector.shape_cast %160 : vector<2x2x8x1x64xf32> to vector<2x2x8x64xf32>
    %c0_229 = arith.constant 0 : index
    %c0_230 = arith.constant 0 : index
    %c1_231 = arith.constant 1 : index
    %c0_232 = arith.constant 0 : index
    %c0_233 = arith.constant 0 : index
    %162 = vector.load %arg21[%c0_229, %c0_230, %c1_231, %c0_232, %c0_233] : memref<2x2x10x10x64xf32, #tpu.memory_space<vmem>>, vector<2x2x8x1x64xf32>
    %163 = vector.shape_cast %162 : vector<2x2x8x1x64xf32> to vector<2x2x8x64xf32>
    %164 = vector.shape_cast %161 : vector<2x2x8x64xf32> to vector<2x2x8x1x64xf32>
    tpu.vector_store %arg21[%c0_229, %c0_230, %c1_231, %c0_232, %c0_233], %164 {strides = array<i32>} : memref<2x2x10x10x64xf32, #tpu.memory_space<vmem>>, vector<2x2x8x1x64xf32>,
    %c0_234 = arith.constant 0 : index
    %c0_235 = arith.constant 0 : index
    %c1_236 = arith.constant 1 : index
    %c7 = arith.constant 7 : index
    %c0_237 = arith.constant 0 : index
    %165 = vector.load %arg21[%c0_234, %c0_235, %c1_236, %c7, %c0_237] : memref<2x2x10x10x64xf32, #tpu.memory_space<vmem>>, vector<2x2x8x1x64xf32>
    %166 = vector.shape_cast %165 : vector<2x2x8x1x64xf32> to vector<2x2x8x64xf32>
    %c0_238 = arith.constant 0 : index
    %c0_239 = arith.constant 0 : index
    %c1_240 = arith.constant 1 : index
    %c9_241 = arith.constant 9 : index
    %c0_242 = arith.constant 0 : index
    %167 = vector.load %arg21[%c0_238, %c0_239, %c1_240, %c9_241, %c0_242] : memref<2x2x10x10x64xf32, #tpu.memory_space<vmem>>, vector<2x2x8x1x64xf32>
    %168 = vector.shape_cast %167 : vector<2x2x8x1x64xf32> to vector<2x2x8x64xf32>
    %169 = vector.shape_cast %166 : vector<2x2x8x64xf32> to vector<2x2x8x1x64xf32>
    tpu.vector_store %arg21[%c0_238, %c0_239, %c1_240, %c9_241, %c0_242], %169 {strides = array<i32>} : memref<2x2x10x10x64xf32, #tpu.memory_space<vmem>>, vector<2x2x8x1x64xf32>,
    %c0_243 = arith.constant 0 : index
    %c0_244 = arith.constant 0 : index
    %c2_245 = arith.constant 2 : index
    %c0_246 = arith.constant 0 : index
    %c0_247 = arith.constant 0 : index
    %170 = vector.load %arg21[%c0_243, %c0_244, %c2_245, %c0_246, %c0_247] : memref<2x2x10x10x64xf32, #tpu.memory_space<vmem>>, vector<2x2x1x10x64xf32>
    %171 = vector.shape_cast %170 : vector<2x2x1x10x64xf32> to vector<2x2x10x64xf32>
    %c0_248 = arith.constant 0 : index
    %c0_249 = arith.constant 0 : index
    %c0_250 = arith.constant 0 : index
    %c0_251 = arith.constant 0 : index
    %c0_252 = arith.constant 0 : index
    %172 = vector.load %arg21[%c0_248, %c0_249, %c0_250, %c0_251, %c0_252] : memref<2x2x10x10x64xf32, #tpu.memory_space<vmem>>, vector<2x2x1x10x64xf32>
    %173 = vector.shape_cast %172 : vector<2x2x1x10x64xf32> to vector<2x2x10x64xf32>
    %174 = vector.shape_cast %171 : vector<2x2x10x64xf32> to vector<2x2x1x10x64xf32>
    tpu.vector_store %arg21[%c0_248, %c0_249, %c0_250, %c0_251, %c0_252], %174 {strides = array<i32>} : memref<2x2x10x10x64xf32, #tpu.memory_space<vmem>>, vector<2x2x1x10x64xf32>,
    %c0_253 = arith.constant 0 : index
    %c0_254 = arith.constant 0 : index
    %c7_255 = arith.constant 7 : index
    %c0_256 = arith.constant 0 : index
    %c0_257 = arith.constant 0 : index
    %175 = vector.load %arg21[%c0_253, %c0_254, %c7_255, %c0_256, %c0_257] : memref<2x2x10x10x64xf32, #tpu.memory_space<vmem>>, vector<2x2x1x10x64xf32>
    %176 = vector.shape_cast %175 : vector<2x2x1x10x64xf32> to vector<2x2x10x64xf32>
    %c0_258 = arith.constant 0 : index
    %c0_259 = arith.constant 0 : index
    %c9_260 = arith.constant 9 : index
    %c0_261 = arith.constant 0 : index
    %c0_262 = arith.constant 0 : index
    %177 = vector.load %arg21[%c0_258, %c0_259, %c9_260, %c0_261, %c0_262] : memref<2x2x10x10x64xf32, #tpu.memory_space<vmem>>, vector<2x2x1x10x64xf32>
    %178 = vector.shape_cast %177 : vector<2x2x1x10x64xf32> to vector<2x2x10x64xf32>
    %179 = vector.shape_cast %176 : vector<2x2x10x64xf32> to vector<2x2x1x10x64xf32>
    tpu.vector_store %arg21[%c0_258, %c0_259, %c9_260, %c0_261, %c0_262], %179 {strides = array<i32>} : memref<2x2x10x10x64xf32, #tpu.memory_space<vmem>>, vector<2x2x1x10x64xf32>,
    %c1_263 = arith.constant 1 : index
    %c0_264 = arith.constant 0 : index
    %c0_265 = arith.constant 0 : index
    %c0_266 = arith.constant 0 : index
    %c0_267 = arith.constant 0 : index
    %180 = vector.load %arg21[%c1_263, %c0_264, %c0_265, %c0_266, %c0_267] : memref<2x2x10x10x64xf32, #tpu.memory_space<vmem>>, vector<1x2x8x8x64xf32>
    %181 = vector.shape_cast %180 : vector<1x2x8x8x64xf32> to vector<2x8x8x64xf32>
    %182 = vector.shape_cast %181 : vector<2x8x8x64xf32> to vector<128x64xf32>
    %183 = arith.truncf %182 : vector<128x64xf32> to vector<128x64xbf16>
    %c0_268 = arith.constant 0 : index
    %c0_269 = arith.constant 0 : index
    %184 = vector.load %arg19[%c0_268, %c0_269] : memref<128x1728xbf16, #tpu.memory_space<vmem>>, vector<128x64xbf16>
    tpu.vector_store %arg19[%c0_268, %c0_269], %183 {strides = array<i32>} : memref<128x1728xbf16, #tpu.memory_space<vmem>>, vector<128x64xbf16>,
    %c0_270 = arith.constant 0 : index
    %c0_271 = arith.constant 0 : index
    %c0_272 = arith.constant 0 : index
    %c0_273 = arith.constant 0 : index
    %c0_274 = arith.constant 0 : index
    %185 = vector.load %arg21[%c0_270, %c0_271, %c0_272, %c0_273, %c0_274] : memref<2x2x10x10x64xf32, #tpu.memory_space<vmem>>, vector<1x2x8x8x64xf32>
    %186 = vector.shape_cast %185 : vector<1x2x8x8x64xf32> to vector<2x8x8x64xf32>
    %187 = vector.shape_cast %186 : vector<2x8x8x64xf32> to vector<128x64xf32>
    %188 = arith.truncf %187 : vector<128x64xf32> to vector<128x64xbf16>
    %c0_275 = arith.constant 0 : index
    %c576 = arith.constant 576 : index
    %189 = vector.load %arg19[%c0_275, %c576] : memref<128x1728xbf16, #tpu.memory_space<vmem>>, vector<128x64xbf16>
    tpu.vector_store %arg19[%c0_275, %c576], %188 {strides = array<i32>} : memref<128x1728xbf16, #tpu.memory_space<vmem>>, vector<128x64xbf16>,
    %c0_276 = arith.constant 0 : index
    %c0_277 = arith.constant 0 : index
    %c0_278 = arith.constant 0 : index
    %c0_279 = arith.constant 0 : index
    %190 = vector.load %arg3[%c0_276, %c0_277, %c0_278, %c0_279] : memref<2x10x10x64xf32, #tpu.memory_space<vmem>>, vector<2x8x8x64xf32>
    %191 = vector.shape_cast %190 : vector<2x8x8x64xf32> to vector<128x64xf32>
    %192 = arith.truncf %191 : vector<128x64xf32> to vector<128x64xbf16>
    %c0_280 = arith.constant 0 : index
    %c1152 = arith.constant 1152 : index
    %193 = vector.load %arg19[%c0_280, %c1152] : memref<128x1728xbf16, #tpu.memory_space<vmem>>, vector<128x64xbf16>
    tpu.vector_store %arg19[%c0_280, %c1152], %192 {strides = array<i32>} : memref<128x1728xbf16, #tpu.memory_space<vmem>>, vector<128x64xbf16>,
    %c1_281 = arith.constant 1 : index
    %c0_282 = arith.constant 0 : index
    %c0_283 = arith.constant 0 : index
    %c1_284 = arith.constant 1 : index
    %c0_285 = arith.constant 0 : index
    %194 = vector.load %arg21[%c1_281, %c0_282, %c0_283, %c1_284, %c0_285] : memref<2x2x10x10x64xf32, #tpu.memory_space<vmem>>, vector<1x2x8x8x64xf32>
    %195 = vector.shape_cast %194 : vector<1x2x8x8x64xf32> to vector<2x8x8x64xf32>
    %196 = vector.shape_cast %195 : vector<2x8x8x64xf32> to vector<128x64xf32>
    %197 = arith.truncf %196 : vector<128x64xf32> to vector<128x64xbf16>
    %c0_286 = arith.constant 0 : index
    %c64_287 = arith.constant 64 : index
    %198 = vector.load %arg19[%c0_286, %c64_287] : memref<128x1728xbf16, #tpu.memory_space<vmem>>, vector<128x64xbf16>
    tpu.vector_store %arg19[%c0_286, %c64_287], %197 {strides = array<i32>} : memref<128x1728xbf16, #tpu.memory_space<vmem>>, vector<128x64xbf16>,
    %c0_288 = arith.constant 0 : index
    %c0_289 = arith.constant 0 : index
    %c0_290 = arith.constant 0 : index
    %c1_291 = arith.constant 1 : index
    %c0_292 = arith.constant 0 : index
    %199 = vector.load %arg21[%c0_288, %c0_289, %c0_290, %c1_291, %c0_292] : memref<2x2x10x10x64xf32, #tpu.memory_space<vmem>>, vector<1x2x8x8x64xf32>
    %200 = vector.shape_cast %199 : vector<1x2x8x8x64xf32> to vector<2x8x8x64xf32>
    %201 = vector.shape_cast %200 : vector<2x8x8x64xf32> to vector<128x64xf32>
    %202 = arith.truncf %201 : vector<128x64xf32> to vector<128x64xbf16>
    %c0_293 = arith.constant 0 : index
    %c640 = arith.constant 640 : index
    %203 = vector.load %arg19[%c0_293, %c640] : memref<128x1728xbf16, #tpu.memory_space<vmem>>, vector<128x64xbf16>
    tpu.vector_store %arg19[%c0_293, %c640], %202 {strides = array<i32>} : memref<128x1728xbf16, #tpu.memory_space<vmem>>, vector<128x64xbf16>,
    %c0_294 = arith.constant 0 : index
    %c0_295 = arith.constant 0 : index
    %c1_296 = arith.constant 1 : index
    %c0_297 = arith.constant 0 : index
    %204 = vector.load %arg3[%c0_294, %c0_295, %c1_296, %c0_297] : memref<2x10x10x64xf32, #tpu.memory_space<vmem>>, vector<2x8x8x64xf32>
    %205 = vector.shape_cast %204 : vector<2x8x8x64xf32> to vector<128x64xf32>
    %206 = arith.truncf %205 : vector<128x64xf32> to vector<128x64xbf16>
    %c0_298 = arith.constant 0 : index
    %c1216 = arith.constant 1216 : index
    %207 = vector.load %arg19[%c0_298, %c1216] : memref<128x1728xbf16, #tpu.memory_space<vmem>>, vector<128x64xbf16>
    tpu.vector_store %arg19[%c0_298, %c1216], %206 {strides = array<i32>} : memref<128x1728xbf16, #tpu.memory_space<vmem>>, vector<128x64xbf16>,
    %c1_299 = arith.constant 1 : index
    %c0_300 = arith.constant 0 : index
    %c0_301 = arith.constant 0 : index
    %c2_302 = arith.constant 2 : index
    %c0_303 = arith.constant 0 : index
    %208 = vector.load %arg21[%c1_299, %c0_300, %c0_301, %c2_302, %c0_303] : memref<2x2x10x10x64xf32, #tpu.memory_space<vmem>>, vector<1x2x8x8x64xf32>
    %209 = vector.shape_cast %208 : vector<1x2x8x8x64xf32> to vector<2x8x8x64xf32>
    %210 = vector.shape_cast %209 : vector<2x8x8x64xf32> to vector<128x64xf32>
    %211 = arith.truncf %210 : vector<128x64xf32> to vector<128x64xbf16>
    %c0_304 = arith.constant 0 : index
    %c128_305 = arith.constant 128 : index
    %212 = vector.load %arg19[%c0_304, %c128_305] : memref<128x1728xbf16, #tpu.memory_space<vmem>>, vector<128x64xbf16>
    tpu.vector_store %arg19[%c0_304, %c128_305], %211 {strides = array<i32>} : memref<128x1728xbf16, #tpu.memory_space<vmem>>, vector<128x64xbf16>,
    %c0_306 = arith.constant 0 : index
    %c0_307 = arith.constant 0 : index
    %c0_308 = arith.constant 0 : index
    %c2_309 = arith.constant 2 : index
    %c0_310 = arith.constant 0 : index
    %213 = vector.load %arg21[%c0_306, %c0_307, %c0_308, %c2_309, %c0_310] : memref<2x2x10x10x64xf32, #tpu.memory_space<vmem>>, vector<1x2x8x8x64xf32>
    %214 = vector.shape_cast %213 : vector<1x2x8x8x64xf32> to vector<2x8x8x64xf32>
    %215 = vector.shape_cast %214 : vector<2x8x8x64xf32> to vector<128x64xf32>
    %216 = arith.truncf %215 : vector<128x64xf32> to vector<128x64xbf16>
    %c0_311 = arith.constant 0 : index
    %c704 = arith.constant 704 : index
    %217 = vector.load %arg19[%c0_311, %c704] : memref<128x1728xbf16, #tpu.memory_space<vmem>>, vector<128x64xbf16>
    tpu.vector_store %arg19[%c0_311, %c704], %216 {strides = array<i32>} : memref<128x1728xbf16, #tpu.memory_space<vmem>>, vector<128x64xbf16>,
    %c0_312 = arith.constant 0 : index
    %c0_313 = arith.constant 0 : index
    %c2_314 = arith.constant 2 : index
    %c0_315 = arith.constant 0 : index
    %218 = vector.load %arg3[%c0_312, %c0_313, %c2_314, %c0_315] : memref<2x10x10x64xf32, #tpu.memory_space<vmem>>, vector<2x8x8x64xf32>
    %219 = vector.shape_cast %218 : vector<2x8x8x64xf32> to vector<128x64xf32>
    %220 = arith.truncf %219 : vector<128x64xf32> to vector<128x64xbf16>
    %c0_316 = arith.constant 0 : index
    %c1280 = arith.constant 1280 : index
    %221 = vector.load %arg19[%c0_316, %c1280] : memref<128x1728xbf16, #tpu.memory_space<vmem>>, vector<128x64xbf16>
    tpu.vector_store %arg19[%c0_316, %c1280], %220 {strides = array<i32>} : memref<128x1728xbf16, #tpu.memory_space<vmem>>, vector<128x64xbf16>,
    %c1_317 = arith.constant 1 : index
    %c0_318 = arith.constant 0 : index
    %c1_319 = arith.constant 1 : index
    %c0_320 = arith.constant 0 : index
    %c0_321 = arith.constant 0 : index
    %222 = vector.load %arg21[%c1_317, %c0_318, %c1_319, %c0_320, %c0_321] : memref<2x2x10x10x64xf32, #tpu.memory_space<vmem>>, vector<1x2x8x8x64xf32>
    %223 = vector.shape_cast %222 : vector<1x2x8x8x64xf32> to vector<2x8x8x64xf32>
    %224 = vector.shape_cast %223 : vector<2x8x8x64xf32> to vector<128x64xf32>
    %225 = arith.truncf %224 : vector<128x64xf32> to vector<128x64xbf16>
    %c0_322 = arith.constant 0 : index
    %c192_323 = arith.constant 192 : index
    %226 = vector.load %arg19[%c0_322, %c192_323] : memref<128x1728xbf16, #tpu.memory_space<vmem>>, vector<128x64xbf16>
    tpu.vector_store %arg19[%c0_322, %c192_323], %225 {strides = array<i32>} : memref<128x1728xbf16, #tpu.memory_space<vmem>>, vector<128x64xbf16>,
    %c0_324 = arith.constant 0 : index
    %c0_325 = arith.constant 0 : index
    %c1_326 = arith.constant 1 : index
    %c0_327 = arith.constant 0 : index
    %c0_328 = arith.constant 0 : index
    %227 = vector.load %arg21[%c0_324, %c0_325, %c1_326, %c0_327, %c0_328] : memref<2x2x10x10x64xf32, #tpu.memory_space<vmem>>, vector<1x2x8x8x64xf32>
    %228 = vector.shape_cast %227 : vector<1x2x8x8x64xf32> to vector<2x8x8x64xf32>
    %229 = vector.shape_cast %228 : vector<2x8x8x64xf32> to vector<128x64xf32>
    %230 = arith.truncf %229 : vector<128x64xf32> to vector<128x64xbf16>
    %c0_329 = arith.constant 0 : index
    %c768 = arith.constant 768 : index
    %231 = vector.load %arg19[%c0_329, %c768] : memref<128x1728xbf16, #tpu.memory_space<vmem>>, vector<128x64xbf16>
    tpu.vector_store %arg19[%c0_329, %c768], %230 {strides = array<i32>} : memref<128x1728xbf16, #tpu.memory_space<vmem>>, vector<128x64xbf16>,
    %c0_330 = arith.constant 0 : index
    %c1_331 = arith.constant 1 : index
    %c0_332 = arith.constant 0 : index
    %c0_333 = arith.constant 0 : index
    %232 = vector.load %arg3[%c0_330, %c1_331, %c0_332, %c0_333] : memref<2x10x10x64xf32, #tpu.memory_space<vmem>>, vector<2x8x8x64xf32>
    %233 = vector.shape_cast %232 : vector<2x8x8x64xf32> to vector<128x64xf32>
    %234 = arith.truncf %233 : vector<128x64xf32> to vector<128x64xbf16>
    %c0_334 = arith.constant 0 : index
    %c1344 = arith.constant 1344 : index
    %235 = vector.load %arg19[%c0_334, %c1344] : memref<128x1728xbf16, #tpu.memory_space<vmem>>, vector<128x64xbf16>
    tpu.vector_store %arg19[%c0_334, %c1344], %234 {strides = array<i32>} : memref<128x1728xbf16, #tpu.memory_space<vmem>>, vector<128x64xbf16>,
    %c1_335 = arith.constant 1 : index
    %c0_336 = arith.constant 0 : index
    %c1_337 = arith.constant 1 : index
    %c1_338 = arith.constant 1 : index
    %c0_339 = arith.constant 0 : index
    %236 = vector.load %arg21[%c1_335, %c0_336, %c1_337, %c1_338, %c0_339] : memref<2x2x10x10x64xf32, #tpu.memory_space<vmem>>, vector<1x2x8x8x64xf32>
    %237 = vector.shape_cast %236 : vector<1x2x8x8x64xf32> to vector<2x8x8x64xf32>
    %238 = vector.shape_cast %237 : vector<2x8x8x64xf32> to vector<128x64xf32>
    %239 = arith.truncf %238 : vector<128x64xf32> to vector<128x64xbf16>
    %c0_340 = arith.constant 0 : index
    %c256_341 = arith.constant 256 : index
    %240 = vector.load %arg19[%c0_340, %c256_341] : memref<128x1728xbf16, #tpu.memory_space<vmem>>, vector<128x64xbf16>
    tpu.vector_store %arg19[%c0_340, %c256_341], %239 {strides = array<i32>} : memref<128x1728xbf16, #tpu.memory_space<vmem>>, vector<128x64xbf16>,
    %c0_342 = arith.constant 0 : index
    %c0_343 = arith.constant 0 : index
    %c1_344 = arith.constant 1 : index
    %c1_345 = arith.constant 1 : index
    %c0_346 = arith.constant 0 : index
    %241 = vector.load %arg21[%c0_342, %c0_343, %c1_344, %c1_345, %c0_346] : memref<2x2x10x10x64xf32, #tpu.memory_space<vmem>>, vector<1x2x8x8x64xf32>
    %242 = vector.shape_cast %241 : vector<1x2x8x8x64xf32> to vector<2x8x8x64xf32>
    %243 = vector.shape_cast %242 : vector<2x8x8x64xf32> to vector<128x64xf32>
    %244 = arith.truncf %243 : vector<128x64xf32> to vector<128x64xbf16>
    %c0_347 = arith.constant 0 : index
    %c832 = arith.constant 832 : index
    %245 = vector.load %arg19[%c0_347, %c832] : memref<128x1728xbf16, #tpu.memory_space<vmem>>, vector<128x64xbf16>
    tpu.vector_store %arg19[%c0_347, %c832], %244 {strides = array<i32>} : memref<128x1728xbf16, #tpu.memory_space<vmem>>, vector<128x64xbf16>,
    %c0_348 = arith.constant 0 : index
    %c1_349 = arith.constant 1 : index
    %c1_350 = arith.constant 1 : index
    %c0_351 = arith.constant 0 : index
    %246 = vector.load %arg3[%c0_348, %c1_349, %c1_350, %c0_351] : memref<2x10x10x64xf32, #tpu.memory_space<vmem>>, vector<2x8x8x64xf32>
    %247 = vector.shape_cast %246 : vector<2x8x8x64xf32> to vector<128x64xf32>
    %248 = arith.truncf %247 : vector<128x64xf32> to vector<128x64xbf16>
    %c0_352 = arith.constant 0 : index
    %c1408 = arith.constant 1408 : index
    %249 = vector.load %arg19[%c0_352, %c1408] : memref<128x1728xbf16, #tpu.memory_space<vmem>>, vector<128x64xbf16>
    tpu.vector_store %arg19[%c0_352, %c1408], %248 {strides = array<i32>} : memref<128x1728xbf16, #tpu.memory_space<vmem>>, vector<128x64xbf16>,
    %c1_353 = arith.constant 1 : index
    %c0_354 = arith.constant 0 : index
    %c1_355 = arith.constant 1 : index
    %c2_356 = arith.constant 2 : index
    %c0_357 = arith.constant 0 : index
    %250 = vector.load %arg21[%c1_353, %c0_354, %c1_355, %c2_356, %c0_357] : memref<2x2x10x10x64xf32, #tpu.memory_space<vmem>>, vector<1x2x8x8x64xf32>
    %251 = vector.shape_cast %250 : vector<1x2x8x8x64xf32> to vector<2x8x8x64xf32>
    %252 = vector.shape_cast %251 : vector<2x8x8x64xf32> to vector<128x64xf32>
    %253 = arith.truncf %252 : vector<128x64xf32> to vector<128x64xbf16>
    %c0_358 = arith.constant 0 : index
    %c320_359 = arith.constant 320 : index
    %254 = vector.load %arg19[%c0_358, %c320_359] : memref<128x1728xbf16, #tpu.memory_space<vmem>>, vector<128x64xbf16>
    tpu.vector_store %arg19[%c0_358, %c320_359], %253 {strides = array<i32>} : memref<128x1728xbf16, #tpu.memory_space<vmem>>, vector<128x64xbf16>,
    %c0_360 = arith.constant 0 : index
    %c0_361 = arith.constant 0 : index
    %c1_362 = arith.constant 1 : index
    %c2_363 = arith.constant 2 : index
    %c0_364 = arith.constant 0 : index
    %255 = vector.load %arg21[%c0_360, %c0_361, %c1_362, %c2_363, %c0_364] : memref<2x2x10x10x64xf32, #tpu.memory_space<vmem>>, vector<1x2x8x8x64xf32>
    %256 = vector.shape_cast %255 : vector<1x2x8x8x64xf32> to vector<2x8x8x64xf32>
    %257 = vector.shape_cast %256 : vector<2x8x8x64xf32> to vector<128x64xf32>
    %258 = arith.truncf %257 : vector<128x64xf32> to vector<128x64xbf16>
    %c0_365 = arith.constant 0 : index
    %c896 = arith.constant 896 : index
    %259 = vector.load %arg19[%c0_365, %c896] : memref<128x1728xbf16, #tpu.memory_space<vmem>>, vector<128x64xbf16>
    tpu.vector_store %arg19[%c0_365, %c896], %258 {strides = array<i32>} : memref<128x1728xbf16, #tpu.memory_space<vmem>>, vector<128x64xbf16>,
    %c0_366 = arith.constant 0 : index
    %c1_367 = arith.constant 1 : index
    %c2_368 = arith.constant 2 : index
    %c0_369 = arith.constant 0 : index
    %260 = vector.load %arg3[%c0_366, %c1_367, %c2_368, %c0_369] : memref<2x10x10x64xf32, #tpu.memory_space<vmem>>, vector<2x8x8x64xf32>
    %261 = vector.shape_cast %260 : vector<2x8x8x64xf32> to vector<128x64xf32>
    %262 = arith.truncf %261 : vector<128x64xf32> to vector<128x64xbf16>
    %c0_370 = arith.constant 0 : index
    %c1472 = arith.constant 1472 : index
    %263 = vector.load %arg19[%c0_370, %c1472] : memref<128x1728xbf16, #tpu.memory_space<vmem>>, vector<128x64xbf16>
    tpu.vector_store %arg19[%c0_370, %c1472], %262 {strides = array<i32>} : memref<128x1728xbf16, #tpu.memory_space<vmem>>, vector<128x64xbf16>,
    %c1_371 = arith.constant 1 : index
    %c0_372 = arith.constant 0 : index
    %c2_373 = arith.constant 2 : index
    %c0_374 = arith.constant 0 : index
    %c0_375 = arith.constant 0 : index
    %264 = vector.load %arg21[%c1_371, %c0_372, %c2_373, %c0_374, %c0_375] : memref<2x2x10x10x64xf32, #tpu.memory_space<vmem>>, vector<1x2x8x8x64xf32>
    %265 = vector.shape_cast %264 : vector<1x2x8x8x64xf32> to vector<2x8x8x64xf32>
    %266 = vector.shape_cast %265 : vector<2x8x8x64xf32> to vector<128x64xf32>
    %267 = arith.truncf %266 : vector<128x64xf32> to vector<128x64xbf16>
    %c0_376 = arith.constant 0 : index
    %c384_377 = arith.constant 384 : index
    %268 = vector.load %arg19[%c0_376, %c384_377] : memref<128x1728xbf16, #tpu.memory_space<vmem>>, vector<128x64xbf16>
    tpu.vector_store %arg19[%c0_376, %c384_377], %267 {strides = array<i32>} : memref<128x1728xbf16, #tpu.memory_space<vmem>>, vector<128x64xbf16>,
    %c0_378 = arith.constant 0 : index
    %c0_379 = arith.constant 0 : index
    %c2_380 = arith.constant 2 : index
    %c0_381 = arith.constant 0 : index
    %c0_382 = arith.constant 0 : index
    %269 = vector.load %arg21[%c0_378, %c0_379, %c2_380, %c0_381, %c0_382] : memref<2x2x10x10x64xf32, #tpu.memory_space<vmem>>, vector<1x2x8x8x64xf32>
    %270 = vector.shape_cast %269 : vector<1x2x8x8x64xf32> to vector<2x8x8x64xf32>
    %271 = vector.shape_cast %270 : vector<2x8x8x64xf32> to vector<128x64xf32>
    %272 = arith.truncf %271 : vector<128x64xf32> to vector<128x64xbf16>
    %c0_383 = arith.constant 0 : index
    %c960 = arith.constant 960 : index
    %273 = vector.load %arg19[%c0_383, %c960] : memref<128x1728xbf16, #tpu.memory_space<vmem>>, vector<128x64xbf16>
    tpu.vector_store %arg19[%c0_383, %c960], %272 {strides = array<i32>} : memref<128x1728xbf16, #tpu.memory_space<vmem>>, vector<128x64xbf16>,
    %c0_384 = arith.constant 0 : index
    %c2_385 = arith.constant 2 : index
    %c0_386 = arith.constant 0 : index
    %c0_387 = arith.constant 0 : index
    %274 = vector.load %arg3[%c0_384, %c2_385, %c0_386, %c0_387] : memref<2x10x10x64xf32, #tpu.memory_space<vmem>>, vector<2x8x8x64xf32>
    %275 = vector.shape_cast %274 : vector<2x8x8x64xf32> to vector<128x64xf32>
    %276 = arith.truncf %275 : vector<128x64xf32> to vector<128x64xbf16>
    %c0_388 = arith.constant 0 : index
    %c1536 = arith.constant 1536 : index
    %277 = vector.load %arg19[%c0_388, %c1536] : memref<128x1728xbf16, #tpu.memory_space<vmem>>, vector<128x64xbf16>
    tpu.vector_store %arg19[%c0_388, %c1536], %276 {strides = array<i32>} : memref<128x1728xbf16, #tpu.memory_space<vmem>>, vector<128x64xbf16>,
    %c1_389 = arith.constant 1 : index
    %c0_390 = arith.constant 0 : index
    %c2_391 = arith.constant 2 : index
    %c1_392 = arith.constant 1 : index
    %c0_393 = arith.constant 0 : index
    %278 = vector.load %arg21[%c1_389, %c0_390, %c2_391, %c1_392, %c0_393] : memref<2x2x10x10x64xf32, #tpu.memory_space<vmem>>, vector<1x2x8x8x64xf32>
    %279 = vector.shape_cast %278 : vector<1x2x8x8x64xf32> to vector<2x8x8x64xf32>
    %280 = vector.shape_cast %279 : vector<2x8x8x64xf32> to vector<128x64xf32>
    %281 = arith.truncf %280 : vector<128x64xf32> to vector<128x64xbf16>
    %c0_394 = arith.constant 0 : index
    %c448_395 = arith.constant 448 : index
    %282 = vector.load %arg19[%c0_394, %c448_395] : memref<128x1728xbf16, #tpu.memory_space<vmem>>, vector<128x64xbf16>
    tpu.vector_store %arg19[%c0_394, %c448_395], %281 {strides = array<i32>} : memref<128x1728xbf16, #tpu.memory_space<vmem>>, vector<128x64xbf16>,
    %c0_396 = arith.constant 0 : index
    %c0_397 = arith.constant 0 : index
    %c2_398 = arith.constant 2 : index
    %c1_399 = arith.constant 1 : index
    %c0_400 = arith.constant 0 : index
    %283 = vector.load %arg21[%c0_396, %c0_397, %c2_398, %c1_399, %c0_400] : memref<2x2x10x10x64xf32, #tpu.memory_space<vmem>>, vector<1x2x8x8x64xf32>
    %284 = vector.shape_cast %283 : vector<1x2x8x8x64xf32> to vector<2x8x8x64xf32>
    %285 = vector.shape_cast %284 : vector<2x8x8x64xf32> to vector<128x64xf32>
    %286 = arith.truncf %285 : vector<128x64xf32> to vector<128x64xbf16>
    %c0_401 = arith.constant 0 : index
    %c1024 = arith.constant 1024 : index
    %287 = vector.load %arg19[%c0_401, %c1024] : memref<128x1728xbf16, #tpu.memory_space<vmem>>, vector<128x64xbf16>
    tpu.vector_store %arg19[%c0_401, %c1024], %286 {strides = array<i32>} : memref<128x1728xbf16, #tpu.memory_space<vmem>>, vector<128x64xbf16>,
    %c0_402 = arith.constant 0 : index
    %c2_403 = arith.constant 2 : index
    %c1_404 = arith.constant 1 : index
    %c0_405 = arith.constant 0 : index
    %288 = vector.load %arg3[%c0_402, %c2_403, %c1_404, %c0_405] : memref<2x10x10x64xf32, #tpu.memory_space<vmem>>, vector<2x8x8x64xf32>
    %289 = vector.shape_cast %288 : vector<2x8x8x64xf32> to vector<128x64xf32>
    %290 = arith.truncf %289 : vector<128x64xf32> to vector<128x64xbf16>
    %c0_406 = arith.constant 0 : index
    %c1600 = arith.constant 1600 : index
    %291 = vector.load %arg19[%c0_406, %c1600] : memref<128x1728xbf16, #tpu.memory_space<vmem>>, vector<128x64xbf16>
    tpu.vector_store %arg19[%c0_406, %c1600], %290 {strides = array<i32>} : memref<128x1728xbf16, #tpu.memory_space<vmem>>, vector<128x64xbf16>,
    %c1_407 = arith.constant 1 : index
    %c0_408 = arith.constant 0 : index
    %c2_409 = arith.constant 2 : index
    %c2_410 = arith.constant 2 : index
    %c0_411 = arith.constant 0 : index
    %292 = vector.load %arg21[%c1_407, %c0_408, %c2_409, %c2_410, %c0_411] : memref<2x2x10x10x64xf32, #tpu.memory_space<vmem>>, vector<1x2x8x8x64xf32>
    %293 = vector.shape_cast %292 : vector<1x2x8x8x64xf32> to vector<2x8x8x64xf32>
    %294 = vector.shape_cast %293 : vector<2x8x8x64xf32> to vector<128x64xf32>
    %295 = arith.truncf %294 : vector<128x64xf32> to vector<128x64xbf16>
    %c0_412 = arith.constant 0 : index
    %c512_413 = arith.constant 512 : index
    %296 = vector.load %arg19[%c0_412, %c512_413] : memref<128x1728xbf16, #tpu.memory_space<vmem>>, vector<128x64xbf16>
    tpu.vector_store %arg19[%c0_412, %c512_413], %295 {strides = array<i32>} : memref<128x1728xbf16, #tpu.memory_space<vmem>>, vector<128x64xbf16>,
    %c0_414 = arith.constant 0 : index
    %c0_415 = arith.constant 0 : index
    %c2_416 = arith.constant 2 : index
    %c2_417 = arith.constant 2 : index
    %c0_418 = arith.constant 0 : index
    %297 = vector.load %arg21[%c0_414, %c0_415, %c2_416, %c2_417, %c0_418] : memref<2x2x10x10x64xf32, #tpu.memory_space<vmem>>, vector<1x2x8x8x64xf32>
    %298 = vector.shape_cast %297 : vector<1x2x8x8x64xf32> to vector<2x8x8x64xf32>
    %299 = vector.shape_cast %298 : vector<2x8x8x64xf32> to vector<128x64xf32>
    %300 = arith.truncf %299 : vector<128x64xf32> to vector<128x64xbf16>
    %c0_419 = arith.constant 0 : index
    %c1088 = arith.constant 1088 : index
    %301 = vector.load %arg19[%c0_419, %c1088] : memref<128x1728xbf16, #tpu.memory_space<vmem>>, vector<128x64xbf16>
    tpu.vector_store %arg19[%c0_419, %c1088], %300 {strides = array<i32>} : memref<128x1728xbf16, #tpu.memory_space<vmem>>, vector<128x64xbf16>,
    %c0_420 = arith.constant 0 : index
    %c2_421 = arith.constant 2 : index
    %c2_422 = arith.constant 2 : index
    %c0_423 = arith.constant 0 : index
    %302 = vector.load %arg3[%c0_420, %c2_421, %c2_422, %c0_423] : memref<2x10x10x64xf32, #tpu.memory_space<vmem>>, vector<2x8x8x64xf32>
    %303 = vector.shape_cast %302 : vector<2x8x8x64xf32> to vector<128x64xf32>
    %304 = arith.truncf %303 : vector<128x64xf32> to vector<128x64xbf16>
    %c0_424 = arith.constant 0 : index
    %c1664 = arith.constant 1664 : index
    %305 = vector.load %arg19[%c0_424, %c1664] : memref<128x1728xbf16, #tpu.memory_space<vmem>>, vector<128x64xbf16>
    tpu.vector_store %arg19[%c0_424, %c1664], %304 {strides = array<i32>} : memref<128x1728xbf16, #tpu.memory_space<vmem>>, vector<128x64xbf16>,
    %c0_425 = arith.constant 0 : index
    %c0_426 = arith.constant 0 : index
    %306 = vector.load %arg19[%c0_425, %c0_426] : memref<128x1728xbf16, #tpu.memory_space<vmem>>, vector<128x1728xbf16>
    %c0_427 = arith.constant 0 : index
    %c0_428 = arith.constant 0 : index
    %307 = vector.load %arg12[%c0_427, %c0_428] : memref<1728x8xbf16, #tpu.memory_space<vmem>>, vector<1728x8xbf16>
    %cst_429 = arith.constant dense<0.000000e+00> : vector<128x8xf32>
    %308 = tpu.matmul %306, %307, %cst_429 {dimension_numbers = #tpu.dot_dimension_numbers<[1], [0], [0], [1], [0, 0, 1, 1], [], []>} : vector<128x1728xbf16>, vector<1728x8xbf16>, vector<128x8xf32> -> vector<128x8xf32>
    %c0_430 = arith.constant 0 : index
    %c0_431 = arith.constant 0 : index
    %309 = vector.load %arg13[%c0_430, %c0_431] : memref<1x8xf32, #tpu.memory_space<vmem>>, vector<1x8xf32>
    %310 = vector.broadcast %309 : vector<1x8xf32> to vector<128x8xf32>
    %311 = arith.mulf %308, %310 : vector<128x8xf32>
    %c0_432 = arith.constant 0 : index
    %c0_433 = arith.constant 0 : index
    %312 = vector.load %arg14[%c0_432, %c0_433] : memref<1x8xf32, #tpu.memory_space<vmem>>, vector<1x8xf32>
    %313 = vector.broadcast %312 : vector<1x8xf32> to vector<128x8xf32>
    %314 = arith.addf %311, %313 : vector<128x8xf32>
    %315 = arith.negf %314 : vector<128x8xf32>
    %316 = math.exp %315 : vector<128x8xf32>
    %cst_434 = arith.constant 1.000000e+00 : f32
    %317 = vector.broadcast %cst_434 : f32 to vector<128x8xf32>
    %318 = arith.addf %317, %316 : vector<128x8xf32>
    %319 = arith.divf %317, %318 : vector<128x8xf32>
    %c0_435 = arith.constant 0 : index
    %c0_436 = arith.constant 0 : index
    %320 = vector.load %arg15[%c0_435, %c0_436] : memref<128x8xf32, #tpu.memory_space<vmem>>, vector<128x8xf32>
    tpu.vector_store %arg15[%c0_435, %c0_436], %319 {strides = array<i32>} : memref<128x8xf32, #tpu.memory_space<vmem>>, vector<128x8xf32>,
    return
  }
  func.func @transform_0(%arg0: i32) -> (i32, i32, i32, i32, i32) {
    %c0_i32 = arith.constant 0 : i32
    %c0_i32_0 = arith.constant 0 : i32
    %c0_i32_1 = arith.constant 0 : i32
    %c0_i32_2 = arith.constant 0 : i32
    %c0_i32_3 = arith.constant 0 : i32
    %c0_i32_4 = arith.constant 0 : i32
    return %c0_i32, %c0_i32_0, %c0_i32_1, %c0_i32_2, %c0_i32_3 : i32, i32, i32, i32, i32
  }
  func.func @transform_1(%arg0: i32) -> (i32, i32, i32, i32) {
    %c0_i32 = arith.constant 0 : i32
    %c0_i32_0 = arith.constant 0 : i32
    %c0_i32_1 = arith.constant 0 : i32
    %c0_i32_2 = arith.constant 0 : i32
    %c0_i32_3 = arith.constant 0 : i32
    return %c0_i32, %c0_i32_0, %c0_i32_1, %c0_i32_2 : i32, i32, i32, i32
  }
  func.func @transform_2(%arg0: i32) -> (i32, i32, i32, i32) {
    %c0_i32 = arith.constant 0 : i32
    %c0_i32_0 = arith.constant 0 : i32
    %c0_i32_1 = arith.constant 0 : i32
    %c0_i32_2 = arith.constant 0 : i32
    %c0_i32_3 = arith.constant 0 : i32
    return %c0_i32, %c0_i32_0, %c0_i32_1, %c0_i32_2 : i32, i32, i32, i32
  }
  func.func @transform_3(%arg0: i32) -> (i32, i32) {
    %c0_i32 = arith.constant 0 : i32
    %c0_i32_0 = arith.constant 0 : i32
    %c0_i32_1 = arith.constant 0 : i32
    return %c0_i32, %c0_i32_0 : i32, i32
  }
  func.func @transform_4(%arg0: i32) -> (i32, i32) {
    %c0_i32 = arith.constant 0 : i32
    %c0_i32_0 = arith.constant 0 : i32
    %c0_i32_1 = arith.constant 0 : i32
    return %c0_i32, %c0_i32_0 : i32, i32
  }
  func.func @transform_5(%arg0: i32) -> (i32, i32) {
    %c0_i32 = arith.constant 0 : i32
    %c0_i32_0 = arith.constant 0 : i32
    %c0_i32_1 = arith.constant 0 : i32
    return %c0_i32, %c0_i32_0 : i32, i32
  }
  func.func @transform_6(%arg0: i32) -> (i32, i32) {
    %c0_i32 = arith.constant 0 : i32
    %c0_i32_0 = arith.constant 0 : i32
    %c0_i32_1 = arith.constant 0 : i32
    return %c0_i32, %c0_i32_0 : i32, i32
  }
  func.func @transform_7(%arg0: i32) -> (i32, i32) {
    %c0_i32 = arith.constant 0 : i32
    %c0_i32_0 = arith.constant 0 : i32
    %c0_i32_1 = arith.constant 0 : i32
    return %c0_i32, %c0_i32_0 : i32, i32
  }
  func.func @transform_8(%arg0: i32) -> (i32, i32) {
    %c0_i32 = arith.constant 0 : i32
    %c0_i32_0 = arith.constant 0 : i32
    %c0_i32_1 = arith.constant 0 : i32
    return %c0_i32, %c0_i32_0 : i32, i32
  }
  func.func @transform_9(%arg0: i32) -> (i32, i32) {
    %c0_i32 = arith.constant 0 : i32
    %c0_i32_0 = arith.constant 0 : i32
    %c0_i32_1 = arith.constant 0 : i32
    return %c0_i32, %c0_i32_0 : i32, i32
  }
  func.func @transform_10(%arg0: i32) -> i32 {
    %c0_i32 = arith.constant 0 : i32
    %c0_i32_0 = arith.constant 0 : i32
    return %c0_i32 : i32
  }
  func.func @transform_11(%arg0: i32) -> (i32, i32) {
    %c0_i32 = arith.constant 0 : i32
    %c0_i32_0 = arith.constant 0 : i32
    %c0_i32_1 = arith.constant 0 : i32
    return %c0_i32, %c0_i32_0 : i32, i32
  }
  func.func @transform_12(%arg0: i32) -> (i32, i32) {
    %c0_i32 = arith.constant 0 : i32
    %c0_i32_0 = arith.constant 0 : i32
    %c0_i32_1 = arith.constant 0 : i32
    return %c0_i32, %c0_i32_0 : i32, i32
  }
  func.func @transform_13(%arg0: i32) -> (i32, i32) {
    %c0_i32 = arith.constant 0 : i32
    %c0_i32_0 = arith.constant 0 : i32
    %c0_i32_1 = arith.constant 0 : i32
    return %c0_i32, %c0_i32_0 : i32, i32
  }
  func.func @transform_14(%arg0: i32) -> (i32, i32) {
    %c0_i32 = arith.constant 0 : i32
    %c0_i32_0 = arith.constant 0 : i32
    %c0_i32_1 = arith.constant 0 : i32
    return %c0_i32, %c0_i32_0 : i32, i32
  }
}

</mosaic_0001>

<bundles_post_ra>
// kernel: squeeze.5
= control target key start
LH: loop header
LB: loop body
LE: loop exit
PB: predicated region body
PF: predicated region fallthrough
CT: control target
= control target key end

     0   :  { %s207_s0 = inlined_call_operand.vmem [shape: f32[128], index: 0, kind: input, shape index: {}]   ;;  %s208_s1 = inlined_call_operand.hbm [shape: f32[2,1,8,8], index: 1, kind: output, shape index: {}]  }
   0x1   :  { %v5_v0 = vld [vmem:[%s207_s0] sm:$0x1] }
   0x2   :  { %6 = vst [vmem:[#allocation2] sm:$0x1] %v5_v0 }
   0x3   :  { %2 = vsyncpa [#allocation1], 0  ;;  %s150_s0 = smov 120   ;;  %s151_s8 = smov 104   ;;  %vm8_vm0 = vcmask 64512  }
   0x4   :  { %s152_s9 = smov 112   ;;  %s153_s10 = smov 96  }
   0x5   :  { %s154_s11 = smov 88   ;;  %s155_s12 = smov 80  }
   0x6   :  { %s156_s13 = smov 72   ;;  %s157_s14 = smov 64  }
   0x7   :  { %s158_s15 = smov 56   ;;  %s159_s16 = smov 48  }
   0x8   :  { %s160_s17 = smov 40   ;;  %s161_s18 = smov 32  }
   0x9   :  { %v10_v1 = vld [vmem:[#allocation2] sm:$0x1]   ;;  %s162_s19 = smov 24   ;;  %s163_s20 = smov 16  }
   0xa   :  { %v22_v2 = vld [vmem:[#allocation2] sm:$0x1]   ;;  %11 = vrot.lane.b32.xlu0 %v10_v1, %s150_s0  ;;  %s164_s21 = smov 8   ;;  %s165_s22 = smov [#allocation0]  }
   0xb   :  { %23 = vrot.lane.b32.xlu1 %v22_v2, %s151_s8  ;;  %v16_v3 = vld [vmem:[#allocation2] sm:$0x1]   ;;  %s104_s23 = sshll.u32 %s165_s22, 4  ;;  %s105_s23 = int_to_ptr.vmem [resolvable:$true] %s104_s23 }
   0xc   :  { %v28_v4 = vld [vmem:[#allocation2] sm:$0x1]   ;;  %s126_s24 = scalar_lea.vmem %s105_s23, 256  ;;  %p131_p1 = scmp.lt.s32.totalorder %s105_s23, %s105_s23 }
   0xd   :  { %v34_v5 = vld [vmem:[#allocation2] sm:$0x1]   ;;  %p127_p0 = scmp.ne.s32.totalorder %s105_s23, %s126_s24  ;;  %p132_p2 = scmp.lt.s32.totalorder %s126_s24, %s126_s24 }
   0xe   :  { %17 = vrot.lane.b32.xlu0 %v16_v3, %s152_s9  ;;  %v40_v6 = vld [vmem:[#allocation2] sm:$0x1]  }
   0xf   :  { %29 = vrot.lane.b32.xlu1 %v28_v4, %s153_s10  ;;  %v46_v7 = vld [vmem:[#allocation2] sm:$0x1]   ;;  %p133_p3 = por %p132_p2, %p131_p1 }
  0x10   :  { %v52_v8 = vld [vmem:[#allocation2] sm:$0x1]  }
  0x11   :  { %v58_v9 = vld [vmem:[#allocation2] sm:$0x1]   ;;  %p134_p4 = pnand %p133_p3, %p127_p0 }
  0x12   :  { %35 = vrot.lane.b32.xlu0 %v34_v5, %s154_s11  ;;  %v64_v10 = vld [vmem:[#allocation2] sm:$0x1]  }
  0x13   :  { %41 = vrot.lane.b32.xlu1 %v40_v6, %s155_s12  ;;  %v7_v11 = vld [vmem:[#allocation2] sm:$0x1]  }
  0x14   :  { %9 = vst.msk [vmem:[#allocation0] sm:$0x1] %vm8_vm0, %v7_v11   ;;  %v70_v12 = vld [vmem:[#allocation2] sm:$0x1]  }
  0x15   :  { %v76_v13 = vld [vmem:[#allocation2] sm:$0x1]  }
  0x16   :  { %47 = vrot.lane.b32.xlu0 %v46_v7, %s156_s13  ;;  %v82_v14 = vld [vmem:[#allocation2] sm:$0x1]  }
  0x17   :  { %53 = vrot.lane.b32.xlu1 %v52_v8, %s157_s14  ;;  %v88_v15 = vld [vmem:[#allocation2] sm:$0x1]  }
  0x18   :  { %v94_v16 = vld [vmem:[#allocation2] sm:$0x1]  }
  0x1a   :  { %59 = vrot.lane.b32.xlu0 %v58_v9, %s158_s15 }
  0x1b   :  { %65 = vrot.lane.b32.xlu1 %v64_v10, %s159_s16 }
  0x1e   :  { %71 = vrot.lane.b32.xlu0 %v70_v12, %s160_s17 }
  0x1f   :  { %77 = vrot.lane.b32.xlu1 %v76_v13, %s161_s18 }
  0x22   :  { %83 = vrot.lane.b32.xlu0 %v82_v14, %s162_s19 }
  0x23   :  { %89 = vrot.lane.b32.xlu1 %v88_v15, %s163_s20 }
  0x26   :  { %95 = vrot.lane.b32.xlu0 %v94_v16, %s164_s21 }
  0x7c   :  { %v12_v17 = vpop.permute.xlu0 %11  }
  0x7d   :  { %v24_v18 = vpop.permute.xlu1 %23   ;;  %15 = vst.msk [vmem:[#allocation0 + $0x1] sm:$0x1] %vm8_vm0, %v12_v17  }
  0x7e   :  { %27 = vst.msk [vmem:[#allocation0 + $0x3] sm:$0x1] %vm8_vm0, %v24_v18  }
  0x80   :  { %v18_v19 = vpop.permute.xlu0 %17  }
  0x81   :  { %v30_v20 = vpop.permute.xlu1 %29   ;;  %21 = vst.msk [vmem:[#allocation0 + $0x2] sm:$0x1] %vm8_vm0, %v18_v19  }
  0x82   :  { %33 = vst.msk [vmem:[#allocation0 + $0x4] sm:$0x1] %vm8_vm0, %v30_v20  }
  0x84   :  { %v36_v21 = vpop.permute.xlu0 %35  }
  0x85   :  { %v42_v22 = vpop.permute.xlu1 %41   ;;  %39 = vst.msk [vmem:[#allocation0 + $0x5] sm:$0x1] %vm8_vm0, %v36_v21  }
  0x86   :  { %45 = vst.msk [vmem:[#allocation0 + $0x6] sm:$0x1] %vm8_vm0, %v42_v22  }
  0x88   :  { %v48_v23 = vpop.permute.xlu0 %47  }
  0x89   :  { %v54_v24 = vpop.permute.xlu1 %53   ;;  %51 = vst.msk [vmem:[#allocation0 + $0x7] sm:$0x1] %vm8_vm0, %v48_v23  }
  0x8a   :  { %57 = vst.msk [vmem:[#allocation0 + $0x8] sm:$0x1] %vm8_vm0, %v54_v24  }
  0x8c   :  { %v60_v25 = vpop.permute.xlu0 %59  }
  0x8d   :  { %v66_v26 = vpop.permute.xlu1 %65   ;;  %63 = vst.msk [vmem:[#allocation0 + $0x9] sm:$0x1] %vm8_vm0, %v60_v25  }
  0x8e   :  { %69 = vst.msk [vmem:[#allocation0 + $0xa] sm:$0x1] %vm8_vm0, %v66_v26  }
  0x90   :  { %v72_v27 = vpop.permute.xlu0 %71  }
  0x91   :  { %v78_v28 = vpop.permute.xlu1 %77   ;;  %75 = vst.msk [vmem:[#allocation0 + $0xb] sm:$0x1] %vm8_vm0, %v72_v27  }
  0x92   :  { %81 = vst.msk [vmem:[#allocation0 + $0xc] sm:$0x1] %vm8_vm0, %v78_v28  }
  0x94   :  { %v84_v29 = vpop.permute.xlu0 %83  }
  0x95   :  { %v90_v30 = vpop.permute.xlu1 %89   ;;  %87 = vst.msk [vmem:[#allocation0 + $0xd] sm:$0x1] %vm8_vm0, %v84_v29  }
  0x96   :  { %93 = vst.msk [vmem:[#allocation0 + $0xe] sm:$0x1] %vm8_vm0, %v90_v30  }
  0x98   :  { %v96_v31 = vpop.permute.xlu0 %95  }
  0x99   :  { %99 = vst.msk [vmem:[#allocation0 + $0xf] sm:$0x1] %vm8_vm0, %v96_v31  }
  0x9a   :  { %137 = shalt.err (!%p134_p4)
}
  0x9b   :  { %s138_s27 = scalar_lea.hbm %s208_s1, 256 }
  0x9c   :  { %p139_p5 = scmp.ne.s32.totalorder %s208_s1, %s138_s27  ;;  %p142_p6 = scmp.lt.u32.totalorder %s138_s27, %s208_s1 }
  0x9e   :  { %p144_p7 = pnand %p142_p6, %p139_p5 }
  0xa0   :  { %147 = shalt.err (!%p144_p7)
}
  0xa1   :  { %107 = dma.vmem_to_hbm [thread:$0]  %s105_s23, 256, %s208_s1, [#allocation1]  }
  0xa2   :  { %148 = dma.done.wait [#allocation1], 256  }
  0xa3   :  { %149 = vsyncadd [#allocation1], 4294967040 }
  0xa4   :  { %109 = vsyncpa [#allocation1], 1 }

// kernel: squeeze.4
= control target key start
LH: loop header
LB: loop body
LE: loop exit
PB: predicated region body
PF: predicated region fallthrough
CT: control target
= control target key end

     0   :  { %s575_s8 = smov 122   ;;  %s576_s9 = smov 124   ;;  %vm7_vm0 = vcmask 15360   ;;  %s762_s0 = inlined_call_operand.vmem [shape: f32[128], index: 0, kind: input, shape index: {}]   ;;  %s763_s1 = inlined_call_operand.vmem [shape: f32[2,4,2,4,2], index: 1, kind: output, shape index: {}]  }
   0x1   :  { %v4_v0 = vld [vmem:[%s762_s0] sm:$0x1]  ;;  %s574_s0 = smov 126   ;;  %s577_s10 = smov 120  }
   0x2   :  { %5 = vst [vmem:[#allocation1] sm:$0x1] %v4_v0  ;;  %s578_s11 = smov 118   ;;  %s579_s12 = smov 116  }
   0x3   :  { %s580_s13 = smov 114   ;;  %s581_s14 = smov 112  }
   0x4   :  { %s582_s15 = smov 110   ;;  %s583_s16 = smov 108  }
   0x5   :  { %s584_s17 = smov 106   ;;  %s585_s18 = smov 104  }
   0x6   :  { %s586_s19 = smov 102   ;;  %s587_s20 = smov 100  }
   0x7   :  { %s588_s21 = smov 98   ;;  %s589_s22 = smov 96  }
   0x8   :  { %s590_s23 = smov 94   ;;  %s591_s24 = smov 92  }
   0x9   :  { %v9_v1 = vld [vmem:[#allocation1] sm:$0x1]   ;;  %s592_s25 = smov 90   ;;  %s593_s26 = smov 88  }
   0xa   :  { %v21_v2 = vld [vmem:[#allocation1] sm:$0x1]   ;;  %10 = vrot.lane.b32.xlu0 %v9_v1, %s574_s0  ;;  %s594_s27 = smov 86   ;;  %s595_s28 = smov 84  }
   0xb   :  { %22 = vrot.lane.b32.xlu1 %v21_v2, %s575_s8  ;;  %v15_v3 = vld [vmem:[#allocation1] sm:$0x1]   ;;  %s596_s29 = smov 82   ;;  %s597_s30 = smov 80  }
   0xc   :  { %v27_v4 = vld [vmem:[#allocation1] sm:$0x1]   ;;  %s598_s2 = smov 78   ;;  %s599_s3 = smov 76  }
   0xd   :  { %v33_v5 = vld [vmem:[#allocation1] sm:$0x1]   ;;  %s600_s4 = smov 74   ;;  %s601_s5 = smov 72  }
   0xe   :  { %16 = vrot.lane.b32.xlu0 %v15_v3, %s576_s9  ;;  %v39_v6 = vld [vmem:[#allocation1] sm:$0x1]   ;;  %s602_s6 = smov 70   ;;  %s603_s7 = smov 68  }
   0xf   :  { %28 = vrot.lane.b32.xlu1 %v27_v4, %s577_s10  ;;  %v45_v7 = vld [vmem:[#allocation1] sm:$0x1]   ;;  %s604_s0 = smov 66   ;;  %s605_s8 = smov 64  }
  0x10   :  { %v51_v8 = vld [vmem:[#allocation1] sm:$0x1]   ;;  %s606_s9 = smov 62   ;;  %s607_s10 = smov 60  }
  0x11   :  { %v57_v9 = vld [vmem:[#allocation1] sm:$0x1]  }
  0x12   :  { %34 = vrot.lane.b32.xlu0 %v33_v5, %s578_s11  ;;  %v63_v10 = vld [vmem:[#allocation1] sm:$0x1]   ;;  %s608_s11 = smov 58  }
  0x13   :  { %40 = vrot.lane.b32.xlu1 %v39_v6, %s579_s12  ;;  %v69_v11 = vld [vmem:[#allocation1] sm:$0x1]   ;;  %s609_s12 = smov 56  }
  0x14   :  { %v75_v12 = vld [vmem:[#allocation1] sm:$0x1]  }
  0x15   :  { %v81_v13 = vld [vmem:[#allocation1] sm:$0x1]  }
  0x16   :  { %46 = vrot.lane.b32.xlu0 %v45_v7, %s580_s13  ;;  %v87_v14 = vld [vmem:[#allocation1] sm:$0x1]   ;;  %s610_s13 = smov 54  }
  0x17   :  { %52 = vrot.lane.b32.xlu1 %v51_v8, %s581_s14  ;;  %v93_v15 = vld [vmem:[#allocation1] sm:$0x1]   ;;  %s611_s14 = smov 52  }
  0x18   :  { %v99_v16 = vld [vmem:[#allocation1] sm:$0x1]  }
  0x19   :  { %v6_v17 = vld [vmem:[#allocation1] sm:$0x1]  }
  0x1a   :  { %58 = vrot.lane.b32.xlu0 %v57_v9, %s582_s15  ;;  %8 = vst.msk [vmem:[#allocation0] sm:$0x1] %vm7_vm0, %v6_v17   ;;  %v105_v18 = vld [vmem:[#allocation1] sm:$0x1]   ;;  %s612_s15 = smov 50  }
  0x1b   :  { %64 = vrot.lane.b32.xlu1 %v63_v10, %s583_s16  ;;  %v111_v19 = vld [vmem:[#allocation1] sm:$0x1]   ;;  %s613_s16 = smov 48  }
  0x1c   :  { %v117_v20 = vld [vmem:[#allocation1] sm:$0x1]  }
  0x1d   :  { %v123_v21 = vld [vmem:[#allocation1] sm:$0x1]  }
  0x1e   :  { %70 = vrot.lane.b32.xlu0 %v69_v11, %s584_s17  ;;  %v129_v22 = vld [vmem:[#allocation1] sm:$0x1]   ;;  %s614_s17 = smov 46  }
  0x1f   :  { %76 = vrot.lane.b32.xlu1 %v75_v12, %s585_s18  ;;  %v135_v23 = vld [vmem:[#allocation1] sm:$0x1]   ;;  %s615_s18 = smov 44  }
  0x20   :  { %v141_v24 = vld [vmem:[#allocation1] sm:$0x1]  }
  0x21   :  { %v147_v25 = vld [vmem:[#allocation1] sm:$0x1]  }
  0x22   :  { %82 = vrot.lane.b32.xlu0 %v81_v13, %s586_s19  ;;  %v153_v26 = vld [vmem:[#allocation1] sm:$0x1]   ;;  %s616_s19 = smov 42  }
  0x23   :  { %88 = vrot.lane.b32.xlu1 %v87_v14, %s587_s20  ;;  %v159_v27 = vld [vmem:[#allocation1] sm:$0x1]   ;;  %s617_s20 = smov 40  }
  0x24   :  { %v165_v28 = vld [vmem:[#allocation1] sm:$0x1]  }
  0x25   :  { %v171_v29 = vld [vmem:[#allocation1] sm:$0x1]  }
  0x26   :  { %94 = vrot.lane.b32.xlu0 %v93_v15, %s588_s21  ;;  %v177_v30 = vld [vmem:[#allocation1] sm:$0x1]   ;;  %s618_s21 = smov 38  }
  0x27   :  { %100 = vrot.lane.b32.xlu1 %v99_v16, %s589_s22  ;;  %v183_v31 = vld [vmem:[#allocation1] sm:$0x1]   ;;  %s619_s22 = smov 36  }
  0x28   :  { %v189_v32 = vld [vmem:[#allocation1] sm:$0x1]  }
  0x29   :  { %v195_v33 = vld [vmem:[#allocation1] sm:$0x1]  }
  0x2a   :  { %106 = vrot.lane.b32.xlu0 %v105_v18, %s590_s23  ;;  %v201_v34 = vld [vmem:[#allocation1] sm:$0x1]   ;;  %s620_s23 = smov 34  }
  0x2b   :  { %112 = vrot.lane.b32.xlu1 %v111_v19, %s591_s24  ;;  %v207_v35 = vld [vmem:[#allocation1] sm:$0x1]   ;;  %s621_s24 = smov 32  }
  0x2c   :  { %v213_v36 = vld [vmem:[#allocation1] sm:$0x1]  }
  0x2d   :  { %v219_v37 = vld [vmem:[#allocation1] sm:$0x1]  }
  0x2e   :  { %118 = vrot.lane.b32.xlu0 %v117_v20, %s592_s25  ;;  %v225_v38 = vld [vmem:[#allocation1] sm:$0x1]   ;;  %s622_s25 = smov 30  }
  0x2f   :  { %124 = vrot.lane.b32.xlu1 %v123_v21, %s593_s26  ;;  %v231_v39 = vld [vmem:[#allocation1] sm:$0x1]   ;;  %s623_s26 = smov 28  }
  0x30   :  { %v237_v40 = vld [vmem:[#allocation1] sm:$0x1]  }
  0x31   :  { %v243_v41 = vld [vmem:[#allocation1] sm:$0x1]  }
  0x32   :  { %130 = vrot.lane.b32.xlu0 %v129_v22, %s594_s27  ;;  %v249_v42 = vld [vmem:[#allocation1] sm:$0x1]   ;;  %s624_s27 = smov 26  }
  0x33   :  { %136 = vrot.lane.b32.xlu1 %v135_v23, %s595_s28  ;;  %v255_v43 = vld [vmem:[#allocation1] sm:$0x1]   ;;  %s625_s28 = smov 24  }
  0x34   :  { %v261_v44 = vld [vmem:[#allocation1] sm:$0x1]  }
  0x35   :  { %v267_v45 = vld [vmem:[#allocation1] sm:$0x1]  }
  0x36   :  { %142 = vrot.lane.b32.xlu0 %v141_v24, %s596_s29  ;;  %v273_v46 = vld [vmem:[#allocation1] sm:$0x1]   ;;  %s626_s29 = smov 22  }
  0x37   :  { %148 = vrot.lane.b32.xlu1 %v147_v25, %s597_s30  ;;  %v279_v47 = vld [vmem:[#allocation1] sm:$0x1]   ;;  %s627_s30 = smov 20  }
  0x38   :  { %v285_v48 = vld [vmem:[#allocation1] sm:$0x1]  }
  0x39   :  { %v291_v49 = vld [vmem:[#allocation1] sm:$0x1]  }
  0x3a   :  { %154 = vrot.lane.b32.xlu0 %v153_v26, %s598_s2  ;;  %v297_v50 = vld [vmem:[#allocation1] sm:$0x1]   ;;  %s628_s2 = smov 18  }
  0x3b   :  { %160 = vrot.lane.b32.xlu1 %v159_v27, %s599_s3  ;;  %v303_v51 = vld [vmem:[#allocation1] sm:$0x1]   ;;  %s629_s3 = smov 16  }
  0x3c   :  { %v309_v52 = vld [vmem:[#allocation1] sm:$0x1]  }
  0x3d   :  { %v315_v53 = vld [vmem:[#allocation1] sm:$0x1]  }
  0x3e   :  { %166 = vrot.lane.b32.xlu0 %v165_v28, %s600_s4  ;;  %v321_v54 = vld [vmem:[#allocation1] sm:$0x1]   ;;  %s630_s4 = smov 14  }
  0x3f   :  { %172 = vrot.lane.b32.xlu1 %v171_v29, %s601_s5  ;;  %v327_v55 = vld [vmem:[#allocation1] sm:$0x1]   ;;  %s631_s5 = smov 12  }
  0x40   :  { %v333_v56 = vld [vmem:[#allocation1] sm:$0x1]  }
  0x41   :  { %v339_v57 = vld [vmem:[#allocation1] sm:$0x1]  }
  0x42   :  { %178 = vrot.lane.b32.xlu0 %v177_v30, %s602_s6  ;;  %v345_v58 = vld [vmem:[#allocation1] sm:$0x1]   ;;  %s632_s6 = smov 10  }
  0x43   :  { %184 = vrot.lane.b32.xlu1 %v183_v31, %s603_s7  ;;  %v351_v59 = vld [vmem:[#allocation1] sm:$0x1]   ;;  %s633_s7 = smov 8  }
  0x44   :  { %v357_v60 = vld [vmem:[#allocation1] sm:$0x1]  }
  0x45   :  { %v363_v61 = vld [vmem:[#allocation1] sm:$0x1]  }
  0x46   :  { %190 = vrot.lane.b32.xlu0 %v189_v32, %s604_s0  ;;  %v369_v0 = vld [vmem:[#allocation1] sm:$0x1]   ;;  %s634_s0 = smov 6  }
  0x47   :  { %196 = vrot.lane.b32.xlu1 %v195_v33, %s605_s8  ;;  %v375_v1 = vld [vmem:[#allocation1] sm:$0x1]   ;;  %s635_s8 = smov 4  }
  0x48   :  { %v381_v4 = vld [vmem:[#allocation1] sm:$0x1]  }
  0x4a   :  { %202 = vrot.lane.b32.xlu0 %v201_v34, %s606_s9  ;;  %s636_s9 = smov 2  }
  0x4b   :  { %208 = vrot.lane.b32.xlu1 %v207_v35, %s607_s10 }
  0x4e   :  { %214 = vrot.lane.b32.xlu0 %v213_v36, %s608_s11 }
  0x4f   :  { %220 = vrot.lane.b32.xlu1 %v219_v37, %s609_s12 }
  0x52   :  { %226 = vrot.lane.b32.xlu0 %v225_v38, %s610_s13 }
  0x53   :  { %232 = vrot.lane.b32.xlu1 %v231_v39, %s611_s14 }
  0x56   :  { %238 = vrot.lane.b32.xlu0 %v237_v40, %s612_s15 }
  0x57   :  { %244 = vrot.lane.b32.xlu1 %v243_v41, %s613_s16 }
  0x5a   :  { %250 = vrot.lane.b32.xlu0 %v249_v42, %s614_s17 }
  0x5b   :  { %256 = vrot.lane.b32.xlu1 %v255_v43, %s615_s18 }
  0x5e   :  { %262 = vrot.lane.b32.xlu0 %v261_v44, %s616_s19 }
  0x5f   :  { %268 = vrot.lane.b32.xlu1 %v267_v45, %s617_s20 }
  0x62   :  { %274 = vrot.lane.b32.xlu0 %v273_v46, %s618_s21 }
  0x63   :  { %280 = vrot.lane.b32.xlu1 %v279_v47, %s619_s22 }
  0x66   :  { %286 = vrot.lane.b32.xlu0 %v285_v48, %s620_s23 }
  0x67   :  { %292 = vrot.lane.b32.xlu1 %v291_v49, %s621_s24 }
  0x6a   :  { %298 = vrot.lane.b32.xlu0 %v297_v50, %s622_s25 }
  0x6b   :  { %304 = vrot.lane.b32.xlu1 %v303_v51, %s623_s26 }
  0x6e   :  { %310 = vrot.lane.b32.xlu0 %v309_v52, %s624_s27 }
  0x6f   :  { %316 = vrot.lane.b32.xlu1 %v315_v53, %s625_s28 }
  0x72   :  { %322 = vrot.lane.b32.xlu0 %v321_v54, %s626_s29 }
  0x73   :  { %328 = vrot.lane.b32.xlu1 %v327_v55, %s627_s30 }
  0x76   :  { %334 = vrot.lane.b32.xlu0 %v333_v56, %s628_s2 }
  0x77   :  { %340 = vrot.lane.b32.xlu1 %v339_v57, %s629_s3 }
  0x7a   :  { %346 = vrot.lane.b32.xlu0 %v345_v58, %s630_s4 }
  0x7b   :  { %352 = vrot.lane.b32.xlu1 %v351_v59, %s631_s5 }
  0x7c   :  { %v11_v62 = vpop.permute.xlu0 %10  }
  0x7d   :  { %v23_v63 = vpop.permute.xlu1 %22   ;;  %14 = vst.msk [vmem:[#allocation0 + $0x1] sm:$0x1] %vm7_vm0, %v11_v62  }
  0x7e   :  { %26 = vst.msk [vmem:[#allocation0 + $0x3] sm:$0x1] %vm7_vm0, %v23_v63   ;;  %358 = vrot.lane.b32.xlu0 %v357_v60, %s632_s6 }
  0x7f   :  { %364 = vrot.lane.b32.xlu1 %v363_v61, %s633_s7 }
  0x80   :  { %v17_v2 = vpop.permute.xlu0 %16  }
  0x81   :  { %v29_v3 = vpop.permute.xlu1 %28   ;;  %20 = vst.msk [vmem:[#allocation0 + $0x2] sm:$0x1] %vm7_vm0, %v17_v2  }
  0x82   :  { %32 = vst.msk [vmem:[#allocation0 + $0x8] sm:$0x1] %vm7_vm0, %v29_v3   ;;  %370 = vrot.lane.b32.xlu0 %v369_v0, %s634_s0 }
  0x83   :  { %376 = vrot.lane.b32.xlu1 %v375_v1, %s635_s8 }
  0x84   :  { %v35_v5 = vpop.permute.xlu0 %34  }
  0x85   :  { %v41_v6 = vpop.permute.xlu1 %40   ;;  %38 = vst.msk [vmem:[#allocation0 + $0x9] sm:$0x1] %vm7_vm0, %v35_v5  }
  0x86   :  { %44 = vst.msk [vmem:[#allocation0 + $0xa] sm:$0x1] %vm7_vm0, %v41_v6   ;;  %382 = vrot.lane.b32.xlu0 %v381_v4, %s636_s9 }
  0x88   :  { %v390_v7 = vld [vmem:[#allocation0] sm:$0xf]  ;;  %v47_v8 = vpop.permute.xlu0 %46  }
  0x89   :  { %v53_v9 = vpop.permute.xlu1 %52   ;;  %392 = vst [vmem:[%s763_s1] sm:$0xf] %v390_v7  ;;  %50 = vst.msk [vmem:[#allocation0 + $0xb] sm:$0x1] %vm7_vm0, %v47_v8  }
  0x8a   :  { %56 = vst.msk [vmem:[#allocation0 + $0x10] sm:$0x1] %vm7_vm0, %v53_v9  }
  0x8c   :  { %v59_v10 = vpop.permute.xlu0 %58  }
  0x8d   :  { %v65_v11 = vpop.permute.xlu1 %64   ;;  %62 = vst.msk [vmem:[#allocation0 + $0x11] sm:$0x1] %vm7_vm0, %v59_v10  }
  0x8e   :  { %68 = vst.msk [vmem:[#allocation0 + $0x12] sm:$0x1] %vm7_vm0, %v65_v11  }
  0x90   :  { %v394_v12 = vld [vmem:[#allocation0 + $0x8] sm:$0xf]  ;;  %v71_v13 = vpop.permute.xlu0 %70  }
  0x91   :  { %v77_v14 = vpop.permute.xlu1 %76   ;;  %496 = vst [vmem:[%s763_s1 + $0x4] sm:$0xf] %v394_v12  ;;  %74 = vst.msk [vmem:[#allocation0 + $0x13] sm:$0x1] %vm7_vm0, %v71_v13  }
  0x92   :  { %80 = vst.msk [vmem:[#allocation0 + $0x18] sm:$0x1] %vm7_vm0, %v77_v14  }
  0x94   :  { %v83_v15 = vpop.permute.xlu0 %82  }
  0x95   :  { %v89_v16 = vpop.permute.xlu1 %88   ;;  %86 = vst.msk [vmem:[#allocation0 + $0x19] sm:$0x1] %vm7_vm0, %v83_v15  }
  0x96   :  { %92 = vst.msk [vmem:[#allocation0 + $0x1a] sm:$0x1] %vm7_vm0, %v89_v16  }
  0x98   :  { %v399_v17 = vld [vmem:[#allocation0 + $0x10] sm:$0xf]  ;;  %v95_v18 = vpop.permute.xlu0 %94  }
  0x99   :  { %v101_v19 = vpop.permute.xlu1 %100   ;;  %497 = vst [vmem:[%s763_s1 + $0x8] sm:$0xf] %v399_v17  ;;  %98 = vst.msk [vmem:[#allocation0 + $0x1b] sm:$0x1] %vm7_vm0, %v95_v18  }
  0x9a   :  { %104 = vst.msk [vmem:[#allocation0 + $0x20] sm:$0x1] %vm7_vm0, %v101_v19  }
  0x9c   :  { %v107_v20 = vpop.permute.xlu0 %106  }
  0x9d   :  { %v113_v21 = vpop.permute.xlu1 %112   ;;  %110 = vst.msk [vmem:[#allocation0 + $0x21] sm:$0x1] %vm7_vm0, %v107_v20  }
  0x9e   :  { %116 = vst.msk [vmem:[#allocation0 + $0x22] sm:$0x1] %vm7_vm0, %v113_v21  }
  0xa0   :  { %v405_v22 = vld [vmem:[#allocation0 + $0x18] sm:$0xf]  ;;  %v119_v23 = vpop.permute.xlu0 %118  }
  0xa1   :  { %v125_v24 = vpop.permute.xlu1 %124   ;;  %498 = vst [vmem:[%s763_s1 + $0xc] sm:$0xf] %v405_v22  ;;  %122 = vst.msk [vmem:[#allocation0 + $0x23] sm:$0x1] %vm7_vm0, %v119_v23  }
  0xa2   :  { %128 = vst.msk [vmem:[#allocation0 + $0x28] sm:$0x1] %vm7_vm0, %v125_v24  }
  0xa4   :  { %v131_v25 = vpop.permute.xlu0 %130  }
  0xa5   :  { %v137_v26 = vpop.permute.xlu1 %136   ;;  %134 = vst.msk [vmem:[#allocation0 + $0x29] sm:$0x1] %vm7_vm0, %v131_v25  }
  0xa6   :  { %140 = vst.msk [vmem:[#allocation0 + $0x2a] sm:$0x1] %vm7_vm0, %v137_v26  }
  0xa8   :  { %v411_v27 = vld [vmem:[#allocation0 + $0x20] sm:$0xf]  ;;  %v143_v28 = vpop.permute.xlu0 %142  }
  0xa9   :  { %v149_v29 = vpop.permute.xlu1 %148   ;;  %499 = vst [vmem:[%s763_s1 + $0x10] sm:$0xf] %v411_v27  ;;  %146 = vst.msk [vmem:[#allocation0 + $0x2b] sm:$0x1] %vm7_vm0, %v143_v28  }
  0xaa   :  { %152 = vst.msk [vmem:[#allocation0 + $0x30] sm:$0x1] %vm7_vm0, %v149_v29  }
  0xac   :  { %v155_v30 = vpop.permute.xlu0 %154  }
  0xad   :  { %v161_v31 = vpop.permute.xlu1 %160   ;;  %158 = vst.msk [vmem:[#allocation0 + $0x31] sm:$0x1] %vm7_vm0, %v155_v30  }
  0xae   :  { %164 = vst.msk [vmem:[#allocation0 + $0x32] sm:$0x1] %vm7_vm0, %v161_v31  }
  0xb0   :  { %v417_v32 = vld [vmem:[#allocation0 + $0x28] sm:$0xf]  ;;  %v167_v33 = vpop.permute.xlu0 %166  }
  0xb1   :  { %v173_v34 = vpop.permute.xlu1 %172   ;;  %500 = vst [vmem:[%s763_s1 + $0x14] sm:$0xf] %v417_v32  ;;  %170 = vst.msk [vmem:[#allocation0 + $0x33] sm:$0x1] %vm7_vm0, %v167_v33  }
  0xb2   :  { %176 = vst.msk [vmem:[#allocation0 + $0x38] sm:$0x1] %vm7_vm0, %v173_v34  }
  0xb4   :  { %v179_v35 = vpop.permute.xlu0 %178  }
  0xb5   :  { %v185_v36 = vpop.permute.xlu1 %184   ;;  %182 = vst.msk [vmem:[#allocation0 + $0x39] sm:$0x1] %vm7_vm0, %v179_v35  }
  0xb6   :  { %188 = vst.msk [vmem:[#allocation0 + $0x3a] sm:$0x1] %vm7_vm0, %v185_v36  }
  0xb8   :  { %v423_v37 = vld [vmem:[#allocation0 + $0x30] sm:$0xf]  ;;  %v191_v38 = vpop.permute.xlu0 %190  }
  0xb9   :  { %v197_v39 = vpop.permute.xlu1 %196   ;;  %501 = vst [vmem:[%s763_s1 + $0x18] sm:$0xf] %v423_v37  ;;  %194 = vst.msk [vmem:[#allocation0 + $0x3b] sm:$0x1] %vm7_vm0, %v191_v38  }
  0xba   :  { %200 = vst.msk [vmem:[#allocation0 + $0x40] sm:$0x1] %vm7_vm0, %v197_v39  }
  0xbc   :  { %v203_v40 = vpop.permute.xlu0 %202  }
  0xbd   :  { %v209_v41 = vpop.permute.xlu1 %208   ;;  %206 = vst.msk [vmem:[#allocation0 + $0x41] sm:$0x1] %vm7_vm0, %v203_v40  }
  0xbe   :  { %212 = vst.msk [vmem:[#allocation0 + $0x42] sm:$0x1] %vm7_vm0, %v209_v41  }
  0xc0   :  { %v429_v42 = vld [vmem:[#allocation0 + $0x38] sm:$0xf]  ;;  %v215_v43 = vpop.permute.xlu0 %214  }
  0xc1   :  { %v221_v44 = vpop.permute.xlu1 %220   ;;  %502 = vst [vmem:[%s763_s1 + $0x1c] sm:$0xf] %v429_v42  ;;  %218 = vst.msk [vmem:[#allocation0 + $0x43] sm:$0x1] %vm7_vm0, %v215_v43  }
  0xc2   :  { %224 = vst.msk [vmem:[#allocation0 + $0x48] sm:$0x1] %vm7_vm0, %v221_v44  }
  0xc4   :  { %v227_v45 = vpop.permute.xlu0 %226  }
  0xc5   :  { %v233_v46 = vpop.permute.xlu1 %232   ;;  %230 = vst.msk [vmem:[#allocation0 + $0x49] sm:$0x1] %vm7_vm0, %v227_v45  }
  0xc6   :  { %236 = vst.msk [vmem:[#allocation0 + $0x4a] sm:$0x1] %vm7_vm0, %v233_v46  }
  0xc8   :  { %v435_v47 = vld [vmem:[#allocation0 + $0x40] sm:$0xf]  ;;  %v239_v48 = vpop.permute.xlu0 %238  }
  0xc9   :  { %v245_v49 = vpop.permute.xlu1 %244   ;;  %503 = vst [vmem:[%s763_s1 + $0x20] sm:$0xf] %v435_v47  ;;  %242 = vst.msk [vmem:[#allocation0 + $0x4b] sm:$0x1] %vm7_vm0, %v239_v48  }
  0xca   :  { %248 = vst.msk [vmem:[#allocation0 + $0x50] sm:$0x1] %vm7_vm0, %v245_v49  }
  0xcc   :  { %v251_v50 = vpop.permute.xlu0 %250  }
  0xcd   :  { %v257_v51 = vpop.permute.xlu1 %256   ;;  %254 = vst.msk [vmem:[#allocation0 + $0x51] sm:$0x1] %vm7_vm0, %v251_v50  }
  0xce   :  { %260 = vst.msk [vmem:[#allocation0 + $0x52] sm:$0x1] %vm7_vm0, %v257_v51  }
  0xd0   :  { %v441_v52 = vld [vmem:[#allocation0 + $0x48] sm:$0xf]  ;;  %v263_v53 = vpop.permute.xlu0 %262  }
  0xd1   :  { %v269_v54 = vpop.permute.xlu1 %268   ;;  %504 = vst [vmem:[%s763_s1 + $0x24] sm:$0xf] %v441_v52  ;;  %266 = vst.msk [vmem:[#allocation0 + $0x53] sm:$0x1] %vm7_vm0, %v263_v53  }
  0xd2   :  { %272 = vst.msk [vmem:[#allocation0 + $0x58] sm:$0x1] %vm7_vm0, %v269_v54  }
  0xd4   :  { %v275_v55 = vpop.permute.xlu0 %274  }
  0xd5   :  { %v281_v56 = vpop.permute.xlu1 %280   ;;  %278 = vst.msk [vmem:[#allocation0 + $0x59] sm:$0x1] %vm7_vm0, %v275_v55  }
  0xd6   :  { %284 = vst.msk [vmem:[#allocation0 + $0x5a] sm:$0x1] %vm7_vm0, %v281_v56  }
  0xd8   :  { %v447_v57 = vld [vmem:[#allocation0 + $0x50] sm:$0xf]  ;;  %v287_v58 = vpop.permute.xlu0 %286  }
  0xd9   :  { %v293_v59 = vpop.permute.xlu1 %292   ;;  %505 = vst [vmem:[%s763_s1 + $0x28] sm:$0xf] %v447_v57  ;;  %290 = vst.msk [vmem:[#allocation0 + $0x5b] sm:$0x1] %vm7_vm0, %v287_v58  }
  0xda   :  { %296 = vst.msk [vmem:[#allocation0 + $0x60] sm:$0x1] %vm7_vm0, %v293_v59  }
  0xdc   :  { %v299_v60 = vpop.permute.xlu0 %298  }
  0xdd   :  { %v305_v61 = vpop.permute.xlu1 %304   ;;  %302 = vst.msk [vmem:[#allocation0 + $0x61] sm:$0x1] %vm7_vm0, %v299_v60  }
  0xde   :  { %308 = vst.msk [vmem:[#allocation0 + $0x62] sm:$0x1] %vm7_vm0, %v305_v61  }
  0xe0   :  { %v453_v62 = vld [vmem:[#allocation0 + $0x58] sm:$0xf]  ;;  %v311_v63 = vpop.permute.xlu0 %310  }
  0xe1   :  { %v317_v0 = vpop.permute.xlu1 %316   ;;  %506 = vst [vmem:[%s763_s1 + $0x2c] sm:$0xf] %v453_v62  ;;  %314 = vst.msk [vmem:[#allocation0 + $0x63] sm:$0x1] %vm7_vm0, %v311_v63  }
  0xe2   :  { %320 = vst.msk [vmem:[#allocation0 + $0x68] sm:$0x1] %vm7_vm0, %v317_v0  }
  0xe4   :  { %v323_v1 = vpop.permute.xlu0 %322  }
  0xe5   :  { %v329_v2 = vpop.permute.xlu1 %328   ;;  %326 = vst.msk [vmem:[#allocation0 + $0x69] sm:$0x1] %vm7_vm0, %v323_v1  }
  0xe6   :  { %332 = vst.msk [vmem:[#allocation0 + $0x6a] sm:$0x1] %vm7_vm0, %v329_v2  }
  0xe8   :  { %v459_v3 = vld [vmem:[#allocation0 + $0x60] sm:$0xf]  ;;  %v335_v4 = vpop.permute.xlu0 %334  }
  0xe9   :  { %v341_v5 = vpop.permute.xlu1 %340   ;;  %507 = vst [vmem:[%s763_s1 + $0x30] sm:$0xf] %v459_v3  ;;  %338 = vst.msk [vmem:[#allocation0 + $0x6b] sm:$0x1] %vm7_vm0, %v335_v4  }
  0xea   :  { %344 = vst.msk [vmem:[#allocation0 + $0x70] sm:$0x1] %vm7_vm0, %v341_v5  }
  0xec   :  { %v347_v6 = vpop.permute.xlu0 %346  }
  0xed   :  { %v353_v7 = vpop.permute.xlu1 %352   ;;  %350 = vst.msk [vmem:[#allocation0 + $0x71] sm:$0x1] %vm7_vm0, %v347_v6  }
  0xee   :  { %356 = vst.msk [vmem:[#allocation0 + $0x72] sm:$0x1] %vm7_vm0, %v353_v7  }
  0xf0   :  { %v465_v8 = vld [vmem:[#allocation0 + $0x68] sm:$0xf]  ;;  %v359_v9 = vpop.permute.xlu0 %358  }
  0xf1   :  { %v365_v10 = vpop.permute.xlu1 %364   ;;  %508 = vst [vmem:[%s763_s1 + $0x34] sm:$0xf] %v465_v8  ;;  %362 = vst.msk [vmem:[#allocation0 + $0x73] sm:$0x1] %vm7_vm0, %v359_v9  }
  0xf2   :  { %368 = vst.msk [vmem:[#allocation0 + $0x78] sm:$0x1] %vm7_vm0, %v365_v10  }
  0xf4   :  { %v371_v11 = vpop.permute.xlu0 %370  }
  0xf5   :  { %v377_v12 = vpop.permute.xlu1 %376   ;;  %374 = vst.msk [vmem:[#allocation0 + $0x79] sm:$0x1] %vm7_vm0, %v371_v11  }
  0xf6   :  { %380 = vst.msk [vmem:[#allocation0 + $0x7a] sm:$0x1] %vm7_vm0, %v377_v12  }
  0xf8   :  { %v471_v13 = vld [vmem:[#allocation0 + $0x70] sm:$0xf]  ;;  %v383_v14 = vpop.permute.xlu0 %382  }
  0xf9   :  { %509 = vst [vmem:[%s763_s1 + $0x38] sm:$0xf] %v471_v13  ;;  %386 = vst.msk [vmem:[#allocation0 + $0x7b] sm:$0x1] %vm7_vm0, %v383_v14  }
 0x100   :  { %v477_v15 = vld [vmem:[#allocation0 + $0x78] sm:$0xf] }
 0x101   :  { %510 = vst [vmem:[%s763_s1 + $0x3c] sm:$0xf] %v477_v15 }

// kernel: ind_decoder_forward.1
= control target key start
LH: loop header
LB: loop body
LE: loop exit
PB: predicated region body
PF: predicated region fallthrough
CT: control target
= control target key end

     0   :  { %vm97_vm0 = vcmask 523264   ;;  %s10485_s15 = smov 64   ;;  %vm258_vm1 = vcmask 1048064   ;;  %vm2331_vm2 = vcmask 516096   ;;  %vm2313_vm3 = vcmask 517120   ;;  %s15357_s0 = inlined_call_operand.vmem [shape: f32[2,2,10,10,64], index: 0, kind: input, shape index: {}]   ;;  %s15358_s3 = inlined_call_operand.vmem [shape: bf16[576,64], index: 3, kind: input, shape index: {}]   ;;  %s15359_s6 = inlined_call_operand.vmem [shape: bf16[576,64], index: 6, kind: input, shape index: {}]   ;;  %s15360_s4 = inlined_call_operand.vmem [shape: f32[1,64], index: 4, kind: input, shape index: {}]   ;;  %s15361_s5 = inlined_call_operand.vmem [shape: f32[1,64], index: 5, kind: input, shape index: {}]   ;;  %s15362_s7 = inlined_call_operand.vmem [shape: bf16[576,64], index: 7, kind: input, shape index: {}]   ;;  %s15363_s1 = inlined_call_operand.vmem [shape: f32[2,10,10,64], index: 1, kind: input, shape index: {}]   ;;  %s15364_s11 = inlined_call_operand.vmem [shape: bf16[1728,8], index: 11, kind: input, shape index: {}]   ;;  %s15365_s8 = inlined_call_operand.vmem [shape: f32[1,64], index: 8, kind: input, shape index: {}]   ;;  %s15366_s9 = inlined_call_operand.vmem [shape: f32[1,64], index: 9, kind: input, shape index: {}]   ;;  %s15367_s10 = inlined_call_operand.<no memory space> [shape: f32[1], index: 10, kind: input, shape index: {}]   ;;  %s15368_s2 = inlined_call_operand.vmem [shape: f32[2,10,10,64], index: 2, kind: input, shape index: {}]   ;;  %s15369_s12 = inlined_call_operand.vmem [shape: f32[1,8], index: 12, kind: input, shape index: {}]   ;;  %s15370_s13 = inlined_call_operand.vmem [shape: f32[1,8], index: 13, kind: input, shape index: {}]   ;;  %s15371_s14 = inlined_call_operand.vmem [shape: f32[128,8], index: 14, kind: output, shape index: {}]  }
   0x1   :  { %v10566_v0 = vld [vmem:[%s15357_s0 + $0x10] sm:$0xff]  ;;  %v8335_v1 = vld [vmem:[%s15357_s0 + $0x20] sm:$0xff] }
   0x2   :  { %v8336_v2 = vld [vmem:[%s15357_s0 + $0x30] sm:$0xff]  ;;  %v468_v3 = vpack.c.bf16 %v8335_v1, %v10566_v0  ;;  %v8337_v4 = vld [vmem:[%s15357_s0 + $0x40] sm:$0xff] }
   0x3   :  { %v146_v5 = vld [vmem:[%s15357_s0 + $0x1] sm:$0xff]  ;;  %v147_v6 = vld [vmem:[%s15357_s0 + $0x11] sm:$0xff]  ;;  %v82_v7 = vpack.c.bf16 %v8336_v2, %v8335_v1  ;;  %v469_v8 = vpack.c.bf16 %v8337_v4, %v8336_v2 }
   0x4   :  { %v148_v9 = vld [vmem:[%s15357_s0 + $0x21] sm:$0xff]  ;;  %v149_v10 = vld [vmem:[%s15357_s0 + $0x31] sm:$0xff]  ;;  %500 = vrot.lane.b32.xlu0 %v468_v3, %s10485_s15  ;;  %v178_v12 = vpack.c.bf16 %v147_v6, %v146_v5 }
   0x5   :  { %v8338_v11 = vld [vmem:[%s15357_s0 + $0x50] sm:$0xff]  ;;  %99 = vst.msk [vmem:[#allocation2 + $0x28] sm:$0xff] %vm97_vm0, %v82_v7  ;;  %502 = vrot.lane.b32.xlu1 %v469_v8, %s10485_s15  ;;  %v10596_v14 = vpack.c.bf16 %v149_v10, %v148_v9  ;;  %v8339_v15 = vld [vmem:[%s15357_s0 + $0x60] sm:$0xff] }
   0x6   :  { %v83_v13 = vpack.c.bf16 %v8338_v11, %v8337_v4  ;;  %v8340_v16 = vld [vmem:[%s15357_s0 + $0x70] sm:$0xff]  ;;  %v150_v17 = vld [vmem:[%s15357_s0 + $0x41] sm:$0xff]  ;;  %v470_v20 = vpack.c.bf16 %v8339_v15, %v8338_v11 }
   0x7   :  { %v151_v18 = vld [vmem:[%s15357_s0 + $0x51] sm:$0xff]  ;;  %v84_v19 = vpack.c.bf16 %v8340_v16, %v8339_v15  ;;  %v8341_v22 = vld [vmem:[%s15357_s0 + $0x80] sm:$0xff]  ;;  %v10142_v15 = vld [vmem:[%s15358_s3 + $0x8] sm:$0xff]  }
   0x8   :  { %100 = vst.msk [vmem:[#allocation2 + $0x50] sm:$0xff] %vm97_vm0, %v83_v13  ;;  %210 = vrot.lane.b32.xlu0 %v178_v12, %s10485_s15  ;;  %v10615_v21 = vpack.c.bf16 %v151_v18, %v150_v17  ;;  %v152_v23 = vld [vmem:[%s15357_s0 + $0x61] sm:$0xff]  ;;  %v153_v24 = vld [vmem:[%s15357_s0 + $0x71] sm:$0xff]  ;;  %v471_v28 = vpack.c.bf16 %v8341_v22, %v8340_v16 }
   0x9   :  { %101 = vst.msk [vmem:[#allocation2 + $0x78] sm:$0xff] %vm97_vm0, %v84_v19  ;;  %212 = vrot.lane.b32.xlu1 %v10596_v14, %s10485_s15  ;;  %v8343_v25 = vld [vmem:[%s15357_s0 + $0xc0] sm:$0xff]  ;;  %v8344_v26 = vld [vmem:[%s15357_s0 + $0xd0] sm:$0xff]  ;;  %v10635_v29 = vpack.c.bf16 %v153_v24, %v152_v23  ;;  %v10141_v12 = vld [vmem:[%s15358_s3 + $0x48] sm:$0xff]  }
   0xa   :  { %v86_v27 = vpack.c.bf16 %v8344_v26, %v8343_v25  ;;  %v10640_v30 = vld [vmem:[%s15357_s0 + $0xb0] sm:$0xff]  ;;  %v154_v31 = vld [vmem:[%s15357_s0 + $0xa1] sm:$0xff] }
   0xb   :  { %v155_v32 = vld [vmem:[%s15357_s0 + $0xb1] sm:$0xff]  ;;  %v8345_v33 = vld [vmem:[%s15357_s0 + $0xe0] sm:$0xff]  ;;  %v472_v36 = vpack.c.bf16 %v8343_v25, %v10640_v30 }
   0xc   :  { %504 = vrot.lane.b32.xlu0 %v470_v20, %s10485_s15  ;;  %103 = vst.msk [vmem:[#allocation2 + $0xc8] sm:$0xff] %vm97_vm0, %v86_v27  ;;  %v8346_v34 = vld [vmem:[%s15357_s0 + $0xf0] sm:$0xff]  ;;  %v182_v37 = vpack.c.bf16 %v155_v32, %v154_v31  ;;  %v156_v38 = vld [vmem:[%s15357_s0 + $0xc1] sm:$0xff]  ;;  %v473_v43 = vpack.c.bf16 %v8345_v33, %v8344_v26  ;;  %v10145_v31 = vld [vmem:[%s15358_s3 + $0x58] sm:$0xff]  }
   0xd   :  { %214 = vrot.lane.b32.xlu1 %v10615_v21, %s10485_s15  ;;  %v87_v35 = vpack.c.bf16 %v8346_v34, %v8345_v33  ;;  %v157_v39 = vld [vmem:[%s15357_s0 + $0xd1] sm:$0xff]  ;;  %v8347_v40 = vld [vmem:[%s15357_s0 + $0x100] sm:$0xff] }
   0xe   :  { %v8348_v41 = vld [vmem:[%s15357_s0 + $0x110] sm:$0xff]  ;;  %v10674_v44 = vpack.c.bf16 %v157_v39, %v156_v38  ;;  %v158_v45 = vld [vmem:[%s15357_s0 + $0xe1] sm:$0xff]  ;;  %v474_v51 = vpack.c.bf16 %v8347_v40, %v8346_v34  ;;  %v10146_v39 = vld [vmem:[%s15358_s3 + $0x18] sm:$0xff]  }
   0xf   :  { %104 = vst.msk [vmem:[#allocation2 + $0xf0] sm:$0xff] %vm97_vm0, %v87_v35  ;;  %v88_v42 = vpack.c.bf16 %v8348_v41, %v8347_v40  ;;  %v159_v46 = vld [vmem:[%s15357_s0 + $0xf1] sm:$0xff]  ;;  %v10686_v47 = vld [vmem:[%s15357_s0 + $0x22] sm:$0xff] }
  0x10   :  { %506 = vrot.lane.b32.xlu0 %v471_v28, %s10485_s15  ;;  %v10691_v48 = vld [vmem:[%s15357_s0 + $0x32] sm:$0xff]  ;;  %v10696_v49 = vld [vmem:[%s15357_s0 + $0x42] sm:$0xff]  ;;  %v10719_v57 = vpack.c.bf16 %v159_v46, %v158_v45 }
  0x11   :  { %216 = vrot.lane.b32.xlu1 %v10635_v29, %s10485_s15  ;;  %105 = vst.msk [vmem:[#allocation2 + $0x118] sm:$0xff] %vm97_vm0, %v88_v42  ;;  %v10701_v50 = vld [vmem:[%s15357_s0 + $0x52] sm:$0xff]  ;;  %v8349_v52 = vld [vmem:[%s15357_s0 + $0x120] sm:$0xff]  ;;  %v372_v55 = vpack.c.bf16 %v10691_v48, %v10686_v47 }
  0x12   :  { %v160_v53 = vld [vmem:[%s15357_s0 + $0x101] sm:$0xff]  ;;  %v161_v54 = vld [vmem:[%s15357_s0 + $0x111] sm:$0xff]  ;;  %v373_v56 = vpack.c.bf16 %v10701_v50, %v10696_v49  ;;  %v475_v3 = vpack.c.bf16 %v8349_v52, %v8348_v41 }
  0x13   :  { %v8351_v58 = vld [vmem:[%s15357_s0 + $0x160] sm:$0xff]  ;;  %v10732_v60 = vld [vmem:[%s15357_s0 + $0x72] sm:$0xff]  ;;  %388 = vst.msk [vmem:[#allocation2 + $0x30] sm:$0xff] %vm97_vm0, %v372_v55  ;;  %v10783_v11 = vpack.c.bf16 %v161_v54, %v160_v53 }
  0x14   :  { %508 = vrot.lane.b32.xlu0 %v472_v36, %s10485_s15  ;;  %v10727_v59 = vld [vmem:[%s15357_s0 + $0x62] sm:$0xff]  ;;  %v10737_v61 = vld [vmem:[%s15357_s0 + $0x170] sm:$0xff]  ;;  %389 = vst.msk [vmem:[#allocation2 + $0x58] sm:$0xff] %vm97_vm0, %v373_v56 }
  0x15   :  { %218 = vrot.lane.b32.xlu1 %v182_v37, %s10485_s15  ;;  %v374_v62 = vpack.c.bf16 %v10732_v60, %v10727_v59  ;;  %v10746_v63 = vld [vmem:[%s15357_s0 + $0x150] sm:$0xff]  ;;  %v10139_v1 = vld [vmem:[%s15358_s3 + $0x40] sm:$0xff]   ;;  %v90_v2 = vpack.c.bf16 %v10737_v61, %v8351_v58 }
  0x16   :  { %v162_v4 = vld [vmem:[%s15357_s0 + $0x141] sm:$0xff]  ;;  %v163_v5 = vld [vmem:[%s15357_s0 + $0x151] sm:$0xff]  ;;  %9004 = vmatprep.subr.bf16.mxu0 %v10139_v1  ;;  %v476_v18 = vpack.c.bf16 %v8351_v58, %v10746_v63 }
  0x17   :  { %v8353_v6 = vld [vmem:[%s15357_s0 + $0x180] sm:$0xff]  ;;  %v10765_v7 = vld [vmem:[%s15357_s0 + $0x190] sm:$0xff]  ;;  %390 = vst.msk [vmem:[#allocation2 + $0x80] sm:$0xff] %vm97_vm0, %v374_v62  ;;  %107 = vst.msk [vmem:[#allocation2 + $0x168] sm:$0xff] %vm97_vm0, %v90_v2  ;;  %v186_v24 = vpack.c.bf16 %v163_v5, %v162_v4 }
  0x18   :  { %510 = vrot.lane.b32.xlu0 %v473_v43, %s10485_s15  ;;  %v10770_v8 = vld [vmem:[%s15357_s0 + $0xc2] sm:$0xff]  ;;  %v10778_v10 = vld [vmem:[%s15357_s0 + $0xd2] sm:$0xff]  ;;  %v91_v17 = vpack.c.bf16 %v10765_v7, %v8353_v6  ;;  %v477_v33 = vpack.c.bf16 %v8353_v6, %v10737_v61 }
  0x19   :  { %220 = vrot.lane.b32.xlu1 %v10674_v44, %s10485_s15  ;;  %v10140_v9 = vld [vmem:[%s15358_s3] sm:$0xff]   ;;  %v376_v13 = vpack.c.bf16 %v10778_v10, %v10770_v8  ;;  %v10143_v16 = vld [vmem:[%s15358_s3 + $0x50] sm:$0xff]   ;;  %v10149_v1 = vld [vmem:[%s15358_s3 + $0x68] sm:$0xff]  }
  0x1a   :  { %9005 = vmatpush3.bf16.msra.mxu0 %v10140_v9  ;;  %v164_v19 = vld [vmem:[%s15357_s0 + $0x161] sm:$0xff]  ;;  %v165_v20 = vld [vmem:[%s15357_s0 + $0x171] sm:$0xff]  ;;  %108 = vst.msk [vmem:[#allocation2 + $0x190] sm:$0xff] %vm97_vm0, %v91_v17 }
  0x1b   :  { %9006 = vmatprep.subr.bf16.mxu0 %v10141_v12  ;;  %392 = vst.msk [vmem:[#allocation2 + $0xd0] sm:$0xff] %vm97_vm0, %v376_v13  ;;  %v8355_v22 = vld [vmem:[%s15357_s0 + $0x1a0] sm:$0xff]  ;;  %v10813_v23 = vld [vmem:[%s15357_s0 + $0x1b0] sm:$0xff]  ;;  %v10841_v34 = vpack.c.bf16 %v165_v20, %v164_v19  ;;  %v10150_v9 = vld [vmem:[%s15358_s3 + $0x28] sm:$0xff]  }
  0x1c   :  { %512 = vrot.lane.b32.xlu0 %v474_v51, %s10485_s15  ;;  %v10820_v25 = vld [vmem:[%s15357_s0 + $0xe2] sm:$0xff]  ;;  %v10825_v26 = vld [vmem:[%s15357_s0 + $0xf2] sm:$0xff]  ;;  %v92_v32 = vpack.c.bf16 %v10813_v23, %v8355_v22  ;;  %v478_v45 = vpack.c.bf16 %v8355_v22, %v10765_v7 }
  0x1d   :  { %222 = vrot.lane.b32.xlu1 %v10719_v57, %s10485_s15  ;;  %v10144_v27 = vld [vmem:[%s15358_s3 + $0x10] sm:$0xff]   ;;  %v377_v28 = vpack.c.bf16 %v10825_v26, %v10820_v25  ;;  %v166_v35 = vld [vmem:[%s15357_s0 + $0x181] sm:$0xff] }
  0x1e   :  { %9007 = vmatpush3.bf16.msra.mxu0 %v10142_v15  ;;  %v167_v36 = vld [vmem:[%s15357_s0 + $0x191] sm:$0xff]  ;;  %109 = vst.msk [vmem:[#allocation2 + $0x1b8] sm:$0xff] %vm97_vm0, %v92_v32  ;;  %v10858_v38 = vld [vmem:[%s15357_s0 + $0x102] sm:$0xff] }
  0x1f   :  { %9008 = vmatprep.subr.bf16.mxu0 %v10143_v16  ;;  %393 = vst.msk [vmem:[#allocation2 + $0xf8] sm:$0xff] %vm97_vm0, %v377_v28  ;;  %v10853_v37 = vld [vmem:[%s15357_s0 + $0x12] sm:$0xff]  ;;  %v8357_v41 = vld [vmem:[%s15357_s0 + $0x1c0] sm:$0xff]  ;;  %v10892_v54 = vpack.c.bf16 %v167_v36, %v166_v35 }
  0x20   :  { %514 = vrot.lane.b32.xlu0 %v475_v3, %s10485_s15  ;;  %v10866_v40 = vld [vmem:[%s15357_s0 + $0x112] sm:$0xff]  ;;  %v10147_v42 = vld [vmem:[%s15358_s3 + $0x60] sm:$0xff]   ;;  %v479_v4 = vpack.c.bf16 %v8357_v41, %v10813_v23 }
  0x21   :  { %224 = vrot.lane.b32.xlu1 %v10783_v11, %s10485_s15  ;;  %v378_v43 = vpack.c.bf16 %v10866_v40, %v10858_v38  ;;  %v168_v46 = vld [vmem:[%s15357_s0 + $0x1a1] sm:$0xff]  ;;  %v169_v51 = vld [vmem:[%s15357_s0 + $0x1b1] sm:$0xff] }
  0x22   :  { %9009 = vmatpush3.bf16.msra.mxu0 %v10144_v27  ;;  %v8359_v52 = vld [vmem:[%s15357_s0 + $0x200] sm:$0xff]  ;;  %v10897_v55 = vld [vmem:[%s15357_s0 + $0x210] sm:$0xff]  ;;  %v10941_v12 = vpack.c.bf16 %v169_v51, %v168_v46  ;;  %v11029_v51 = vld [vmem:[%s15358_s3 + $0xc8] sm:$0xff]  }
  0x23   :  { %9010 = vmatprep.subr.bf16.mxu0 %v10145_v31  ;;  %v339_v53 = vld [vmem:[%s15357_s0 + $0x2] sm:$0xff]  ;;  %394 = vst.msk [vmem:[#allocation2 + $0x120] sm:$0xff] %vm97_vm0, %v378_v43  ;;  %v10910_v62 = vld [vmem:[%s15357_s0 + $0x1f0] sm:$0xff]  ;;  %v94_v3 = vpack.c.bf16 %v10897_v55, %v8359_v52 }
  0x24   :  { %516 = vrot.lane.b32.xlu0 %v476_v18, %s10485_s15  ;;  %v371_v56 = vpack.c.bf16 %v10853_v37, %v339_v53  ;;  %v10148_v58 = vld [vmem:[%s15358_s3 + $0x20] sm:$0xff]   ;;  %v171_v6 = vld [vmem:[%s15357_s0 + $0x1f1] sm:$0xff]  ;;  %v480_v19 = vpack.c.bf16 %v8359_v52, %v10910_v62 }
  0x25   :  { %226 = vrot.lane.b32.xlu1 %v186_v24, %s10485_s15  ;;  %v49_v61 = vld [vmem:[%s15357_s0] sm:$0xff]  ;;  %v10151_v13 = vld [vmem:[%s15358_s3 + $0x70] sm:$0xff]   ;;  %111 = vst.msk [vmem:[#allocation2 + $0x208] sm:$0xff] %vm97_vm0, %v94_v3 }
  0x26   :  { %9011 = vmatpush3.bf16.msra.mxu0 %v10146_v39  ;;  %387 = vst.msk [vmem:[#allocation2 + $0x8] sm:$0xff] %vm97_vm0, %v371_v56  ;;  %v81_v2 = vpack.c.bf16 %v10566_v0, %v49_v61  ;;  %v170_v5 = vld [vmem:[%s15357_s0 + $0x1e1] sm:$0xff]  ;;  %v10934_v0 = vld [vmem:[%s15357_s0 + $0x230] sm:$0xff] }
  0x27   :  { %9012 = vmatprep.subr.bf16.mxu0 %v10147_v42  ;;  %v10929_v7 = vld [vmem:[%s15357_s0 + $0x220] sm:$0xff]  ;;  %v10956_v16 = vld [vmem:[%s15357_s0 + $0xb2] sm:$0xff] }
  0x28   :  { %518 = vrot.lane.b32.xlu0 %v477_v33, %s10485_s15  ;;  %98 = vst.msk [vmem:[#allocation2] sm:$0xff] %vm97_vm0, %v81_v2  ;;  %v10951_v15 = vld [vmem:[%s15357_s0 + $0x162] sm:$0xff]  ;;  %v95_v18 = vpack.c.bf16 %v10934_v0, %v10929_v7  ;;  %v173_v22 = vld [vmem:[%s15357_s0 + $0x211] sm:$0xff]  ;;  %v190_v33 = vpack.c.bf16 %v171_v6, %v170_v5 }
  0x29   :  { %228 = vrot.lane.b32.xlu1 %v10841_v34, %s10485_s15  ;;  %v10961_v17 = vld [vmem:[%s15358_s3 + $0xc0] sm:$0xff]   ;;  %v10981_v24 = vld [vmem:[%s15357_s0 + $0x250] sm:$0xff]  ;;  %v10153_v42 = vld [vmem:[%s15358_s3 + $0x78] sm:$0xff]  }
  0x2a   :  { %9013 = vmatpush3.bf16.msra.mxu0 %v10148_v58  ;;  %v172_v20 = vld [vmem:[%s15357_s0 + $0x201] sm:$0xff]  ;;  %v10152_v27 = vld [vmem:[%s15358_s3 + $0x30] sm:$0xff]   ;;  %10120 = vmatprep.subr.bf16.mxu1 %v10961_v17  ;;  %112 = vst.msk [vmem:[#allocation2 + $0x230] sm:$0xff] %vm97_vm0, %v95_v18 }
  0x2b   :  { %9014 = vmatprep.subr.bf16.mxu0 %v10149_v1  ;;  %v10976_v23 = vld [vmem:[%s15357_s0 + $0x240] sm:$0xff]  ;;  %v10994_v31 = vld [vmem:[%s15357_s0 + $0x172] sm:$0xff]  ;;  %v11050_v58 = vld [vmem:[%s15358_s3 + $0x88] sm:$0xff]  }
  0x2c   :  { %520 = vrot.lane.b32.xlu0 %v478_v45, %s10485_s15  ;;  %v10989_v28 = vld [vmem:[%s15358_s3 + $0x80] sm:$0xff]   ;;  %v11012_v39 = vld [vmem:[%s15357_s0 + $0x192] sm:$0xff]  ;;  %v380_v41 = vpack.c.bf16 %v10994_v31, %v10951_v15  ;;  %v96_v52 = vpack.c.bf16 %v10981_v24, %v10976_v23 }
  0x2d   :  { %230 = vrot.lane.b32.xlu1 %v10892_v54, %s10485_s15  ;;  %v10999_v32 = vld [vmem:[%s15357_s0 + $0x182] sm:$0xff]  ;;  %10128 = vmatpush3.bf16.msra.mxu1 %v10989_v28  ;;  %v11043_v56 = vld [vmem:[%s15357_s0 + $0x152] sm:$0xff] }
  0x2e   :  { %v347_v35 = vld [vmem:[%s15357_s0 + $0xa2] sm:$0xff]  ;;  %9015 = vmatpush3.bf16.msra.mxu0 %v10150_v9  ;;  %v381_v46 = vpack.c.bf16 %v11012_v39, %v10999_v32  ;;  %396 = vst.msk [vmem:[#allocation2 + $0x170] sm:$0xff] %vm97_vm0, %v380_v41  ;;  %v11064_v1 = vld [vmem:[%s15357_s0 + $0x1b2] sm:$0xff]  ;;  %10121 = vmatprep.subr.bf16.mxu1 %v11029_v51  ;;  %113 = vst.msk [vmem:[#allocation2 + $0x258] sm:$0xff] %vm97_vm0, %v96_v52 }
  0x2f   :  { %v57_v36 = vld [vmem:[%s15357_s0 + $0xa0] sm:$0xff]  ;;  %v375_v43 = vpack.c.bf16 %v10956_v16, %v347_v35  ;;  %9016 = vmatprep.subr.bf16.mxu0 %v10151_v13  ;;  %v175_v3 = vld [vmem:[%s15357_s0 + $0x231] sm:$0xff] }
  0x30   :  { %522 = vrot.lane.b32.xlu0 %v479_v4, %s10485_s15  ;;  %v85_v45 = vpack.c.bf16 %v10640_v30, %v57_v36  ;;  %v481_v30 = vpack.c.bf16 %v10929_v7, %v10897_v55  ;;  %v174_v53 = vld [vmem:[%s15357_s0 + $0x221] sm:$0xff]  ;;  %397 = vst.msk [vmem:[#allocation2 + $0x198] sm:$0xff] %vm97_vm0, %v381_v46  ;;  %v11054_v55 = vpack.c.bf16 %v173_v22, %v172_v20  ;;  %v10154_v4 = vld [vmem:[%s15358_s3 + $0x38] sm:$0xff]   ;;  %v11101_v20 = vld [vmem:[%s15358_s3 + $0xd0] sm:$0xff]  }
  0x31   :  { %232 = vrot.lane.b32.xlu1 %v10941_v12, %s10485_s15  ;;  %391 = vst.msk [vmem:[#allocation2 + $0xa8] sm:$0xff] %vm97_vm0, %v375_v43  ;;  %v11059_v61 = vld [vmem:[%s15357_s0 + $0x1a2] sm:$0xff]  ;;  %10129 = vmatpush3.bf16.msra.mxu1 %v11050_v58  ;;  %v11091_v18 = vld [vmem:[%s15357_s0 + $0x1f2] sm:$0xff] }
  0x32   :  { %102 = vst.msk [vmem:[#allocation2 + $0xa0] sm:$0xff] %vm97_vm0, %v85_v45  ;;  %v355_v2 = vld [vmem:[%s15357_s0 + $0x142] sm:$0xff]  ;;  %9017 = vmatpush3.bf16.msra.mxu0 %v10152_v27  ;;  %v382_v7 = vpack.c.bf16 %v11064_v1, %v11059_v61  ;;  %v177_v27 = vld [vmem:[%s15357_s0 + $0x251] sm:$0xff]  ;;  %10122 = vmatprep.subr.bf16.mxu1 %v11101_v20 }
  0x33   :  { %v379_v5 = vpack.c.bf16 %v11043_v56, %v355_v2  ;;  %v65_v6 = vld [vmem:[%s15357_s0 + $0x140] sm:$0xff]  ;;  %9018 = vmatprep.subr.bf16.mxu0 %v10153_v42  ;;  %v11147_v45 = vld [vmem:[%s15357_s0 + $0x232] sm:$0xff] }
  0x34   :  { %524 = vrot.lane.b32.xlu0 %v480_v19, %s10485_s15  ;;  %v8365_v9 = vld [vmem:[%s15357_s0 + $0x260] sm:$0xff]  ;;  %v89_v13 = vpack.c.bf16 %v10746_v63, %v65_v6  ;;  %v482_v63 = vpack.c.bf16 %v10976_v23, %v10934_v0  ;;  %398 = vst.msk [vmem:[#allocation2 + $0x1c0] sm:$0xff] %vm97_vm0, %v382_v7  ;;  %v11121_v0 = vpack.c.bf16 %v175_v3, %v174_v53  ;;  %v11127_v23 = vld [vmem:[%s15357_s0 + $0x212] sm:$0xff] }
  0x35   :  { %234 = vrot.lane.b32.xlu1 %v190_v33, %s10485_s15  ;;  %v11096_v19 = vld [vmem:[%s15357_s0 + $0x202] sm:$0xff]  ;;  %395 = vst.msk [vmem:[#allocation2 + $0x148] sm:$0xff] %vm97_vm0, %v379_v5  ;;  %v11117_v33 = vld [vmem:[%s15358_s3 + $0x90] sm:$0xff]   ;;  %v483_v2 = vpack.c.bf16 %v8365_v9, %v10981_v24  ;;  %v11184_v24 = vld [vmem:[%s15358_s3 + $0x98] sm:$0xff]  }
  0x36   :  { %v176_v22 = vld [vmem:[%s15357_s0 + $0x241] sm:$0xff]  ;;  %106 = vst.msk [vmem:[#allocation2 + $0x140] sm:$0xff] %vm97_vm0, %v89_v13  ;;  %9019 = vmatpush3.bf16.msra.mxu0 %v10154_v4  ;;  %v384_v43 = vpack.c.bf16 %v11127_v23, %v11096_v19  ;;  %10130 = vmatpush3.bf16.msra.mxu1 %v11117_v33  ;;  %v11162_v53 = vld [vmem:[%s15357_s0 + $0x252] sm:$0xff] }
  0x37   :  { %v11132_v35 = vld [vmem:[%s15357_s0 + $0x222] sm:$0xff]  ;;  %9116 = vmatprep.subr.bf16.mxu0 %v10961_v17  ;;  %v11177_v3 = vpack.c.bf16 %v177_v27, %v176_v22  ;;  %v8479_v5 = vld [vmem:[%s15357_s0 + $0x30] sm:$0xff]  ;;  %v757_v22 = vpack.c.bf16 %v10686_v47, %v10853_v37 }
  0x38   :  { %526 = vrot.lane.b32.xlu0 %v481_v30, %s10485_s15  ;;  %v363_v36 = vld [vmem:[%s15357_s0 + $0x1e2] sm:$0xff]  ;;  %v385_v30 = vpack.c.bf16 %v11147_v45, %v11132_v35  ;;  %400 = vst.msk [vmem:[#allocation2 + $0x210] sm:$0xff] %vm97_vm0, %v384_v43  ;;  %v8382_v7 = vld [vmem:[%s15357_s0 + $0x11] sm:$0xff] }
  0x39   :  { %236 = vrot.lane.b32.xlu1 %v11054_v55, %s10485_s15  ;;  %v383_v41 = vpack.c.bf16 %v11091_v18, %v363_v36  ;;  %v73_v42 = vld [vmem:[%s15357_s0 + $0x1e0] sm:$0xff]  ;;  %v8384_v47 = vld [vmem:[%s15357_s0 + $0x31] sm:$0xff] }
  0x3a   :  { %v11152_v46 = vld [vmem:[%s15357_s0 + $0x242] sm:$0xff]  ;;  %v93_v52 = vpack.c.bf16 %v10910_v62, %v73_v42  ;;  %v11173_v62 = vld [vmem:[%s15358_s3 + $0xd8] sm:$0xff]   ;;  %401 = vst.msk [vmem:[#allocation2 + $0x238] sm:$0xff] %vm97_vm0, %v385_v30 }
  0x3b   :  { %399 = vst.msk [vmem:[#allocation2 + $0x1e8] sm:$0xff] %vm97_vm0, %v383_v41  ;;  %v386_v17 = vpack.c.bf16 %v11162_v53, %v11152_v46  ;;  %10123 = vmatprep.subr.bf16.mxu1 %v11173_v62  ;;  %v8478_v4 = vld [vmem:[%s15357_s0 + $0x20] sm:$0xff]  ;;  %v8481_v41 = vld [vmem:[%s15357_s0 + $0x50] sm:$0xff]  ;;  %v11243_v30 = vld [vmem:[%s15358_s3 + $0xa8] sm:$0xff]  }
  0x3c   :  { %528 = vrot.lane.b32.xlu0 %v482_v63, %s10485_s15  ;;  %110 = vst.msk [vmem:[#allocation2 + $0x1e0] sm:$0xff] %vm97_vm0, %v93_v52  ;;  %10131 = vmatpush3.bf16.msra.mxu1 %v11184_v24  ;;  %v950_v6 = vpack.c.bf16 %v8479_v5, %v8478_v4  ;;  %v8383_v9 = vld [vmem:[%s15357_s0 + $0x21] sm:$0xff]  ;;  %v8386_v4 = vld [vmem:[%s15357_s0 + $0x51] sm:$0xff] }
  0x3d   :  { %238 = vrot.lane.b32.xlu1 %v11121_v0, %s10485_s15  ;;  %402 = vst.msk [vmem:[#allocation2 + $0x260] sm:$0xff] %vm97_vm0, %v386_v17  ;;  %1269 = vst.msk [vmem:[#allocation2 + $0x250] sm:$0xff] %vm97_vm0, %v386_v17  ;;  %v661_v13 = vpack.c.bf16 %v8383_v9, %v8382_v7  ;;  %v11206_v63 = vld [vmem:[%s15358_s3 + $0xe0] sm:$0xff]   ;;  %v11236_v52 = vld [vmem:[%s15358_s3 + $0xe8] sm:$0xff]  }
  0x3e   :  { %966 = vst.msk [vmem:[#allocation2 + $0x18] sm:$0xff] %vm97_vm0, %v950_v6  ;;  %v11216_v27 = vld [vmem:[%s15358_s3 + $0xa0] sm:$0xff]   ;;  %10124 = vmatprep.subr.bf16.mxu1 %v11206_v63  ;;  %v8483_v17 = vld [vmem:[%s15357_s0 + $0x70] sm:$0xff] }
  0x3f   :  { %v8480_v36 = vld [vmem:[%s15357_s0 + $0x40] sm:$0xff]  ;;  %677 = vst.msk [vmem:[#allocation2 + $0x10] sm:$0xff] %vm97_vm0, %v661_v13  ;;  %v8533_v6 = vld [vmem:[%s15357_s0 + $0x91] sm:$0xff] }
  0x40   :  { %530 = vrot.lane.b32.xlu0 %v483_v2, %s10485_s15  ;;  %v8385_v37 = vld [vmem:[%s15357_s0 + $0x41] sm:$0xff]  ;;  %10132 = vmatpush3.bf16.msra.mxu1 %v11216_v27  ;;  %v951_v42 = vpack.c.bf16 %v8481_v41, %v8480_v36  ;;  %v758_v2 = vpack.c.bf16 %v10696_v49, %v10691_v48  ;;  %v11273_v9 = vld [vmem:[%s15358_s3 + $0xf0] sm:$0xff]   ;;  %v759_v36 = vpack.c.bf16 %v10727_v59, %v10701_v50  ;;  %v11299_v41 = vld [vmem:[%s15358_s3 + $0xb8] sm:$0xff]  }
  0x41   :  { %240 = vrot.lane.b32.xlu1 %v11177_v3, %s10485_s15  ;;  %v662_v43 = vpack.c.bf16 %v8385_v37, %v8384_v47  ;;  %10125 = vmatprep.subr.bf16.mxu1 %v11236_v52  ;;  %v8387_v48 = vld [vmem:[%s15357_s0 + $0x61] sm:$0xff]  ;;  %v8485_v50 = vld [vmem:[%s15357_s0 + $0x90] sm:$0xff] }
  0x42   :  { %967 = vst.msk [vmem:[#allocation2 + $0x40] sm:$0xff] %vm97_vm0, %v951_v42  ;;  %v8532_v49 = vld [vmem:[%s15357_s0 + $0x81] sm:$0xff]  ;;  %v663_v7 = vpack.c.bf16 %v8387_v48, %v8386_v4  ;;  %v8388_v37 = vld [vmem:[%s15357_s0 + $0x71] sm:$0xff] }
  0x43   :  { %678 = vst.msk [vmem:[#allocation2 + $0x38] sm:$0xff] %vm97_vm0, %v662_v43  ;;  %v8437_v13 = vld [vmem:[%s15357_s0 + $0x82] sm:$0xff]  ;;  %v8390_v4 = vld [vmem:[%s15357_s0 + $0xb1] sm:$0xff] }
  0x44   :  { %1079 = vrot.lane.b32.xlu0 %v10596_v14, %s10485_s15  ;;  %v8482_v14 = vld [vmem:[%s15357_s0 + $0x60] sm:$0xff]  ;;  %10133 = vmatpush3.bf16.msra.mxu1 %v11243_v30  ;;  %679 = vst.msk [vmem:[#allocation2 + $0x60] sm:$0xff] %vm97_vm0, %v663_v7  ;;  %v8489_v7 = vld [vmem:[%s15357_s0 + $0xf0] sm:$0xff] }
  0x45   :  { %789 = vrot.lane.b32.xlu1 %v757_v22, %s10485_s15  ;;  %v952_v5 = vpack.c.bf16 %v8483_v17, %v8482_v14  ;;  %v11284_v22 = vld [vmem:[%s15358_s3 + $0xb0] sm:$0xff]   ;;  %10126 = vmatprep.subr.bf16.mxu1 %v11273_v9  ;;  %v8484_v47 = vld [vmem:[%s15357_s0 + $0x80] sm:$0xff] }
  0x46   :  { %v953_v59 = vpack.c.bf16 %v8485_v50, %v8484_v47  ;;  %v8389_v42 = vld [vmem:[%s15357_s0 + $0x81] sm:$0xff]  ;;  %v8487_v17 = vld [vmem:[%s15357_s0 + $0xd0] sm:$0xff] }
  0x47   :  { %968 = vst.msk [vmem:[#allocation2 + $0x68] sm:$0xff] %vm97_vm0, %v952_v5  ;;  %v8486_v43 = vld [vmem:[%s15357_s0 + $0xc0] sm:$0xff]  ;;  %v664_v14 = vpack.c.bf16 %v8389_v42, %v8388_v37 }
  0x48   :  { %1081 = vrot.lane.b32.xlu0 %v10615_v21, %s10485_s15  ;;  %v11294_v21 = vld [vmem:[%s15358_s3 + $0xf8] sm:$0xff]   ;;  %10134 = vmatpush3.bf16.msra.mxu1 %v11284_v22  ;;  %v8391_v5 = vld [vmem:[%s15357_s0 + $0xc1] sm:$0xff]  ;;  %969 = vst.msk [vmem:[#allocation2 + $0x90] sm:$0xff] %vm97_vm0, %v953_v59  ;;  %v954_v48 = vpack.c.bf16 %v8487_v17, %v8486_v43 }
  0x49   :  { %791 = vrot.lane.b32.xlu1 %v758_v2, %s10485_s15  ;;  %v1050_v2 = vpack.c.bf16 %v8533_v6, %v8532_v49  ;;  %10127 = vmatprep.subr.bf16.mxu1 %v11294_v21  ;;  %v665_v49 = vpack.c.bf16 %v8391_v5, %v8390_v4  ;;  %680 = vst.msk [vmem:[#allocation2 + $0x88] sm:$0xff] %vm97_vm0, %v664_v14  ;;  %v8540_v50 = vld [vmem:[%s15357_s0 + $0x121] sm:$0xff]  ;;  %v8396_v17 = vld [vmem:[%s15357_s0 + $0x111] sm:$0xff] }
  0x4a   :  { %970 = vst.msk [vmem:[#allocation2 + $0xb8] sm:$0xff] %vm97_vm0, %v954_v48  ;;  %v761_v6 = vpack.c.bf16 %v10770_v8, %v10956_v16  ;;  %v8393_v8 = vld [vmem:[%s15357_s0 + $0xe1] sm:$0xff]  ;;  %v762_v16 = vpack.c.bf16 %v10820_v25, %v10778_v10  ;;  %v8541_v10 = vld [vmem:[%s15357_s0 + $0x131] sm:$0xff] }
  0x4b   :  { %681 = vst.msk [vmem:[#allocation2 + $0xb0] sm:$0xff] %vm97_vm0, %v665_v49  ;;  %v8445_v25 = vld [vmem:[%s15357_s0 + $0x122] sm:$0xff]  ;;  %v1054_v59 = vpack.c.bf16 %v8541_v10, %v8540_v50 }
  0x4c   :  { %1083 = vrot.lane.b32.xlu0 %v10635_v29, %s10485_s15  ;;  %v760_v29 = vpack.c.bf16 %v8437_v13, %v10732_v60  ;;  %10135 = vmatpush3.bf16.msra.mxu1 %v11299_v41  ;;  %v8488_v60 = vld [vmem:[%s15357_s0 + $0xe0] sm:$0xff]  ;;  %v8392_v13 = vld [vmem:[%s15357_s0 + $0xd1] sm:$0xff]  ;;  %v764_v43 = vpack.c.bf16 %v8445_v25, %v10866_v40 }
  0x4d   :  { %793 = vrot.lane.b32.xlu1 %v759_v36, %s10485_s15  ;;  %v955_v36 = vpack.c.bf16 %v8489_v7, %v8488_v60  ;;  %v666_v47 = vpack.c.bf16 %v8393_v8, %v8392_v13  ;;  %v8395_v42 = vld [vmem:[%s15357_s0 + $0x101] sm:$0xff]  ;;  %v8493_v40 = vld [vmem:[%s15357_s0 + $0x130] sm:$0xff] }
  0x4e   :  { %v8492_v14 = vld [vmem:[%s15357_s0 + $0x120] sm:$0xff]  ;;  %v8499_v25 = vld [vmem:[%s15357_s0 + $0x1b0] sm:$0xff] }
  0x4f   :  { %971 = vst.msk [vmem:[#allocation2 + $0xe0] sm:$0xff] %vm97_vm0, %v955_v36  ;;  %682 = vst.msk [vmem:[#allocation2 + $0xd8] sm:$0xff] %vm97_vm0, %v666_v47  ;;  %v957_v4 = vpack.c.bf16 %v8493_v40, %v8492_v14  ;;  %v8496_v13 = vld [vmem:[%s15357_s0 + $0x180] sm:$0xff]  ;;  %v8400_v36 = vld [vmem:[%s15357_s0 + $0x171] sm:$0xff] }
  0x50   :  { %1085 = vrot.lane.b32.xlu0 %v1050_v2, %s10485_s15  ;;  %v11490_v10 = vld [vmem:[%s15357_s0 + $0x262] sm:$0xff] }
  0x51   :  { %795 = vrot.lane.b32.xlu1 %v760_v29, %s10485_s15  ;;  %973 = vst.msk [vmem:[#allocation2 + $0x130] sm:$0xff] %vm97_vm0, %v957_v4  ;;  %v11422_v29 = vld [vmem:[%s15357_s0 + $0x1c1] sm:$0xff]  ;;  %v8501_v4 = vld [vmem:[%s15357_s0 + $0x1d0] sm:$0xff] }
  0x54   :  { %1087 = vrot.lane.b32.xlu0 %v10674_v44, %s10485_s15  ;;  %v763_v44 = vpack.c.bf16 %v10858_v38, %v10825_v26  ;;  %v8491_v26 = vld [vmem:[%s15357_s0 + $0x110] sm:$0xff] }
  0x55   :  { %797 = vrot.lane.b32.xlu1 %v761_v6, %s10485_s15  ;;  %v8394_v38 = vld [vmem:[%s15357_s0 + $0xf1] sm:$0xff]  ;;  %v8399_v6 = vld [vmem:[%s15357_s0 + $0x161] sm:$0xff] }
  0x56   :  { %v667_v2 = vpack.c.bf16 %v8395_v42, %v8394_v38 }
  0x58   :  { %1089 = vrot.lane.b32.xlu0 %v10719_v57, %s10485_s15  ;;  %v8490_v57 = vld [vmem:[%s15357_s0 + $0x100] sm:$0xff]  ;;  %683 = vst.msk [vmem:[#allocation2 + $0x100] sm:$0xff] %vm97_vm0, %v667_v2 }
  0x59   :  { %799 = vrot.lane.b32.xlu1 %v762_v16, %s10485_s15  ;;  %v956_v37 = vpack.c.bf16 %v8491_v26, %v8490_v57  ;;  %v8402_v57 = vld [vmem:[%s15357_s0 + $0x191] sm:$0xff] }
  0x5b   :  { %972 = vst.msk [vmem:[#allocation2 + $0x108] sm:$0xff] %vm97_vm0, %v956_v37  ;;  %v772_v37 = vpack.c.bf16 %v11490_v10, %v11162_v53 }
  0x5c   :  { %1091 = vrot.lane.b32.xlu0 %v10783_v11, %s10485_s15  ;;  %v765_v11 = vpack.c.bf16 %v10951_v15, %v11043_v56  ;;  %v8397_v15 = vld [vmem:[%s15357_s0 + $0x121] sm:$0xff]  ;;  %v766_v56 = vpack.c.bf16 %v10999_v32, %v10994_v31  ;;  %v8549_v31 = vld [vmem:[%s15357_s0 + $0x1d1] sm:$0xff] }
  0x5d   :  { %801 = vrot.lane.b32.xlu1 %v763_v44, %s10485_s15  ;;  %v668_v5 = vpack.c.bf16 %v8397_v15, %v8396_v17  ;;  %v8453_v32 = vld [vmem:[%s15357_s0 + $0x1c2] sm:$0xff]  ;;  %v1058_v48 = vpack.c.bf16 %v8549_v31, %v11422_v29 }
  0x5e   :  { %v768_v60 = vpack.c.bf16 %v8453_v32, %v11064_v1  ;;  %v8497_v1 = vld [vmem:[%s15357_s0 + $0x190] sm:$0xff]  ;;  %v8500_v17 = vld [vmem:[%s15357_s0 + $0x1c0] sm:$0xff] }
  0x5f   :  { %684 = vst.msk [vmem:[#allocation2 + $0x128] sm:$0xff] %vm97_vm0, %v668_v5  ;;  %v959_v8 = vpack.c.bf16 %v8497_v1, %v8496_v13  ;;  %v961_v15 = vpack.c.bf16 %v8501_v4, %v8500_v17  ;;  %v8575_v32 = vld [vmem:[%s15357_s0 + $0x32] sm:$0xff]  ;;  %v11643_v17 = vld [vmem:[%s15358_s3 + $0x100] sm:$0xff]  }
  0x60   :  { %1093 = vrot.lane.b32.xlu0 %v1054_v59, %s10485_s15  ;;  %v8403_v59 = vld [vmem:[%s15357_s0 + $0x1a1] sm:$0xff] }
  0x61   :  { %803 = vrot.lane.b32.xlu1 %v764_v43, %s10485_s15  ;;  %975 = vst.msk [vmem:[#allocation2 + $0x180] sm:$0xff] %vm97_vm0, %v959_v8  ;;  %v671_v42 = vpack.c.bf16 %v8403_v59, %v8402_v57  ;;  %977 = vst.msk [vmem:[#allocation2 + $0x1d0] sm:$0xff] %vm97_vm0, %v961_v15  ;;  %v8579_v8 = vld [vmem:[%s15357_s0 + $0x72] sm:$0xff] }
  0x63   :  { %687 = vst.msk [vmem:[#allocation2 + $0x1a0] sm:$0xff] %vm97_vm0, %v671_v42  ;;  %v8585_v42 = vld [vmem:[%s15357_s0 + $0xf2] sm:$0xff] }
  0x64   :  { %1095 = vrot.lane.b32.xlu0 %v10841_v34, %s10485_s15  ;;  %v767_v34 = vpack.c.bf16 %v11059_v61, %v11012_v39  ;;  %v8495_v39 = vld [vmem:[%s15357_s0 + $0x170] sm:$0xff] }
  0x65   :  { %805 = vrot.lane.b32.xlu1 %v765_v11, %s10485_s15  ;;  %v8398_v61 = vld [vmem:[%s15357_s0 + $0x151] sm:$0xff] }
  0x66   :  { %v669_v7 = vpack.c.bf16 %v8399_v6, %v8398_v61 }
  0x68   :  { %1097 = vrot.lane.b32.xlu0 %v10892_v54, %s10485_s15  ;;  %v8494_v54 = vld [vmem:[%s15357_s0 + $0x160] sm:$0xff]  ;;  %685 = vst.msk [vmem:[#allocation2 + $0x150] sm:$0xff] %vm97_vm0, %v669_v7  ;;  %v8406_v7 = vld [vmem:[%s15357_s0 + $0x1f1] sm:$0xff] }
  0x69   :  { %807 = vrot.lane.b32.xlu1 %v766_v56, %s10485_s15  ;;  %v958_v49 = vpack.c.bf16 %v8495_v39, %v8494_v54  ;;  %v8404_v56 = vld [vmem:[%s15357_s0 + $0x1b1] sm:$0xff]  ;;  %v8576_v54 = vld [vmem:[%s15357_s0 + $0x42] sm:$0xff] }
  0x6a   :  { %v672_v5 = vpack.c.bf16 %v11422_v29, %v8404_v56  ;;  %v8577_v39 = vld [vmem:[%s15357_s0 + $0x52] sm:$0xff]  ;;  %v8586_v56 = vld [vmem:[%s15357_s0 + $0x102] sm:$0xff] }
  0x6b   :  { %974 = vst.msk [vmem:[#allocation2 + $0x158] sm:$0xff] %vm97_vm0, %v958_v49 }
  0x6c   :  { %1099 = vrot.lane.b32.xlu0 %v10941_v12, %s10485_s15  ;;  %v769_v12 = vpack.c.bf16 %v11096_v19, %v11091_v18  ;;  %v8401_v18 = vld [vmem:[%s15357_s0 + $0x181] sm:$0xff]  ;;  %v770_v19 = vpack.c.bf16 %v11132_v35, %v11127_v23  ;;  %v8557_v35 = vld [vmem:[%s15357_s0 + $0x271] sm:$0xff]  ;;  %688 = vst.msk [vmem:[#allocation2 + $0x1c8] sm:$0xff] %vm97_vm0, %v672_v5 }
  0x6d   :  { %809 = vrot.lane.b32.xlu1 %v767_v34, %s10485_s15  ;;  %v670_v16 = vpack.c.bf16 %v8401_v18, %v8400_v36  ;;  %v11482_v23 = vld [vmem:[%s15357_s0 + $0x261] sm:$0xff] }
  0x6e   :  { %v1062_v26 = vpack.c.bf16 %v8557_v35, %v11482_v23 }
  0x6f   :  { %686 = vst.msk [vmem:[#allocation2 + $0x178] sm:$0xff] %vm97_vm0, %v670_v16  ;;  %v8581_v16 = vld [vmem:[%s15357_s0 + $0x92] sm:$0xff] }
  0x70   :  { %1101 = vrot.lane.b32.xlu0 %v1058_v48, %s10485_s15  ;;  %v1240_v48 = vpack.c.bf16 %v8577_v39, %v8576_v54  ;;  %v8509_v39 = vld [vmem:[%s15357_s0 + $0x270] sm:$0xff] }
  0x71   :  { %811 = vrot.lane.b32.xlu1 %v768_v60, %s10485_s15  ;;  %v8503_v60 = vld [vmem:[%s15357_s0 + $0x210] sm:$0xff] }
  0x72   :  { %1256 = vst.msk [vmem:[#allocation2 + $0x48] sm:$0xff] %vm97_vm0, %v1240_v48  ;;  %v8412_v48 = vld [vmem:[%s15357_s0 + $0x251] sm:$0xff] }
  0x74   :  { %1103 = vrot.lane.b32.xlu0 %v11054_v55, %s10485_s15  ;;  %v771_v55 = vpack.c.bf16 %v11152_v46, %v11147_v45  ;;  %v8498_v46 = vld [vmem:[%s15357_s0 + $0x1a0] sm:$0xff] }
  0x75   :  { %813 = vrot.lane.b32.xlu1 %v769_v12, %s10485_s15  ;;  %v960_v38 = vpack.c.bf16 %v8499_v25, %v8498_v46  ;;  %v8407_v12 = vld [vmem:[%s15357_s0 + $0x201] sm:$0xff] }
  0x76   :  { %v501_v47 = vpop.permute.xlu0 %500  ;;  %v673_v13 = vpack.c.bf16 %v8407_v12, %v8406_v7  ;;  %v8409_v46 = vld [vmem:[%s15357_s0 + $0x221] sm:$0xff] }
  0x77   :  { %548 = vst.msk [vmem:[#allocation2 + $0x8] sm:$0xff] %vm258_vm1, %v501_v47  ;;  %v503_v44 = vpop.permute.xlu1 %502  ;;  %v8592_v12 = vld [vmem:[%s15357_s0 + $0x182] sm:$0xff] }
  0x78   :  { %549 = vst.msk [vmem:[#allocation2 + $0x30] sm:$0xff] %vm258_vm1, %v503_v44  ;;  %1105 = vrot.lane.b32.xlu0 %v11121_v0, %s10485_s15 }
  0x79   :  { %815 = vrot.lane.b32.xlu1 %v770_v19, %s10485_s15  ;;  %976 = vst.msk [vmem:[#allocation2 + $0x1a8] sm:$0xff] %vm97_vm0, %v960_v38  ;;  %689 = vst.msk [vmem:[#allocation2 + $0x1f0] sm:$0xff] %vm97_vm0, %v673_v13  ;;  %v8580_v19 = vld [vmem:[%s15357_s0 + $0x82] sm:$0xff]  ;;  %v8583_v38 = vld [vmem:[%s15357_s0 + $0xd2] sm:$0xff] }
  0x7a   :  { %v211_v50 = vpop.permute.xlu0 %210  ;;  %v1242_v44 = vpack.c.bf16 %v8581_v16, %v8580_v19  ;;  %v8593_v13 = vld [vmem:[%s15357_s0 + $0x192] sm:$0xff]  ;;  %v8594_v19 = vld [vmem:[%s15357_s0 + $0x1a2] sm:$0xff] }
  0x7b   :  { %259 = vst.msk [vmem:[#allocation2] sm:$0xff] %vm258_vm1, %v211_v50  ;;  %v213_v0 = vpop.permute.xlu1 %212  ;;  %v8505_v50 = vld [vmem:[%s15357_s0 + $0x230] sm:$0xff] }
  0x7c   :  { %260 = vst.msk [vmem:[#allocation2 + $0x28] sm:$0xff] %vm258_vm1, %v213_v0  ;;  %1107 = vrot.lane.b32.xlu0 %v11177_v3, %s10485_s15  ;;  %v8408_v0 = vld [vmem:[%s15357_s0 + $0x211] sm:$0xff] }
  0x7d   :  { %817 = vrot.lane.b32.xlu1 %v771_v55, %s10485_s15  ;;  %1258 = vst.msk [vmem:[#allocation2 + $0x98] sm:$0xff] %vm97_vm0, %v1242_v44  ;;  %v674_v25 = vpack.c.bf16 %v8409_v46, %v8408_v0  ;;  %v8595_v16 = vld [vmem:[%s15357_s0 + $0x1b2] sm:$0xff] }
  0x7e   :  { %v505_v43 = vpop.permute.xlu0 %504  ;;  %v1304_v2 = vld [vmem:[#allocation2 + $0x8] sm:$0xff]  ;;  %v1249_v44 = vpack.c.bf16 %v8595_v16, %v8594_v19 }
  0x7f   :  { %550 = vst.msk [vmem:[#allocation2 + $0x58] sm:$0xff] %vm258_vm1, %v505_v43  ;;  %1751 = vmatprep.mubr.bf16.mxu0 %v1304_v2  ;;  %v215_v3 = vpop.permute.xlu1 %214  ;;  %v1309_v11 = vld [vmem:[#allocation2 + $0x30] sm:$0xff] }
  0x80   :  { %261 = vst.msk [vmem:[#allocation2 + $0x50] sm:$0xff] %vm258_vm1, %v215_v3  ;;  %1109 = vrot.lane.b32.xlu0 %v1062_v26, %s10485_s15 }
  0x81   :  { %819 = vrot.lane.b32.xlu1 %v772_v37, %s10485_s15  ;;  %690 = vst.msk [vmem:[#allocation2 + $0x218] sm:$0xff] %vm97_vm0, %v674_v25  ;;  %v8584_v37 = vld [vmem:[%s15357_s0 + $0xe2] sm:$0xff]  ;;  %1265 = vst.msk [vmem:[#allocation2 + $0x1b0] sm:$0xff] %vm97_vm0, %v1249_v44 }
  0x82   :  { %v507_v14 = vpop.permute.xlu0 %506  ;;  %v1303_v53 = vld [vmem:[#allocation2] sm:$0xff]  ;;  %v1244_v2 = vpack.c.bf16 %v8585_v42, %v8584_v37 }
  0x83   :  { %551 = vst.msk [vmem:[#allocation2 + $0x80] sm:$0xff] %vm258_vm1, %v507_v14  ;;  %v217_v40 = vpop.permute.xlu1 %216  ;;  %1752 = vmatmul.mubr.bf16.vlgmr.msra.gmra.mrb[0].mxu0 %v1303_v53  ;;  %v8507_v14 = vld [vmem:[%s15357_s0 + $0x250] sm:$0xff] }
  0x84   :  { %262 = vst.msk [vmem:[#allocation2 + $0x78] sm:$0xff] %vm258_vm1, %v217_v40  ;;  %9117 = vmatpush3.bf16.msra.mxu0 %v10989_v28  ;;  %1759 = vmatprep.mubr.bf16.mxu0 %v1309_v11  ;;  %v8574_v28 = vld [vmem:[%s15357_s0 + $0x22] sm:$0xff]  ;;  %v8410_v53 = vld [vmem:[%s15357_s0 + $0x231] sm:$0xff] }
  0x85   :  { %9118 = vmatprep.subr.bf16.mxu0 %v11029_v51  ;;  %v1308_v51 = vld [vmem:[#allocation2 + $0x28] sm:$0xff]  ;;  %v1239_v29 = vpack.c.bf16 %v8575_v32, %v8574_v28  ;;  %1260 = vst.msk [vmem:[#allocation2 + $0xe8] sm:$0xff] %vm97_vm0, %v1244_v2  ;;  %v8589_v28 = vld [vmem:[%s15357_s0 + $0x132] sm:$0xff] }
  0x86   :  { %v509_v34 = vpop.permute.xlu0 %508  ;;  %v1314_v61 = vld [vmem:[#allocation2 + $0x58] sm:$0xff]  ;;  %v8411_v40 = vld [vmem:[%s15357_s0 + $0x241] sm:$0xff] }
  0x87   :  { %552 = vst.msk [vmem:[#allocation2 + $0xa8] sm:$0xff] %vm258_vm1, %v509_v34  ;;  %v219_v31 = vpop.permute.xlu1 %218  ;;  %v675_v4 = vpack.c.bf16 %v8411_v40, %v8410_v53 }
  0x88   :  { %263 = vst.msk [vmem:[#allocation2 + $0xa0] sm:$0xff] %vm258_vm1, %v219_v31  ;;  %9119 = vmatpush3.bf16.msra.mxu0 %v11050_v58  ;;  %v8502_v58 = vld [vmem:[%s15357_s0 + $0x200] sm:$0xff] }
  0x89   :  { %9120 = vmatprep.subr.bf16.mxu0 %v11101_v20  ;;  %1255 = vst.msk [vmem:[#allocation2 + $0x20] sm:$0xff] %vm97_vm0, %v1239_v29  ;;  %v962_v20 = vpack.c.bf16 %v8503_v60, %v8502_v58  ;;  %691 = vst.msk [vmem:[#allocation2 + $0x240] sm:$0xff] %vm97_vm0, %v675_v4  ;;  %v8588_v31 = vld [vmem:[%s15357_s0 + $0x122] sm:$0xff] }
  0x8a   :  { %v511_v49 = vpop.permute.xlu0 %510  ;;  %v1319_v47 = vld [vmem:[#allocation2 + $0x80] sm:$0xff] }
  0x8b   :  { %553 = vst.msk [vmem:[#allocation2 + $0xd0] sm:$0xff] %vm258_vm1, %v511_v49  ;;  %v221_v6 = vpop.permute.xlu1 %220  ;;  %1760 = vmatmul.mubr.bf16.gmra.mrb[4].mxu0 %v1308_v51  ;;  %v1246_v51 = vpack.c.bf16 %v8589_v28, %v8588_v31  ;;  %v676_v49 = vpack.c.bf16 %v11482_v23, %v8412_v48  ;;  %v8590_v60 = vld [vmem:[%s15357_s0 + $0x162] sm:$0xff] }
  0x8c   :  { %264 = vst.msk [vmem:[#allocation2 + $0xc8] sm:$0xff] %vm258_vm1, %v221_v6  ;;  %1767 = vmatprep.mubr.bf16.mxu0 %v1314_v61  ;;  %9121 = vmatpush3.bf16.msra.mxu0 %v11117_v33  ;;  %v8578_v33 = vld [vmem:[%s15357_s0 + $0x62] sm:$0xff] }
  0x8d   :  { %9122 = vmatprep.subr.bf16.mxu0 %v11173_v62  ;;  %978 = vst.msk [vmem:[#allocation2 + $0x1f8] sm:$0xff] %vm97_vm0, %v962_v20  ;;  %v1313_v62 = vld [vmem:[#allocation2 + $0x50] sm:$0xff]  ;;  %v1241_v18 = vpack.c.bf16 %v8579_v8, %v8578_v33  ;;  %1262 = vst.msk [vmem:[#allocation2 + $0x138] sm:$0xff] %vm97_vm0, %v1246_v51 }
  0x8e   :  { %v513_v1 = vpop.permute.xlu0 %512  ;;  %v1324_v43 = vld [vmem:[#allocation2 + $0xa8] sm:$0xff]  ;;  %692 = vst.msk [vmem:[#allocation2 + $0x268] sm:$0xff] %vm97_vm0, %v676_v49  ;;  %v8591_v20 = vld [vmem:[%s15357_s0 + $0x172] sm:$0xff] }
  0x8f   :  { %554 = vst.msk [vmem:[#allocation2 + $0xf8] sm:$0xff] %vm258_vm1, %v513_v1  ;;  %v223_v36 = vpop.permute.xlu1 %222  ;;  %v1323_v5 = vld [vmem:[#allocation2 + $0xa0] sm:$0xff]  ;;  %v1247_v23 = vpack.c.bf16 %v8591_v20, %v8590_v60 }
  0x90   :  { %265 = vst.msk [vmem:[#allocation2 + $0xf0] sm:$0xff] %vm258_vm1, %v223_v36  ;;  %9123 = vmatpush3.bf16.msra.mxu0 %v11184_v24  ;;  %v8504_v24 = vld [vmem:[%s15357_s0 + $0x220] sm:$0xff]  ;;  %v1248_v36 = vpack.c.bf16 %v8593_v13, %v8592_v12 }
  0x91   :  { %9124 = vmatprep.subr.bf16.mxu0 %v11206_v63  ;;  %1257 = vst.msk [vmem:[#allocation2 + $0x70] sm:$0xff] %vm97_vm0, %v1241_v18  ;;  %v963_v63 = vpack.c.bf16 %v8505_v50, %v8504_v24  ;;  %1263 = vst.msk [vmem:[#allocation2 + $0x160] sm:$0xff] %vm97_vm0, %v1247_v23 }
  0x92   :  { %v515_v55 = vpop.permute.xlu0 %514  ;;  %v1329_v32 = vld [vmem:[#allocation2 + $0xd0] sm:$0xff]  ;;  %1264 = vst.msk [vmem:[#allocation2 + $0x188] sm:$0xff] %vm97_vm0, %v1248_v36 }
  0x93   :  { %555 = vst.msk [vmem:[#allocation2 + $0x120] sm:$0xff] %vm258_vm1, %v515_v55  ;;  %v225_v35 = vpop.permute.xlu1 %224  ;;  %1768 = vmatmul.mubr.bf16.gmra.mrb[8].mxu0 %v1313_v62  ;;  %v1328_v7 = vld [vmem:[#allocation2 + $0xc8] sm:$0xff] }
  0x94   :  { %266 = vst.msk [vmem:[#allocation2 + $0x118] sm:$0xff] %vm258_vm1, %v225_v35  ;;  %1775 = vmatprep.mubr.bf16.mxu0 %v1319_v47  ;;  %9125 = vmatpush3.bf16.msra.mxu0 %v11216_v27  ;;  %v8582_v27 = vld [vmem:[%s15357_s0 + $0xc2] sm:$0xff]  ;;  %v8597_v35 = vld [vmem:[%s15357_s0 + $0x1d2] sm:$0xff] }
  0x95   :  { %9126 = vmatprep.subr.bf16.mxu0 %v11236_v52  ;;  %979 = vst.msk [vmem:[#allocation2 + $0x220] sm:$0xff] %vm97_vm0, %v963_v63  ;;  %v1318_v52 = vld [vmem:[#allocation2 + $0x78] sm:$0xff]  ;;  %v1243_v59 = vpack.c.bf16 %v8583_v38, %v8582_v27  ;;  %v8596_v55 = vld [vmem:[%s15357_s0 + $0x1c2] sm:$0xff] }
  0x96   :  { %v517_v57 = vpop.permute.xlu0 %516  ;;  %v1334_v1 = vld [vmem:[#allocation2 + $0xf8] sm:$0xff]  ;;  %v1250_v50 = vpack.c.bf16 %v8597_v35, %v8596_v55 }
  0x97   :  { %556 = vst.msk [vmem:[#allocation2 + $0x148] sm:$0xff] %vm258_vm1, %v517_v57  ;;  %v227_v26 = vpop.permute.xlu1 %226  ;;  %v1333_v47 = vld [vmem:[#allocation2 + $0xf0] sm:$0xff]  ;;  %v8598_v57 = vld [vmem:[%s15357_s0 + $0x202] sm:$0xff] }
  0x98   :  { %267 = vst.msk [vmem:[#allocation2 + $0x140] sm:$0xff] %vm258_vm1, %v227_v26  ;;  %9127 = vmatpush3.bf16.msra.mxu0 %v11243_v30  ;;  %v8506_v30 = vld [vmem:[%s15357_s0 + $0x240] sm:$0xff]  ;;  %v8599_v26 = vld [vmem:[%s15357_s0 + $0x212] sm:$0xff] }
  0x99   :  { %9128 = vmatprep.subr.bf16.mxu0 %v11273_v9  ;;  %1259 = vst.msk [vmem:[#allocation2 + $0xc0] sm:$0xff] %vm97_vm0, %v1243_v59  ;;  %v964_v9 = vpack.c.bf16 %v8507_v14, %v8506_v30  ;;  %1266 = vst.msk [vmem:[#allocation2 + $0x1d8] sm:$0xff] %vm97_vm0, %v1250_v50  ;;  %v1251_v38 = vpack.c.bf16 %v8599_v26, %v8598_v57 }
  0x9a   :  { %v519_v3 = vpop.permute.xlu0 %518  ;;  %v1339_v24 = vld [vmem:[#allocation2 + $0x120] sm:$0xff] }
  0x9b   :  { %557 = vst.msk [vmem:[#allocation2 + $0x170] sm:$0xff] %vm258_vm1, %v519_v3  ;;  %v229_v11 = vpop.permute.xlu1 %228  ;;  %1776 = vmatmul.mubr.bf16.gmra.mrb[12].mxu0 %v1318_v52  ;;  %v1338_v27 = vld [vmem:[#allocation2 + $0x118] sm:$0xff]  ;;  %v8600_v52 = vld [vmem:[%s15357_s0 + $0x222] sm:$0xff] }
  0x9c   :  { %268 = vst.msk [vmem:[#allocation2 + $0x168] sm:$0xff] %vm258_vm1, %v229_v11  ;;  %1783 = vmatprep.mubr.bf16.mxu0 %v1324_v43  ;;  %9129 = vmatpush3.bf16.msra.mxu0 %v11284_v22  ;;  %v1252_v37 = vpack.c.bf16 %v11147_v45, %v8600_v52  ;;  %v8605_v45 = vld [vmem:[%s15357_s0 + $0x272] sm:$0xff] }
  0x9d   :  { %9130 = vmatprep.subr.bf16.mxu0 %v11294_v21  ;;  %980 = vst.msk [vmem:[#allocation2 + $0x248] sm:$0xff] %vm97_vm0, %v964_v9  ;;  %v8587_v21 = vld [vmem:[%s15357_s0 + $0x112] sm:$0xff]  ;;  %1267 = vst.msk [vmem:[#allocation2 + $0x200] sm:$0xff] %vm97_vm0, %v1251_v38  ;;  %v1254_v14 = vpack.c.bf16 %v8605_v45, %v11490_v10 }
  0x9e   :  { %v521_v15 = vpop.permute.xlu0 %520  ;;  %v1245_v34 = vpack.c.bf16 %v8587_v21, %v8586_v56  ;;  %v1344_v59 = vld [vmem:[#allocation2 + $0x148] sm:$0xff]  ;;  %1268 = vst.msk [vmem:[#allocation2 + $0x228] sm:$0xff] %vm97_vm0, %v1252_v37 }
  0x9f   :  { %558 = vst.msk [vmem:[#allocation2 + $0x198] sm:$0xff] %vm258_vm1, %v521_v15  ;;  %v231_v22 = vpop.permute.xlu1 %230  ;;  %v1343_v11 = vld [vmem:[#allocation2 + $0x140] sm:$0xff] }
  0xa0   :  { %269 = vst.msk [vmem:[#allocation2 + $0x190] sm:$0xff] %vm258_vm1, %v231_v22  ;;  %9131 = vmatpush3.bf16.msra.mxu0 %v11299_v41  ;;  %v8508_v41 = vld [vmem:[%s15357_s0 + $0x260] sm:$0xff] }
  0xa1   :  { %10016 = vmatprep.subr.bf16.mxu0 %v11643_v17  ;;  %1261 = vst.msk [vmem:[#allocation2 + $0x110] sm:$0xff] %vm97_vm0, %v1245_v34  ;;  %v965_v61 = vpack.c.bf16 %v8509_v39, %v8508_v41  ;;  %1270 = vst.msk [vmem:[#allocation2 + $0x278] sm:$0xff] %vm97_vm0, %v1254_v14 }
  0xa2   :  { %v523_v29 = vpop.permute.xlu0 %522  ;;  %v1349_v30 = vld [vmem:[#allocation2 + $0x170] sm:$0xff] }
  0xa3   :  { %559 = vst.msk [vmem:[#allocation2 + $0x1c0] sm:$0xff] %vm258_vm1, %v523_v29  ;;  %v233_v54 = vpop.permute.xlu1 %232  ;;  %1784 = vmatmul.mubr.bf16.gmra.mrb[16].mxu0 %v1323_v5  ;;  %v1348_v56 = vld [vmem:[#allocation2 + $0x168] sm:$0xff] }
  0xa4   :  { %270 = vst.msk [vmem:[#allocation2 + $0x1b8] sm:$0xff] %vm258_vm1, %v233_v54  ;;  %1791 = vmatprep.mubr.bf16.mxu0 %v1329_v32 }
  0xa5   :  { %981 = vst.msk [vmem:[#allocation2 + $0x270] sm:$0xff] %vm97_vm0, %v965_v61 }
  0xa6   :  { %v525_v6 = vpop.permute.xlu0 %524  ;;  %v1354_v10 = vld [vmem:[#allocation2 + $0x198] sm:$0xff] }
  0xa7   :  { %560 = vst.msk [vmem:[#allocation2 + $0x1e8] sm:$0xff] %vm258_vm1, %v525_v6  ;;  %v235_v58 = vpop.permute.xlu1 %234  ;;  %v1353_v29 = vld [vmem:[#allocation2 + $0x190] sm:$0xff] }
  0xa8   :  { %271 = vst.msk [vmem:[#allocation2 + $0x1e0] sm:$0xff] %vm258_vm1, %v235_v58 }
  0xaa   :  { %v527_v33 = vpop.permute.xlu0 %526  ;;  %v1359_v54 = vld [vmem:[#allocation2 + $0x1c0] sm:$0xff] }
  0xab   :  { %561 = vst.msk [vmem:[#allocation2 + $0x210] sm:$0xff] %vm258_vm1, %v527_v33  ;;  %v237_v8 = vpop.permute.xlu1 %236  ;;  %1792 = vmatmul.mubr.bf16.gmra.mrb[20].mxu0 %v1328_v7  ;;  %v1358_v58 = vld [vmem:[#allocation2 + $0x1b8] sm:$0xff] }
  0xac   :  { %272 = vst.msk [vmem:[#allocation2 + $0x208] sm:$0xff] %vm258_vm1, %v237_v8  ;;  %1799 = vmatprep.mubr.bf16.mxu0 %v1334_v1 }
  0xae   :  { %v529_v62 = vpop.permute.xlu0 %528  ;;  %v1364_v60 = vld [vmem:[#allocation2 + $0x1e8] sm:$0xff] }
  0xaf   :  { %562 = vst.msk [vmem:[#allocation2 + $0x238] sm:$0xff] %vm258_vm1, %v529_v62  ;;  %v239_v18 = vpop.permute.xlu1 %238  ;;  %v1363_v36 = vld [vmem:[#allocation2 + $0x1e0] sm:$0xff] }
  0xb0   :  { %273 = vst.msk [vmem:[#allocation2 + $0x230] sm:$0xff] %vm258_vm1, %v239_v18 }
  0xb2   :  { %v531_v63 = vpop.permute.xlu0 %530  ;;  %v1369_v33 = vld [vmem:[#allocation2 + $0x210] sm:$0xff] }
  0xb3   :  { %563 = vst.msk [vmem:[#allocation2 + $0x260] sm:$0xff] %vm258_vm1, %v531_v63  ;;  %v241_v0 = vpop.permute.xlu1 %240  ;;  %1800 = vmatmul.mubr.bf16.gmra.mrb[24].mxu0 %v1333_v47  ;;  %v1368_v44 = vld [vmem:[#allocation2 + $0x208] sm:$0xff] }
  0xb4   :  { %274 = vst.msk [vmem:[#allocation2 + $0x258] sm:$0xff] %vm258_vm1, %v241_v0  ;;  %1807 = vmatprep.mubr.bf16.mxu0 %v1339_v24 }
  0xb6   :  { %v1080_v46 = vpop.permute.xlu0 %1079  ;;  %v1374_v55 = vld [vmem:[#allocation2 + $0x238] sm:$0xff] }
  0xb7   :  { %1127 = vst.msk [vmem:[#allocation2 + $0x18] sm:$0xff] %vm258_vm1, %v1080_v46  ;;  %v790_v25 = vpop.permute.xlu1 %789 }
  0xb8   :  { %837 = vst.msk [vmem:[#allocation2 + $0x10] sm:$0xff] %vm258_vm1, %v790_v25  ;;  %v1373_v25 = vld [vmem:[#allocation2 + $0x230] sm:$0xff] }
  0xba   :  { %v1082_v42 = vpop.permute.xlu0 %1081  ;;  %v1379_v57 = vld [vmem:[#allocation2 + $0x260] sm:$0xff] }
  0xbb   :  { %1128 = vst.msk [vmem:[#allocation2 + $0x40] sm:$0xff] %vm258_vm1, %v1082_v42  ;;  %v792_v43 = vpop.permute.xlu1 %791  ;;  %1808 = vmatmul.mubr.bf16.gmra.mrb[28].mxu0 %v1338_v27 }
  0xbc   :  { %838 = vst.msk [vmem:[#allocation2 + $0x38] sm:$0xff] %vm258_vm1, %v792_v43  ;;  %1815 = vmatprep.mubr.bf16.mxu0 %v1344_v59  ;;  %v1378_v59 = vld [vmem:[#allocation2 + $0x258] sm:$0xff] }
  0xbe   :  { %v1084_v2 = vpop.permute.xlu0 %1083  ;;  %v1306_v37 = vld [vmem:[#allocation2 + $0x18] sm:$0xff] }
  0xbf   :  { %1129 = vst.msk [vmem:[#allocation2 + $0x68] sm:$0xff] %vm258_vm1, %v1084_v2  ;;  %v794_v3 = vpop.permute.xlu1 %793  ;;  %v1305_v2 = vld [vmem:[#allocation2 + $0x10] sm:$0xff] }
  0xc0   :  { %839 = vst.msk [vmem:[#allocation2 + $0x60] sm:$0xff] %vm258_vm1, %v794_v3  ;;  %v10172_v3 = vld [vmem:[%s15358_s3 + $0x108] sm:$0xff]  }
  0xc2   :  { %v1086_v9 = vpop.permute.xlu0 %1085 }
  0xc3   :  { %1816 = vmatmul.mubr.bf16.gmra.mrb[32].mxu0 %v1343_v11  ;;  %1130 = vst.msk [vmem:[#allocation2 + $0x90] sm:$0xff] %vm258_vm1, %v1086_v9  ;;  %v796_v53 = vpop.permute.xlu1 %795  ;;  %v1311_v11 = vld [vmem:[#allocation2 + $0x40] sm:$0xff]  ;;  %v1310_v9 = vld [vmem:[#allocation2 + $0x38] sm:$0xff] }
  0xc4   :  { %840 = vst.msk [vmem:[#allocation2 + $0x88] sm:$0xff] %vm258_vm1, %v796_v53  ;;  %1823 = vmatprep.mubr.bf16.mxu0 %v1349_v30  ;;  %v10173_v30 = vld [vmem:[%s15358_s3 + $0x110] sm:$0xff]   ;;  %v10174_v53 = vld [vmem:[%s15358_s3 + $0x118] sm:$0xff]  }
  0xc6   :  { %v1316_v40 = vld [vmem:[#allocation2 + $0x68] sm:$0xff]  ;;  %v1088_v4 = vpop.permute.xlu0 %1087 }
  0xc7   :  { %1928 = vmatprep.mubr.bf16.mxu1 %v1316_v40  ;;  %v1315_v15 = vld [vmem:[#allocation2 + $0x60] sm:$0xff]  ;;  %1131 = vst.msk [vmem:[#allocation2 + $0xb8] sm:$0xff] %vm258_vm1, %v1088_v4  ;;  %v798_v22 = vpop.permute.xlu1 %797 }
  0xc8   :  { %1929 = vmatmul.mubr.bf16.vlgmr.msra.gmra.mrb[0].mxu1 %v1315_v15  ;;  %841 = vst.msk [vmem:[#allocation2 + $0xb0] sm:$0xff] %vm258_vm1, %v798_v22  ;;  %v1307_v40 = vld [vmem:[#allocation2 + $0x20] sm:$0xff]  ;;  %v1312_v15 = vld [vmem:[#allocation2 + $0x48] sm:$0xff]  ;;  %v1317_v22 = vld [vmem:[#allocation2 + $0x70] sm:$0xff] }
  0xca   :  { %v1321_v21 = vld [vmem:[#allocation2 + $0x90] sm:$0xff]  ;;  %v1090_v5 = vpop.permute.xlu0 %1089 }
  0xcb   :  { %1824 = vmatmul.mubr.bf16.gmra.mrb[36].mxu0 %v1348_v56  ;;  %1936 = vmatprep.mubr.bf16.mxu1 %v1321_v21  ;;  %1132 = vst.msk [vmem:[#allocation2 + $0xe0] sm:$0xff] %vm258_vm1, %v1090_v5  ;;  %v800_v34 = vpop.permute.xlu1 %799  ;;  %v1320_v31 = vld [vmem:[#allocation2 + $0x88] sm:$0xff]  ;;  %v1322_v21 = vld [vmem:[#allocation2 + $0x98] sm:$0xff]  ;;  %v1327_v5 = vld [vmem:[#allocation2 + $0xc0] sm:$0xff] }
  0xcc   :  { %1831 = vmatprep.mubr.bf16.mxu0 %v1354_v10  ;;  %842 = vst.msk [vmem:[#allocation2 + $0xd8] sm:$0xff] %vm258_vm1, %v800_v34 }
  0xce   :  { %v1326_v28 = vld [vmem:[#allocation2 + $0xb8] sm:$0xff]  ;;  %v1092_v32 = vpop.permute.xlu0 %1091 }
  0xcf   :  { %1133 = vst.msk [vmem:[#allocation2 + $0x108] sm:$0xff] %vm258_vm1, %v1092_v32  ;;  %v802_v51 = vpop.permute.xlu1 %801  ;;  %v1325_v61 = vld [vmem:[#allocation2 + $0xb0] sm:$0xff] }
  0xd0   :  { %1937 = vmatmul.mubr.bf16.gmra.mrb[4].mxu1 %v1320_v31  ;;  %843 = vst.msk [vmem:[#allocation2 + $0x100] sm:$0xff] %vm258_vm1, %v802_v51  ;;  %v1337_v32 = vld [vmem:[#allocation2 + $0x110] sm:$0xff] }
  0xd1   :  { %1944 = vmatprep.mubr.bf16.mxu1 %v1326_v28  ;;  %v1332_v28 = vld [vmem:[#allocation2 + $0xe8] sm:$0xff] }
  0xd2   :  { %v1094_v41 = vpop.permute.xlu0 %1093  ;;  %v1331_v48 = vld [vmem:[#allocation2 + $0xe0] sm:$0xff] }
  0xd3   :  { %1832 = vmatmul.mubr.bf16.gmra.mrb[40].mxu0 %v1353_v29  ;;  %1134 = vst.msk [vmem:[#allocation2 + $0x130] sm:$0xff] %vm258_vm1, %v1094_v41  ;;  %v804_v39 = vpop.permute.xlu1 %803  ;;  %v1330_v23 = vld [vmem:[#allocation2 + $0xd8] sm:$0xff]  ;;  %v1347_v41 = vld [vmem:[#allocation2 + $0x160] sm:$0xff] }
  0xd4   :  { %1839 = vmatprep.mubr.bf16.mxu0 %v1359_v54  ;;  %844 = vst.msk [vmem:[#allocation2 + $0x128] sm:$0xff] %vm258_vm1, %v804_v39  ;;  %v1342_v54 = vld [vmem:[#allocation2 + $0x138] sm:$0xff] }
  0xd6   :  { %v1096_v49 = vpop.permute.xlu0 %1095  ;;  %v1336_v12 = vld [vmem:[#allocation2 + $0x108] sm:$0xff] }
  0xd7   :  { %1135 = vst.msk [vmem:[#allocation2 + $0x158] sm:$0xff] %vm258_vm1, %v1096_v49  ;;  %v806_v6 = vpop.permute.xlu1 %805  ;;  %v1335_v18 = vld [vmem:[#allocation2 + $0x100] sm:$0xff]  ;;  %v1362_v49 = vld [vmem:[#allocation2 + $0x1d8] sm:$0xff] }
  0xd8   :  { %1945 = vmatmul.mubr.bf16.gmra.mrb[8].mxu1 %v1325_v61  ;;  %845 = vst.msk [vmem:[#allocation2 + $0x150] sm:$0xff] %vm258_vm1, %v806_v6  ;;  %v1352_v61 = vld [vmem:[#allocation2 + $0x188] sm:$0xff]  ;;  %v1367_v6 = vld [vmem:[#allocation2 + $0x200] sm:$0xff] }
  0xd9   :  { %1952 = vmatprep.mubr.bf16.mxu1 %v1331_v48  ;;  %v1357_v48 = vld [vmem:[#allocation2 + $0x1b0] sm:$0xff] }
  0xda   :  { %v1098_v20 = vpop.permute.xlu0 %1097  ;;  %v1341_v19 = vld [vmem:[#allocation2 + $0x130] sm:$0xff] }
  0xdb   :  { %1840 = vmatmul.mubr.bf16.gmra.mrb[44].mxu0 %v1358_v58  ;;  %1136 = vst.msk [vmem:[#allocation2 + $0x180] sm:$0xff] %vm258_vm1, %v1098_v20  ;;  %v808_v7 = vpop.permute.xlu1 %807  ;;  %v1340_v50 = vld [vmem:[#allocation2 + $0x128] sm:$0xff]  ;;  %v1382_v20 = vld [vmem:[#allocation2 + $0x278] sm:$0xff] }
  0xdc   :  { %1847 = vmatprep.mubr.bf16.mxu0 %v1364_v60  ;;  %846 = vst.msk [vmem:[#allocation2 + $0x178] sm:$0xff] %vm258_vm1, %v808_v7  ;;  %v1372_v58 = vld [vmem:[#allocation2 + $0x228] sm:$0xff]  ;;  %v1377_v60 = vld [vmem:[#allocation2 + $0x250] sm:$0xff] }
  0xde   :  { %v1100_v13 = vpop.permute.xlu0 %1099  ;;  %v1346_v63 = vld [vmem:[#allocation2 + $0x158] sm:$0xff] }
  0xdf   :  { %1137 = vst.msk [vmem:[#allocation2 + $0x1a8] sm:$0xff] %vm258_vm1, %v1100_v13  ;;  %v810_v1 = vpop.permute.xlu1 %809  ;;  %v1345_v38 = vld [vmem:[#allocation2 + $0x150] sm:$0xff] }
  0xe0   :  { %1953 = vmatmul.mubr.bf16.gmra.mrb[12].mxu1 %v1330_v23  ;;  %847 = vst.msk [vmem:[#allocation2 + $0x1a0] sm:$0xff] %vm258_vm1, %v810_v1 }
  0xe1   :  { %1960 = vmatprep.mubr.bf16.mxu1 %v1336_v12 }
  0xe2   :  { %v1102_v8 = vpop.permute.xlu0 %1101  ;;  %v1351_v52 = vld [vmem:[#allocation2 + $0x180] sm:$0xff] }
  0xe3   :  { %1848 = vmatmul.mubr.bf16.gmra.mrb[48].mxu0 %v1363_v36  ;;  %1138 = vst.msk [vmem:[#allocation2 + $0x1d0] sm:$0xff] %vm258_vm1, %v1102_v8  ;;  %v812_v62 = vpop.permute.xlu1 %811  ;;  %v1350_v42 = vld [vmem:[#allocation2 + $0x178] sm:$0xff] }
  0xe4   :  { %1855 = vmatprep.mubr.bf16.mxu0 %v1369_v33  ;;  %848 = vst.msk [vmem:[#allocation2 + $0x1c8] sm:$0xff] %vm258_vm1, %v812_v62 }
  0xe6   :  { %v1104_v16 = vpop.permute.xlu0 %1103  ;;  %v1356_v43 = vld [vmem:[#allocation2 + $0x1a8] sm:$0xff] }
  0xe7   :  { %1139 = vst.msk [vmem:[#allocation2 + $0x1f8] sm:$0xff] %vm258_vm1, %v1104_v16  ;;  %v814_v47 = vpop.permute.xlu1 %813  ;;  %v1355_v45 = vld [vmem:[#allocation2 + $0x1a0] sm:$0xff] }
  0xe8   :  { %1961 = vmatmul.mubr.bf16.gmra.mrb[16].mxu1 %v1335_v18  ;;  %849 = vst.msk [vmem:[#allocation2 + $0x1f0] sm:$0xff] %vm258_vm1, %v814_v47 }
  0xe9   :  { %1968 = vmatprep.mubr.bf16.mxu1 %v1341_v19 }
  0xea   :  { %v1106_v35 = vpop.permute.xlu0 %1105  ;;  %v1361_v14 = vld [vmem:[#allocation2 + $0x1d0] sm:$0xff] }
  0xeb   :  { %1856 = vmatmul.mubr.bf16.gmra.mrb[52].mxu0 %v1368_v44  ;;  %1140 = vst.msk [vmem:[#allocation2 + $0x220] sm:$0xff] %vm258_vm1, %v1106_v35  ;;  %v816_v24 = vpop.permute.xlu1 %815 }
  0xec   :  { %1863 = vmatprep.mubr.bf16.mxu0 %v1374_v55  ;;  %850 = vst.msk [vmem:[#allocation2 + $0x218] sm:$0xff] %vm258_vm1, %v816_v24 }
  0xee   :  { %v1108_v0 = vpop.permute.xlu0 %1107  ;;  %v1366_v4 = vld [vmem:[#allocation2 + $0x1f8] sm:$0xff] }
  0xef   :  { %1141 = vst.msk [vmem:[#allocation2 + $0x248] sm:$0xff] %vm258_vm1, %v1108_v0  ;;  %v818_v46 = vpop.permute.xlu1 %817  ;;  %v1365_v56 = vld [vmem:[#allocation2 + $0x1f0] sm:$0xff] }
  0xf0   :  { %1969 = vmatmul.mubr.bf16.gmra.mrb[20].mxu1 %v1340_v50  ;;  %851 = vst.msk [vmem:[#allocation2 + $0x240] sm:$0xff] %vm258_vm1, %v818_v46 }
  0xf1   :  { %1976 = vmatprep.mubr.bf16.mxu1 %v1346_v63 }
  0xf2   :  { %v1110_v26 = vpop.permute.xlu0 %1109  ;;  %v1371_v10 = vld [vmem:[#allocation2 + $0x220] sm:$0xff] }
  0xf3   :  { %1864 = vmatmul.mubr.bf16.gmra.mrb[56].mxu0 %v1373_v25  ;;  %1142 = vst.msk [vmem:[#allocation2 + $0x270] sm:$0xff] %vm258_vm1, %v1110_v26  ;;  %v820_v27 = vpop.permute.xlu1 %819  ;;  %v1370_v34 = vld [vmem:[#allocation2 + $0x218] sm:$0xff] }
  0xf4   :  { %1871 = vmatprep.mubr.bf16.mxu0 %v1379_v57  ;;  %852 = vst.msk [vmem:[#allocation2 + $0x268] sm:$0xff] %vm258_vm1, %v820_v27 }
  0xf6   :  { %v1376_v31 = vld [vmem:[#allocation2 + $0x248] sm:$0xff] }
  0xf7   :  { %v1375_v51 = vld [vmem:[#allocation2 + $0x240] sm:$0xff] }
  0xf8   :  { %1977 = vmatmul.mubr.bf16.gmra.mrb[24].mxu1 %v1345_v38 }
  0xf9   :  { %1984 = vmatprep.mubr.bf16.mxu1 %v1351_v52 }
  0xfa   :  { %v1381_v29 = vld [vmem:[#allocation2 + $0x270] sm:$0xff] }
  0xfb   :  { %1872 = vmatmul.mubr.bf16.gmra.mrb[60].mxu0 %v1378_v59  ;;  %v1380_v39 = vld [vmem:[#allocation2 + $0x268] sm:$0xff] }
  0xfc   :  { %1912 = vmatprep.mubr.bf16.mxu0 %v1306_v37  ;;  %v10486_v37 = vmov 0.0  }
  0xfd   :  { %2312 = vst.msk [vmem:[#allocation6] sm:$0xff] %vm97_vm0, %v10486_v37  ;;  %2315 = vst.msk [vmem:[#allocation6 + $0xa0] sm:$0xff] %vm97_vm0, %v10486_v37 }
  0xfe   :  { %2317 = vst.msk [vmem:[#allocation6 + $0x140] sm:$0xff] %vm97_vm0, %v10486_v37  ;;  %2319 = vst.msk [vmem:[#allocation6 + $0x1e0] sm:$0xff] %vm97_vm0, %v10486_v37 }
  0xff   :  { %2322 = vst.msk [vmem:[#allocation6 + $0x90] sm:$0xff] %vm97_vm0, %v10486_v37  ;;  %2324 = vst.msk [vmem:[#allocation6 + $0x130] sm:$0xff] %vm97_vm0, %v10486_v37 }
 0x100   :  { %1985 = vmatmul.mubr.bf16.gmra.mrb[28].mxu1 %v1350_v42  ;;  %2326 = vst.msk [vmem:[#allocation6 + $0x1d0] sm:$0xff] %vm97_vm0, %v10486_v37  ;;  %2328 = vst.msk [vmem:[#allocation6 + $0x270] sm:$0xff] %vm97_vm0, %v10486_v37 }
 0x101   :  { %1992 = vmatprep.mubr.bf16.mxu1 %v1356_v43  ;;  %2332 = vst.msk [vmem:[#allocation6 + $0x10] sm:$0x1] %vm2331_vm2, %v10486_v37  ;;  %2333 = vst.msk [vmem:[#allocation6 + $0x20] sm:$0x1] %vm2331_vm2, %v10486_v37 }
 0x102   :  { %2334 = vst.msk [vmem:[#allocation6 + $0x30] sm:$0x1] %vm2331_vm2, %v10486_v37  ;;  %2335 = vst.msk [vmem:[#allocation6 + $0x40] sm:$0x1] %vm2331_vm2, %v10486_v37 }
 0x103   :  { %1913 = vmatmul.mubr.bf16.vlgmr.msra.gmra.mrb[64].mxu0 %v1305_v2  ;;  %2336 = vst.msk [vmem:[#allocation6 + $0x50] sm:$0x1] %vm2331_vm2, %v10486_v37  ;;  %2337 = vst.msk [vmem:[#allocation6 + $0x60] sm:$0x1] %vm2331_vm2, %v10486_v37 }
 0x104   :  { %10017 = vmatpush3.bf16.msra.mxu0 %v11643_v17  ;;  %1920 = vmatprep.mubr.bf16.mxu0 %v1311_v11  ;;  %v1360_v17 = vld [vmem:[#allocation2 + $0x1c8] sm:$0xff]  ;;  %2338 = vst.msk [vmem:[#allocation6 + $0x70] sm:$0x1] %vm2331_vm2, %v10486_v37  ;;  %2339 = vst.msk [vmem:[#allocation6 + $0x80] sm:$0x1] %vm2331_vm2, %v10486_v37 }
 0x105   :  { %10018 = vmatprep.subr.bf16.mxu0 %v10172_v3  ;;  %2340 = vst.msk [vmem:[#allocation6 + $0xb0] sm:$0x1] %vm2331_vm2, %v10486_v37  ;;  %2341 = vst.msk [vmem:[#allocation6 + $0xc0] sm:$0x1] %vm2331_vm2, %v10486_v37 }
 0x106   :  { %2342 = vst.msk [vmem:[#allocation6 + $0xd0] sm:$0x1] %vm2331_vm2, %v10486_v37  ;;  %2343 = vst.msk [vmem:[#allocation6 + $0xe0] sm:$0x1] %vm2331_vm2, %v10486_v37 }
 0x107   :  { %2344 = vst.msk [vmem:[#allocation6 + $0xf0] sm:$0x1] %vm2331_vm2, %v10486_v37  ;;  %2345 = vst.msk [vmem:[#allocation6 + $0x100] sm:$0x1] %vm2331_vm2, %v10486_v37 }
 0x108   :  { %10019 = vmatpush3.bf16.msra.mxu0 %v10172_v3  ;;  %1993 = vmatmul.mubr.bf16.gmra.mrb[32].mxu1 %v1355_v45  ;;  %2346 = vst.msk [vmem:[#allocation6 + $0x110] sm:$0x1] %vm2331_vm2, %v10486_v37  ;;  %2347 = vst.msk [vmem:[#allocation6 + $0x120] sm:$0x1] %vm2331_vm2, %v10486_v37 }
 0x109   :  { %10020 = vmatprep.subr.bf16.mxu0 %v10173_v30  ;;  %2000 = vmatprep.mubr.bf16.mxu1 %v1361_v14  ;;  %2348 = vst.msk [vmem:[#allocation6 + $0x150] sm:$0x1] %vm2331_vm2, %v10486_v37  ;;  %2349 = vst.msk [vmem:[#allocation6 + $0x160] sm:$0x1] %vm2331_vm2, %v10486_v37 }
 0x10a   :  { %2350 = vst.msk [vmem:[#allocation6 + $0x170] sm:$0x1] %vm2331_vm2, %v10486_v37  ;;  %2351 = vst.msk [vmem:[#allocation6 + $0x180] sm:$0x1] %vm2331_vm2, %v10486_v37 }
 0x10b   :  { %1921 = vmatmul.mubr.bf16.gmra.mrb[68].mxu0 %v1310_v9  ;;  %2352 = vst.msk [vmem:[#allocation6 + $0x190] sm:$0x1] %vm2331_vm2, %v10486_v37  ;;  %2353 = vst.msk [vmem:[#allocation6 + $0x1a0] sm:$0x1] %vm2331_vm2, %v10486_v37 }
 0x10c   :  { %10021 = vmatpush3.bf16.msra.mxu0 %v10173_v30  ;;  %10024 = vmatprep.mubr.msk.bf16.mxu0 %vm97_vm0, %v1307_v40  ;;  %2354 = vst.msk [vmem:[#allocation6 + $0x1b0] sm:$0x1] %vm2331_vm2, %v10486_v37  ;;  %2355 = vst.msk [vmem:[#allocation6 + $0x1c0] sm:$0x1] %vm2331_vm2, %v10486_v37 }
 0x10d   :  { %10022 = vmatprep.subr.bf16.mxu0 %v10174_v53  ;;  %2356 = vst.msk [vmem:[#allocation6 + $0x1f0] sm:$0x1] %vm2331_vm2, %v10486_v37  ;;  %2357 = vst.msk [vmem:[#allocation6 + $0x200] sm:$0x1] %vm2331_vm2, %v10486_v37 }
 0x10e   :  { %2358 = vst.msk [vmem:[#allocation6 + $0x210] sm:$0x1] %vm2331_vm2, %v10486_v37  ;;  %2359 = vst.msk [vmem:[#allocation6 + $0x220] sm:$0x1] %vm2331_vm2, %v10486_v37 }
 0x10f   :  { %2360 = vst.msk [vmem:[#allocation6 + $0x230] sm:$0x1] %vm2331_vm2, %v10486_v37  ;;  %2361 = vst.msk [vmem:[#allocation6 + $0x240] sm:$0x1] %vm2331_vm2, %v10486_v37 }
 0x110   :  { %10023 = vmatpush3.bf16.msra.mxu0 %v10174_v53  ;;  %2001 = vmatmul.mubr.bf16.gmra.mrb[36].mxu1 %v1360_v17  ;;  %2362 = vst.msk [vmem:[#allocation6 + $0x250] sm:$0x1] %vm2331_vm2, %v10486_v37  ;;  %2363 = vst.msk [vmem:[#allocation6 + $0x260] sm:$0x1] %vm2331_vm2, %v10486_v37 }
 0x111   :  { %2008 = vmatprep.mubr.bf16.mxu1 %v1366_v4  ;;  %2364 = vst.msk [vmem:[#allocation6 + $0x19] sm:$0x1] %vm2331_vm2, %v10486_v37  ;;  %2365 = vst.msk [vmem:[#allocation6 + $0x29] sm:$0x1] %vm2331_vm2, %v10486_v37 }
 0x112   :  { %2366 = vst.msk [vmem:[#allocation6 + $0x39] sm:$0x1] %vm2331_vm2, %v10486_v37  ;;  %2367 = vst.msk [vmem:[#allocation6 + $0x49] sm:$0x1] %vm2331_vm2, %v10486_v37 }
 0x113   :  { %10025 = vmatmul.mubr.msk.bf16.vlgmr.msra.gmra.mrb[72].mxu0 %vm97_vm0, %v1312_v15  ;;  %2368 = vst.msk [vmem:[#allocation6 + $0x59] sm:$0x1] %vm2331_vm2, %v10486_v37  ;;  %2369 = vst.msk [vmem:[#allocation6 + $0x69] sm:$0x1] %vm2331_vm2, %v10486_v37 }
 0x114   :  { %10028 = vmatprep.mubr.msk.bf16.mxu0 %vm97_vm0, %v1317_v22  ;;  %2370 = vst.msk [vmem:[#allocation6 + $0x79] sm:$0x1] %vm2331_vm2, %v10486_v37  ;;  %2371 = vst.msk [vmem:[#allocation6 + $0x89] sm:$0x1] %vm2331_vm2, %v10486_v37 }
 0x115   :  { %2372 = vst.msk [vmem:[#allocation6 + $0xb9] sm:$0x1] %vm2331_vm2, %v10486_v37  ;;  %2373 = vst.msk [vmem:[#allocation6 + $0xc9] sm:$0x1] %vm2331_vm2, %v10486_v37 }
 0x116   :  { %2374 = vst.msk [vmem:[#allocation6 + $0xd9] sm:$0x1] %vm2331_vm2, %v10486_v37  ;;  %2375 = vst.msk [vmem:[#allocation6 + $0xe9] sm:$0x1] %vm2331_vm2, %v10486_v37 }
 0x117   :  { %2376 = vst.msk [vmem:[#allocation6 + $0xf9] sm:$0x1] %vm2331_vm2, %v10486_v37  ;;  %2377 = vst.msk [vmem:[#allocation6 + $0x109] sm:$0x1] %vm2331_vm2, %v10486_v37 }
 0x118   :  { %2009 = vmatmul.mubr.bf16.gmra.mrb[40].mxu1 %v1365_v56  ;;  %2378 = vst.msk [vmem:[#allocation6 + $0x119] sm:$0x1] %vm2331_vm2, %v10486_v37  ;;  %2379 = vst.msk [vmem:[#allocation6 + $0x129] sm:$0x1] %vm2331_vm2, %v10486_v37 }
 0x119   :  { %2016 = vmatprep.mubr.bf16.mxu1 %v1371_v10  ;;  %2380 = vst.msk [vmem:[#allocation6 + $0x159] sm:$0x1] %vm2331_vm2, %v10486_v37  ;;  %2381 = vst.msk [vmem:[#allocation6 + $0x169] sm:$0x1] %vm2331_vm2, %v10486_v37 }
 0x11a   :  { %2382 = vst.msk [vmem:[#allocation6 + $0x179] sm:$0x1] %vm2331_vm2, %v10486_v37  ;;  %2383 = vst.msk [vmem:[#allocation6 + $0x189] sm:$0x1] %vm2331_vm2, %v10486_v37 }
 0x11b   :  { %10029 = vmatmul.mubr.msk.bf16.gmra.mrb[76].mxu0 %vm97_vm0, %v1322_v21  ;;  %2384 = vst.msk [vmem:[#allocation6 + $0x199] sm:$0x1] %vm2331_vm2, %v10486_v37  ;;  %2385 = vst.msk [vmem:[#allocation6 + $0x1a9] sm:$0x1] %vm2331_vm2, %v10486_v37 }
 0x11c   :  { %10032 = vmatprep.mubr.msk.bf16.mxu0 %vm97_vm0, %v1327_v5  ;;  %2386 = vst.msk [vmem:[#allocation6 + $0x1b9] sm:$0x1] %vm2331_vm2, %v10486_v37  ;;  %2387 = vst.msk [vmem:[#allocation6 + $0x1c9] sm:$0x1] %vm2331_vm2, %v10486_v37 }
 0x11d   :  { %2388 = vst.msk [vmem:[#allocation6 + $0x1f9] sm:$0x1] %vm2331_vm2, %v10486_v37  ;;  %2389 = vst.msk [vmem:[#allocation6 + $0x209] sm:$0x1] %vm2331_vm2, %v10486_v37 }
 0x11e   :  { %2390 = vst.msk [vmem:[#allocation6 + $0x219] sm:$0x1] %vm2331_vm2, %v10486_v37  ;;  %2391 = vst.msk [vmem:[#allocation6 + $0x229] sm:$0x1] %vm2331_vm2, %v10486_v37 }
 0x11f   :  { %2392 = vst.msk [vmem:[#allocation6 + $0x239] sm:$0x1] %vm2331_vm2, %v10486_v37  ;;  %2393 = vst.msk [vmem:[#allocation6 + $0x249] sm:$0x1] %vm2331_vm2, %v10486_v37 }
 0x120   :  { %2017 = vmatmul.mubr.bf16.gmra.mrb[44].mxu1 %v1370_v34  ;;  %2394 = vst.msk [vmem:[#allocation6 + $0x259] sm:$0x1] %vm2331_vm2, %v10486_v37  ;;  %2395 = vst.msk [vmem:[#allocation6 + $0x269] sm:$0x1] %vm2331_vm2, %v10486_v37 }
 0x121   :  { %2024 = vmatprep.mubr.bf16.mxu1 %v1376_v31  ;;  %2314 = vst.msk [vmem:[#allocation6 + $0x8] sm:$0x3] %vm2313_vm3, %v10486_v37  ;;  %2316 = vst.msk [vmem:[#allocation6 + $0xa8] sm:$0x3] %vm2313_vm3, %v10486_v37 }
 0x122   :  { %2318 = vst.msk [vmem:[#allocation6 + $0x148] sm:$0x3] %vm2313_vm3, %v10486_v37  ;;  %2320 = vst.msk [vmem:[#allocation6 + $0x1e8] sm:$0x3] %vm2313_vm3, %v10486_v37 }
 0x123   :  { %10033 = vmatmul.mubr.msk.bf16.gmra.mrb[80].mxu0 %vm97_vm0, %v1332_v28  ;;  %2323 = vst.msk [vmem:[#allocation6 + $0x98] sm:$0x3] %vm2313_vm3, %v10486_v37  ;;  %2325 = vst.msk [vmem:[#allocation6 + $0x138] sm:$0x3] %vm2313_vm3, %v10486_v37 }
 0x124   :  { %10036 = vmatprep.mubr.msk.bf16.mxu0 %vm97_vm0, %v1337_v32  ;;  %2327 = vst.msk [vmem:[#allocation6 + $0x1d8] sm:$0x3] %vm2313_vm3, %v10486_v37  ;;  %2329 = vst.msk [vmem:[#allocation6 + $0x278] sm:$0x3] %vm2313_vm3, %v10486_v37 }
 0x128   :  { %2025 = vmatmul.mubr.bf16.gmra.mrb[48].mxu1 %v1375_v51 }
 0x129   :  { %2032 = vmatprep.mubr.bf16.mxu1 %v1381_v29 }
 0x12b   :  { %10037 = vmatmul.mubr.msk.bf16.gmra.mrb[84].mxu0 %vm97_vm0, %v1342_v54 }
 0x12c   :  { %10040 = vmatprep.mubr.msk.bf16.mxu0 %vm97_vm0, %v1347_v41 }
 0x130   :  { %2033 = vmatmul.mubr.bf16.gmra.mrb[52].mxu1 %v1380_v39 }
 0x133   :  { %10041 = vmatmul.mubr.msk.bf16.gmra.mrb[88].mxu0 %vm97_vm0, %v1352_v61 }
 0x134   :  { %10044 = vmatprep.mubr.msk.bf16.mxu0 %vm97_vm0, %v1357_v48 }
 0x13b   :  { %10045 = vmatmul.mubr.msk.bf16.gmra.mrb[92].mxu0 %vm97_vm0, %v1362_v49 }
 0x13c   :  { %10048 = vmatprep.mubr.msk.bf16.mxu0 %vm97_vm0, %v1367_v6 }
 0x143   :  { %10049 = vmatmul.mubr.msk.bf16.gmra.mrb[96].mxu0 %vm97_vm0, %v1372_v58 }
 0x144   :  { %10052 = vmatprep.mubr.msk.bf16.mxu0 %vm97_vm0, %v1377_v60 }
 0x14b   :  { %10053 = vmatmul.mubr.msk.bf16.gmra.mrb[100].mxu0 %vm97_vm0, %v1382_v20 }
 0x156   :  { %v9020_v7 = vpop.f32.mrb[0].mxu0 }
 0x157   :  { %v9021_v23 = vpop.f32.mrb[1].mxu0 }
 0x158   :  { %v11790_v12 = vadd.f32 %v9021_v23, %v9020_v7  ;;  %v9023_v13 = vpop.f32.mrb[2].mxu0 }
 0x159   :  { %v9024_v1 = vpop.f32.mrb[3].mxu0 }
 0x15a   :  { %v11792_v36 = vadd.f32 %v9024_v1, %v9023_v13 }
 0x15e   :  { %v9026_v33 = vpop.f32.mrb[4].mxu0 }
 0x15f   :  { %v9027_v8 = vpop.f32.mrb[5].mxu0 }
 0x160   :  { %v11794_v62 = vadd.f32 %v9027_v8, %v9026_v33  ;;  %v9029_v18 = vpop.f32.mrb[6].mxu0 }
 0x161   :  { %v9030_v19 = vpop.f32.mrb[7].mxu0 }
 0x162   :  { %v11796_v16 = vadd.f32 %v9030_v19, %v9029_v18  ;;  %v10175_v18 = vld [vmem:[%s15359_s6 + $0x40] sm:$0xff]  }
 0x163   :  { %9248 = vmatprep.subr.bf16.mxu1 %v10175_v18 }
 0x166   :  { %v9032_v47 = vpop.f32.mrb[8].mxu0 }
 0x167   :  { %v9033_v44 = vpop.f32.mrb[9].mxu0 }
 0x168   :  { %v11798_v55 = vadd.f32 %v9033_v44, %v9032_v47  ;;  %v9035_v35 = vpop.f32.mrb[10].mxu0  ;;  %v10176_v47 = vld [vmem:[%s15359_s6] sm:$0xff]  }
 0x169   :  { %v9036_v24 = vpop.f32.mrb[11].mxu0  ;;  %9249 = vmatpush3.bf16.msra.mxu1 %v10176_v47 }
 0x16a   :  { %v11800_v50 = vadd.f32 %v9036_v24, %v9035_v35 }
 0x16e   :  { %v9038_v63 = vpop.f32.mrb[12].mxu0 }
 0x16f   :  { %v9039_v0 = vpop.f32.mrb[13].mxu0 }
 0x170   :  { %v11802_v46 = vadd.f32 %v9039_v0, %v9038_v63  ;;  %v9041_v25 = vpop.f32.mrb[14].mxu0 }
 0x171   :  { %v9042_v57 = vpop.f32.mrb[15].mxu0 }
 0x172   :  { %v11804_v26 = vadd.f32 %v9042_v57, %v9041_v25 }
 0x176   :  { %v9044_v27 = vpop.f32.mrb[16].mxu0 }
 0x177   :  { %v9045_v38 = vpop.f32.mrb[17].mxu0 }
 0x178   :  { %v11806_v52 = vadd.f32 %v9045_v38, %v9044_v27  ;;  %v11808_v59 = vpop.f32.mrb[18].mxu0 }
 0x179   :  { %v9048_v42 = vpop.f32.mrb[19].mxu0 }
 0x17a   :  { %v11971_v43 = vadd.f32 %v9048_v42, %v11808_v59 }
 0x17e   :  { %v9050_v2 = vpop.f32.mrb[20].mxu0 }
 0x17f   :  { %v9051_v3 = vpop.f32.mrb[21].mxu0 }
 0x180   :  { %v11973_v11 = vadd.f32 %v9051_v3, %v9050_v2  ;;  %v9053_v45 = vpop.f32.mrb[22].mxu0 }
 0x181   :  { %v9054_v30 = vpop.f32.mrb[23].mxu0 }
 0x182   :  { %v11975_v14 = vadd.f32 %v9054_v30, %v9053_v45 }
 0x186   :  { %v9056_v9 = vpop.f32.mrb[24].mxu0 }
 0x187   :  { %v9057_v53 = vpop.f32.mrb[25].mxu0 }
 0x188   :  { %v11977_v40 = vadd.f32 %v9057_v53, %v9056_v9  ;;  %v9059_v17 = vpop.f32.mrb[26].mxu0 }
 0x189   :  { %v9060_v4 = vpop.f32.mrb[27].mxu0 }
 0x18a   :  { %v11979_v15 = vadd.f32 %v9060_v4, %v9059_v17 }
 0x18e   :  { %v9062_v22 = vpop.f32.mrb[28].mxu0 }
 0x18f   :  { %v9063_v56 = vpop.f32.mrb[29].mxu0 }
 0x190   :  { %v11981_v10 = vadd.f32 %v9063_v56, %v9062_v22  ;;  %v9065_v21 = vpop.f32.mrb[30].mxu0 }
 0x191   :  { %v9066_v5 = vpop.f32.mrb[31].mxu0 }
 0x192   :  { %v11983_v34 = vadd.f32 %v9066_v5, %v9065_v21  ;;  %v10178_v21 = vld [vmem:[%s15359_s6 + $0x8] sm:$0xff]  }
 0x196   :  { %v9068_v31 = vpop.f32.mrb[32].mxu0 }
 0x197   :  { %v9069_v28 = vpop.f32.mrb[33].mxu0 }
 0x198   :  { %v11985_v32 = vadd.f32 %v9069_v28, %v9068_v31  ;;  %v9071_v51 = vpop.f32.mrb[34].mxu0  ;;  %v10179_v31 = vld [vmem:[%s15359_s6 + $0x50] sm:$0xff]  }
 0x199   :  { %v9072_v29 = vpop.f32.mrb[35].mxu0  ;;  %v10180_v28 = vld [vmem:[%s15359_s6 + $0x10] sm:$0xff]  }
 0x19a   :  { %v11987_v54 = vadd.f32 %v9072_v29, %v9071_v51 }
 0x19b   :  { %v9144_v41 = vpop.f32.mrb[0].mxu1 }
 0x19c   :  { %v9145_v39 = vpop.f32.mrb[1].mxu1 }
 0x19d   :  { %v9146_v61 = vadd.f32 %v9145_v39, %v9144_v41  ;;  %v9147_v48 = vpop.f32.mrb[2].mxu1 }
 0x19e   :  { %v9074_v49 = vpop.f32.mrb[36].mxu0  ;;  %v9148_v6 = vpop.f32.mrb[3].mxu1 }
 0x19f   :  { %v9149_v58 = vadd.f32 %v9148_v6, %v9147_v48  ;;  %v9075_v60 = vpop.f32.mrb[37].mxu0  ;;  %v11990_v20 = vadd.f32 %v9146_v61, %v11798_v55 }
 0x1a0   :  { %v11992_v7 = vadd.f32 %v9075_v60, %v9074_v49  ;;  %v9077_v23 = vpop.f32.mrb[38].mxu0 }
 0x1a1   :  { %v9078_v13 = vpop.f32.mrb[39].mxu0  ;;  %v11995_v1 = vadd.f32 %v9149_v58, %v11800_v50 }
 0x1a2   :  { %v11997_v33 = vadd.f32 %v9078_v13, %v9077_v23  ;;  %v10181_v13 = vld [vmem:[%s15359_s6 + $0x58] sm:$0xff]  }
 0x1a3   :  { %v9150_v8 = vpop.f32.mrb[4].mxu1 }
 0x1a4   :  { %v9151_v19 = vpop.f32.mrb[5].mxu1 }
 0x1a5   :  { %v9152_v44 = vadd.f32 %v9151_v19, %v9150_v8  ;;  %v9153_v55 = vpop.f32.mrb[6].mxu1  ;;  %v10182_v8 = vld [vmem:[%s15359_s6 + $0x18] sm:$0xff]  }
 0x1a6   :  { %v9080_v35 = vpop.f32.mrb[40].mxu0  ;;  %v9154_v24 = vpop.f32.mrb[7].mxu1 }
 0x1a7   :  { %v9155_v50 = vadd.f32 %v9154_v24, %v9153_v55  ;;  %v9081_v63 = vpop.f32.mrb[41].mxu0  ;;  %v12006_v0 = vadd.f32 %v9152_v44, %v11802_v46 }
 0x1a8   :  { %v12008_v25 = vadd.f32 %v9081_v63, %v9080_v35  ;;  %v9083_v57 = vpop.f32.mrb[42].mxu0 }
 0x1a9   :  { %v9084_v27 = vpop.f32.mrb[43].mxu0  ;;  %v12011_v38 = vadd.f32 %v9155_v50, %v11804_v26  ;;  %v10177_v26 = vld [vmem:[%s15359_s6 + $0x48] sm:$0xff]  }
 0x1aa   :  { %v12013_v59 = vadd.f32 %v9084_v27, %v9083_v57  ;;  %9250 = vmatprep.subr.bf16.mxu1 %v10177_v26 }
 0x1ab   :  { %v9156_v37 = vpop.f32.mrb[8].mxu1  ;;  %9251 = vmatpush3.bf16.msra.mxu1 %v10178_v21  ;;  %v10185_v21 = vld [vmem:[%s15359_s6 + $0x60] sm:$0xff]  }
 0x1ac   :  { %v9157_v42 = vpop.f32.mrb[9].mxu1  ;;  %9252 = vmatprep.subr.bf16.mxu1 %v10179_v31 }
 0x1ad   :  { %v9158_v2 = vadd.f32 %v9157_v42, %v9156_v37  ;;  %v9159_v3 = vpop.f32.mrb[10].mxu1 }
 0x1ae   :  { %v9086_v45 = vpop.f32.mrb[44].mxu0  ;;  %v9160_v30 = vpop.f32.mrb[11].mxu1 }
 0x1af   :  { %v9161_v9 = vadd.f32 %v9160_v30, %v9159_v3  ;;  %v9087_v53 = vpop.f32.mrb[45].mxu0  ;;  %v12016_v46 = vadd.f32 %v9158_v2, %v11806_v52  ;;  %9253 = vmatpush3.bf16.msra.mxu1 %v10180_v28  ;;  %v10183_v3 = vld [vmem:[%s15359_s6 + $0xc0] sm:$0xff]  }
 0x1b0   :  { %v12018_v17 = vadd.f32 %v9087_v53, %v9086_v45  ;;  %v9089_v4 = vpop.f32.mrb[46].mxu0  ;;  %9254 = vmatprep.subr.bf16.mxu1 %v10181_v13  ;;  %v10184_v45 = vld [vmem:[%s15359_s6 + $0x80] sm:$0xff]   ;;  %9360 = vmatprep.subr.bf16.mxu0 %v10183_v3  ;;  %v10192_v3 = vld [vmem:[%s15359_s6 + $0x28] sm:$0xff]  }
 0x1b1   :  { %v9090_v22 = vpop.f32.mrb[47].mxu0  ;;  %v12024_v56 = vadd.f32 %v9161_v9, %v11971_v43  ;;  %9361 = vmatpush3.bf16.msra.mxu0 %v10184_v45 }
 0x1b2   :  { %v12029_v5 = vadd.f32 %v9090_v22, %v9089_v4 }
 0x1b3   :  { %v9162_v52 = vpop.f32.mrb[12].mxu1  ;;  %9255 = vmatpush3.bf16.msra.mxu1 %v10182_v8 }
 0x1b4   :  { %v9163_v51 = vpop.f32.mrb[13].mxu1  ;;  %9256 = vmatprep.subr.bf16.mxu1 %v10185_v21 }
 0x1b5   :  { %v9164_v43 = vadd.f32 %v9163_v51, %v9162_v52  ;;  %v9165_v29 = vpop.f32.mrb[14].mxu1  ;;  %v10186_v52 = vld [vmem:[%s15359_s6 + $0x20] sm:$0xff]  }
 0x1b6   :  { %v9092_v41 = vpop.f32.mrb[48].mxu0  ;;  %v9166_v39 = vpop.f32.mrb[15].mxu1 }
 0x1b7   :  { %v9167_v61 = vadd.f32 %v9166_v39, %v9165_v29  ;;  %v9093_v48 = vpop.f32.mrb[49].mxu0  ;;  %v12038_v49 = vadd.f32 %v9164_v43, %v11973_v11  ;;  %9257 = vmatpush3.bf16.msra.mxu1 %v10186_v52  ;;  %v10188_v39 = vld [vmem:[%s15359_s6 + $0x88] sm:$0xff]  }
 0x1b8   :  { %v12040_v6 = vadd.f32 %v9093_v48, %v9092_v41  ;;  %v9095_v58 = vpop.f32.mrb[50].mxu0  ;;  %v10187_v41 = vld [vmem:[%s15359_s6 + $0xc8] sm:$0xff]  }
 0x1b9   :  { %v9096_v60 = vpop.f32.mrb[51].mxu0  ;;  %v12043_v23 = vadd.f32 %v9167_v61, %v11975_v14  ;;  %9362 = vmatprep.subr.bf16.mxu0 %v10187_v41 }
 0x1ba   :  { %v12051_v18 = vadd.f32 %v9096_v60, %v9095_v58  ;;  %9363 = vmatpush3.bf16.msra.mxu0 %v10188_v39 }
 0x1bb   :  { %v9168_v11 = vpop.f32.mrb[16].mxu1 }
 0x1bc   :  { %v9169_v19 = vpop.f32.mrb[17].mxu1 }
 0x1bd   :  { %v9170_v47 = vadd.f32 %v9169_v19, %v9168_v11  ;;  %v9171_v44 = vpop.f32.mrb[18].mxu1 }
 0x1be   :  { %v9098_v55 = vpop.f32.mrb[52].mxu0  ;;  %v9172_v35 = vpop.f32.mrb[19].mxu1 }
 0x1bf   :  { %v9173_v14 = vadd.f32 %v9172_v35, %v9171_v44  ;;  %v9099_v24 = vpop.f32.mrb[53].mxu0  ;;  %v12054_v50 = vadd.f32 %v9170_v47, %v11977_v40 }
 0x1c0   :  { %v12056_v63 = vadd.f32 %v9099_v24, %v9098_v55  ;;  %v9101_v57 = vpop.f32.mrb[54].mxu0  ;;  %v10189_v24 = vld [vmem:[%s15359_s6 + $0xd0] sm:$0xff]  }
 0x1c1   :  { %v9102_v27 = vpop.f32.mrb[55].mxu0  ;;  %v12059_v37 = vadd.f32 %v9173_v14, %v11979_v15  ;;  %9364 = vmatprep.subr.bf16.mxu0 %v10189_v24 }
 0x1c2   :  { %v12061_v42 = vadd.f32 %v9102_v27, %v9101_v57  ;;  %v10190_v57 = vld [vmem:[%s15359_s6 + $0x90] sm:$0xff]  }
 0x1c3   :  { %v9174_v2 = vpop.f32.mrb[20].mxu1  ;;  %9365 = vmatpush3.bf16.msra.mxu0 %v10190_v57  ;;  %v10195_v57 = vld [vmem:[%s15359_s6 + $0x70] sm:$0xff]  }
 0x1c4   :  { %v9175_v40 = vpop.f32.mrb[21].mxu1 }
 0x1c5   :  { %v9176_v30 = vadd.f32 %v9175_v40, %v9174_v2  ;;  %v9177_v9 = vpop.f32.mrb[22].mxu1 }
 0x1c6   :  { %v9104_v53 = vpop.f32.mrb[56].mxu0  ;;  %v9178_v4 = vpop.f32.mrb[23].mxu1 }
 0x1c7   :  { %v9179_v15 = vadd.f32 %v9178_v4, %v9177_v9  ;;  %v9105_v26 = vpop.f32.mrb[57].mxu0  ;;  %v12070_v22 = vadd.f32 %v9176_v30, %v11981_v10 }
 0x1c8   :  { %v12078_v31 = vadd.f32 %v9105_v26, %v9104_v53  ;;  %v9107_v28 = vpop.f32.mrb[58].mxu0 }
 0x1c9   :  { %v9108_v51 = vpop.f32.mrb[59].mxu0  ;;  %v12081_v43 = vadd.f32 %v9179_v15, %v11983_v34 }
 0x1ca   :  { %v12083_v29 = vadd.f32 %v9108_v51, %v9107_v28 }
 0x1cb   :  { %v9180_v10 = vpop.f32.mrb[24].mxu1 }
 0x1cc   :  { %v9181_v61 = vpop.f32.mrb[25].mxu1 }
 0x1cd   :  { %v9182_v48 = vadd.f32 %v9181_v61, %v9180_v10  ;;  %v9183_v58 = vpop.f32.mrb[26].mxu1  ;;  %v10193_v10 = vld [vmem:[%s15359_s6 + $0xd8] sm:$0xff]  }
 0x1ce   :  { %v9110_v60 = vpop.f32.mrb[60].mxu0  ;;  %v9184_v34 = vpop.f32.mrb[27].mxu1  ;;  %9366 = vmatprep.subr.bf16.mxu0 %v10193_v10 }
 0x1cf   :  { %v9185_v13 = vadd.f32 %v9184_v34, %v9183_v58  ;;  %v9111_v8 = vpop.f32.mrb[61].mxu0  ;;  %v12092_v11 = vadd.f32 %v9182_v48, %v11985_v32 }
 0x1d0   :  { %v12094_v19 = vadd.f32 %v9111_v8, %v9110_v60  ;;  %v9113_v47 = vpop.f32.mrb[62].mxu0 }
 0x1d1   :  { %v9114_v44 = vpop.f32.mrb[63].mxu0  ;;  %v12097_v55 = vadd.f32 %v9185_v13, %v11987_v54  ;;  %v10191_v54 = vld [vmem:[%s15359_s6 + $0x68] sm:$0xff]  }
 0x1d2   :  { %v12099_v35 = vadd.f32 %v9114_v44, %v9113_v47  ;;  %9258 = vmatprep.subr.bf16.mxu1 %v10191_v54 }
 0x1d3   :  { %v9186_v14 = vpop.f32.mrb[28].mxu1  ;;  %9259 = vmatpush3.bf16.msra.mxu1 %v10192_v3 }
 0x1d4   :  { %v9187_v32 = vpop.f32.mrb[29].mxu1  ;;  %9260 = vmatprep.subr.bf16.mxu1 %v10195_v57 }
 0x1d5   :  { %v9188_v27 = vadd.f32 %v9187_v32, %v9186_v14  ;;  %v9189_v2 = vpop.f32.mrb[30].mxu1  ;;  %v10196_v32 = vld [vmem:[%s15359_s6 + $0xe0] sm:$0xff]  }
 0x1d6   :  { %v9132_v45 = vpop.f32.mrb[64].mxu0  ;;  %v9190_v40 = vpop.f32.mrb[31].mxu1 }
 0x1d7   :  { %v9191_v30 = vadd.f32 %v9190_v40, %v9189_v2  ;;  %v9133_v9 = vpop.f32.mrb[65].mxu0  ;;  %v12114_v53 = vadd.f32 %v9188_v27, %v11992_v7  ;;  %v10194_v7 = vld [vmem:[%s15359_s6 + $0x98] sm:$0xff]   ;;  %v12150_v40 = vld [vmem:[%s15360_s4] ss:$0 sm:$0xff] }
 0x1d8   :  { %v9134_v4 = vadd.f32 %v9133_v9, %v9132_v45  ;;  %v9135_v15 = vpop.f32.mrb[66].mxu0  ;;  %9367 = vmatpush3.bf16.msra.mxu0 %v10194_v7 }
 0x1d9   :  { %v9136_v26 = vpop.f32.mrb[67].mxu0  ;;  %v12117_v21 = vadd.f32 %v9191_v30, %v11997_v33  ;;  %9368 = vmatprep.subr.bf16.mxu0 %v10196_v32 }
 0x1da   :  { %v9137_v52 = vadd.f32 %v9136_v26, %v9135_v15  ;;  %v1915_v28 = vadd.f32 %v9134_v4, %v11790_v12  ;;  %v12158_v15 = vld [vmem:[%s15361_s5] ss:$0 sm:$0xff] }
 0x1db   :  { %v9192_v51 = vpop.f32.mrb[32].mxu1 }
 0x1dc   :  { %v9193_v41 = vpop.f32.mrb[33].mxu1  ;;  %v1918_v39 = vadd.f32 %v9137_v52, %v11792_v36 }
 0x1dd   :  { %v9194_v61 = vadd.f32 %v9193_v41, %v9192_v51  ;;  %v9195_v48 = vpop.f32.mrb[34].mxu1 }
 0x1de   :  { %v9138_v33 = vpop.f32.mrb[68].mxu0  ;;  %v9196_v58 = vpop.f32.mrb[35].mxu1 }
 0x1df   :  { %v9197_v60 = vadd.f32 %v9196_v58, %v9195_v48  ;;  %v9139_v12 = vpop.f32.mrb[69].mxu0  ;;  %v12128_v34 = vadd.f32 %v9194_v61, %v12008_v25  ;;  %v10197_v25 = vld [vmem:[%s15359_s6 + $0x30] sm:$0xff]  }
 0x1e0   :  { %v9140_v13 = vadd.f32 %v9139_v12, %v9138_v33  ;;  %v9141_v8 = vpop.f32.mrb[70].mxu0  ;;  %9261 = vmatpush3.bf16.msra.mxu1 %v10197_v25 }
 0x1e1   :  { %v9142_v47 = vpop.f32.mrb[71].mxu0  ;;  %v12131_v44 = vadd.f32 %v9197_v60, %v12013_v59  ;;  %v10200_v60 = vld [vmem:[%s15359_s6 + $0xa8] sm:$0xff]  }
 0x1e2   :  { %v9143_v14 = vadd.f32 %v9142_v47, %v9141_v8  ;;  %v1923_v36 = vadd.f32 %v9140_v13, %v11794_v62  ;;  %v10198_v62 = vld [vmem:[%s15359_s6 + $0xa0] sm:$0xff]  }
 0x1e3   :  { %v9198_v24 = vpop.f32.mrb[36].mxu1  ;;  %9369 = vmatpush3.bf16.msra.mxu0 %v10198_v62 }
 0x1e4   :  { %v9199_v27 = vpop.f32.mrb[37].mxu1  ;;  %v1926_v59 = vadd.f32 %v9143_v14, %v11796_v16 }
 0x1e5   :  { %v9200_v2 = vadd.f32 %v9199_v27, %v9198_v24  ;;  %v9201_v54 = vpop.f32.mrb[38].mxu1 }
 0x1e6   :  { %v9202_v3 = vpop.f32.mrb[39].mxu1  ;;  %v10026_v45 = vpop.f32.mrb[72].mxu0 }
 0x1e7   :  { %v9203_v30 = vadd.f32 %v9202_v3, %v9201_v54  ;;  %v2084_v9 = vadd.f32 %v10026_v45, %v1923_v36  ;;  %v2075_v16 = vpop.f32.mrb[73].mxu0  ;;  %v12153_v4 = vadd.f32 %v9200_v2, %v12018_v17 }
 0x1e8   :  { %v2076_v26 = vadd.f32 %v2075_v16, %v1915_v28  ;;  %v10027_v52 = vpop.f32.mrb[74].mxu0  ;;  %v10199_v28 = vld [vmem:[%s15359_s6 + $0xe8] sm:$0xff]  }
 0x1e9   :  { %v2211_v51 = vmul.f32 %v12150_v40, %v2084_v9  ;;  %v2087_v10 = vadd.f32 %v10027_v52, %v1926_v59  ;;  %v2078_v7 = vpop.f32.mrb[75].mxu0  ;;  %v12162_v41 = vadd.f32 %v9203_v30, %v12029_v5  ;;  %9370 = vmatprep.subr.bf16.mxu0 %v10199_v28 }
 0x1ea   :  { %v2209_v61 = vmul.f32 %v12150_v40, %v2076_v26  ;;  %v2079_v48 = vadd.f32 %v2078_v7, %v1918_v39  ;;  %9371 = vmatpush3.bf16.msra.mxu0 %v10200_v60  ;;  %v10204_v26 = vld [vmem:[%s15359_s6 + $0xb0] sm:$0xff]  }
 0x1eb   :  { %v2250_v17 = vadd.f32 %v12158_v15, %v2211_v51  ;;  %v2212_v33 = vmul.f32 %v12150_v40, %v2087_v10  ;;  %v9204_v58 = vpop.f32.mrb[40].mxu1 }
 0x1ec   :  { %v2248_v12 = vadd.f32 %v12158_v15, %v2209_v61  ;;  %v2210_v5 = vmul.f32 %v12150_v40, %v2079_v48  ;;  %v9205_v13 = vpop.f32.mrb[41].mxu1 }
 0x1ed   :  { %10355 = vtanh.f32 %v2250_v17  ;;  %v2251_v39 = vadd.f32 %v12158_v15, %v2212_v33  ;;  %v9206_v8 = vadd.f32 %v9205_v13, %v9204_v58  ;;  %v9207_v47 = vpop.f32.mrb[42].mxu1 }
 0x1ee   :  { %10357 = vtanh.f32 %v2248_v12  ;;  %v2249_v14 = vadd.f32 %v12158_v15, %v2210_v5  ;;  %v9208_v36 = vpop.f32.mrb[43].mxu1  ;;  %v10030_v24 = vpop.f32.mrb[76].mxu0 }
 0x1ef   :  { %10359 = vtanh.f32 %v2251_v39  ;;  %v9209_v57 = vadd.f32 %v9208_v36, %v9207_v47  ;;  %v2100_v32 = vadd.f32 %v10030_v24, %v12006_v0  ;;  %v2091_v25 = vpop.f32.mrb[77].mxu0  ;;  %v12179_v27 = vadd.f32 %v9206_v8, %v12040_v6  ;;  %v10201_v0 = vld [vmem:[%s15359_s6 + $0x78] sm:$0xff]  }
 0x1f0   :  { %10361 = vtanh.f32 %v2249_v14  ;;  %v2092_v59 = vadd.f32 %v2091_v25, %v11990_v20  ;;  %v10031_v62 = vpop.f32.mrb[78].mxu0  ;;  %v10202_v6 = vld [vmem:[%s15359_s6 + $0x38] sm:$0xff]   ;;  %9262 = vmatprep.subr.bf16.mxu1 %v10201_v0 }
 0x1f1   :  { %v2215_v2 = vmul.f32 %v12150_v40, %v2100_v32  ;;  %v2103_v54 = vadd.f32 %v10031_v62, %v12011_v38  ;;  %v2094_v3 = vpop.f32.mrb[79].mxu0  ;;  %v12185_v45 = vadd.f32 %v9209_v57, %v12051_v18  ;;  %v10203_v18 = vld [vmem:[%s15359_s6 + $0xf0] sm:$0xff]   ;;  %9263 = vmatpush3.bf16.msra.mxu1 %v10202_v6 }
 0x1f2   :  { %v2213_v30 = vmul.f32 %v12150_v40, %v2092_v59  ;;  %v2095_v20 = vadd.f32 %v2094_v3, %v11995_v1  ;;  %9372 = vmatprep.subr.bf16.mxu0 %v10203_v18 }
 0x1f3   :  { %v2254_v9 = vadd.f32 %v12158_v15, %v2215_v2  ;;  %v2216_v38 = vmul.f32 %v12150_v40, %v2103_v54  ;;  %v9210_v16 = vpop.f32.mrb[44].mxu1  ;;  %9373 = vmatpush3.bf16.msra.mxu0 %v10204_v26  ;;  %v10205_v2 = vld [vmem:[%s15359_s6 + $0xf8] sm:$0xff]  }
 0x1f4   :  { %v2252_v52 = vadd.f32 %v12158_v15, %v2213_v30  ;;  %v2214_v51 = vmul.f32 %v12150_v40, %v2095_v20  ;;  %v9211_v10 = vpop.f32.mrb[45].mxu1  ;;  %9374 = vmatprep.subr.bf16.mxu0 %v10205_v2 }
 0x1f5   :  { %10363 = vtanh.f32 %v2254_v9  ;;  %v2255_v1 = vadd.f32 %v12158_v15, %v2216_v38  ;;  %v9212_v7 = vadd.f32 %v9211_v10, %v9210_v16  ;;  %v9213_v61 = vpop.f32.mrb[46].mxu1  ;;  %v2492_v9 = vld [vmem:[#allocation6 + $0x1] sm:$0xff] }
 0x1f6   :  { %10365 = vtanh.f32 %v2252_v52  ;;  %v2253_v48 = vadd.f32 %v12158_v15, %v2214_v51  ;;  %v9214_v17 = vpop.f32.mrb[47].mxu1  ;;  %v10034_v33 = vpop.f32.mrb[80].mxu0 }
 0x1f7   :  { %v10356_v58 = vpop.eup %10355  ;;  %10367 = vtanh.f32 %v2255_v1  ;;  %v9215_v28 = vadd.f32 %v9214_v17, %v9213_v61  ;;  %v2116_v60 = vadd.f32 %v10034_v33, %v12038_v49  ;;  %v2107_v12 = vpop.f32.mrb[81].mxu0  ;;  %v12209_v5 = vadd.f32 %v9212_v7, %v12056_v63  ;;  %v2428_v61 = vld [vmem:[#allocation6] sm:$0xff] }
 0x1f8   :  { %v10358_v13 = vpop.eup %10357  ;;  %2398 = vst.msk [vmem:[#allocation6 + $0x31] sm:$0xff] %vm97_vm0, %v10356_v58  ;;  %10369 = vtanh.f32 %v2253_v48  ;;  %v2108_v39 = vadd.f32 %v2107_v12, %v12016_v46  ;;  %v10035_v8 = vpop.f32.mrb[82].mxu0  ;;  %v2620_v48 = vld [vmem:[#allocation6 + $0x2] sm:$0xff] }
 0x1f9   :  { %v10360_v47 = vpop.eup %10359  ;;  %2396 = vst.msk [vmem:[#allocation6 + $0x11] sm:$0xff] %vm97_vm0, %v10358_v13  ;;  %v2219_v14 = vmul.f32 %v12150_v40, %v2116_v60  ;;  %v2119_v36 = vadd.f32 %v10035_v8, %v12043_v23  ;;  %v2110_v24 = vpop.f32.mrb[83].mxu0  ;;  %v12217_v49 = vadd.f32 %v9215_v28, %v12061_v42 }
 0x1fa   :  { %v10362_v63 = vpop.eup %10361  ;;  %2399 = vst.msk [vmem:[#allocation6 + $0x41] sm:$0xff] %vm97_vm0, %v10360_v47  ;;  %v2217_v57 = vmul.f32 %v12150_v40, %v2108_v39  ;;  %v2111_v32 = vadd.f32 %v2110_v24, %v12024_v56  ;;  %v10206_v56 = vld [vmem:[%s15359_s6 + $0xb8] sm:$0xff]  }
 0x1fb   :  { %2397 = vst.msk [vmem:[#allocation6 + $0x21] sm:$0xff] %vm97_vm0, %v10362_v63  ;;  %v2258_v46 = vadd.f32 %v12158_v15, %v2219_v14  ;;  %v2220_v25 = vmul.f32 %v12150_v40, %v2119_v36  ;;  %v9216_v59 = vpop.f32.mrb[48].mxu1  ;;  %9375 = vmatpush3.bf16.msra.mxu0 %v10206_v56 }
 0x1fc   :  { %v2256_v23 = vadd.f32 %v12158_v15, %v2217_v57  ;;  %v2218_v62 = vmul.f32 %v12150_v40, %v2111_v32  ;;  %v9217_v42 = vpop.f32.mrb[49].mxu1 }
 0x1fd   :  { %10371 = vtanh.f32 %v2258_v46  ;;  %v2259_v54 = vadd.f32 %v12158_v15, %v2220_v25  ;;  %v9218_v3 = vadd.f32 %v9217_v42, %v9216_v59  ;;  %v9219_v0 = vpop.f32.mrb[50].mxu1 }
 0x1fe   :  { %10373 = vtanh.f32 %v2256_v23  ;;  %v2257_v6 = vadd.f32 %v12158_v15, %v2218_v62  ;;  %v9220_v30 = vpop.f32.mrb[51].mxu1  ;;  %v10038_v20 = vpop.f32.mrb[84].mxu0 }
 0x1ff   :  { %v10364_v38 = vpop.eup %10363  ;;  %10375 = vtanh.f32 %v2259_v54  ;;  %v9221_v16 = vadd.f32 %v9220_v30, %v9219_v0  ;;  %v2132_v18 = vadd.f32 %v10038_v20, %v12070_v22  ;;  %v2123_v26 = vpop.f32.mrb[85].mxu0  ;;  %v12237_v52 = vadd.f32 %v9218_v3, %v12078_v31  ;;  %v12244_v12 = vld [vmem:[#allocation6 + $0x31] sm:$0xff]  ;;  %v10207_v54 = vld [vmem:[%s15359_s6 + $0x100] sm:$0xff]  }
 0x200   :  { %v10366_v51 = vpop.eup %10365  ;;  %2402 = vst.msk [vmem:[#allocation6 + $0x71] sm:$0xff] %vm97_vm0, %v10364_v38  ;;  %10377 = vtanh.f32 %v2257_v6  ;;  %v2124_v10 = vadd.f32 %v2123_v26, %v12054_v50  ;;  %v10039_v1 = vpop.f32.mrb[86].mxu0  ;;  %v2493_v7 = vld [vmem:[#allocation6 + $0x11] sm:$0xff]  ;;  %v10208_v20 = vld [vmem:[%s15362_s7 + $0x40] sm:$0xff]   ;;  %10056 = vmatprep.subr.bf16.mxu1 %v10207_v54 }
 0x201   :  { %v10368_v17 = vpop.eup %10367  ;;  %2400 = vst.msk [vmem:[#allocation6 + $0x51] sm:$0xff] %vm97_vm0, %v10366_v51  ;;  %v2223_v22 = vmul.f32 %v12150_v40, %v2132_v18  ;;  %v2135_v33 = vadd.f32 %v10039_v1, %v12081_v43  ;;  %v2126_v31 = vpop.f32.mrb[87].mxu0  ;;  %v2524_v58 = vpack.c.bf16 %v2493_v7, %v2492_v9  ;;  %v2684_v28 = vld [vmem:[#allocation6 + $0x10] sm:$0xff]  ;;  %v12247_v13 = vadd.f32 %v9221_v16, %v12083_v29  ;;  %v12264_v42 = vld [vmem:[#allocation6 + $0x41] sm:$0xff] }
 0x202   :  { %v2876_v60 = vld [vmem:[#allocation6 + $0x12] sm:$0xff]  ;;  %v10370_v50 = vpop.eup %10369  ;;  %2403 = vst.msk [vmem:[#allocation6 + $0x81] sm:$0xff] %vm97_vm0, %v10368_v17  ;;  %v2221_v39 = vmul.f32 %v12150_v40, %v2124_v10  ;;  %v2127_v8 = vadd.f32 %v2126_v31, %v12059_v37  ;;  %v2685_v47 = vld [vmem:[#allocation6 + $0x20] sm:$0xff]  ;;  %9492 = vmatprep.subr.bf16.mxu0 %v10208_v20 }
 0x203   :  { %v12252_v14 = vld [vmem:[#allocation6 + $0x22] sm:$0xff]  ;;  %2401 = vst.msk [vmem:[#allocation6 + $0x61] sm:$0xff] %vm97_vm0, %v10370_v50  ;;  %v2262_v36 = vadd.f32 %v12158_v15, %v2223_v22  ;;  %v2224_v24 = vmul.f32 %v12150_v40, %v2135_v33  ;;  %v9222_v63 = vpop.f32.mrb[52].mxu1  ;;  %2556 = vrot.lane.b32.xlu1 %v2524_v58, %s10485_s15  ;;  %v2716_v29 = vpack.c.bf16 %v2685_v47, %v2684_v28  ;;  %v12259_v32 = vld [vmem:[#allocation6 + $0x30] sm:$0xff] }
 0x204   :  { %v3069_v43 = vld [vmem:[#allocation6 + $0x21] sm:$0xff]  ;;  %v2908_v57 = vpack.c.bf16 %v12252_v14, %v2876_v60  ;;  %v2429_v46 = vld [vmem:[#allocation6 + $0x10] sm:$0xff]  ;;  %v2260_v25 = vadd.f32 %v12158_v15, %v2221_v39  ;;  %v2222_v59 = vmul.f32 %v12150_v40, %v2127_v8  ;;  %v9223_v23 = vpop.f32.mrb[53].mxu1  ;;  %v2652_v30 = vpack.c.bf16 %v2876_v60, %v2620_v48 }
 0x205   :  { %v3005_v37 = vld [vmem:[#allocation6 + $0x20] sm:$0xff]  ;;  %v3101_v62 = vpack.c.bf16 %v12244_v12, %v3069_v43  ;;  %v2460_v2 = vpack.c.bf16 %v2429_v46, %v2428_v61  ;;  %v2812_v56 = vld [vmem:[#allocation6 + $0x11] sm:$0xff]  ;;  %10379 = vtanh.f32 %v2262_v36  ;;  %v2263_v3 = vadd.f32 %v12158_v15, %v2224_v24  ;;  %v9225_v6 = vpop.f32.mrb[54].mxu1  ;;  %2748 = vrot.lane.b32.xlu0 %v2716_v29, %s10485_s15 }
 0x206   :  { %v9224_v0 = vadd.f32 %v9223_v23, %v9222_v63  ;;  %10381 = vtanh.f32 %v2260_v25  ;;  %v2261_v9 = vadd.f32 %v12158_v15, %v2222_v59  ;;  %v9226_v38 = vpop.f32.mrb[55].mxu1  ;;  %v10042_v16 = vpop.f32.mrb[88].mxu0  ;;  %v2844_v18 = vpack.c.bf16 %v3069_v43, %v2812_v56  ;;  %v2878_v61 = vld [vmem:[#allocation6 + $0x32] sm:$0xff]  ;;  %2668 = vst.msk [vmem:[#allocation3 + $0x8] sm:$0xff] %vm97_vm0, %v2652_v30  ;;  %v2687_v31 = vld [vmem:[#allocation6 + $0x40] sm:$0xff] }
 0x207   :  { %2476 = vst.msk [vmem:[#allocation3] sm:$0xff] %vm97_vm0, %v2460_v2  ;;  %v3037_v26 = vpack.c.bf16 %v12259_v32, %v3005_v37  ;;  %v10372_v51 = vpop.eup %10371  ;;  %10383 = vtanh.f32 %v2263_v3  ;;  %v9227_v10 = vadd.f32 %v9226_v38, %v9225_v6  ;;  %v2148_v1 = vadd.f32 %v10042_v16, %v12114_v53  ;;  %v2139_v7 = vpop.f32.mrb[89].mxu0  ;;  %2940 = vrot.lane.b32.xlu1 %v2908_v57, %s10485_s15  ;;  %v2879_v50 = vld [vmem:[#allocation6 + $0x42] sm:$0xff]  ;;  %v12331_v20 = vld [vmem:[#allocation6 + $0x70] sm:$0xff] }
 0x208   :  { %v12280_v48 = vadd.f32 %v9224_v0, %v12094_v19  ;;  %v10374_v17 = vpop.eup %10373  ;;  %2406 = vst.msk [vmem:[#allocation6 + $0xd1] sm:$0xff] %vm97_vm0, %v10372_v51  ;;  %10385 = vtanh.f32 %v2261_v9  ;;  %v2140_v22 = vadd.f32 %v2139_v7, %v12092_v11  ;;  %v10043_v33 = vpop.f32.mrb[90].mxu0  ;;  %2860 = vst.msk [vmem:[#allocation3 + $0x10] sm:$0xff] %vm97_vm0, %v2844_v18  ;;  %v2653_v19 = vpack.c.bf16 %v2878_v61, %v12252_v14  ;;  %v12301_v14 = vld [vmem:[#allocation6 + $0x50] sm:$0xff] }
 0x209   :  { %3053 = vst.msk [vmem:[#allocation3 + $0x18] sm:$0xff] %vm97_vm0, %v3037_v26  ;;  %2477 = vst.msk [vmem:[#allocation3 + $0x28] sm:$0xff] %vm97_vm0, %v3037_v26  ;;  %v2845_v53 = vpack.c.bf16 %v12264_v42, %v12244_v12  ;;  %v10376_v58 = vpop.eup %10375  ;;  %v2227_v28 = vmul.f32 %v12150_v40, %v2148_v1  ;;  %v2151_v11 = vadd.f32 %v10043_v33, %v12117_v21  ;;  %v2142_v60 = vpop.f32.mrb[91].mxu0  ;;  %3133 = vrot.lane.b32.xlu0 %v3101_v62, %s10485_s15  ;;  %v2432_v21 = vld [vmem:[#allocation6 + $0x40] sm:$0xff]  ;;  %v3072_v24 = vld [vmem:[#allocation6 + $0x51] sm:$0xff] }
 0x20a   :  { %2404 = vst.msk [vmem:[#allocation6 + $0xb1] sm:$0xff] %vm97_vm0, %v10374_v17  ;;  %v12296_v39 = vadd.f32 %v9227_v10, %v12099_v35  ;;  %v10378_v8 = vpop.eup %10377  ;;  %2407 = vst.msk [vmem:[#allocation6 + $0xe1] sm:$0xff] %vm97_vm0, %v10376_v58  ;;  %v2225_v47 = vmul.f32 %v12150_v40, %v2140_v22  ;;  %v2143_v12 = vadd.f32 %v2142_v60, %v12097_v55  ;;  %v12310_v63 = vld [vmem:[#allocation6 + $0x60] sm:$0xff]  ;;  %v12312_v55 = vld [vmem:[#allocation6 + $0x52] sm:$0xff] }
 0x20b   :  { %2669 = vst.msk [vmem:[#allocation3 + $0x30] sm:$0xff] %vm97_vm0, %v2653_v19  ;;  %2861 = vst.msk [vmem:[#allocation3 + $0x38] sm:$0xff] %vm97_vm0, %v2845_v53  ;;  %v2266_v43 = vadd.f32 %v12158_v15, %v2227_v28  ;;  %v2228_v35 = vmul.f32 %v12150_v40, %v2151_v11  ;;  %2558 = vrot.lane.b32.xlu1 %v3101_v62, %s10485_s15  ;;  %v2717_v36 = vpack.c.bf16 %v2687_v31, %v12259_v32  ;;  %v12316_v37 = vld [vmem:[#allocation6 + $0x62] sm:$0xff]  ;;  %v12333_v9 = vld [vmem:[#allocation6 + $0x72] sm:$0xff] }
 0x20c   :  { %2405 = vst.msk [vmem:[#allocation6 + $0xc1] sm:$0xff] %vm97_vm0, %v10378_v8  ;;  %v2264_v29 = vadd.f32 %v12158_v15, %v2225_v47  ;;  %v2226_v57 = vmul.f32 %v12150_v40, %v2143_v12  ;;  %v2909_v46 = vpack.c.bf16 %v2879_v50, %v2878_v61  ;;  %v12318_v25 = vld [vmem:[#allocation6 + $0x61] sm:$0xff]  ;;  %v3038_v32 = vpack.c.bf16 %v12301_v14, %v2687_v31  ;;  %v3074_v26 = vld [vmem:[#allocation6 + $0x71] sm:$0xff] }
 0x20d   :  { %10387 = vtanh.f32 %v2266_v43  ;;  %v2267_v59 = vadd.f32 %v12158_v15, %v2228_v35  ;;  %2750 = vrot.lane.b32.xlu0 %v2717_v36, %s10485_s15  ;;  %v2462_v23 = vpack.c.bf16 %v12301_v14, %v2432_v21  ;;  %v12325_v56 = vld [vmem:[#allocation6 + $0x81] sm:$0xff]  ;;  %v2654_v54 = vpack.c.bf16 %v12312_v55, %v2879_v50 }
 0x20e   :  { %10389 = vtanh.f32 %v2264_v29  ;;  %v2265_v62 = vadd.f32 %v12158_v15, %v2226_v57  ;;  %v10046_v2 = vpop.f32.mrb[92].mxu0  ;;  %v3102_v30 = vpack.c.bf16 %v3072_v24, %v12264_v42  ;;  %3054 = vst.msk [vmem:[#allocation3 + $0x40] sm:$0xff] %vm97_vm0, %v3038_v32  ;;  %v2846_v38 = vpack.c.bf16 %v12318_v25, %v3072_v24  ;;  %v12354_v31 = vld [vmem:[#allocation6 + $0x80] sm:$0xff] }
 0x20f   :  { %v10380_v3 = vpop.eup %10379  ;;  %10391 = vtanh.f32 %v2267_v59  ;;  %v2164_v0 = vadd.f32 %v10046_v2, %v12153_v4  ;;  %v2155_v6 = vpop.f32.mrb[93].mxu0  ;;  %2942 = vrot.lane.b32.xlu1 %v2909_v46, %s10485_s15  ;;  %2478 = vst.msk [vmem:[#allocation3 + $0x50] sm:$0xff] %vm97_vm0, %v2462_v23  ;;  %2670 = vst.msk [vmem:[#allocation3 + $0x58] sm:$0xff] %vm97_vm0, %v2654_v54  ;;  %v3039_v42 = vpack.c.bf16 %v12331_v20, %v12310_v63  ;;  %v2436_v19 = vld [vmem:[#allocation6 + $0xa0] sm:$0xff]  ;;  %v12378_v43 = vld [vmem:[#allocation6 + $0xd0] sm:$0xff] }
 0x210   :  { %v10382_v16 = vpop.eup %10381  ;;  %2410 = vst.msk [vmem:[#allocation6 + $0x111] sm:$0xff] %vm97_vm0, %v10380_v3  ;;  %10393 = vtanh.f32 %v2265_v62  ;;  %v2156_v4 = vadd.f32 %v2155_v6, %v12128_v34  ;;  %v10047_v18 = vpop.f32.mrb[94].mxu0  ;;  %v2655_v51 = vpack.c.bf16 %v12333_v9, %v12316_v37  ;;  %2862 = vst.msk [vmem:[#allocation3 + $0x60] sm:$0xff] %vm97_vm0, %v2846_v38  ;;  %v2847_v34 = vpack.c.bf16 %v12325_v56, %v3074_v26  ;;  %v2628_v60 = vld [vmem:[#allocation6 + $0xa2] sm:$0xff]  ;;  %v12395_v23 = vld [vmem:[#allocation6 + $0xd1] sm:$0xff] }
 0x211   :  { %v10384_v10 = vpop.eup %10383  ;;  %2408 = vst.msk [vmem:[#allocation6 + $0xf1] sm:$0xff] %vm97_vm0, %v10382_v16  ;;  %v2231_v1 = vmul.f32 %v12150_v40, %v2164_v0  ;;  %v2167_v7 = vadd.f32 %v10047_v18, %v12162_v41  ;;  %v2158_v61 = vpop.f32.mrb[95].mxu0  ;;  %3135 = vrot.lane.b32.xlu0 %v3102_v30, %s10485_s15  ;;  %3055 = vst.msk [vmem:[#allocation3 + $0x68] sm:$0xff] %vm97_vm0, %v3039_v42  ;;  %v3012_v41 = vld [vmem:[#allocation6 + $0x90] sm:$0xff]  ;;  %v2910_v47 = vpack.c.bf16 %v12316_v37, %v12312_v55  ;;  %v12385_v24 = vld [vmem:[#allocation6 + $0xe1] sm:$0xff] }
 0x212   :  { %v10386_v17 = vpop.eup %10385  ;;  %2411 = vst.msk [vmem:[#allocation6 + $0x121] sm:$0xff] %vm97_vm0, %v10384_v10  ;;  %v2229_v22 = vmul.f32 %v12150_v40, %v2156_v4  ;;  %v2159_v33 = vadd.f32 %v2158_v61, %v12131_v44  ;;  %2479 = vst.msk [vmem:[#allocation3 + $0x78] sm:$0xff] %vm97_vm0, %v3039_v42  ;;  %v2718_v44 = vpack.c.bf16 %v12310_v63, %v12301_v14  ;;  %v12365_v28 = vld [vmem:[#allocation6 + $0xb0] sm:$0xff]  ;;  %v12406_v6 = vld [vmem:[#allocation6 + $0xe0] sm:$0xff] }
 0x213   :  { %2671 = vst.msk [vmem:[#allocation3 + $0x80] sm:$0xff] %vm97_vm0, %v2655_v51  ;;  %2409 = vst.msk [vmem:[#allocation6 + $0x101] sm:$0xff] %vm97_vm0, %v10386_v17  ;;  %v2270_v53 = vadd.f32 %v12158_v15, %v2231_v1  ;;  %v2232_v58 = vmul.f32 %v12150_v40, %v2167_v7  ;;  %2560 = vrot.lane.b32.xlu1 %v3102_v30, %s10485_s15  ;;  %v12367_v11 = vld [vmem:[#allocation6 + $0xb2] sm:$0xff]  ;;  %v12374_v12 = vld [vmem:[#allocation6 + $0xc0] sm:$0xff]  ;;  %v3103_v35 = vpack.c.bf16 %v3074_v26, %v12318_v25 }
 0x214   :  { %2863 = vst.msk [vmem:[#allocation3 + $0x88] sm:$0xff] %vm97_vm0, %v2847_v34  ;;  %v2268_v50 = vadd.f32 %v12158_v15, %v2229_v22  ;;  %v2230_v8 = vmul.f32 %v12150_v40, %v2159_v33  ;;  %v12376_v21 = vld [vmem:[#allocation6 + $0xc1] sm:$0xff]  ;;  %v3040_v63 = vpack.c.bf16 %v3012_v41, %v12354_v31  ;;  %v12389_v57 = vld [vmem:[#allocation6 + $0xb1] sm:$0xff]  ;;  %v2464_v46 = vpack.c.bf16 %v12365_v28, %v2436_v19 }
 0x215   :  { %10395 = vtanh.f32 %v2270_v53  ;;  %v2271_v14 = vadd.f32 %v12158_v15, %v2232_v58  ;;  %2752 = vrot.lane.b32.xlu0 %v2718_v44, %s10485_s15  ;;  %v12383_v36 = vld [vmem:[#allocation6 + $0xc2] sm:$0xff]  ;;  %v2656_v37 = vpack.c.bf16 %v12367_v11, %v2628_v60  ;;  %v12397_v62 = vld [vmem:[#allocation6 + $0xd2] sm:$0xff]  ;;  %v2848_v2 = vpack.c.bf16 %v12376_v21, %v12389_v57 }
 0x216   :  { %10397 = vtanh.f32 %v2268_v50  ;;  %v2269_v55 = vadd.f32 %v12158_v15, %v2230_v8  ;;  %v10050_v29 = vpop.f32.mrb[96].mxu0  ;;  %3056 = vst.msk [vmem:[#allocation3 + $0x90] sm:$0xff] %vm97_vm0, %v3040_v63  ;;  %v3041_v54 = vpack.c.bf16 %v12378_v43, %v12374_v12  ;;  %2480 = vst.msk [vmem:[#allocation3 + $0xa0] sm:$0xff] %vm97_vm0, %v2464_v46  ;;  %v2657_v38 = vpack.c.bf16 %v12397_v62, %v12383_v36  ;;  %v3076_v7 = vld [vmem:[#allocation6 + $0x91] sm:$0xff]  ;;  %v2500_v41 = vld [vmem:[#allocation6 + $0xa1] sm:$0xff] }
 0x217   :  { %v10388_v59 = vpop.eup %10387  ;;  %10399 = vtanh.f32 %v2271_v14  ;;  %v2180_v25 = vadd.f32 %v10050_v29, %v12209_v5  ;;  %v2171_v32 = vpop.f32.mrb[97].mxu0  ;;  %2944 = vrot.lane.b32.xlu1 %v2910_v47, %s10485_s15  ;;  %2672 = vst.msk [vmem:[#allocation3 + $0xa8] sm:$0xff] %vm97_vm0, %v2656_v37  ;;  %v2849_v16 = vpack.c.bf16 %v12385_v24, %v12395_v23  ;;  %2864 = vst.msk [vmem:[#allocation3 + $0xb0] sm:$0xff] %vm97_vm0, %v2848_v2  ;;  %v2440_v19 = vld [vmem:[#allocation6 + $0xe0] sm:$0xff]  ;;  %v3018_v29 = vld [vmem:[#allocation6 + $0x110] sm:$0xff] }
 0x218   :  { %v10390_v3 = vpop.eup %10389  ;;  %2414 = vst.msk [vmem:[#allocation6 + $0x171] sm:$0xff] %vm97_vm0, %v10388_v59  ;;  %10401 = vtanh.f32 %v2269_v55  ;;  %v2172_v5 = vadd.f32 %v2171_v32, %v12179_v27  ;;  %v10051_v0 = vpop.f32.mrb[98].mxu0  ;;  %v12408_v30 = vld [vmem:[#allocation6 + $0xf0] sm:$0xff]  ;;  %3057 = vst.msk [vmem:[#allocation3 + $0xb8] sm:$0xff] %vm97_vm0, %v3041_v54  ;;  %v2719_v17 = vpack.c.bf16 %v12354_v31, %v12331_v20  ;;  %v3104_v20 = vpack.c.bf16 %v3076_v7, %v12325_v56  ;;  %v2632_v31 = vld [vmem:[#allocation6 + $0xe2] sm:$0xff] }
 0x219   :  { %v10392_v4 = vpop.eup %10391  ;;  %2412 = vst.msk [vmem:[#allocation6 + $0x151] sm:$0xff] %vm97_vm0, %v10390_v3  ;;  %v2235_v27 = vmul.f32 %v12150_v40, %v2180_v25  ;;  %v2183_v18 = vadd.f32 %v10051_v0, %v12217_v49  ;;  %v2174_v26 = vpop.f32.mrb[99].mxu0  ;;  %3137 = vrot.lane.b32.xlu0 %v3103_v35, %s10485_s15  ;;  %2481 = vst.msk [vmem:[#allocation3 + $0xc8] sm:$0xff] %vm97_vm0, %v3041_v54  ;;  %v3042_v42 = vpack.c.bf16 %v12408_v30, %v12406_v6  ;;  %v2883_v49 = vld [vmem:[#allocation6 + $0x82] sm:$0xff]  ;;  %v2441_v53 = vld [vmem:[#allocation6 + $0xf0] sm:$0xff] }
 0x21a   :  { %v10394_v51 = vpop.eup %10393  ;;  %2415 = vst.msk [vmem:[#allocation6 + $0x181] sm:$0xff] %vm97_vm0, %v10392_v4  ;;  %v2233_v10 = vmul.f32 %v12150_v40, %v2172_v5  ;;  %v2175_v1 = vadd.f32 %v2174_v26, %v12185_v45  ;;  %2673 = vst.msk [vmem:[#allocation3 + $0xd0] sm:$0xff] %vm97_vm0, %v2657_v38  ;;  %v3197_v45 = vld [vmem:[#allocation6 + $0x22] sm:$0xff]  ;;  %v2633_v58 = vld [vmem:[#allocation6 + $0xf2] sm:$0xff]  ;;  %v2911_v60 = vpack.c.bf16 %v2883_v49, %v12333_v9 }
 0x21b   :  { %2865 = vst.msk [vmem:[#allocation3 + $0xd8] sm:$0xff] %vm97_vm0, %v2849_v16  ;;  %2413 = vst.msk [vmem:[#allocation6 + $0x161] sm:$0xff] %vm97_vm0, %v10394_v51  ;;  %v2274_v61 = vadd.f32 %v12158_v15, %v2235_v27  ;;  %v2236_v34 = vmul.f32 %v12150_v40, %v2183_v18  ;;  %2562 = vrot.lane.b32.xlu1 %v3103_v35, %s10485_s15  ;;  %v2825_v50 = vld [vmem:[#allocation6 + $0x101] sm:$0xff]  ;;  %v2466_v35 = vpack.c.bf16 %v2441_v53, %v2440_v19  ;;  %v2824_v55 = vld [vmem:[#allocation6 + $0xf1] sm:$0xff] }
 0x21c   :  { %3058 = vst.msk [vmem:[#allocation3 + $0xe0] sm:$0xff] %vm97_vm0, %v3042_v42  ;;  %v2272_v22 = vadd.f32 %v12158_v15, %v2233_v10  ;;  %v2234_v33 = vmul.f32 %v12150_v40, %v2175_v1  ;;  %v3017_v8 = vld [vmem:[#allocation6 + $0x100] sm:$0xff]  ;;  %v2658_v63 = vpack.c.bf16 %v2633_v58, %v2632_v31  ;;  %v2850_v56 = vpack.c.bf16 %v2825_v50, %v2824_v55  ;;  %v2635_v32 = vld [vmem:[#allocation6 + $0x112] sm:$0xff] }
 0x21d   :  { %10403 = vtanh.f32 %v2274_v61  ;;  %v2275_v44 = vadd.f32 %v12158_v15, %v2236_v34  ;;  %2754 = vrot.lane.b32.xlu0 %v2719_v17, %s10485_s15  ;;  %v2634_v46 = vld [vmem:[#allocation6 + $0x102] sm:$0xff]  ;;  %v3043_v9 = vpack.c.bf16 %v3018_v29, %v3017_v8  ;;  %v3198_v2 = vld [vmem:[#allocation6 + $0x32] sm:$0xff]  ;;  %2482 = vst.msk [vmem:[#allocation3 + $0xf0] sm:$0xff] %vm97_vm0, %v2466_v35  ;;  %v2528_v18 = vpack.c.bf16 %v12389_v57, %v2500_v41 }
 0x21e   :  { %10405 = vtanh.f32 %v2272_v22  ;;  %v2273_v47 = vadd.f32 %v12158_v15, %v2234_v33  ;;  %v10054_v14 = vpop.f32.mrb[100].mxu0  ;;  %2674 = vst.msk [vmem:[#allocation3 + $0xf8] sm:$0xff] %vm97_vm0, %v2658_v63  ;;  %v2659_v0 = vpack.c.bf16 %v2635_v32, %v2634_v46  ;;  %2866 = vst.msk [vmem:[#allocation3 + $0x100] sm:$0xff] %vm97_vm0, %v2850_v56  ;;  %v2720_v51 = vpack.c.bf16 %v12374_v12, %v12365_v28  ;;  %v2826_v61 = vld [vmem:[#allocation6 + $0x111] sm:$0xff]  ;;  %v2827_v34 = vld [vmem:[#allocation6 + $0x121] sm:$0xff] }
 0x21f   :  { %v10396_v37 = vpop.eup %10395  ;;  %10407 = vtanh.f32 %v2275_v44  ;;  %v2196_v59 = vadd.f32 %v10054_v14, %v12280_v48  ;;  %v2187_v25 = vpop.f32.mrb[101].mxu0  ;;  %2946 = vrot.lane.b32.xlu1 %v2911_v60, %s10485_s15  ;;  %v3229_v48 = vpack.c.bf16 %v3198_v2, %v3197_v45  ;;  %3059 = vst.msk [vmem:[#allocation3 + $0x108] sm:$0xff] %vm97_vm0, %v3043_v9  ;;  %2483 = vst.msk [vmem:[#allocation3 + $0x118] sm:$0xff] %vm97_vm0, %v3043_v9  ;;  %v3019_v28 = vld [vmem:[#allocation6 + $0x120] sm:$0xff]  ;;  %v3080_v19 = vld [vmem:[#allocation6 + $0xf1] sm:$0xff] }
 0x220   :  { %v10398_v54 = vpop.eup %10397  ;;  %2418 = vst.msk [vmem:[#allocation6 + $0x1b1] sm:$0xff] %vm97_vm0, %v10396_v37  ;;  %10409 = vtanh.f32 %v2273_v47  ;;  %v2188_v3 = vadd.f32 %v2187_v25, %v12237_v52  ;;  %v10055_v5 = vpop.f32.mrb[102].mxu0  ;;  %2675 = vst.msk [vmem:[#allocation3 + $0x120] sm:$0xff] %vm97_vm0, %v2659_v0  ;;  %v2912_v7 = vpack.c.bf16 %v12383_v36, %v12367_v11  ;;  %v2851_v45 = vpack.c.bf16 %v2827_v34, %v2826_v61  ;;  %v2887_v36 = vld [vmem:[#allocation6 + $0xe2] sm:$0xff]  ;;  %v2445_v53 = vld [vmem:[#allocation6 + $0x150] sm:$0xff] }
 0x221   :  { %v10400_v38 = vpop.eup %10399  ;;  %2416 = vst.msk [vmem:[#allocation6 + $0x191] sm:$0xff] %vm97_vm0, %v10398_v54  ;;  %v2239_v16 = vmul.f32 %v12150_v40, %v2196_v59  ;;  %v2199_v4 = vadd.f32 %v10055_v5, %v12296_v39  ;;  %v2190_v27 = vpop.f32.mrb[103].mxu0  ;;  %3139 = vrot.lane.b32.xlu0 %v3104_v20, %s10485_s15  ;;  %3245 = vst.msk [vmem:[#allocation3 + $0x20] sm:$0xff] %vm97_vm0, %v3229_v48  ;;  %v2444_v41 = vld [vmem:[#allocation6 + $0x140] sm:$0xff]  ;;  %v2637_v58 = vld [vmem:[#allocation6 + $0x152] sm:$0xff]  ;;  %v2913_v44 = vpack.c.bf16 %v2887_v36, %v12397_v62 }
 0x222   :  { %v10402_v52 = vpop.eup %10401  ;;  %2419 = vst.msk [vmem:[#allocation6 + $0x1c1] sm:$0xff] %vm97_vm0, %v10400_v38  ;;  %v2237_v26 = vmul.f32 %v12150_v40, %v2188_v3  ;;  %v2191_v42 = vadd.f32 %v2190_v27, %v12247_v13  ;;  %v3020_v13 = vld [vmem:[#allocation6 + $0x130] sm:$0xff]  ;;  %2867 = vst.msk [vmem:[#allocation3 + $0x128] sm:$0xff] %vm97_vm0, %v2851_v45  ;;  %v2468_v60 = vpack.c.bf16 %v2445_v53, %v2444_v41  ;;  %v2829_v50 = vld [vmem:[#allocation6 + $0x161] sm:$0xff] }
 0x223   :  { %2417 = vst.msk [vmem:[#allocation6 + $0x1a1] sm:$0xff] %vm97_vm0, %v10402_v52  ;;  %v2278_v39 = vadd.f32 %v12158_v15, %v2239_v16  ;;  %v2240_v57 = vmul.f32 %v12150_v40, %v2199_v4  ;;  %2564 = vrot.lane.b32.xlu1 %v2528_v18, %s10485_s15  ;;  %v3044_v22 = vpack.c.bf16 %v3020_v13, %v3019_v28  ;;  %v2828_v31 = vld [vmem:[#allocation6 + $0x151] sm:$0xff]  ;;  %v3021_v8 = vld [vmem:[#allocation6 + $0x160] sm:$0xff] }
 0x224   :  { %v2276_v10 = vadd.f32 %v12158_v15, %v2237_v26  ;;  %v2238_v1 = vmul.f32 %v12150_v40, %v2191_v42  ;;  %v3105_v40 = vpack.c.bf16 %v12395_v23, %v12376_v21  ;;  %v2636_v21 = vld [vmem:[#allocation6 + $0x142] sm:$0xff]  ;;  %v2721_v23 = vpack.c.bf16 %v12406_v6, %v12378_v43  ;;  %v3022_v14 = vld [vmem:[#allocation6 + $0x170] sm:$0xff]  ;;  %2484 = vst.msk [vmem:[#allocation3 + $0x140] sm:$0xff] %vm97_vm0, %v2468_v60 }
 0x225   :  { %10411 = vtanh.f32 %v2278_v39  ;;  %v2279_v49 = vadd.f32 %v12158_v15, %v2240_v57  ;;  %2756 = vrot.lane.b32.xlu0 %v2720_v51, %s10485_s15  ;;  %3060 = vst.msk [vmem:[#allocation3 + $0x130] sm:$0xff] %vm97_vm0, %v3044_v22  ;;  %v2660_v20 = vpack.c.bf16 %v2637_v58, %v2636_v21  ;;  %v2852_v47 = vpack.c.bf16 %v2829_v50, %v2828_v31  ;;  %v2638_v35 = vld [vmem:[#allocation6 + $0x162] sm:$0xff]  ;;  %v2639_v63 = vld [vmem:[#allocation6 + $0x172] sm:$0xff] }
 0x226   :  { %10413 = vtanh.f32 %v2276_v10  ;;  %v2277_v17 = vadd.f32 %v12158_v15, %v2238_v1  ;;  %v3106_v43 = vpack.c.bf16 %v3080_v19, %v12385_v24  ;;  %v3045_v6 = vpack.c.bf16 %v3022_v14, %v3021_v8  ;;  %v2697_v46 = vld [vmem:[#allocation6 + $0x100] sm:$0xff]  ;;  %v2888_v56 = vld [vmem:[#allocation6 + $0xf2] sm:$0xff] }
 0x227   :  { %v10404_v12 = vpop.eup %10403  ;;  %10415 = vtanh.f32 %v2279_v49  ;;  %2948 = vrot.lane.b32.xlu1 %v2912_v7, %s10485_s15  ;;  %2676 = vst.msk [vmem:[#allocation3 + $0x148] sm:$0xff] %vm97_vm0, %v2660_v20  ;;  %v2661_v62 = vpack.c.bf16 %v2639_v63, %v2638_v35  ;;  %2868 = vst.msk [vmem:[#allocation3 + $0x150] sm:$0xff] %vm97_vm0, %v2852_v47  ;;  %v2889_v59 = vld [vmem:[#allocation6 + $0x102] sm:$0xff]  ;;  %v2722_v25 = vpack.c.bf16 %v2697_v46, %v12408_v30  ;;  %v3082_v32 = vld [vmem:[#allocation6 + $0x111] sm:$0xff] }
 0x228   :  { %v10406_v33 = vpop.eup %10405  ;;  %2422 = vst.msk [vmem:[#allocation6 + $0x211] sm:$0xff] %vm97_vm0, %v10404_v12  ;;  %10417 = vtanh.f32 %v2277_v17  ;;  %3061 = vst.msk [vmem:[#allocation3 + $0x158] sm:$0xff] %vm97_vm0, %v3045_v6  ;;  %v3081_v9 = vld [vmem:[#allocation6 + $0x101] sm:$0xff]  ;;  %v2914_v2 = vpack.c.bf16 %v2889_v59, %v2888_v56  ;;  %v2830_v54 = vld [vmem:[#allocation6 + $0x171] sm:$0xff] }
 0x229   :  { %v10408_v11 = vpop.eup %10407  ;;  %2420 = vst.msk [vmem:[#allocation6 + $0x1f1] sm:$0xff] %vm97_vm0, %v10406_v33  ;;  %3141 = vrot.lane.b32.xlu0 %v3105_v40, %s10485_s15  ;;  %2485 = vst.msk [vmem:[#allocation3 + $0x168] sm:$0xff] %vm97_vm0, %v3045_v6  ;;  %v2831_v3 = vld [vmem:[#allocation6 + $0x181] sm:$0xff]  ;;  %v3024_v48 = vld [vmem:[#allocation6 + $0x190] sm:$0xff]  ;;  %v3107_v38 = vpack.c.bf16 %v3082_v32, %v3081_v9 }
 0x22a   :  { %v10410_v15 = vpop.eup %10409  ;;  %2423 = vst.msk [vmem:[#allocation6 + $0x221] sm:$0xff] %vm97_vm0, %v10408_v11  ;;  %2677 = vst.msk [vmem:[#allocation3 + $0x170] sm:$0xff] %vm97_vm0, %v2661_v62  ;;  %v3023_v5 = vld [vmem:[#allocation6 + $0x180] sm:$0xff]  ;;  %v2853_v0 = vpack.c.bf16 %v2831_v3, %v2830_v54  ;;  %v2698_v30 = vld [vmem:[#allocation6 + $0x110] sm:$0xff] }
 0x22b   :  { %2421 = vst.msk [vmem:[#allocation6 + $0x201] sm:$0xff] %vm97_vm0, %v10410_v15  ;;  %2566 = vrot.lane.b32.xlu1 %v3105_v40, %s10485_s15  ;;  %3253 = vst.msk [vmem:[#allocation3 + $0x160] sm:$0xff] %vm97_vm0, %v2661_v62  ;;  %v3046_v16 = vpack.c.bf16 %v3024_v48, %v3023_v5  ;;  %v2699_v4 = vld [vmem:[#allocation6 + $0x120] sm:$0xff]  ;;  %v2890_v52 = vld [vmem:[#allocation6 + $0x112] sm:$0xff] }
 0x22c   :  { %2869 = vst.msk [vmem:[#allocation3 + $0x178] sm:$0xff] %vm97_vm0, %v2853_v0  ;;  %v2891_v27 = vld [vmem:[#allocation6 + $0x122] sm:$0xff]  ;;  %v2723_v18 = vpack.c.bf16 %v2699_v4, %v2698_v30  ;;  %v3084_v42 = vld [vmem:[#allocation6 + $0x131] sm:$0xff] }
 0x22d   :  { %2758 = vrot.lane.b32.xlu0 %v2721_v23, %s10485_s15  ;;  %3062 = vst.msk [vmem:[#allocation3 + $0x180] sm:$0xff] %vm97_vm0, %v3046_v16  ;;  %2486 = vst.msk [vmem:[#allocation3 + $0x190] sm:$0xff] %vm97_vm0, %v3046_v16  ;;  %v3083_v26 = vld [vmem:[#allocation6 + $0x121] sm:$0xff]  ;;  %v2509_v57 = vld [vmem:[#allocation6 + $0x151] sm:$0xff]  ;;  %v2915_v51 = vpack.c.bf16 %v2891_v27, %v2890_v52 }
 0x22e   :  { %v2508_v39 = vld [vmem:[#allocation6 + $0x141] sm:$0xff]  ;;  %v2641_v1 = vld [vmem:[#allocation6 + $0x192] sm:$0xff]  ;;  %v3108_v45 = vpack.c.bf16 %v3084_v42, %v3083_v26 }
 0x22f   :  { %v10412_v55 = vpop.eup %10411  ;;  %2950 = vrot.lane.b32.xlu1 %v2913_v44, %s10485_s15  ;;  %v2640_v10 = vld [vmem:[#allocation6 + $0x182] sm:$0xff]  ;;  %v2832_v13 = vld [vmem:[#allocation6 + $0x191] sm:$0xff]  ;;  %v2532_v21 = vpack.c.bf16 %v2509_v57, %v2508_v39 }
 0x230   :  { %v10414_v29 = vpop.eup %10413  ;;  %2426 = vst.msk [vmem:[#allocation6 + $0x251] sm:$0xff] %vm97_vm0, %v10412_v55  ;;  %v3028_v49 = vld [vmem:[#allocation6 + $0x1d0] sm:$0xff]  ;;  %v2662_v7 = vpack.c.bf16 %v2641_v1, %v2640_v10  ;;  %v2833_v61 = vld [vmem:[#allocation6 + $0x1a1] sm:$0xff] }
 0x231   :  { %v10416_v37 = vpop.eup %10415  ;;  %2424 = vst.msk [vmem:[#allocation6 + $0x231] sm:$0xff] %vm97_vm0, %v10414_v29  ;;  %3143 = vrot.lane.b32.xlu0 %v3106_v43, %s10485_s15  ;;  %v3025_v34 = vld [vmem:[#allocation6 + $0x1a0] sm:$0xff]  ;;  %v3026_v17 = vld [vmem:[#allocation6 + $0x1b0] sm:$0xff]  ;;  %v2854_v28 = vpack.c.bf16 %v2833_v61, %v2832_v13 }
 0x232   :  { %v10418_v24 = vpop.eup %10417  ;;  %2427 = vst.msk [vmem:[#allocation6 + $0x261] sm:$0xff] %vm97_vm0, %v10416_v37  ;;  %v3047_v12 = vpack.c.bf16 %v3026_v17, %v3025_v34  ;;  %v2642_v40 = vld [vmem:[#allocation6 + $0x1a2] sm:$0xff]  ;;  %v2643_v22 = vld [vmem:[#allocation6 + $0x1b2] sm:$0xff]  ;;  %2678 = vst.msk [vmem:[#allocation3 + $0x198] sm:$0xff] %vm97_vm0, %v2662_v7 }
 0x233   :  { %2425 = vst.msk [vmem:[#allocation6 + $0x241] sm:$0xff] %vm97_vm0, %v10418_v24  ;;  %2568 = vrot.lane.b32.xlu1 %v3106_v43, %s10485_s15  ;;  %v2452_v33 = vld [vmem:[#allocation6 + $0x1e0] sm:$0xff]  ;;  %v2663_v15 = vpack.c.bf16 %v2643_v22, %v2642_v40  ;;  %v2834_v36 = vld [vmem:[#allocation6 + $0x1b1] sm:$0xff]  ;;  %3254 = vst.msk [vmem:[#allocation3 + $0x188] sm:$0xff] %vm97_vm0, %v2662_v7 }
 0x234   :  { %v2701_v11 = vld [vmem:[#allocation6 + $0x160] sm:$0xff]  ;;  %2870 = vst.msk [vmem:[#allocation3 + $0x1a0] sm:$0xff] %vm97_vm0, %v2854_v28  ;;  %3063 = vst.msk [vmem:[#allocation3 + $0x1a8] sm:$0xff] %vm97_vm0, %v3047_v12  ;;  %v2700_v53 = vld [vmem:[#allocation6 + $0x150] sm:$0xff] }
 0x235   :  { %2760 = vrot.lane.b32.xlu0 %v2722_v25, %s10485_s15  ;;  %v2644_v41 = vld [vmem:[#allocation6 + $0x1e2] sm:$0xff]  ;;  %2487 = vst.msk [vmem:[#allocation3 + $0x1b8] sm:$0xff] %vm97_vm0, %v3047_v12  ;;  %2679 = vst.msk [vmem:[#allocation3 + $0x1c0] sm:$0xff] %vm97_vm0, %v2663_v15  ;;  %v2724_v20 = vpack.c.bf16 %v2701_v11, %v2700_v53  ;;  %v2453_v31 = vld [vmem:[#allocation6 + $0x1f0] sm:$0xff] }
 0x236   :  { %v2835_v23 = vld [vmem:[#allocation6 + $0x1c1] sm:$0xff]  ;;  %3255 = vst.msk [vmem:[#allocation3 + $0x1b0] sm:$0xff] %vm97_vm0, %v2663_v15  ;;  %v2892_v50 = vld [vmem:[#allocation6 + $0x152] sm:$0xff]  ;;  %v2472_v47 = vpack.c.bf16 %v2453_v31, %v2452_v33 }
 0x237   :  { %2952 = vrot.lane.b32.xlu1 %v2914_v2, %s10485_s15  ;;  %v3027_v19 = vld [vmem:[#allocation6 + $0x1c0] sm:$0xff]  ;;  %v2855_v44 = vpack.c.bf16 %v2835_v23, %v2834_v36  ;;  %v2645_v14 = vld [vmem:[#allocation6 + $0x1f2] sm:$0xff] }
 0x238   :  { %v2893_v58 = vld [vmem:[#allocation6 + $0x162] sm:$0xff]  ;;  %v3048_v60 = vpack.c.bf16 %v3028_v49, %v3027_v19  ;;  %v2664_v63 = vpack.c.bf16 %v2645_v14, %v2644_v41  ;;  %v2836_v55 = vld [vmem:[#allocation6 + $0x1f1] sm:$0xff]  ;;  %2488 = vst.msk [vmem:[#allocation3 + $0x1e0] sm:$0xff] %vm97_vm0, %v2472_v47 }
 0x239   :  { %3145 = vrot.lane.b32.xlu0 %v3107_v38, %s10485_s15  ;;  %v3085_v8 = vld [vmem:[#allocation6 + $0x161] sm:$0xff]  ;;  %2871 = vst.msk [vmem:[#allocation3 + $0x1c8] sm:$0xff] %vm97_vm0, %v2855_v44  ;;  %v2916_v35 = vpack.c.bf16 %v2893_v58, %v2892_v50  ;;  %v3086_v62 = vld [vmem:[#allocation6 + $0x171] sm:$0xff] }
 0x23a   :  { %3064 = vst.msk [vmem:[#allocation3 + $0x1d0] sm:$0xff] %vm97_vm0, %v3048_v60  ;;  %v2837_v43 = vld [vmem:[#allocation6 + $0x201] sm:$0xff]  ;;  %v3030_v37 = vld [vmem:[#allocation6 + $0x210] sm:$0xff]  ;;  %v3109_v24 = vpack.c.bf16 %v3086_v62, %v3085_v8  ;;  %2680 = vst.msk [vmem:[#allocation3 + $0x1e8] sm:$0xff] %vm97_vm0, %v2664_v63 }
 0x23b   :  { %2570 = vrot.lane.b32.xlu1 %v3107_v38, %s10485_s15  ;;  %v3029_v6 = vld [vmem:[#allocation6 + $0x200] sm:$0xff]  ;;  %v2856_v46 = vpack.c.bf16 %v2837_v43, %v2836_v55  ;;  %v2647_v56 = vld [vmem:[#allocation6 + $0x212] sm:$0xff] }
 0x23c   :  { %v2703_v29 = vld [vmem:[#allocation6 + $0x180] sm:$0xff]  ;;  %v3049_v59 = vpack.c.bf16 %v3030_v37, %v3029_v6  ;;  %v2838_v9 = vld [vmem:[#allocation6 + $0x211] sm:$0xff] }
 0x23d   :  { %2762 = vrot.lane.b32.xlu0 %v2723_v18, %s10485_s15  ;;  %v2646_v25 = vld [vmem:[#allocation6 + $0x202] sm:$0xff]  ;;  %v2702_v32 = vld [vmem:[#allocation6 + $0x170] sm:$0xff]  ;;  %2872 = vst.msk [vmem:[#allocation3 + $0x1f0] sm:$0xff] %vm97_vm0, %v2856_v46 }
 0x23e   :  { %v2895_v2 = vld [vmem:[#allocation6 + $0x182] sm:$0xff]  ;;  %v2665_v54 = vpack.c.bf16 %v2647_v56, %v2646_v25  ;;  %v3032_v0 = vld [vmem:[#allocation6 + $0x230] sm:$0xff]  ;;  %3065 = vst.msk [vmem:[#allocation3 + $0x1f8] sm:$0xff] %vm97_vm0, %v3049_v59  ;;  %2489 = vst.msk [vmem:[#allocation3 + $0x208] sm:$0xff] %vm97_vm0, %v3049_v59  ;;  %v2725_v52 = vpack.c.bf16 %v2703_v29, %v2702_v32 }
 0x23f   :  { %2954 = vrot.lane.b32.xlu1 %v2915_v51, %s10485_s15  ;;  %v2839_v3 = vld [vmem:[#allocation6 + $0x221] sm:$0xff]  ;;  %v3036_v16 = vld [vmem:[#allocation6 + $0x270] sm:$0xff] }
 0x240   :  { %v3031_v5 = vld [vmem:[#allocation6 + $0x220] sm:$0xff]  ;;  %v2857_v48 = vpack.c.bf16 %v2839_v3, %v2838_v9  ;;  %v2894_v4 = vld [vmem:[#allocation6 + $0x172] sm:$0xff]  ;;  %2681 = vst.msk [vmem:[#allocation3 + $0x210] sm:$0xff] %vm97_vm0, %v2665_v54  ;;  %3257 = vst.msk [vmem:[#allocation3 + $0x200] sm:$0xff] %vm97_vm0, %v2665_v54 }
 0x241   :  { %3147 = vrot.lane.b32.xlu0 %v3108_v45, %s10485_s15  ;;  %v3050_v38 = vpack.c.bf16 %v3032_v0, %v3031_v5  ;;  %v3088_v30 = vld [vmem:[#allocation6 + $0x191] sm:$0xff]  ;;  %v2648_v27 = vld [vmem:[#allocation6 + $0x222] sm:$0xff]  ;;  %v2917_v49 = vpack.c.bf16 %v2895_v2, %v2894_v4 }
 0x242   :  { %v2649_v18 = vld [vmem:[#allocation6 + $0x232] sm:$0xff]  ;;  %2873 = vst.msk [vmem:[#allocation3 + $0x218] sm:$0xff] %vm97_vm0, %v2857_v48  ;;  %v2841_v39 = vld [vmem:[#allocation6 + $0x241] sm:$0xff] }
 0x243   :  { %2572 = vrot.lane.b32.xlu1 %v2532_v21, %s10485_s15  ;;  %3066 = vst.msk [vmem:[#allocation3 + $0x220] sm:$0xff] %vm97_vm0, %v3050_v38  ;;  %2490 = vst.msk [vmem:[#allocation3 + $0x230] sm:$0xff] %vm97_vm0, %v3050_v38  ;;  %v2666_v26 = vpack.c.bf16 %v2649_v18, %v2648_v27  ;;  %v2840_v42 = vld [vmem:[#allocation6 + $0x231] sm:$0xff]  ;;  %v3033_v57 = vld [vmem:[#allocation6 + $0x240] sm:$0xff] }
 0x244   :  { %v2858_v51 = vpack.c.bf16 %v2841_v39, %v2840_v42  ;;  %v3034_v10 = vld [vmem:[#allocation6 + $0x250] sm:$0xff]  ;;  %v2650_v1 = vld [vmem:[#allocation6 + $0x242] sm:$0xff] }
 0x245   :  { %2764 = vrot.lane.b32.xlu0 %v2724_v20, %s10485_s15  ;;  %v2651_v13 = vld [vmem:[#allocation6 + $0x252] sm:$0xff]  ;;  %2682 = vst.msk [vmem:[#allocation3 + $0x238] sm:$0xff] %vm97_vm0, %v2666_v26  ;;  %v3051_v7 = vpack.c.bf16 %v3034_v10, %v3033_v57  ;;  %v2843_v17 = vld [vmem:[#allocation6 + $0x261] sm:$0xff]  ;;  %3258 = vst.msk [vmem:[#allocation3 + $0x228] sm:$0xff] %vm97_vm0, %v2666_v26 }
 0x246   :  { %v2667_v61 = vpack.c.bf16 %v2651_v13, %v2650_v1  ;;  %v2842_v34 = vld [vmem:[#allocation6 + $0x251] sm:$0xff]  ;;  %v3035_v45 = vld [vmem:[#allocation6 + $0x260] sm:$0xff]  ;;  %2874 = vst.msk [vmem:[#allocation3 + $0x240] sm:$0xff] %vm97_vm0, %v2858_v51 }
 0x247   :  { %2956 = vrot.lane.b32.xlu1 %v2916_v35, %s10485_s15  ;;  %v3087_v28 = vld [vmem:[#allocation6 + $0x181] sm:$0xff]  ;;  %v2859_v40 = vpack.c.bf16 %v2843_v17, %v2842_v34  ;;  %v3052_v22 = vpack.c.bf16 %v3036_v16, %v3035_v45  ;;  %3067 = vst.msk [vmem:[#allocation3 + $0x248] sm:$0xff] %vm97_vm0, %v3051_v7  ;;  %2491 = vst.msk [vmem:[#allocation3 + $0x258] sm:$0xff] %vm97_vm0, %v3051_v7  ;;  %v2704_v11 = vld [vmem:[#allocation6 + $0x190] sm:$0xff] }
 0x248   :  { %v2705_v12 = vld [vmem:[#allocation6 + $0x1a0] sm:$0xff]  ;;  %v3110_v33 = vpack.c.bf16 %v3088_v30, %v3087_v28  ;;  %2683 = vst.msk [vmem:[#allocation3 + $0x260] sm:$0xff] %vm97_vm0, %v2667_v61  ;;  %3259 = vst.msk [vmem:[#allocation3 + $0x250] sm:$0xff] %vm97_vm0, %v2667_v61  ;;  %v3204_v36 = vld [vmem:[#allocation6 + $0x92] sm:$0xff] }
 0x249   :  { %3149 = vrot.lane.b32.xlu0 %v3109_v24, %s10485_s15  ;;  %v2897_v15 = vld [vmem:[#allocation6 + $0x1a2] sm:$0xff]  ;;  %2875 = vst.msk [vmem:[#allocation3 + $0x268] sm:$0xff] %vm97_vm0, %v2859_v40  ;;  %3068 = vst.msk [vmem:[#allocation3 + $0x270] sm:$0xff] %vm97_vm0, %v3052_v22  ;;  %v3200_v21 = vld [vmem:[#allocation6 + $0x52] sm:$0xff]  ;;  %v2726_v44 = vpack.c.bf16 %v2705_v12, %v2704_v11 }
 0x24a   :  { %v3199_v41 = vld [vmem:[#allocation6 + $0x42] sm:$0xff]  ;;  %v2896_v23 = vld [vmem:[#allocation6 + $0x192] sm:$0xff] }
 0x24b   :  { %2574 = vrot.lane.b32.xlu1 %v3109_v24, %s10485_s15  ;;  %v3230_v19 = vpack.c.bf16 %v3200_v21, %v3199_v41  ;;  %v3201_v53 = vld [vmem:[#allocation6 + $0x62] sm:$0xff]  ;;  %v3202_v58 = vld [vmem:[#allocation6 + $0x72] sm:$0xff]  ;;  %v2918_v50 = vpack.c.bf16 %v2897_v15, %v2896_v23 }
 0x24c   :  { %v3231_v60 = vpack.c.bf16 %v3202_v58, %v3201_v53  ;;  %v3089_v20 = vld [vmem:[#allocation6 + $0x1a1] sm:$0xff]  ;;  %v3090_v47 = vld [vmem:[#allocation6 + $0x1b1] sm:$0xff] }
 0x24d   :  { %2766 = vrot.lane.b32.xlu0 %v2725_v52, %s10485_s15  ;;  %3246 = vst.msk [vmem:[#allocation3 + $0x48] sm:$0xff] %vm97_vm0, %v3230_v19  ;;  %v3203_v31 = vld [vmem:[#allocation6 + $0x82] sm:$0xff]  ;;  %v3111_v63 = vpack.c.bf16 %v3090_v47, %v3089_v20  ;;  %v3206_v55 = vld [vmem:[#allocation6 + $0xd2] sm:$0xff] }
 0x24e   :  { %3247 = vst.msk [vmem:[#allocation3 + $0x70] sm:$0xff] %vm97_vm0, %v3231_v60  ;;  %v3232_v8 = vpack.c.bf16 %v3204_v36, %v3203_v31  ;;  %v2707_v14 = vld [vmem:[#allocation6 + $0x1c0] sm:$0xff]  ;;  %v3212_v43 = vld [vmem:[#allocation6 + $0x132] sm:$0xff] }
 0x24f   :  { %2958 = vrot.lane.b32.xlu1 %v2917_v49, %s10485_s15  ;;  %v3205_v35 = vld [vmem:[#allocation6 + $0xc2] sm:$0xff]  ;;  %v2706_v6 = vld [vmem:[#allocation6 + $0x1b0] sm:$0xff] }
 0x250   :  { %3248 = vst.msk [vmem:[#allocation3 + $0x98] sm:$0xff] %vm97_vm0, %v3232_v8  ;;  %v2899_v62 = vld [vmem:[#allocation6 + $0x1c2] sm:$0xff]  ;;  %v3233_v29 = vpack.c.bf16 %v3206_v55, %v3205_v35  ;;  %v3208_v37 = vld [vmem:[#allocation6 + $0xf2] sm:$0xff]  ;;  %v2727_v9 = vpack.c.bf16 %v2707_v14, %v2706_v6 }
 0x251   :  { %3151 = vrot.lane.b32.xlu0 %v3110_v33, %s10485_s15  ;;  %v3207_v46 = vld [vmem:[#allocation6 + $0xe2] sm:$0xff]  ;;  %v3210_v25 = vld [vmem:[#allocation6 + $0x112] sm:$0xff] }
 0x252   :  { %v3234_v24 = vpack.c.bf16 %v3208_v37, %v3207_v46  ;;  %v3209_v59 = vld [vmem:[#allocation6 + $0x102] sm:$0xff]  ;;  %3249 = vst.msk [vmem:[#allocation3 + $0xc0] sm:$0xff] %vm97_vm0, %v3233_v29  ;;  %v2898_v2 = vld [vmem:[#allocation6 + $0x1b2] sm:$0xff] }
 0x253   :  { %2576 = vrot.lane.b32.xlu1 %v3110_v33, %s10485_s15  ;;  %v3235_v56 = vpack.c.bf16 %v3210_v25, %v3209_v59  ;;  %v3211_v32 = vld [vmem:[#allocation6 + $0x122] sm:$0xff]  ;;  %v3092_v3 = vld [vmem:[#allocation6 + $0x1d1] sm:$0xff]  ;;  %v2919_v0 = vpack.c.bf16 %v2899_v62, %v2898_v2 }
 0x254   :  { %3250 = vst.msk [vmem:[#allocation3 + $0xe8] sm:$0xff] %vm97_vm0, %v3234_v24  ;;  %v3091_v54 = vld [vmem:[#allocation6 + $0x1c1] sm:$0xff]  ;;  %v3236_v5 = vpack.c.bf16 %v3212_v43, %v3211_v32  ;;  %v2517_v38 = vld [vmem:[#allocation6 + $0x1f1] sm:$0xff] }
 0x255   :  { %2768 = vrot.lane.b32.xlu0 %v2726_v44, %s10485_s15  ;;  %3251 = vst.msk [vmem:[#allocation3 + $0x110] sm:$0xff] %vm97_vm0, %v3235_v56  ;;  %v2516_v48 = vld [vmem:[#allocation6 + $0x1e1] sm:$0xff]  ;;  %v3112_v16 = vpack.c.bf16 %v3092_v3, %v3091_v54  ;;  %v2708_v27 = vld [vmem:[#allocation6 + $0x1f0] sm:$0xff] }
 0x256   :  { %3252 = vst.msk [vmem:[#allocation3 + $0x138] sm:$0xff] %vm97_vm0, %v3236_v5  ;;  %v2709_v4 = vld [vmem:[#allocation6 + $0x200] sm:$0xff]  ;;  %v2536_v30 = vpack.c.bf16 %v2517_v38, %v2516_v48  ;;  %v3220_v18 = vld [vmem:[#allocation6 + $0x1d2] sm:$0xff]  ;;  %v10212_v48 = vld [vmem:[%s15359_s6 + $0x108] sm:$0xff]  }
 0x257   :  { %2960 = vrot.lane.b32.xlu1 %v2918_v50, %s10485_s15  ;;  %v2901_v52 = vld [vmem:[#allocation6 + $0x202] sm:$0xff]  ;;  %v2728_v26 = vpack.c.bf16 %v2709_v4, %v2708_v27  ;;  %v2900_v42 = vld [vmem:[#allocation6 + $0x1f2] sm:$0xff] }
 0x258   :  { %v3219_v39 = vld [vmem:[#allocation6 + $0x1c2] sm:$0xff]  ;;  %v2920_v10 = vpack.c.bf16 %v2901_v52, %v2900_v42  ;;  %v3094_v1 = vld [vmem:[#allocation6 + $0x211] sm:$0xff] }
 0x259   :  { %3153 = vrot.lane.b32.xlu0 %v3111_v63, %s10485_s15  ;;  %v3093_v57 = vld [vmem:[#allocation6 + $0x201] sm:$0xff]  ;;  %v3240_v51 = vpack.c.bf16 %v3220_v18, %v3219_v39  ;;  %v2710_v7 = vld [vmem:[#allocation6 + $0x210] sm:$0xff] }
 0x25a   :  { %v3113_v13 = vpack.c.bf16 %v3094_v1, %v3093_v57  ;;  %v2711_v49 = vld [vmem:[#allocation6 + $0x220] sm:$0xff]  ;;  %v3228_v17 = vld [vmem:[#allocation6 + $0x272] sm:$0xff] }
 0x25b   :  { %2578 = vrot.lane.b32.xlu1 %v3111_v63, %s10485_s15  ;;  %3256 = vst.msk [vmem:[#allocation3 + $0x1d8] sm:$0xff] %vm97_vm0, %v3240_v51  ;;  %v2903_v61 = vld [vmem:[#allocation6 + $0x222] sm:$0xff]  ;;  %v2729_v45 = vpack.c.bf16 %v2711_v49, %v2710_v7  ;;  %v2902_v12 = vld [vmem:[#allocation6 + $0x212] sm:$0xff] }
 0x25c   :  { %v3227_v34 = vld [vmem:[#allocation6 + $0x262] sm:$0xff]  ;;  %v3096_v40 = vld [vmem:[#allocation6 + $0x231] sm:$0xff]  ;;  %v2921_v22 = vpack.c.bf16 %v2903_v61, %v2902_v12 }
 0x25d   :  { %2770 = vrot.lane.b32.xlu0 %v2727_v9, %s10485_s15  ;;  %v3244_v28 = vpack.c.bf16 %v3228_v17, %v3227_v34  ;;  %v3095_v33 = vld [vmem:[#allocation6 + $0x221] sm:$0xff]  ;;  %v2712_v36 = vld [vmem:[#allocation6 + $0x230] sm:$0xff] }
 0x25e   :  { %v3114_v11 = vpack.c.bf16 %v3096_v40, %v3095_v33  ;;  %v2713_v15 = vld [vmem:[#allocation6 + $0x240] sm:$0xff]  ;;  %v2904_v23 = vld [vmem:[#allocation6 + $0x232] sm:$0xff]  ;;  %v10210_v61 = vld [vmem:[%s15362_s7 + $0x48] sm:$0xff]  }
 0x25f   :  { %2962 = vrot.lane.b32.xlu1 %v2919_v0, %s10485_s15  ;;  %3260 = vst.msk [vmem:[#allocation3 + $0x278] sm:$0xff] %vm97_vm0, %v3244_v28  ;;  %v2905_v41 = vld [vmem:[#allocation6 + $0x242] sm:$0xff]  ;;  %v2730_v21 = vpack.c.bf16 %v2713_v15, %v2712_v36  ;;  %v3098_v44 = vld [vmem:[#allocation6 + $0x251] sm:$0xff] }
 0x260   :  { %v3097_v19 = vld [vmem:[#allocation6 + $0x241] sm:$0xff]  ;;  %v2922_v58 = vpack.c.bf16 %v2905_v41, %v2904_v23  ;;  %v2714_v8 = vld [vmem:[#allocation6 + $0x250] sm:$0xff] }
 0x261   :  { %3155 = vrot.lane.b32.xlu0 %v3112_v16, %s10485_s15  ;;  %v3115_v20 = vpack.c.bf16 %v3098_v44, %v3097_v19  ;;  %v2715_v31 = vld [vmem:[#allocation6 + $0x260] sm:$0xff]  ;;  %v3100_v14 = vld [vmem:[#allocation6 + $0x271] sm:$0xff]  ;;  %v10211_v33 = vld [vmem:[%s15362_s7 + $0x8] sm:$0xff]  }
 0x262   :  { %v2907_v47 = vld [vmem:[#allocation6 + $0x262] sm:$0xff]  ;;  %v12588_v35 = vld [vmem:[%s15363_s1 + $0x12] sm:$0xff]  ;;  %v2731_v43 = vpack.c.bf16 %v2715_v31, %v2714_v8 }
 0x263   :  { %2580 = vrot.lane.b32.xlu1 %v2536_v30, %s10485_s15  ;;  %v403_v63 = vld [vmem:[%s15363_s1 + $0x2] sm:$0xff]  ;;  %v2906_v6 = vld [vmem:[#allocation6 + $0x252] sm:$0xff] }
 0x264   :  { %v275_v62 = vld [vmem:[%s15363_s1 + $0x1] sm:$0xff]  ;;  %v276_v29 = vld [vmem:[%s15363_s1 + $0x11] sm:$0xff]  ;;  %v419_v46 = vpack.c.bf16 %v12588_v35, %v403_v63  ;;  %v2923_v56 = vpack.c.bf16 %v2907_v47, %v2906_v6 }
 0x265   :  { %2772 = vrot.lane.b32.xlu0 %v2728_v26, %s10485_s15  ;;  %v3099_v37 = vld [vmem:[#allocation6 + $0x261] sm:$0xff]  ;;  %v115_v59 = vld [vmem:[%s15363_s1 + $0x10] sm:$0xff]  ;;  %v291_v0 = vpack.c.bf16 %v276_v29, %v275_v62 }
 0x266   :  { %v114_v24 = vld [vmem:[%s15363_s1] sm:$0xff]  ;;  %427 = vst.msk [vmem:[#allocation4 + $0x8] sm:$0xff] %vm97_vm0, %v419_v46  ;;  %v8366_v32 = vld [vmem:[%s15363_s1 + $0x10] sm:$0xff]  ;;  %v3116_v5 = vpack.c.bf16 %v3100_v14, %v3099_v37  ;;  %v10215_v37 = vld [vmem:[%s15362_s7 + $0x58] sm:$0xff]  }
 0x267   :  { %2964 = vrot.lane.b32.xlu1 %v2920_v10, %s10485_s15  ;;  %v130_v9 = vpack.c.bf16 %v115_v59, %v114_v24  ;;  %v8367_v2 = vld [vmem:[%s15363_s1 + $0x20] sm:$0xff]  ;;  %v278_v30 = vld [vmem:[%s15363_s1 + $0x31] sm:$0xff] }
 0x268   :  { %v10209_v16 = vld [vmem:[%s15362_s7] sm:$0xff]   ;;  %v581_v18 = vpack.c.bf16 %v8367_v2, %v8366_v32  ;;  %v8368_v52 = vld [vmem:[%s15363_s1 + $0x30] sm:$0xff] }
 0x269   :  { %3157 = vrot.lane.b32.xlu0 %v3113_v13, %s10485_s15  ;;  %138 = vst.msk [vmem:[#allocation4] sm:$0xff] %vm97_vm0, %v130_v9  ;;  %v277_v4 = vld [vmem:[%s15363_s1 + $0x21] sm:$0xff]  ;;  %v12644_v42 = vld [vmem:[%s15363_s1 + $0x32] sm:$0xff] }
 0x26a   :  { %v12639_v26 = vld [vmem:[%s15363_s1 + $0x22] sm:$0xff]  ;;  %v117_v1 = vld [vmem:[%s15363_s1 + $0x30] sm:$0xff]  ;;  %v12662_v7 = vpack.c.bf16 %v278_v30, %v277_v4 }
 0x26b   :  { %2582 = vrot.lane.b32.xlu1 %v3113_v13, %s10485_s15  ;;  %v10483_v39 = vld [vmem:[%s15359_s6 + $0x100] sm:$0xff]   ;;  %v420_v51 = vpack.c.bf16 %v12644_v42, %v12639_v26  ;;  %v280_v28 = vld [vmem:[%s15363_s1 + $0x51] sm:$0xff] }
 0x26c   :  { %v8369_v57 = vld [vmem:[%s15363_s1 + $0x40] sm:$0xff]  ;;  %v10217_v12 = vld [vmem:[%s15359_s6 + $0x110] sm:$0xff]  }
 0x26d   :  { %2774 = vrot.lane.b32.xlu0 %v2729_v45, %s10485_s15  ;;  %v116_v10 = vld [vmem:[%s15363_s1 + $0x20] sm:$0xff]  ;;  %428 = vst.msk [vmem:[#allocation4 + $0x30] sm:$0xff] %vm97_vm0, %v420_v51  ;;  %v10213_v19 = vld [vmem:[%s15362_s7 + $0x50] sm:$0xff]  }
 0x26e   :  { %v279_v34 = vld [vmem:[%s15363_s1 + $0x41] sm:$0xff]  ;;  %v131_v17 = vpack.c.bf16 %v117_v1, %v116_v10  ;;  %v282_v44 = vld [vmem:[%s15363_s1 + $0x71] sm:$0xff] }
 0x26f   :  { %2966 = vrot.lane.b32.xlu1 %v2921_v22, %s10485_s15  ;;  %v582_v22 = vpack.c.bf16 %v8369_v57, %v8368_v52  ;;  %v8371_v15 = vld [vmem:[%s15363_s1 + $0x60] sm:$0xff]  ;;  %v12723_v47 = vld [vmem:[%s15363_s1 + $0x52] sm:$0xff] }
 0x270   :  { %139 = vst.msk [vmem:[#allocation4 + $0x28] sm:$0xff] %vm97_vm0, %v131_v17  ;;  %1007 = vst.msk [vmem:[#allocation4 + $0x18] sm:$0xff] %vm97_vm0, %v131_v17  ;;  %v281_v23 = vld [vmem:[%s15363_s1 + $0x61] sm:$0xff]  ;;  %v10214_v14 = vld [vmem:[%s15362_s7 + $0x10] sm:$0xff]  }
 0x271   :  { %3159 = vrot.lane.b32.xlu0 %v3114_v11, %s10485_s15  ;;  %v12718_v8 = vld [vmem:[%s15363_s1 + $0x42] sm:$0xff]  ;;  %v12739_v29 = vpack.c.bf16 %v282_v44, %v281_v23  ;;  %v8374_v2 = vld [vmem:[%s15363_s1 + $0xb0] sm:$0xff] }
 0x272   :  { %v421_v63 = vpack.c.bf16 %v12723_v47, %v12718_v8  ;;  %v283_v46 = vld [vmem:[%s15363_s1 + $0xa1] sm:$0xff]  ;;  %v8376_v4 = vld [vmem:[%s15363_s1 + $0xd0] sm:$0xff] }
 0x273   :  { %2584 = vrot.lane.b32.xlu1 %v3114_v11, %s10485_s15  ;;  %v8370_v11 = vld [vmem:[%s15363_s1 + $0x50] sm:$0xff]  ;;  %v285_v30 = vld [vmem:[%s15363_s1 + $0xc1] sm:$0xff] }
 0x274   :  { %v583_v31 = vpack.c.bf16 %v8371_v15, %v8370_v11  ;;  %429 = vst.msk [vmem:[#allocation4 + $0x58] sm:$0xff] %vm97_vm0, %v421_v63  ;;  %v12790_v57 = vld [vmem:[%s15363_s1 + $0x62] sm:$0xff]  ;;  %v12795_v51 = vld [vmem:[%s15363_s1 + $0x72] sm:$0xff] }
 0x275   :  { %2776 = vrot.lane.b32.xlu0 %v2730_v21, %s10485_s15  ;;  %v2557_v53 = vpop.permute.xlu1 %2556  ;;  %v12693_v21 = vpack.c.bf16 %v280_v28, %v279_v34  ;;  %v10219_v10 = vld [vmem:[%s15362_s7 + $0x20] sm:$0xff]   ;;  %v422_v1 = vpack.c.bf16 %v12795_v51, %v12790_v57  ;;  %v8378_v15 = vld [vmem:[%s15363_s1 + $0xf0] sm:$0xff] }
 0x276   :  { %2604 = vst.msk [vmem:[#allocation3] sm:$0xff] %vm258_vm1, %v2557_v53  ;;  %v8381_v63 = vld [vmem:[%s15363_s1 + $0x120] sm:$0xff] }
 0x277   :  { %v2749_v60 = vpop.permute.xlu0 %2748  ;;  %2968 = vrot.lane.b32.xlu1 %v2922_v58, %s10485_s15  ;;  %v8372_v58 = vld [vmem:[%s15363_s1 + $0x70] sm:$0xff]  ;;  %430 = vst.msk [vmem:[#allocation4 + $0x80] sm:$0xff] %vm97_vm0, %v422_v1 }
 0x278   :  { %2796 = vst.msk [vmem:[#allocation3 + $0x8] sm:$0xff] %vm258_vm1, %v2749_v60  ;;  %v10222_v60 = vld [vmem:[%s15359_s6 + $0x118] sm:$0xff]  }
 0x279   :  { %3161 = vrot.lane.b32.xlu0 %v3115_v20, %s10485_s15  ;;  %v2941_v50 = vpop.permute.xlu1 %2940 }
 0x27a   :  { %2988 = vst.msk [vmem:[#allocation3 + $0x10] sm:$0xff] %vm258_vm1, %v2941_v50  ;;  %v8373_v50 = vld [vmem:[%s15363_s1 + $0x80] sm:$0xff] }
 0x27b   :  { %v3134_v55 = vpop.permute.xlu0 %3133  ;;  %2586 = vrot.lane.b32.xlu1 %v3115_v20, %s10485_s15  ;;  %v584_v32 = vpack.c.bf16 %v8373_v50, %v8372_v58  ;;  %v10223_v58 = vld [vmem:[%s15362_s7 + $0x70] sm:$0xff]  }
 0x27c   :  { %3181 = vst.msk [vmem:[#allocation3 + $0x18] sm:$0xff] %vm258_vm1, %v3134_v55  ;;  %v118_v55 = vld [vmem:[%s15363_s1 + $0x40] sm:$0xff] }
 0x27d   :  { %2778 = vrot.lane.b32.xlu0 %v2731_v43, %s10485_s15  ;;  %v2559_v25 = vpop.permute.xlu1 %2558  ;;  %v3261_v38 = vld [vmem:[#allocation3] sm:$0xff]  ;;  %v119_v43 = vld [vmem:[%s15363_s1 + $0x50] sm:$0xff] }
 0x27e   :  { %2605 = vst.msk [vmem:[#allocation3 + $0x28] sm:$0xff] %vm258_vm1, %v2559_v25  ;;  %v132_v24 = vpack.c.bf16 %v119_v43, %v118_v55  ;;  %v284_v25 = vld [vmem:[%s15363_s1 + $0xb1] sm:$0xff] }
 0x27f   :  { %v2751_v54 = vpop.permute.xlu0 %2750  ;;  %2970 = vrot.lane.b32.xlu1 %v2923_v56, %s10485_s15  ;;  %v3262_v3 = vld [vmem:[#allocation3 + $0x8] sm:$0xff]  ;;  %v10227_v56 = vld [vmem:[%s15362_s7 + $0xc0] sm:$0xff]   ;;  %v10224_v55 = vld [vmem:[%s15362_s7 + $0x30] sm:$0xff]  }
 0x280   :  { %2797 = vst.msk [vmem:[#allocation3 + $0x30] sm:$0xff] %vm258_vm1, %v2751_v54  ;;  %3709 = vmatprep.mubr.bf16.mxu1 %v3262_v3  ;;  %v8375_v54 = vld [vmem:[%s15363_s1 + $0xc0] sm:$0xff]  ;;  %v10216_v3 = vld [vmem:[%s15362_s7 + $0x18] sm:$0xff]  }
 0x281   :  { %3163 = vrot.lane.b32.xlu0 %v3116_v5, %s10485_s15  ;;  %v2943_v27 = vpop.permute.xlu1 %2942  ;;  %3710 = vmatmul.mubr.bf16.vlgmr.msra.gmra.mrb[56].mxu1 %v3261_v38  ;;  %v3263_v45 = vld [vmem:[#allocation3 + $0x10] sm:$0xff]  ;;  %140 = vst.msk [vmem:[#allocation4 + $0x50] sm:$0xff] %vm97_vm0, %v132_v24  ;;  %1008 = vst.msk [vmem:[#allocation4 + $0x40] sm:$0xff] %vm97_vm0, %v132_v24  ;;  %v10218_v38 = vld [vmem:[%s15362_s7 + $0x60] sm:$0xff]   ;;  %v585_v52 = vpack.c.bf16 %v8375_v54, %v8374_v2 }
 0x282   :  { %2989 = vst.msk [vmem:[#allocation3 + $0x38] sm:$0xff] %vm258_vm1, %v2943_v27  ;;  %10057 = vmatpush3.bf16.msra.mxu1 %v10483_v39  ;;  %v286_v27 = vld [vmem:[%s15363_s1 + $0xd1] sm:$0xff]  ;;  %v8377_v39 = vld [vmem:[%s15363_s1 + $0xe0] sm:$0xff] }
 0x283   :  { %v3136_v13 = vpop.permute.xlu0 %3135  ;;  %v3264_v49 = vld [vmem:[#allocation3 + $0x18] sm:$0xff]  ;;  %307 = vrot.lane.b32.xlu1 %v291_v0, %s10485_s15  ;;  %10058 = vmatprep.subr.bf16.mxu1 %v10212_v48  ;;  %v12810_v17 = vpack.c.bf16 %v286_v27, %v285_v30  ;;  %v586_v11 = vpack.c.bf16 %v8377_v39, %v8376_v4  ;;  %v12905_v30 = vld [vmem:[%s15363_s1 + $0xc2] sm:$0xff] }
 0x284   :  { %3182 = vst.msk [vmem:[#allocation3 + $0x40] sm:$0xff] %vm258_vm1, %v3136_v13  ;;  %3870 = vmatprep.mubr.bf16.mxu0 %v3264_v49  ;;  %v120_v13 = vld [vmem:[%s15363_s1 + $0x60] sm:$0xff]  ;;  %v121_v49 = vld [vmem:[%s15363_s1 + $0x70] sm:$0xff] }
 0x285   :  { %3871 = vmatmul.mubr.bf16.vlgmr.msra.gmra.mrb[104].mxu0 %v3263_v45  ;;  %v2561_v40 = vpop.permute.xlu1 %2560  ;;  %597 = vrot.lane.b32.xlu0 %v581_v18, %s10485_s15  ;;  %v3266_v53 = vld [vmem:[#allocation3 + $0x28] sm:$0xff]  ;;  %v133_v28 = vpack.c.bf16 %v121_v49, %v120_v13  ;;  %v12863_v43 = vld [vmem:[%s15363_s1 + $0xb2] sm:$0xff]  ;;  %v124_v27 = vld [vmem:[%s15363_s1 + $0xc0] sm:$0xff] }
 0x286   :  { %9493 = vmatpush3.bf16.msra.mxu0 %v10209_v16  ;;  %2606 = vst.msk [vmem:[#allocation3 + $0x50] sm:$0xff] %vm258_vm1, %v2561_v40  ;;  %10059 = vmatpush3.bf16.msra.mxu1 %v10212_v48  ;;  %v295_v48 = vpack.c.bf16 %v284_v25, %v283_v46  ;;  %v10220_v45 = vld [vmem:[%s15362_s7 + $0x68] sm:$0xff]   ;;  %v123_v46 = vld [vmem:[%s15363_s1 + $0xb0] sm:$0xff]  ;;  %v10225_v25 = vld [vmem:[%s15362_s7 + $0x78] sm:$0xff]  }
 0x287   :  { %v2753_v36 = vpop.permute.xlu0 %2752  ;;  %v3267_v41 = vld [vmem:[#allocation3 + $0x30] sm:$0xff]  ;;  %309 = vrot.lane.b32.xlu1 %v12662_v7, %s10485_s15  ;;  %9494 = vmatprep.subr.bf16.mxu0 %v10210_v61  ;;  %v287_v40 = vld [vmem:[%s15363_s1 + $0xe1] sm:$0xff]  ;;  %141 = vst.msk [vmem:[#allocation4 + $0x78] sm:$0xff] %vm97_vm0, %v133_v28  ;;  %1009 = vst.msk [vmem:[#allocation4 + $0x68] sm:$0xff] %vm97_vm0, %v133_v28 }
 0x288   :  { %2798 = vst.msk [vmem:[#allocation3 + $0x58] sm:$0xff] %vm258_vm1, %v2753_v36  ;;  %3717 = vmatprep.mubr.bf16.mxu1 %v3267_v41  ;;  %10060 = vmatprep.subr.bf16.mxu1 %v10217_v12  ;;  %v8379_v36 = vld [vmem:[%s15363_s1 + $0x100] sm:$0xff]  ;;  %v10221_v41 = vld [vmem:[%s15362_s7 + $0x28] sm:$0xff]  }
 0x289   :  { %v2945_v20 = vpop.permute.xlu1 %2944  ;;  %3718 = vmatmul.mubr.bf16.gmra.mrb[60].mxu1 %v3266_v53  ;;  %599 = vrot.lane.b32.xlu0 %v582_v22, %s10485_s15  ;;  %v3268_v59 = vld [vmem:[#allocation3 + $0x38] sm:$0xff]  ;;  %v8564_v28 = vld [vmem:[%s15363_s1 + $0x81] sm:$0xff] }
 0x28a   :  { %2990 = vst.msk [vmem:[#allocation3 + $0x60] sm:$0xff] %vm258_vm1, %v2945_v20  ;;  %9495 = vmatpush3.bf16.msra.mxu0 %v10211_v33  ;;  %10061 = vmatpush3.bf16.msra.mxu1 %v10217_v12  ;;  %v288_v22 = vld [vmem:[%s15363_s1 + $0xf1] sm:$0xff]  ;;  %v289_v20 = vld [vmem:[%s15363_s1 + $0x101] sm:$0xff] }
 0x28b   :  { %v3138_v6 = vpop.permute.xlu0 %3137  ;;  %v3269_v62 = vld [vmem:[#allocation3 + $0x40] sm:$0xff]  ;;  %311 = vrot.lane.b32.xlu1 %v12693_v21, %s10485_s15  ;;  %9496 = vmatprep.subr.bf16.mxu0 %v10213_v19  ;;  %v12838_v53 = vpack.c.bf16 %v288_v22, %v287_v40  ;;  %v127_v22 = vld [vmem:[%s15363_s1 + $0xf0] sm:$0xff] }
 0x28c   :  { %3183 = vst.msk [vmem:[#allocation3 + $0x68] sm:$0xff] %vm258_vm1, %v3138_v6  ;;  %3878 = vmatprep.mubr.bf16.mxu0 %v3269_v62  ;;  %10062 = vmatprep.subr.bf16.mxu1 %v10222_v60  ;;  %v411_v6 = vld [vmem:[%s15363_s1 + $0xa2] sm:$0xff] }
 0x28d   :  { %3879 = vmatmul.mubr.bf16.gmra.mrb[108].mxu0 %v3268_v59  ;;  %v2563_v9 = vpop.permute.xlu1 %2562  ;;  %601 = vrot.lane.b32.xlu0 %v583_v31, %s10485_s15  ;;  %v3271_v16 = vld [vmem:[#allocation3 + $0x50] sm:$0xff]  ;;  %v122_v62 = vld [vmem:[%s15363_s1 + $0xa0] sm:$0xff] }
 0x28e   :  { %2607 = vst.msk [vmem:[#allocation3 + $0x78] sm:$0xff] %vm258_vm1, %v2563_v9  ;;  %9497 = vmatpush3.bf16.msra.mxu0 %v10214_v14  ;;  %10063 = vmatpush3.bf16.msra.mxu1 %v10222_v60  ;;  %v8380_v60 = vld [vmem:[%s15363_s1 + $0x110] sm:$0xff]  ;;  %v587_v14 = vpack.c.bf16 %v8379_v36, %v8378_v15  ;;  %v134_v9 = vpack.c.bf16 %v123_v46, %v122_v62  ;;  %v126_v40 = vld [vmem:[%s15363_s1 + $0xe0] sm:$0xff] }
 0x28f   :  { %v2755_v5 = vpop.permute.xlu0 %2754  ;;  %v3272_v0 = vld [vmem:[#allocation3 + $0x58] sm:$0xff]  ;;  %313 = vrot.lane.b32.xlu1 %v12739_v29, %s10485_s15  ;;  %9498 = vmatprep.subr.bf16.mxu0 %v10215_v37  ;;  %v588_v54 = vpack.c.bf16 %v8381_v63, %v8380_v60  ;;  %v136_v36 = vpack.c.bf16 %v127_v22, %v126_v40  ;;  %v129_v63 = vld [vmem:[%s15363_s1 + $0x110] sm:$0xff] }
 0x290   :  { %2799 = vst.msk [vmem:[#allocation3 + $0x80] sm:$0xff] %vm258_vm1, %v2755_v5  ;;  %3725 = vmatprep.mubr.bf16.mxu1 %v3272_v0  ;;  %9556 = vmatprep.subr.bf16.mxu1 %v10227_v56  ;;  %v290_v31 = vld [vmem:[%s15363_s1 + $0x111] sm:$0xff]  ;;  %v423_v56 = vpack.c.bf16 %v12863_v43, %v411_v6 }
 0x291   :  { %v2947_v18 = vpop.permute.xlu1 %2946  ;;  %3726 = vmatmul.mubr.bf16.gmra.mrb[64].mxu1 %v3271_v16  ;;  %603 = vrot.lane.b32.xlu0 %v584_v32, %s10485_s15  ;;  %v3273_v12 = vld [vmem:[#allocation3 + $0x60] sm:$0xff]  ;;  %v12877_v59 = vpack.c.bf16 %v290_v31, %v289_v20  ;;  %142 = vst.msk [vmem:[#allocation4 + $0xa0] sm:$0xff] %vm97_vm0, %v134_v9  ;;  %144 = vst.msk [vmem:[#allocation4 + $0xf0] sm:$0xff] %vm97_vm0, %v136_v36  ;;  %v12983_v31 = vld [vmem:[%s15363_s1 + $0x112] sm:$0xff] }
 0x292   :  { %2991 = vst.msk [vmem:[#allocation3 + $0x88] sm:$0xff] %vm258_vm1, %v2947_v18  ;;  %9499 = vmatpush3.bf16.msra.mxu0 %v10216_v3  ;;  %v10226_v3 = vld [vmem:[%s15362_s7 + $0x38] sm:$0xff]   ;;  %v125_v18 = vld [vmem:[%s15363_s1 + $0xd0] sm:$0xff] }
 0x293   :  { %v3140_v61 = vpop.permute.xlu0 %3139  ;;  %v3274_v34 = vld [vmem:[#allocation3 + $0x68] sm:$0xff]  ;;  %315 = vrot.lane.b32.xlu1 %v295_v48, %s10485_s15  ;;  %9500 = vmatprep.subr.bf16.mxu0 %v10218_v38  ;;  %431 = vst.msk [vmem:[#allocation4 + $0xa8] sm:$0xff] %vm97_vm0, %v423_v56  ;;  %v869_v48 = vpack.c.bf16 %v12639_v26, %v12588_v35  ;;  %v12898_v38 = vld [vmem:[%s15362_s7 + $0x100] sm:$0xff]   ;;  %v12910_v35 = vld [vmem:[%s15363_s1 + $0xd2] sm:$0xff]  ;;  %v135_v1 = vpack.c.bf16 %v125_v18, %v124_v27 }
 0x294   :  { %3184 = vst.msk [vmem:[#allocation3 + $0x90] sm:$0xff] %vm258_vm1, %v3140_v61  ;;  %3886 = vmatprep.mubr.bf16.mxu0 %v3274_v34  ;;  %v424_v26 = vpack.c.bf16 %v12910_v35, %v12905_v30  ;;  %v871_v61 = vpack.c.bf16 %v12790_v57, %v12723_v47  ;;  %v8473_v47 = vld [vmem:[%s15363_s1 + $0xe2] sm:$0xff]  ;;  %v12950_v57 = vld [vmem:[%s15363_s1 + $0xf2] sm:$0xff] }
 0x295   :  { %3887 = vmatmul.mubr.bf16.gmra.mrb[112].mxu0 %v3273_v12  ;;  %v2565_v33 = vpop.permute.xlu1 %2564  ;;  %605 = vrot.lane.b32.xlu0 %v585_v52, %s10485_s15  ;;  %v3276_v44 = vld [vmem:[#allocation3 + $0x78] sm:$0xff]  ;;  %143 = vst.msk [vmem:[#allocation4 + $0xc8] sm:$0xff] %vm97_vm0, %v135_v1  ;;  %1011 = vst.msk [vmem:[#allocation4 + $0xb8] sm:$0xff] %vm97_vm0, %v135_v1  ;;  %v874_v6 = vpack.c.bf16 %v8473_v47, %v12910_v35  ;;  %v8417_v18 = vld [vmem:[%s15363_s1 + $0x41] sm:$0xff] }
 0x296   :  { %2608 = vst.msk [vmem:[#allocation3 + $0xa0] sm:$0xff] %vm258_vm1, %v2565_v33  ;;  %9501 = vmatpush3.bf16.msra.mxu0 %v10219_v10  ;;  %v870_v10 = vpack.c.bf16 %v12718_v8, %v12644_v42  ;;  %v8565_v12 = vld [vmem:[%s15363_s1 + $0x91] sm:$0xff] }
 0x297   :  { %v2757_v23 = vpop.permute.xlu0 %2756  ;;  %v3277_v19 = vld [vmem:[#allocation3 + $0x80] sm:$0xff]  ;;  %317 = vrot.lane.b32.xlu1 %v12810_v17, %s10485_s15  ;;  %9502 = vmatprep.subr.bf16.mxu0 %v10220_v45  ;;  %432 = vst.msk [vmem:[#allocation4 + $0xd0] sm:$0xff] %vm97_vm0, %v424_v26  ;;  %1012 = vst.msk [vmem:[#allocation4 + $0xe0] sm:$0xff] %vm97_vm0, %v136_v36  ;;  %v8416_v27 = vld [vmem:[%s15363_s1 + $0x31] sm:$0xff] }
 0x298   :  { %2800 = vst.msk [vmem:[#allocation3 + $0xa8] sm:$0xff] %vm258_vm1, %v2757_v23  ;;  %3733 = vmatprep.mubr.bf16.mxu1 %v3277_v19  ;;  %v1162_v19 = vpack.c.bf16 %v8565_v12, %v8564_v28  ;;  %v8418_v12 = vld [vmem:[%s15363_s1 + $0x51] sm:$0xff]  ;;  %v8516_v36 = vld [vmem:[%s15363_s1 + $0x80] sm:$0xff] }
 0x299   :  { %v2949_v50 = vpop.permute.xlu1 %2948  ;;  %3734 = vmatmul.mubr.bf16.gmra.mrb[68].mxu1 %v3276_v44  ;;  %607 = vrot.lane.b32.xlu0 %v586_v11, %s10485_s15  ;;  %v3278_v32 = vld [vmem:[#allocation3 + $0x88] sm:$0xff]  ;;  %v873_v44 = vpack.c.bf16 %v12905_v30, %v12863_v43 }
 0x29a   :  { %2992 = vst.msk [vmem:[#allocation3 + $0xb0] sm:$0xff] %vm258_vm1, %v2949_v50  ;;  %9503 = vmatpush3.bf16.msra.mxu0 %v10221_v41 }
 0x29b   :  { %v3142_v37 = vpop.permute.xlu0 %3141  ;;  %v3279_v24 = vld [vmem:[#allocation3 + $0x90] sm:$0xff]  ;;  %319 = vrot.lane.b32.xlu1 %v12838_v53, %s10485_s15  ;;  %9504 = vmatprep.subr.bf16.mxu0 %v10223_v58 }
 0x29c   :  { %3185 = vst.msk [vmem:[#allocation3 + $0xb8] sm:$0xff] %vm258_vm1, %v3142_v37  ;;  %3894 = vmatprep.mubr.bf16.mxu0 %v3279_v24  ;;  %v8414_v24 = vld [vmem:[%s15363_s1 + $0x11] sm:$0xff] }
 0x29d   :  { %3895 = vmatmul.mubr.bf16.gmra.mrb[116].mxu0 %v3278_v32  ;;  %v2567_v2 = vpop.permute.xlu1 %2566  ;;  %609 = vrot.lane.b32.xlu0 %v587_v14, %s10485_s15  ;;  %v3281_v16 = vld [vmem:[#allocation3 + $0xa0] sm:$0xff] }
 0x29e   :  { %2609 = vst.msk [vmem:[#allocation3 + $0xc8] sm:$0xff] %vm258_vm1, %v2567_v2  ;;  %9505 = vmatpush3.bf16.msra.mxu0 %v10224_v55  ;;  %v128_v14 = vld [vmem:[%s15363_s1 + $0x100] sm:$0xff] }
 0x29f   :  { %v2759_v5 = vpop.permute.xlu0 %2758  ;;  %v3282_v0 = vld [vmem:[#allocation3 + $0xa8] sm:$0xff]  ;;  %321 = vrot.lane.b32.xlu1 %v12877_v59, %s10485_s15  ;;  %9506 = vmatprep.subr.bf16.mxu0 %v10225_v25  ;;  %v137_v62 = vpack.c.bf16 %v129_v63, %v128_v14 }
 0x2a0   :  { %2801 = vst.msk [vmem:[#allocation3 + $0xd0] sm:$0xff] %vm258_vm1, %v2759_v5  ;;  %3741 = vmatprep.mubr.bf16.mxu1 %v3282_v0  ;;  %v8415_v25 = vld [vmem:[%s15363_s1 + $0x21] sm:$0xff]  ;;  %v8573_v0 = vld [vmem:[%s15363_s1 + $0x131] sm:$0xff] }
 0x2a1   :  { %v2951_v4 = vpop.permute.xlu1 %2950  ;;  %3742 = vmatmul.mubr.bf16.gmra.mrb[72].mxu1 %v3281_v16  ;;  %611 = vrot.lane.b32.xlu0 %v588_v54, %s10485_s15  ;;  %v3283_v13 = vld [vmem:[#allocation3 + $0xb0] sm:$0xff]  ;;  %145 = vst.msk [vmem:[#allocation4 + $0x118] sm:$0xff] %vm97_vm0, %v137_v62  ;;  %1013 = vst.msk [vmem:[#allocation4 + $0x108] sm:$0xff] %vm97_vm0, %v137_v62  ;;  %v709_v56 = vpack.c.bf16 %v8415_v25, %v8414_v24  ;;  %v13014_v54 = vld [vmem:[%s15363_s1 + $0x122] sm:$0xff] }
 0x2a2   :  { %2993 = vst.msk [vmem:[#allocation3 + $0xd8] sm:$0xff] %vm258_vm1, %v2951_v4  ;;  %9507 = vmatpush3.bf16.msra.mxu0 %v10226_v3  ;;  %v13023_v5 = vld [vmem:[%s15363_s1 + $0x121] sm:$0xff]  ;;  %v876_v4 = vpack.c.bf16 %v13014_v54, %v12983_v31 }
 0x2a3   :  { %v3144_v52 = vpop.permute.xlu0 %3143  ;;  %v3284_v39 = vld [vmem:[#allocation3 + $0xb8] sm:$0xff]  ;;  %885 = vrot.lane.b32.xlu1 %v869_v48, %s10485_s15  ;;  %10096 = vmatprep.subr.bf16.mxu0 %v12898_v38  ;;  %717 = vst.msk [vmem:[#allocation4 + $0x10] sm:$0xff] %vm97_vm0, %v709_v56  ;;  %v1166_v26 = vpack.c.bf16 %v8573_v0, %v13023_v5  ;;  %v8612_v56 = vld [vmem:[%s15363_s1 + $0x82] sm:$0xff] }
 0x2a4   :  { %3186 = vst.msk [vmem:[#allocation3 + $0xe0] sm:$0xff] %vm258_vm1, %v3144_v52  ;;  %3902 = vmatprep.mubr.bf16.mxu0 %v3284_v39  ;;  %v710_v52 = vpack.c.bf16 %v8417_v18, %v8416_v27  ;;  %v8422_v0 = vld [vmem:[%s15363_s1 + $0xb1] sm:$0xff] }
 0x2a5   :  { %3903 = vmatmul.mubr.bf16.gmra.mrb[120].mxu0 %v3283_v13  ;;  %v2569_v49 = vpop.permute.xlu1 %2568  ;;  %1175 = vrot.lane.b32.xlu0 %v12662_v7, %s10485_s15  ;;  %v3286_v34 = vld [vmem:[#allocation3 + $0xc8] sm:$0xff] }
 0x2a6   :  { %2610 = vst.msk [vmem:[#allocation3 + $0xf0] sm:$0xff] %vm258_vm1, %v2569_v49  ;;  %v8469_v7 = vld [vmem:[%s15363_s1 + $0x82] sm:$0xff]  ;;  %v8607_v49 = vld [vmem:[%s15363_s1 + $0x32] sm:$0xff] }
 0x2a7   :  { %v2761_v42 = vpop.permute.xlu0 %2760  ;;  %v3287_v8 = vld [vmem:[#allocation3 + $0xd0] sm:$0xff]  ;;  %887 = vrot.lane.b32.xlu1 %v870_v10, %s10485_s15  ;;  %v872_v15 = vpack.c.bf16 %v8469_v7, %v12795_v51  ;;  %718 = vst.msk [vmem:[#allocation4 + $0x38] sm:$0xff] %vm97_vm0, %v710_v52  ;;  %v8606_v13 = vld [vmem:[%s15363_s1 + $0x22] sm:$0xff] }
 0x2a8   :  { %2802 = vst.msk [vmem:[#allocation3 + $0xf8] sm:$0xff] %vm258_vm1, %v2761_v42  ;;  %3749 = vmatprep.mubr.bf16.mxu1 %v3287_v8  ;;  %v1287_v42 = vpack.c.bf16 %v8607_v49, %v8606_v13  ;;  %v8608_v8 = vld [vmem:[%s15363_s1 + $0x42] sm:$0xff] }
 0x2a9   :  { %v2953_v45 = vpop.permute.xlu1 %2952  ;;  %3750 = vmatmul.mubr.bf16.gmra.mrb[76].mxu1 %v3286_v34  ;;  %1177 = vrot.lane.b32.xlu0 %v12693_v21, %s10485_s15  ;;  %v425_v21 = vpack.c.bf16 %v12950_v57, %v8473_v47  ;;  %v3288_v41 = vld [vmem:[#allocation3 + $0xd8] sm:$0xff]  ;;  %v8614_v49 = vld [vmem:[%s15363_s1 + $0xc2] sm:$0xff] }
 0x2aa   :  { %2994 = vst.msk [vmem:[#allocation3 + $0x100] sm:$0xff] %vm258_vm1, %v2953_v45 }
 0x2ab   :  { %v3146_v33 = vpop.permute.xlu0 %3145  ;;  %v3289_v11 = vld [vmem:[#allocation3 + $0xe0] sm:$0xff]  ;;  %889 = vrot.lane.b32.xlu1 %v871_v61, %s10485_s15  ;;  %433 = vst.msk [vmem:[#allocation4 + $0xf8] sm:$0xff] %vm97_vm0, %v425_v21  ;;  %v8609_v61 = vld [vmem:[%s15363_s1 + $0x52] sm:$0xff]  ;;  %1295 = vst.msk [vmem:[#allocation4 + $0x20] sm:$0xff] %vm97_vm0, %v1287_v42 }
 0x2ac   :  { %3187 = vst.msk [vmem:[#allocation3 + $0x108] sm:$0xff] %vm258_vm1, %v3146_v33  ;;  %3910 = vmatprep.mubr.bf16.mxu0 %v3289_v11  ;;  %v1288_v45 = vpack.c.bf16 %v8609_v61, %v8608_v8  ;;  %v8419_v21 = vld [vmem:[%s15363_s1 + $0x61] sm:$0xff] }
 0x2ad   :  { %3911 = vmatmul.mubr.bf16.gmra.mrb[124].mxu0 %v3288_v41  ;;  %v2571_v23 = vpop.permute.xlu1 %2570  ;;  %1179 = vrot.lane.b32.xlu0 %v12739_v29, %s10485_s15  ;;  %v3291_v60 = vld [vmem:[#allocation3 + $0xf0] sm:$0xff]  ;;  %v8475_v29 = vld [vmem:[%s15363_s1 + $0x102] sm:$0xff]  ;;  %v711_v40 = vpack.c.bf16 %v8419_v21, %v8418_v12 }
 0x2ae   :  { %2611 = vst.msk [vmem:[#allocation3 + $0x118] sm:$0xff] %vm258_vm1, %v2571_v23  ;;  %v426_v50 = vpack.c.bf16 %v12983_v31, %v8475_v29  ;;  %v8517_v41 = vld [vmem:[%s15363_s1 + $0x90] sm:$0xff]  ;;  %v8616_v42 = vld [vmem:[%s15363_s1 + $0xe2] sm:$0xff] }
 0x2af   :  { %v2763_v51 = vpop.permute.xlu0 %2762  ;;  %v3292_v58 = vld [vmem:[#allocation3 + $0xf8] sm:$0xff]  ;;  %891 = vrot.lane.b32.xlu1 %v872_v15, %s10485_s15  ;;  %1296 = vst.msk [vmem:[#allocation4 + $0x48] sm:$0xff] %vm97_vm0, %v1288_v45  ;;  %719 = vst.msk [vmem:[#allocation4 + $0x60] sm:$0xff] %vm97_vm0, %v711_v40  ;;  %v1002_v23 = vpack.c.bf16 %v8517_v41, %v8516_v36  ;;  %v8427_v21 = vld [vmem:[%s15363_s1 + $0x101] sm:$0xff] }
 0x2b0   :  { %2803 = vst.msk [vmem:[#allocation3 + $0x120] sm:$0xff] %vm258_vm1, %v2763_v51  ;;  %3757 = vmatprep.mubr.bf16.mxu1 %v3292_v58  ;;  %v8421_v51 = vld [vmem:[%s15363_s1 + $0x81] sm:$0xff] }
 0x2b1   :  { %v2955_v20 = vpop.permute.xlu1 %2954  ;;  %3758 = vmatmul.mubr.bf16.gmra.mrb[80].mxu1 %v3291_v60  ;;  %1181 = vrot.lane.b32.xlu0 %v1162_v19, %s10485_s15  ;;  %v3293_v46 = vld [vmem:[#allocation3 + $0x100] sm:$0xff]  ;;  %434 = vst.msk [vmem:[#allocation4 + $0x120] sm:$0xff] %vm97_vm0, %v426_v50  ;;  %v8420_v19 = vld [vmem:[%s15363_s1 + $0x71] sm:$0xff]  ;;  %1010 = vst.msk [vmem:[#allocation4 + $0x90] sm:$0xff] %vm97_vm0, %v1002_v23 }
 0x2b2   :  { %2995 = vst.msk [vmem:[#allocation3 + $0x128] sm:$0xff] %vm258_vm1, %v2955_v20  ;;  %v712_v60 = vpack.c.bf16 %v8421_v51, %v8420_v19  ;;  %v8524_v41 = vld [vmem:[%s15363_s1 + $0x120] sm:$0xff]  ;;  %v8525_v23 = vld [vmem:[%s15363_s1 + $0x130] sm:$0xff] }
 0x2b3   :  { %v3148_v55 = vpop.permute.xlu0 %3147  ;;  %v3294_v43 = vld [vmem:[#allocation3 + $0x108] sm:$0xff]  ;;  %893 = vrot.lane.b32.xlu1 %v873_v44, %s10485_s15 }
 0x2b4   :  { %3188 = vst.msk [vmem:[#allocation3 + $0x130] sm:$0xff] %vm258_vm1, %v3148_v55  ;;  %3918 = vmatprep.mubr.bf16.mxu0 %v3294_v43 }
 0x2b5   :  { %3919 = vmatmul.mubr.bf16.gmra.mrb[128].mxu0 %v3293_v46  ;;  %v2573_v37 = vpop.permute.xlu1 %2572  ;;  %1183 = vrot.lane.b32.xlu0 %v12810_v17, %s10485_s15  ;;  %v875_v17 = vpack.c.bf16 %v8475_v29, %v12950_v57  ;;  %v3296_v2 = vld [vmem:[#allocation3 + $0x118] sm:$0xff]  ;;  %720 = vst.msk [vmem:[#allocation4 + $0x88] sm:$0xff] %vm97_vm0, %v712_v60  ;;  %v8610_v46 = vld [vmem:[%s15363_s1 + $0x62] sm:$0xff] }
 0x2b6   :  { %2612 = vst.msk [vmem:[#allocation3 + $0x140] sm:$0xff] %vm258_vm1, %v2573_v37  ;;  %v8611_v37 = vld [vmem:[%s15363_s1 + $0x72] sm:$0xff] }
 0x2b7   :  { %v2765_v9 = vpop.permute.xlu0 %2764  ;;  %v3297_v32 = vld [vmem:[#allocation3 + $0x120] sm:$0xff]  ;;  %895 = vrot.lane.b32.xlu1 %v874_v6, %s10485_s15  ;;  %v1289_v25 = vpack.c.bf16 %v8611_v37, %v8610_v46  ;;  %v8428_v60 = vld [vmem:[%s15363_s1 + $0x111] sm:$0xff] }
 0x2b8   :  { %2804 = vst.msk [vmem:[#allocation3 + $0x148] sm:$0xff] %vm258_vm1, %v2765_v9  ;;  %3765 = vmatprep.mubr.bf16.mxu1 %v3297_v32  ;;  %v8613_v9 = vld [vmem:[%s15363_s1 + $0x92] sm:$0xff] }
 0x2b9   :  { %v2957_v3 = vpop.permute.xlu1 %2956  ;;  %3766 = vmatmul.mubr.bf16.gmra.mrb[84].mxu1 %v3296_v2  ;;  %1185 = vrot.lane.b32.xlu0 %v12838_v53, %s10485_s15  ;;  %v3298_v53 = vld [vmem:[#allocation3 + $0x128] sm:$0xff]  ;;  %1297 = vst.msk [vmem:[#allocation4 + $0x70] sm:$0xff] %vm97_vm0, %v1289_v25  ;;  %v1290_v2 = vpack.c.bf16 %v8613_v9, %v8612_v56  ;;  %v3265_v25 = vld [vmem:[#allocation3 + $0x20] sm:$0xff] }
 0x2ba   :  { %2996 = vst.msk [vmem:[#allocation3 + $0x150] sm:$0xff] %vm258_vm1, %v2957_v3 }
 0x2bb   :  { %v3150_v48 = vpop.permute.xlu0 %3149  ;;  %v3299_v16 = vld [vmem:[#allocation3 + $0x130] sm:$0xff]  ;;  %897 = vrot.lane.b32.xlu1 %v875_v17, %s10485_s15  ;;  %1298 = vst.msk [vmem:[#allocation4 + $0x98] sm:$0xff] %vm97_vm0, %v1290_v2 }
 0x2bc   :  { %3189 = vst.msk [vmem:[#allocation3 + $0x158] sm:$0xff] %vm258_vm1, %v3150_v48  ;;  %3926 = vmatprep.mubr.bf16.mxu0 %v3299_v16  ;;  %v8423_v48 = vld [vmem:[%s15363_s1 + $0xc1] sm:$0xff] }
 0x2bd   :  { %3927 = vmatmul.mubr.bf16.gmra.mrb[132].mxu0 %v3298_v53  ;;  %v2575_v30 = vpop.permute.xlu1 %2574  ;;  %1187 = vrot.lane.b32.xlu0 %v12877_v59, %s10485_s15  ;;  %v3301_v59 = vld [vmem:[#allocation3 + $0x140] sm:$0xff] }
 0x2be   :  { %2613 = vst.msk [vmem:[#allocation3 + $0x168] sm:$0xff] %vm258_vm1, %v2575_v30 }
 0x2bf   :  { %v2767_v39 = vpop.permute.xlu0 %2766  ;;  %v3302_v10 = vld [vmem:[#allocation3 + $0x148] sm:$0xff]  ;;  %899 = vrot.lane.b32.xlu1 %v876_v4, %s10485_s15  ;;  %v713_v4 = vpack.c.bf16 %v8423_v48, %v8422_v0 }
 0x2c0   :  { %2805 = vst.msk [vmem:[#allocation3 + $0x170] sm:$0xff] %vm258_vm1, %v2767_v39  ;;  %3773 = vmatprep.mubr.bf16.mxu1 %v3302_v10  ;;  %v8424_v10 = vld [vmem:[%s15363_s1 + $0xd1] sm:$0xff]  ;;  %v3270_v48 = vld [vmem:[#allocation3 + $0x48] sm:$0xff] }
 0x2c1   :  { %v2959_v1 = vpop.permute.xlu1 %2958  ;;  %3774 = vmatmul.mubr.bf16.gmra.mrb[88].mxu1 %v3301_v59  ;;  %1189 = vrot.lane.b32.xlu0 %v1166_v26, %s10485_s15  ;;  %v3303_v28 = vld [vmem:[#allocation3 + $0x150] sm:$0xff]  ;;  %721 = vst.msk [vmem:[#allocation4 + $0xb0] sm:$0xff] %vm97_vm0, %v713_v4  ;;  %v8425_v59 = vld [vmem:[%s15363_s1 + $0xe1] sm:$0xff] }
 0x2c2   :  { %2997 = vst.msk [vmem:[#allocation3 + $0x178] sm:$0xff] %vm258_vm1, %v2959_v1  ;;  %v714_v13 = vpack.c.bf16 %v8425_v59, %v8424_v10  ;;  %v10233_v10 = vld [vmem:[%s15362_s7 + $0x90] sm:$0xff]   ;;  %v10235_v59 = vld [vmem:[%s15362_s7 + $0xd8] sm:$0xff]  }
 0x2c3   :  { %v3152_v34 = vpop.permute.xlu0 %3151  ;;  %v3304_v7 = vld [vmem:[#allocation3 + $0x158] sm:$0xff] }
 0x2c4   :  { %3190 = vst.msk [vmem:[#allocation3 + $0x180] sm:$0xff] %vm258_vm1, %v3152_v34  ;;  %3934 = vmatprep.mubr.bf16.mxu0 %v3304_v7  ;;  %v1291_v34 = vpack.c.bf16 %v12910_v35, %v8614_v49  ;;  %v1292_v7 = vpack.c.bf16 %v12950_v57, %v8616_v42  ;;  %v8426_v57 = vld [vmem:[%s15363_s1 + $0xf1] sm:$0xff]  ;;  %v3285_v49 = vld [vmem:[#allocation3 + $0xc0] sm:$0xff] }
 0x2c5   :  { %3935 = vmatmul.mubr.bf16.gmra.mrb[136].mxu0 %v3303_v28  ;;  %v2577_v47 = vpop.permute.xlu1 %2576  ;;  %v3306_v11 = vld [vmem:[#allocation3 + $0x168] sm:$0xff]  ;;  %722 = vst.msk [vmem:[#allocation4 + $0xd8] sm:$0xff] %vm97_vm0, %v714_v13  ;;  %v3280_v13 = vld [vmem:[#allocation3 + $0x98] sm:$0xff] }
 0x2c6   :  { %2614 = vst.msk [vmem:[#allocation3 + $0x190] sm:$0xff] %vm258_vm1, %v2577_v47 }
 0x2c7   :  { %v2769_v22 = vpop.permute.xlu0 %2768  ;;  %v3307_v33 = vld [vmem:[#allocation3 + $0x170] sm:$0xff]  ;;  %1299 = vst.msk [vmem:[#allocation4 + $0xc0] sm:$0xff] %vm97_vm0, %v1291_v34  ;;  %1300 = vst.msk [vmem:[#allocation4 + $0xe8] sm:$0xff] %vm97_vm0, %v1292_v7  ;;  %v10237_v7 = vld [vmem:[%s15362_s7 + $0xe0] sm:$0xff]  }
 0x2c8   :  { %2806 = vst.msk [vmem:[#allocation3 + $0x198] sm:$0xff] %vm258_vm1, %v2769_v22  ;;  %3781 = vmatprep.mubr.bf16.mxu1 %v3307_v33  ;;  %v715_v22 = vpack.c.bf16 %v8427_v21, %v8426_v57  ;;  %v3290_v21 = vld [vmem:[#allocation3 + $0xe8] sm:$0xff] }
 0x2c9   :  { %v2961_v15 = vpop.permute.xlu1 %2960  ;;  %3782 = vmatmul.mubr.bf16.gmra.mrb[92].mxu1 %v3306_v11  ;;  %v3308_v20 = vld [vmem:[#allocation3 + $0x178] sm:$0xff] }
 0x2ca   :  { %2998 = vst.msk [vmem:[#allocation3 + $0x1a0] sm:$0xff] %vm258_vm1, %v2961_v15 }
 0x2cb   :  { %v3154_v58 = vpop.permute.xlu0 %3153  ;;  %v3309_v44 = vld [vmem:[#allocation3 + $0x180] sm:$0xff]  ;;  %723 = vst.msk [vmem:[#allocation4 + $0x100] sm:$0xff] %vm97_vm0, %v715_v22 }
 0x2cc   :  { %3191 = vst.msk [vmem:[#allocation3 + $0x1a8] sm:$0xff] %vm258_vm1, %v3154_v58  ;;  %3942 = vmatprep.mubr.bf16.mxu0 %v3309_v44  ;;  %v1006_v58 = vpack.c.bf16 %v8525_v23, %v8524_v41 }
 0x2cd   :  { %3943 = vmatmul.mubr.bf16.gmra.mrb[140].mxu0 %v3308_v20  ;;  %v2579_v29 = vpop.permute.xlu1 %2578  ;;  %v3311_v63 = vld [vmem:[#allocation3 + $0x190] sm:$0xff] }
 0x2ce   :  { %2615 = vst.msk [vmem:[#allocation3 + $0x1b8] sm:$0xff] %vm258_vm1, %v2579_v29  ;;  %v716_v29 = vpack.c.bf16 %v13023_v5, %v8428_v60  ;;  %v8621_v5 = vld [vmem:[%s15363_s1 + $0x132] sm:$0xff]  ;;  %v3305_v60 = vld [vmem:[#allocation3 + $0x160] sm:$0xff] }
 0x2cf   :  { %v2771_v50 = vpop.permute.xlu0 %2770  ;;  %v3312_v14 = vld [vmem:[#allocation3 + $0x198] sm:$0xff]  ;;  %1014 = vst.msk [vmem:[#allocation4 + $0x130] sm:$0xff] %vm97_vm0, %v1006_v58  ;;  %v1294_v37 = vpack.c.bf16 %v8621_v5, %v13014_v54  ;;  %v3315_v5 = vld [vmem:[#allocation3 + $0x1b0] sm:$0xff] }
 0x2d0   :  { %2807 = vst.msk [vmem:[#allocation3 + $0x1c0] sm:$0xff] %vm258_vm1, %v2771_v50  ;;  %3789 = vmatprep.mubr.bf16.mxu1 %v3312_v14  ;;  %v10245_v58 = vld [vmem:[%s15362_s7 + $0xf8] sm:$0xff]  }
 0x2d1   :  { %v2963_v55 = vpop.permute.xlu1 %2962  ;;  %3790 = vmatmul.mubr.bf16.gmra.mrb[96].mxu1 %v3311_v63  ;;  %v3313_v62 = vld [vmem:[#allocation3 + $0x1a0] sm:$0xff]  ;;  %724 = vst.msk [vmem:[#allocation4 + $0x128] sm:$0xff] %vm97_vm0, %v716_v29  ;;  %1302 = vst.msk [vmem:[#allocation4 + $0x138] sm:$0xff] %vm97_vm0, %v1294_v37 }
 0x2d2   :  { %2999 = vst.msk [vmem:[#allocation3 + $0x1c8] sm:$0xff] %vm258_vm1, %v2963_v55  ;;  %v8618_v55 = vld [vmem:[%s15363_s1 + $0x102] sm:$0xff] }
 0x2d3   :  { %v3156_v43 = vpop.permute.xlu0 %3155  ;;  %v3314_v6 = vld [vmem:[#allocation3 + $0x1a8] sm:$0xff] }
 0x2d4   :  { %3192 = vst.msk [vmem:[#allocation3 + $0x1d0] sm:$0xff] %vm258_vm1, %v3156_v43  ;;  %3950 = vmatprep.mubr.bf16.mxu0 %v3314_v6  ;;  %v1293_v6 = vpack.c.bf16 %v12983_v31, %v8618_v55 }
 0x2d5   :  { %3951 = vmatmul.mubr.bf16.gmra.mrb[144].mxu0 %v3313_v62  ;;  %v2581_v24 = vpop.permute.xlu1 %2580  ;;  %v3316_v3 = vld [vmem:[#allocation3 + $0x1b8] sm:$0xff] }
 0x2d6   :  { %2616 = vst.msk [vmem:[#allocation3 + $0x1e0] sm:$0xff] %vm258_vm1, %v2581_v24 }
 0x2d7   :  { %v2773_v32 = vpop.permute.xlu0 %2772  ;;  %v3317_v17 = vld [vmem:[#allocation3 + $0x1c0] sm:$0xff]  ;;  %1301 = vst.msk [vmem:[#allocation4 + $0x110] sm:$0xff] %vm97_vm0, %v1293_v6  ;;  %v3310_v6 = vld [vmem:[#allocation3 + $0x188] sm:$0xff] }
 0x2d8   :  { %2808 = vst.msk [vmem:[#allocation3 + $0x1e8] sm:$0xff] %vm258_vm1, %v2773_v32  ;;  %3797 = vmatprep.mubr.bf16.mxu1 %v3317_v17  ;;  %v10228_v17 = vld [vmem:[%s15362_s7 + $0x80] sm:$0xff]  }
 0x2d9   :  { %v2965_v16 = vpop.permute.xlu1 %2964  ;;  %3798 = vmatmul.mubr.bf16.gmra.mrb[100].mxu1 %v3316_v3  ;;  %v3318_v26 = vld [vmem:[#allocation3 + $0x1c8] sm:$0xff] }
 0x2da   :  { %3000 = vst.msk [vmem:[#allocation3 + $0x1f0] sm:$0xff] %vm258_vm1, %v2965_v16  ;;  %v10230_v3 = vld [vmem:[%s15362_s7 + $0xc8] sm:$0xff]   ;;  %v3275_v16 = vld [vmem:[#allocation3 + $0x70] sm:$0xff] }
 0x2db   :  { %v3158_v53 = vpop.permute.xlu0 %3157  ;;  %v3319_v30 = vld [vmem:[#allocation3 + $0x1d0] sm:$0xff] }
 0x2dc   :  { %3193 = vst.msk [vmem:[#allocation3 + $0x1f8] sm:$0xff] %vm258_vm1, %v3158_v53  ;;  %3958 = vmatprep.mubr.bf16.mxu0 %v3319_v30  ;;  %v10231_v30 = vld [vmem:[%s15362_s7 + $0x88] sm:$0xff]  }
 0x2dd   :  { %3959 = vmatmul.mubr.bf16.gmra.mrb[148].mxu0 %v3318_v26  ;;  %v2583_v27 = vpop.permute.xlu1 %2582  ;;  %v3321_v39 = vld [vmem:[#allocation3 + $0x1e0] sm:$0xff]  ;;  %v10232_v26 = vld [vmem:[%s15362_s7 + $0xd0] sm:$0xff]  }
 0x2de   :  { %2617 = vst.msk [vmem:[#allocation3 + $0x208] sm:$0xff] %vm258_vm1, %v2583_v27 }
 0x2df   :  { %v2775_v18 = vpop.permute.xlu0 %2774  ;;  %v3322_v52 = vld [vmem:[#allocation3 + $0x1e8] sm:$0xff] }
 0x2e0   :  { %2809 = vst.msk [vmem:[#allocation3 + $0x210] sm:$0xff] %vm258_vm1, %v2775_v18  ;;  %3805 = vmatprep.mubr.bf16.mxu1 %v3322_v52  ;;  %v10234_v52 = vld [vmem:[%s15362_s7 + $0x108] sm:$0xff]  }
 0x2e1   :  { %v2967_v1 = vpop.permute.xlu1 %2966  ;;  %3806 = vmatmul.mubr.bf16.gmra.mrb[104].mxu1 %v3321_v39  ;;  %v3323_v45 = vld [vmem:[#allocation3 + $0x1f0] sm:$0xff] }
 0x2e2   :  { %3001 = vst.msk [vmem:[#allocation3 + $0x218] sm:$0xff] %vm258_vm1, %v2967_v1 }
 0x2e3   :  { %v3160_v8 = vpop.permute.xlu0 %3159  ;;  %v3324_v61 = vld [vmem:[#allocation3 + $0x1f8] sm:$0xff] }
 0x2e4   :  { %3194 = vst.msk [vmem:[#allocation3 + $0x220] sm:$0xff] %vm258_vm1, %v3160_v8  ;;  %3966 = vmatprep.mubr.bf16.mxu0 %v3324_v61  ;;  %v10236_v61 = vld [vmem:[%s15362_s7 + $0x98] sm:$0xff]  }
 0x2e5   :  { %3967 = vmatmul.mubr.bf16.gmra.mrb[152].mxu0 %v3323_v45  ;;  %v2585_v28 = vpop.permute.xlu1 %2584  ;;  %v3326_v35 = vld [vmem:[#allocation3 + $0x208] sm:$0xff] }
 0x2e6   :  { %2618 = vst.msk [vmem:[#allocation3 + $0x230] sm:$0xff] %vm258_vm1, %v2585_v28  ;;  %v10244_v28 = vld [vmem:[%s15362_s7 + $0x118] sm:$0xff]  }
 0x2e7   :  { %v2777_v47 = vpop.permute.xlu0 %2776  ;;  %v3327_v12 = vld [vmem:[#allocation3 + $0x210] sm:$0xff] }
 0x2e8   :  { %2810 = vst.msk [vmem:[#allocation3 + $0x238] sm:$0xff] %vm258_vm1, %v2777_v47  ;;  %3813 = vmatprep.mubr.bf16.mxu1 %v3327_v12  ;;  %v10238_v12 = vld [vmem:[%s15362_s7 + $0xa0] sm:$0xff]  }
 0x2e9   :  { %v2969_v40 = vpop.permute.xlu1 %2968  ;;  %3814 = vmatmul.mubr.bf16.gmra.mrb[108].mxu1 %v3326_v35  ;;  %v3328_v15 = vld [vmem:[#allocation3 + $0x218] sm:$0xff]  ;;  %v10240_v35 = vld [vmem:[%s15362_s7 + $0xe8] sm:$0xff]  }
 0x2ea   :  { %3002 = vst.msk [vmem:[#allocation3 + $0x240] sm:$0xff] %vm258_vm1, %v2969_v40  ;;  %v3295_v40 = vld [vmem:[#allocation3 + $0x110] sm:$0xff] }
 0x2eb   :  { %v3162_v33 = vpop.permute.xlu0 %3161  ;;  %v3329_v11 = vld [vmem:[#allocation3 + $0x220] sm:$0xff] }
 0x2ec   :  { %3195 = vst.msk [vmem:[#allocation3 + $0x248] sm:$0xff] %vm258_vm1, %v3162_v33  ;;  %3974 = vmatprep.mubr.bf16.mxu0 %v3329_v11  ;;  %v10241_v11 = vld [vmem:[%s15362_s7 + $0xa8] sm:$0xff]  }
 0x2ed   :  { %3975 = vmatmul.mubr.bf16.gmra.mrb[156].mxu0 %v3328_v15  ;;  %v2587_v36 = vpop.permute.xlu1 %2586  ;;  %v3331_v44 = vld [vmem:[#allocation3 + $0x230] sm:$0xff] }
 0x2ee   :  { %2619 = vst.msk [vmem:[#allocation3 + $0x258] sm:$0xff] %vm258_vm1, %v2587_v36  ;;  %v10242_v36 = vld [vmem:[%s15362_s7 + $0xf0] sm:$0xff]  }
 0x2ef   :  { %v2779_v19 = vpop.permute.xlu0 %2778  ;;  %v3332_v51 = vld [vmem:[#allocation3 + $0x238] sm:$0xff] }
 0x2f0   :  { %2811 = vst.msk [vmem:[#allocation3 + $0x260] sm:$0xff] %vm258_vm1, %v2779_v19  ;;  %3821 = vmatprep.mubr.bf16.mxu1 %v3332_v51  ;;  %v10243_v19 = vld [vmem:[%s15362_s7 + $0xb0] sm:$0xff]  }
 0x2f1   :  { %v2971_v20 = vpop.permute.xlu1 %2970  ;;  %3822 = vmatmul.mubr.bf16.gmra.mrb[112].mxu1 %v3331_v44  ;;  %v3333_v63 = vld [vmem:[#allocation3 + $0x240] sm:$0xff]  ;;  %v3300_v44 = vld [vmem:[#allocation3 + $0x138] sm:$0xff] }
 0x2f2   :  { %3003 = vst.msk [vmem:[#allocation3 + $0x268] sm:$0xff] %vm258_vm1, %v2971_v20 }
 0x2f3   :  { %v3164_v50 = vpop.permute.xlu0 %3163  ;;  %v3334_v14 = vld [vmem:[#allocation3 + $0x248] sm:$0xff] }
 0x2f4   :  { %3196 = vst.msk [vmem:[#allocation3 + $0x270] sm:$0xff] %vm258_vm1, %v3164_v50  ;;  %3982 = vmatprep.mubr.bf16.mxu0 %v3334_v14  ;;  %v10246_v50 = vld [vmem:[%s15362_s7 + $0xb8] sm:$0xff]  }
 0x2f5   :  { %3983 = vmatmul.mubr.bf16.gmra.mrb[160].mxu0 %v3333_v63  ;;  %v308_v43 = vpop.permute.xlu1 %307  ;;  %v3336_v24 = vld [vmem:[#allocation3 + $0x258] sm:$0xff] }
 0x2f6   :  { %331 = vst.msk [vmem:[#allocation4] sm:$0xff] %vm258_vm1, %v308_v43 }
 0x2f7   :  { %v3337_v62 = vld [vmem:[#allocation3 + $0x260] sm:$0xff]  ;;  %v598_v46 = vpop.permute.xlu0 %597 }
 0x2f8   :  { %3829 = vmatprep.mubr.bf16.mxu1 %v3337_v62  ;;  %621 = vst.msk [vmem:[#allocation4 + $0x8] sm:$0xff] %vm258_vm1, %v598_v46 }
 0x2f9   :  { %3830 = vmatmul.mubr.bf16.gmra.mrb[116].mxu1 %v3336_v24  ;;  %v310_v56 = vpop.permute.xlu1 %309  ;;  %v3338_v32 = vld [vmem:[#allocation3 + $0x268] sm:$0xff] }
 0x2fa   :  { %10064 = vmatprep.mubr.msk.bf16.mxu1 %vm97_vm0, %v3265_v25  ;;  %332 = vst.msk [vmem:[#allocation4 + $0x28] sm:$0xff] %vm258_vm1, %v310_v56 }
 0x2fb   :  { %v3339_v31 = vld [vmem:[#allocation3 + $0x270] sm:$0xff]  ;;  %v600_v9 = vpop.permute.xlu0 %599 }
 0x2fc   :  { %3990 = vmatprep.mubr.bf16.mxu0 %v3339_v31  ;;  %622 = vst.msk [vmem:[#allocation4 + $0x30] sm:$0xff] %vm258_vm1, %v600_v9  ;;  %v3320_v31 = vld [vmem:[#allocation3 + $0x1d8] sm:$0xff]  ;;  %v3325_v9 = vld [vmem:[#allocation3 + $0x200] sm:$0xff] }
 0x2fd   :  { %3991 = vmatmul.mubr.bf16.gmra.mrb[164].mxu0 %v3338_v32  ;;  %v312_v54 = vpop.permute.xlu1 %311  ;;  %v4160_v53 = vld [vmem:[#allocation4] sm:$0xff] }
 0x2fe   :  { %333 = vst.msk [vmem:[#allocation4 + $0x50] sm:$0xff] %vm258_vm1, %v312_v54 }
 0x2ff   :  { %v4161_v2 = vld [vmem:[#allocation4 + $0x8] sm:$0xff]  ;;  %v602_v0 = vpop.permute.xlu0 %601 }
 0x300   :  { %4544 = vmatprep.mubr.bf16.mxu0 %v4161_v2  ;;  %623 = vst.msk [vmem:[#allocation4 + $0x58] sm:$0xff] %vm258_vm1, %v602_v0 }
 0x301   :  { %10065 = vmatmul.mubr.msk.bf16.vlgmr.msra.gmra.mrb[120].mxu1 %vm97_vm0, %v3270_v48  ;;  %v314_v4 = vpop.permute.xlu1 %313  ;;  %v4165_v8 = vld [vmem:[#allocation4 + $0x28] sm:$0xff] }
 0x302   :  { %9557 = vmatpush3.bf16.msra.mxu1 %v10228_v17  ;;  %10068 = vmatprep.mubr.msk.bf16.mxu1 %vm97_vm0, %v3275_v16  ;;  %334 = vst.msk [vmem:[#allocation4 + $0x78] sm:$0xff] %vm258_vm1, %v314_v4  ;;  %v3330_v48 = vld [vmem:[#allocation3 + $0x228] sm:$0xff]  ;;  %v3335_v16 = vld [vmem:[#allocation3 + $0x250] sm:$0xff] }
 0x303   :  { %9558 = vmatprep.subr.bf16.mxu1 %v10230_v3  ;;  %v604_v27 = vpop.permute.xlu0 %603  ;;  %v4166_v18 = vld [vmem:[#allocation4 + $0x30] sm:$0xff] }
 0x304   :  { %624 = vst.msk [vmem:[#allocation4 + $0x80] sm:$0xff] %vm258_vm1, %v604_v27 }
 0x305   :  { %4545 = vmatmul.mubr.bf16.vlgmr.msra.gmra.mrb[168].mxu0 %v4160_v53  ;;  %v316_v39 = vpop.permute.xlu1 %315  ;;  %v4170_v33 = vld [vmem:[#allocation4 + $0x50] sm:$0xff] }
 0x306   :  { %10097 = vmatpush3.bf16.msra.mxu0 %v12898_v38  ;;  %9559 = vmatpush3.bf16.msra.mxu1 %v10231_v30  ;;  %335 = vst.msk [vmem:[#allocation4 + $0xa0] sm:$0xff] %vm258_vm1, %v316_v39  ;;  %v10239_v38 = vld [vmem:[%s15362_s7 + $0x110] sm:$0xff]   ;;  %v4164_v39 = vld [vmem:[#allocation4 + $0x20] sm:$0xff] }
 0x307   :  { %4552 = vmatprep.mubr.bf16.mxu0 %v4166_v18  ;;  %9560 = vmatprep.subr.bf16.mxu1 %v10232_v26  ;;  %v606_v1 = vpop.permute.xlu0 %605  ;;  %v4171_v34 = vld [vmem:[#allocation4 + $0x58] sm:$0xff] }
 0x308   :  { %10098 = vmatprep.subr.bf16.mxu0 %v10234_v52  ;;  %625 = vst.msk [vmem:[#allocation4 + $0xa8] sm:$0xff] %vm258_vm1, %v606_v1  ;;  %v3340_v18 = vld [vmem:[#allocation3 + $0x278] sm:$0xff]  ;;  %v4169_v1 = vld [vmem:[#allocation4 + $0x48] sm:$0xff] }
 0x309   :  { %10069 = vmatmul.mubr.msk.bf16.gmra.mrb[124].mxu1 %vm97_vm0, %v3280_v13  ;;  %v318_v42 = vpop.permute.xlu1 %317  ;;  %v4175_v29 = vld [vmem:[#allocation4 + $0x78] sm:$0xff]  ;;  %v4174_v13 = vld [vmem:[#allocation4 + $0x70] sm:$0xff] }
 0x30a   :  { %10072 = vmatprep.mubr.msk.bf16.mxu1 %vm97_vm0, %v3285_v49  ;;  %9561 = vmatpush3.bf16.msra.mxu1 %v10233_v10  ;;  %336 = vst.msk [vmem:[#allocation4 + $0xc8] sm:$0xff] %vm258_vm1, %v318_v42  ;;  %v4179_v42 = vld [vmem:[#allocation4 + $0x98] sm:$0xff] }
 0x30b   :  { %10099 = vmatpush3.bf16.msra.mxu0 %v10234_v52  ;;  %9562 = vmatprep.subr.bf16.mxu1 %v10235_v59  ;;  %v608_v45 = vpop.permute.xlu0 %607  ;;  %v4176_v15 = vld [vmem:[#allocation4 + $0x80] sm:$0xff] }
 0x30c   :  { %626 = vst.msk [vmem:[#allocation4 + $0xd0] sm:$0xff] %vm258_vm1, %v608_v45  ;;  %10100 = vmatprep.subr.bf16.mxu0 %v10239_v38  ;;  %v4194_v45 = vld [vmem:[#allocation4 + $0x110] sm:$0xff] }
 0x30d   :  { %4553 = vmatmul.mubr.bf16.gmra.mrb[172].mxu0 %v4165_v8  ;;  %v320_v47 = vpop.permute.xlu1 %319  ;;  %v4180_v46 = vld [vmem:[#allocation4 + $0xa0] sm:$0xff] }
 0x30e   :  { %4560 = vmatprep.mubr.bf16.mxu0 %v4171_v34  ;;  %9563 = vmatpush3.bf16.msra.mxu1 %v10236_v61  ;;  %337 = vst.msk [vmem:[#allocation4 + $0xf0] sm:$0xff] %vm258_vm1, %v320_v47  ;;  %v4184_v8 = vld [vmem:[#allocation4 + $0xc0] sm:$0xff] }
 0x30f   :  { %9564 = vmatprep.subr.bf16.mxu1 %v10237_v7  ;;  %10101 = vmatpush3.bf16.msra.mxu0 %v10239_v38  ;;  %v610_v57 = vpop.permute.xlu0 %609  ;;  %v4181_v14 = vld [vmem:[#allocation4 + $0xa8] sm:$0xff] }
 0x310   :  { %627 = vst.msk [vmem:[#allocation4 + $0xf8] sm:$0xff] %vm258_vm1, %v610_v57  ;;  %10102 = vmatprep.subr.bf16.mxu0 %v10244_v28  ;;  %v4189_v7 = vld [vmem:[#allocation4 + $0xe8] sm:$0xff] }
 0x311   :  { %10073 = vmatmul.mubr.msk.bf16.gmra.mrb[128].mxu1 %vm97_vm0, %v3290_v21  ;;  %v322_v22 = vpop.permute.xlu1 %321  ;;  %v4185_v54 = vld [vmem:[#allocation4 + $0xc8] sm:$0xff] }
 0x312   :  { %10076 = vmatprep.mubr.msk.bf16.mxu1 %vm97_vm0, %v3295_v40  ;;  %9565 = vmatpush3.bf16.msra.mxu1 %v10238_v12  ;;  %338 = vst.msk [vmem:[#allocation4 + $0x118] sm:$0xff] %vm258_vm1, %v322_v22 }
 0x313   :  { %9566 = vmatprep.subr.bf16.mxu1 %v10240_v35  ;;  %v612_v41 = vpop.permute.xlu0 %611  ;;  %10103 = vmatpush3.bf16.msra.mxu0 %v10244_v28  ;;  %v4186_v37 = vld [vmem:[#allocation4 + $0xd0] sm:$0xff] }
 0x314   :  { %628 = vst.msk [vmem:[#allocation4 + $0x120] sm:$0xff] %vm258_vm1, %v612_v41  ;;  %v4199_v41 = vld [vmem:[#allocation4 + $0x138] sm:$0xff] }
 0x315   :  { %4561 = vmatmul.mubr.bf16.gmra.mrb[176].mxu0 %v4170_v33  ;;  %v886_v23 = vpop.permute.xlu1 %885  ;;  %v4190_v53 = vld [vmem:[#allocation4 + $0xf0] sm:$0xff] }
 0x316   :  { %4568 = vmatprep.mubr.bf16.mxu0 %v4176_v15  ;;  %9567 = vmatpush3.bf16.msra.mxu1 %v10241_v11  ;;  %909 = vst.msk [vmem:[#allocation4 + $0x10] sm:$0xff] %vm258_vm1, %v886_v23 }
 0x317   :  { %9568 = vmatprep.subr.bf16.mxu1 %v10242_v36  ;;  %v1176_v51 = vpop.permute.xlu0 %1175  ;;  %v4191_v17 = vld [vmem:[#allocation4 + $0xf8] sm:$0xff] }
 0x318   :  { %1199 = vst.msk [vmem:[#allocation4 + $0x18] sm:$0xff] %vm258_vm1, %v1176_v51 }
 0x319   :  { %10077 = vmatmul.mubr.msk.bf16.gmra.mrb[132].mxu1 %vm97_vm0, %v3300_v44  ;;  %v888_v20 = vpop.permute.xlu1 %887  ;;  %v4195_v52 = vld [vmem:[#allocation4 + $0x118] sm:$0xff] }
 0x31a   :  { %10080 = vmatprep.mubr.msk.bf16.mxu1 %vm97_vm0, %v3305_v60  ;;  %9569 = vmatpush3.bf16.msra.mxu1 %v10243_v19  ;;  %910 = vst.msk [vmem:[#allocation4 + $0x38] sm:$0xff] %vm258_vm1, %v888_v20 }
 0x31b   :  { %9570 = vmatprep.subr.bf16.mxu1 %v10245_v58  ;;  %v1178_v63 = vpop.permute.xlu0 %1177  ;;  %v4196_v30 = vld [vmem:[#allocation4 + $0x120] sm:$0xff] }
 0x31c   :  { %1200 = vst.msk [vmem:[#allocation4 + $0x40] sm:$0xff] %vm258_vm1, %v1178_v63 }
 0x31d   :  { %4569 = vmatmul.mubr.bf16.gmra.mrb[180].mxu0 %v4175_v29  ;;  %v890_v55 = vpop.permute.xlu1 %889  ;;  %v4162_v10 = vld [vmem:[#allocation4 + $0x10] sm:$0xff] }
 0x31e   :  { %4576 = vmatprep.mubr.bf16.mxu0 %v4181_v14  ;;  %9571 = vmatpush3.bf16.msra.mxu1 %v10246_v50  ;;  %911 = vst.msk [vmem:[#allocation4 + $0x60] sm:$0xff] %vm258_vm1, %v890_v55 }
 0x31f   :  { %v1180_v43 = vpop.permute.xlu0 %1179  ;;  %v4163_v27 = vld [vmem:[#allocation4 + $0x18] sm:$0xff] }
 0x320   :  { %1201 = vst.msk [vmem:[#allocation4 + $0x68] sm:$0xff] %vm258_vm1, %v1180_v43 }
 0x321   :  { %10081 = vmatmul.mubr.msk.bf16.gmra.mrb[136].mxu1 %vm97_vm0, %v3310_v6  ;;  %v892_v62 = vpop.permute.xlu1 %891  ;;  %v4167_v38 = vld [vmem:[#allocation4 + $0x38] sm:$0xff] }
 0x322   :  { %10084 = vmatprep.mubr.msk.bf16.mxu1 %vm97_vm0, %v3315_v5  ;;  %912 = vst.msk [vmem:[#allocation4 + $0x88] sm:$0xff] %vm258_vm1, %v892_v62 }
 0x323   :  { %v1182_v24 = vpop.permute.xlu0 %1181  ;;  %v4168_v59 = vld [vmem:[#allocation4 + $0x40] sm:$0xff] }
 0x324   :  { %1202 = vst.msk [vmem:[#allocation4 + $0x90] sm:$0xff] %vm258_vm1, %v1182_v24 }
 0x325   :  { %4577 = vmatmul.mubr.bf16.gmra.mrb[184].mxu0 %v4180_v46  ;;  %v894_v25 = vpop.permute.xlu1 %893  ;;  %v4172_v61 = vld [vmem:[#allocation4 + $0x60] sm:$0xff] }
 0x326   :  { %4584 = vmatprep.mubr.bf16.mxu0 %v4186_v37  ;;  %913 = vst.msk [vmem:[#allocation4 + $0xb0] sm:$0xff] %vm258_vm1, %v894_v25 }
 0x327   :  { %v1184_v56 = vpop.permute.xlu0 %1183  ;;  %v4173_v49 = vld [vmem:[#allocation4 + $0x68] sm:$0xff] }
 0x328   :  { %1203 = vst.msk [vmem:[#allocation4 + $0xb8] sm:$0xff] %vm258_vm1, %v1184_v56 }
 0x329   :  { %10085 = vmatmul.mubr.msk.bf16.gmra.mrb[140].mxu1 %vm97_vm0, %v3320_v31  ;;  %v896_v32 = vpop.permute.xlu1 %895  ;;  %v4177_v57 = vld [vmem:[#allocation4 + $0x88] sm:$0xff] }
 0x32a   :  { %10088 = vmatprep.mubr.msk.bf16.mxu1 %vm97_vm0, %v3325_v9  ;;  %914 = vst.msk [vmem:[#allocation4 + $0xd8] sm:$0xff] %vm258_vm1, %v896_v32 }
 0x32b   :  { %v1186_v2 = vpop.permute.xlu0 %1185  ;;  %v4178_v34 = vld [vmem:[#allocation4 + $0x90] sm:$0xff] }
 0x32c   :  { %1204 = vst.msk [vmem:[#allocation4 + $0xe0] sm:$0xff] %vm258_vm1, %v1186_v2 }
 0x32d   :  { %4585 = vmatmul.mubr.bf16.gmra.mrb[188].mxu0 %v4185_v54  ;;  %v898_v3 = vpop.permute.xlu1 %897  ;;  %v4182_v29 = vld [vmem:[#allocation4 + $0xb0] sm:$0xff] }
 0x32e   :  { %4592 = vmatprep.mubr.bf16.mxu0 %v4191_v17  ;;  %915 = vst.msk [vmem:[#allocation4 + $0x100] sm:$0xff] %vm258_vm1, %v898_v3 }
 0x32f   :  { %v1188_v0 = vpop.permute.xlu0 %1187  ;;  %v4183_v40 = vld [vmem:[#allocation4 + $0xb8] sm:$0xff] }
 0x330   :  { %1205 = vst.msk [vmem:[#allocation4 + $0x108] sm:$0xff] %vm258_vm1, %v1188_v0 }
 0x331   :  { %10089 = vmatmul.mubr.msk.bf16.gmra.mrb[144].mxu1 %vm97_vm0, %v3330_v48  ;;  %v900_v4 = vpop.permute.xlu1 %899  ;;  %v4187_v32 = vld [vmem:[#allocation4 + $0xd8] sm:$0xff] }
 0x332   :  { %10092 = vmatprep.mubr.msk.bf16.mxu1 %vm97_vm0, %v3335_v16  ;;  %916 = vst.msk [vmem:[#allocation4 + $0x128] sm:$0xff] %vm258_vm1, %v900_v4 }
 0x333   :  { %v1190_v26 = vpop.permute.xlu0 %1189  ;;  %v4188_v63 = vld [vmem:[#allocation4 + $0xe0] sm:$0xff] }
 0x334   :  { %1206 = vst.msk [vmem:[#allocation4 + $0x130] sm:$0xff] %vm258_vm1, %v1190_v26 }
 0x335   :  { %4593 = vmatmul.mubr.bf16.gmra.mrb[192].mxu0 %v4190_v53 }
 0x336   :  { %4600 = vmatprep.mubr.bf16.mxu0 %v4196_v30 }
 0x337   :  { %v4193_v2 = vld [vmem:[#allocation4 + $0x108] sm:$0xff] }
 0x339   :  { %10093 = vmatmul.mubr.msk.bf16.gmra.mrb[148].mxu1 %vm97_vm0, %v3340_v18 }
 0x33a   :  { %4641 = vmatprep.mubr.bf16.mxu1 %v4163_v27 }
 0x33d   :  { %4601 = vmatmul.mubr.bf16.gmra.mrb[196].mxu0 %v4195_v52 }
 0x33e   :  { %10104 = vmatprep.mubr.msk.bf16.mxu0 %vm97_vm0, %v4164_v39 }
 0x341   :  { %4642 = vmatmul.mubr.bf16.vlgmr.msra.gmra.mrb[152].mxu1 %v4162_v10  ;;  %v4192_v10 = vld [vmem:[#allocation4 + $0x100] sm:$0xff] }
 0x342   :  { %4649 = vmatprep.mubr.bf16.mxu1 %v4168_v59 }
 0x345   :  { %10105 = vmatmul.mubr.msk.bf16.vlgmr.msra.gmra.mrb[200].mxu0 %vm97_vm0, %v4169_v1 }
 0x346   :  { %10108 = vmatprep.mubr.msk.bf16.mxu0 %vm97_vm0, %v4174_v13  ;;  %v4198_v13 = vld [vmem:[#allocation4 + $0x130] sm:$0xff] }
 0x349   :  { %4650 = vmatmul.mubr.bf16.gmra.mrb[156].mxu1 %v4167_v38 }
 0x34a   :  { %4657 = vmatprep.mubr.bf16.mxu1 %v4173_v49 }
 0x34d   :  { %10109 = vmatmul.mubr.msk.bf16.gmra.mrb[204].mxu0 %vm97_vm0, %v4179_v42 }
 0x34e   :  { %10112 = vmatprep.mubr.msk.bf16.mxu0 %vm97_vm0, %v4184_v8 }
 0x351   :  { %4658 = vmatmul.mubr.bf16.gmra.mrb[160].mxu1 %v4172_v61 }
 0x352   :  { %4665 = vmatprep.mubr.bf16.mxu1 %v4178_v34 }
 0x354   :  { %v9264_v28 = vpop.f32.mrb[56].mxu1 }
 0x355   :  { %v9265_v47 = vpop.f32.mrb[57].mxu1  ;;  %10113 = vmatmul.mubr.msk.bf16.gmra.mrb[208].mxu0 %vm97_vm0, %v4189_v7 }
 0x356   :  { %v9266_v12 = vadd.f32 %v9265_v47, %v9264_v28  ;;  %v9267_v35 = vpop.f32.mrb[58].mxu1  ;;  %10116 = vmatprep.mubr.msk.bf16.mxu0 %vm97_vm0, %v4194_v45 }
 0x357   :  { %v9268_v21 = vpop.f32.mrb[59].mxu1 }
 0x358   :  { %v9269_v22 = vadd.f32 %v9268_v21, %v9267_v35  ;;  %v9376_v33 = vpop.f32.mrb[104].mxu0 }
 0x359   :  { %v9377_v11 = vpop.f32.mrb[105].mxu0  ;;  %4666 = vmatmul.mubr.bf16.gmra.mrb[164].mxu1 %v4177_v57  ;;  %v4197_v57 = vld [vmem:[#allocation4 + $0x128] sm:$0xff] }
 0x35a   :  { %v9378_v15 = vadd.f32 %v9377_v11, %v9376_v33  ;;  %v9379_v36 = vpop.f32.mrb[106].mxu0  ;;  %4673 = vmatprep.mubr.bf16.mxu1 %v4183_v40 }
 0x35b   :  { %v9380_v23 = vpop.f32.mrb[107].mxu0 }
 0x35c   :  { %v9381_v19 = vadd.f32 %v9380_v23, %v9379_v36  ;;  %v9270_v51 = vpop.f32.mrb[60].mxu1  ;;  %v13284_v58 = vadd.f32 %v9378_v15, %v9266_v12 }
 0x35d   :  { %v9271_v44 = vpop.f32.mrb[61].mxu1  ;;  %10117 = vmatmul.mubr.msk.bf16.gmra.mrb[212].mxu0 %vm97_vm0, %v4199_v41 }
 0x35e   :  { %v9272_v60 = vadd.f32 %v9271_v44, %v9270_v51  ;;  %v9273_v20 = vpop.f32.mrb[62].mxu1  ;;  %v13287_v50 = vadd.f32 %v9381_v19, %v9269_v22 }
 0x35f   :  { %v9274_v14 = vpop.f32.mrb[63].mxu1 }
 0x360   :  { %v9275_v55 = vadd.f32 %v9274_v14, %v9273_v20  ;;  %v9382_v43 = vpop.f32.mrb[108].mxu0 }
 0x361   :  { %v9383_v6 = vpop.f32.mrb[109].mxu0  ;;  %4674 = vmatmul.mubr.bf16.gmra.mrb[168].mxu1 %v4182_v29 }
 0x362   :  { %v9384_v5 = vadd.f32 %v9383_v6, %v9382_v43  ;;  %v9385_v62 = vpop.f32.mrb[110].mxu0  ;;  %4681 = vmatprep.mubr.bf16.mxu1 %v4188_v63 }
 0x363   :  { %v9386_v46 = vpop.f32.mrb[111].mxu0 }
 0x364   :  { %v9387_v37 = vadd.f32 %v9386_v46, %v9385_v62  ;;  %v9276_v24 = vpop.f32.mrb[64].mxu1  ;;  %v13289_v25 = vadd.f32 %v9384_v5, %v9272_v60 }
 0x365   :  { %v9277_v56 = vpop.f32.mrb[65].mxu1 }
 0x366   :  { %v9278_v31 = vadd.f32 %v9277_v56, %v9276_v24  ;;  %v9279_v9 = vpop.f32.mrb[66].mxu1  ;;  %v13291_v54 = vadd.f32 %v9387_v37, %v9275_v55 }
 0x367   :  { %v9280_v17 = vpop.f32.mrb[67].mxu1 }
 0x368   :  { %v9281_v3 = vadd.f32 %v9280_v17, %v9279_v9  ;;  %v9388_v0 = vpop.f32.mrb[112].mxu0 }
 0x369   :  { %v9389_v48 = vpop.f32.mrb[113].mxu0  ;;  %4682 = vmatmul.mubr.bf16.gmra.mrb[172].mxu1 %v4187_v32 }
 0x36a   :  { %v9390_v16 = vadd.f32 %v9389_v48, %v9388_v0  ;;  %v9391_v4 = vpop.f32.mrb[114].mxu0  ;;  %4689 = vmatprep.mubr.bf16.mxu1 %v4193_v2 }
 0x36b   :  { %v9392_v53 = vpop.f32.mrb[115].mxu0 }
 0x36c   :  { %v9393_v30 = vadd.f32 %v9392_v53, %v9391_v4  ;;  %v9282_v26 = vpop.f32.mrb[68].mxu1  ;;  %v13293_v27 = vadd.f32 %v9390_v16, %v9278_v31 }
 0x36d   :  { %v9283_v18 = vpop.f32.mrb[69].mxu1 }
 0x36e   :  { %v9284_v52 = vadd.f32 %v9283_v18, %v9282_v26  ;;  %v9285_v39 = vpop.f32.mrb[70].mxu1  ;;  %v13295_v59 = vadd.f32 %v9393_v30, %v9281_v3 }
 0x36f   :  { %v9286_v1 = vpop.f32.mrb[71].mxu1 }
 0x370   :  { %v9287_v38 = vadd.f32 %v9286_v1, %v9285_v39  ;;  %v9394_v49 = vpop.f32.mrb[116].mxu0 }
 0x371   :  { %v9395_v42 = vpop.f32.mrb[117].mxu0  ;;  %4690 = vmatmul.mubr.bf16.gmra.mrb[176].mxu1 %v4192_v10 }
 0x372   :  { %v9396_v8 = vadd.f32 %v9395_v42, %v9394_v49  ;;  %v9397_v61 = vpop.f32.mrb[118].mxu0  ;;  %4697 = vmatprep.mubr.bf16.mxu1 %v4198_v13 }
 0x373   :  { %v9398_v34 = vpop.f32.mrb[119].mxu0 }
 0x374   :  { %v9399_v7 = vadd.f32 %v9398_v34, %v9397_v61  ;;  %v9288_v45 = vpop.f32.mrb[72].mxu1  ;;  %v13297_v28 = vadd.f32 %v9396_v8, %v9284_v52 }
 0x375   :  { %v9289_v47 = vpop.f32.mrb[73].mxu1 }
 0x376   :  { %v9290_v12 = vadd.f32 %v9289_v47, %v9288_v45  ;;  %v9291_v35 = vpop.f32.mrb[74].mxu1  ;;  %v13299_v21 = vadd.f32 %v9399_v7, %v9287_v38 }
 0x377   :  { %v9292_v40 = vpop.f32.mrb[75].mxu1 }
 0x378   :  { %v9293_v22 = vadd.f32 %v9292_v40, %v9291_v35  ;;  %v9400_v33 = vpop.f32.mrb[120].mxu0 }
 0x379   :  { %v9401_v11 = vpop.f32.mrb[121].mxu0  ;;  %4698 = vmatmul.mubr.bf16.gmra.mrb[180].mxu1 %v4197_v57 }
 0x37a   :  { %v9402_v15 = vadd.f32 %v9401_v11, %v9400_v33  ;;  %v9403_v36 = vpop.f32.mrb[122].mxu0 }
 0x37b   :  { %v9404_v41 = vpop.f32.mrb[123].mxu0 }
 0x37c   :  { %v9405_v23 = vadd.f32 %v9404_v41, %v9403_v36  ;;  %v9294_v19 = vpop.f32.mrb[76].mxu1  ;;  %v13301_v51 = vadd.f32 %v9402_v15, %v9290_v12 }
 0x37d   :  { %v9295_v44 = vpop.f32.mrb[77].mxu1 }
 0x37e   :  { %v9296_v60 = vadd.f32 %v9295_v44, %v9294_v19  ;;  %v9297_v20 = vpop.f32.mrb[78].mxu1  ;;  %v13303_v29 = vadd.f32 %v9405_v23, %v9293_v22 }
 0x37f   :  { %v9298_v14 = vpop.f32.mrb[79].mxu1 }
 0x380   :  { %v9299_v63 = vadd.f32 %v9298_v14, %v9297_v20  ;;  %v9406_v55 = vpop.f32.mrb[124].mxu0 }
 0x381   :  { %v9407_v43 = vpop.f32.mrb[125].mxu0 }
 0x382   :  { %v9408_v6 = vadd.f32 %v9407_v43, %v9406_v55  ;;  %v9409_v5 = vpop.f32.mrb[126].mxu0 }
 0x383   :  { %v9410_v62 = vpop.f32.mrb[127].mxu0 }
 0x384   :  { %v9411_v46 = vadd.f32 %v9410_v62, %v9409_v5  ;;  %v9300_v37 = vpop.f32.mrb[80].mxu1  ;;  %v13305_v24 = vadd.f32 %v9408_v6, %v9296_v60 }
 0x385   :  { %v9301_v56 = vpop.f32.mrb[81].mxu1 }
 0x386   :  { %v9302_v31 = vadd.f32 %v9301_v56, %v9300_v37  ;;  %v9303_v9 = vpop.f32.mrb[82].mxu1  ;;  %v13307_v32 = vadd.f32 %v9411_v46, %v9299_v63 }
 0x387   :  { %v9304_v17 = vpop.f32.mrb[83].mxu1 }
 0x388   :  { %v9305_v2 = vadd.f32 %v9304_v17, %v9303_v9  ;;  %v9412_v3 = vpop.f32.mrb[128].mxu0 }
 0x389   :  { %v9413_v0 = vpop.f32.mrb[129].mxu0 }
 0x38a   :  { %v9414_v48 = vadd.f32 %v9413_v0, %v9412_v3  ;;  %v9415_v16 = vpop.f32.mrb[130].mxu0 }
 0x38b   :  { %v9416_v4 = vpop.f32.mrb[131].mxu0 }
 0x38c   :  { %v9417_v53 = vadd.f32 %v9416_v4, %v9415_v16  ;;  %v9306_v30 = vpop.f32.mrb[84].mxu1  ;;  %v13309_v26 = vadd.f32 %v9414_v48, %v9302_v31 }
 0x38d   :  { %v9307_v18 = vpop.f32.mrb[85].mxu1 }
 0x38e   :  { %v9308_v52 = vadd.f32 %v9307_v18, %v9306_v30  ;;  %v9309_v39 = vpop.f32.mrb[86].mxu1  ;;  %v13311_v10 = vadd.f32 %v9417_v53, %v9305_v2 }
 0x38f   :  { %v9310_v1 = vpop.f32.mrb[87].mxu1 }
 0x390   :  { %v9311_v13 = vadd.f32 %v9310_v1, %v9309_v39  ;;  %v9418_v38 = vpop.f32.mrb[132].mxu0 }
 0x391   :  { %v9419_v49 = vpop.f32.mrb[133].mxu0 }
 0x392   :  { %v9420_v42 = vadd.f32 %v9419_v49, %v9418_v38  ;;  %v9421_v8 = vpop.f32.mrb[134].mxu0 }
 0x393   :  { %v9422_v61 = vpop.f32.mrb[135].mxu0 }
 0x394   :  { %v9423_v34 = vadd.f32 %v9422_v61, %v9421_v8  ;;  %v9312_v7 = vpop.f32.mrb[88].mxu1  ;;  %v13313_v45 = vadd.f32 %v9420_v42, %v9308_v52 }
 0x395   :  { %v9313_v47 = vpop.f32.mrb[89].mxu1 }
 0x396   :  { %v9314_v12 = vadd.f32 %v9313_v47, %v9312_v7  ;;  %v9315_v35 = vpop.f32.mrb[90].mxu1  ;;  %v13315_v57 = vadd.f32 %v9423_v34, %v9311_v13 }
 0x397   :  { %v9316_v40 = vpop.f32.mrb[91].mxu1 }
 0x398   :  { %v9317_v22 = vadd.f32 %v9316_v40, %v9315_v35  ;;  %v9424_v33 = vpop.f32.mrb[136].mxu0 }
 0x399   :  { %v9425_v11 = vpop.f32.mrb[137].mxu0 }
 0x39a   :  { %v9426_v15 = vadd.f32 %v9425_v11, %v9424_v33  ;;  %v9427_v36 = vpop.f32.mrb[138].mxu0 }
 0x39b   :  { %v9428_v41 = vpop.f32.mrb[139].mxu0 }
 0x39c   :  { %v9429_v23 = vadd.f32 %v9428_v41, %v9427_v36  ;;  %v9318_v19 = vpop.f32.mrb[92].mxu1  ;;  %v13317_v44 = vadd.f32 %v9426_v15, %v9314_v12 }
 0x39d   :  { %v9319_v60 = vpop.f32.mrb[93].mxu1 }
 0x39e   :  { %v9320_v20 = vadd.f32 %v9319_v60, %v9318_v19  ;;  %v9321_v14 = vpop.f32.mrb[94].mxu1  ;;  %v13319_v63 = vadd.f32 %v9429_v23, %v9317_v22 }
 0x39f   :  { %v9322_v55 = vpop.f32.mrb[95].mxu1 }
 0x3a0   :  { %v9323_v43 = vadd.f32 %v9322_v55, %v9321_v14  ;;  %v9430_v6 = vpop.f32.mrb[140].mxu0 }
 0x3a1   :  { %v9431_v5 = vpop.f32.mrb[141].mxu0 }
 0x3a2   :  { %v9432_v62 = vadd.f32 %v9431_v5, %v9430_v6  ;;  %v9433_v46 = vpop.f32.mrb[142].mxu0 }
 0x3a3   :  { %v9434_v37 = vpop.f32.mrb[143].mxu0 }
 0x3a4   :  { %v9435_v56 = vadd.f32 %v9434_v37, %v9433_v46  ;;  %v9324_v31 = vpop.f32.mrb[96].mxu1  ;;  %v13321_v9 = vadd.f32 %v9432_v62, %v9320_v20 }
 0x3a5   :  { %v9325_v17 = vpop.f32.mrb[97].mxu1 }
 0x3a6   :  { %v9326_v2 = vadd.f32 %v9325_v17, %v9324_v31  ;;  %v9327_v3 = vpop.f32.mrb[98].mxu1  ;;  %v13323_v0 = vadd.f32 %v9435_v56, %v9323_v43 }
 0x3a7   :  { %v9328_v48 = vpop.f32.mrb[99].mxu1 }
 0x3a8   :  { %v9329_v16 = vadd.f32 %v9328_v48, %v9327_v3  ;;  %v9436_v4 = vpop.f32.mrb[144].mxu0 }
 0x3a9   :  { %v9437_v53 = vpop.f32.mrb[145].mxu0 }
 0x3aa   :  { %v9438_v30 = vadd.f32 %v9437_v53, %v9436_v4  ;;  %v9439_v18 = vpop.f32.mrb[146].mxu0 }
 0x3ab   :  { %v9440_v52 = vpop.f32.mrb[147].mxu0 }
 0x3ac   :  { %v9441_v39 = vadd.f32 %v9440_v52, %v9439_v18  ;;  %v9330_v1 = vpop.f32.mrb[100].mxu1  ;;  %v13325_v13 = vadd.f32 %v9438_v30, %v9326_v2 }
 0x3ad   :  { %v9331_v38 = vpop.f32.mrb[101].mxu1 }
 0x3ae   :  { %v9332_v49 = vadd.f32 %v9331_v38, %v9330_v1  ;;  %v9333_v42 = vpop.f32.mrb[102].mxu1  ;;  %v13327_v8 = vadd.f32 %v9441_v39, %v9329_v16 }
 0x3af   :  { %v9334_v61 = vpop.f32.mrb[103].mxu1 }
 0x3b0   :  { %v9335_v34 = vadd.f32 %v9334_v61, %v9333_v42  ;;  %v9442_v7 = vpop.f32.mrb[148].mxu0 }
 0x3b1   :  { %v9443_v47 = vpop.f32.mrb[149].mxu0 }
 0x3b2   :  { %v9444_v12 = vadd.f32 %v9443_v47, %v9442_v7  ;;  %v9445_v35 = vpop.f32.mrb[150].mxu0 }
 0x3b3   :  { %v9446_v40 = vpop.f32.mrb[151].mxu0 }
 0x3b4   :  { %v9447_v22 = vadd.f32 %v9446_v40, %v9445_v35  ;;  %v9336_v33 = vpop.f32.mrb[104].mxu1  ;;  %v13329_v11 = vadd.f32 %v9444_v12, %v9332_v49 }
 0x3b5   :  { %v9337_v15 = vpop.f32.mrb[105].mxu1 }
 0x3b6   :  { %v9338_v36 = vadd.f32 %v9337_v15, %v9336_v33  ;;  %v9339_v41 = vpop.f32.mrb[106].mxu1  ;;  %v13331_v23 = vadd.f32 %v9447_v22, %v9335_v34 }
 0x3b7   :  { %v9340_v19 = vpop.f32.mrb[107].mxu1 }
 0x3b8   :  { %v9341_v60 = vadd.f32 %v9340_v19, %v9339_v41  ;;  %v9448_v20 = vpop.f32.mrb[152].mxu0 }
 0x3b9   :  { %v9449_v14 = vpop.f32.mrb[153].mxu0 }
 0x3ba   :  { %v9450_v55 = vadd.f32 %v9449_v14, %v9448_v20  ;;  %v9451_v43 = vpop.f32.mrb[154].mxu0 }
 0x3bb   :  { %v9452_v6 = vpop.f32.mrb[155].mxu0 }
 0x3bc   :  { %v9453_v5 = vadd.f32 %v9452_v6, %v9451_v43  ;;  %v9342_v62 = vpop.f32.mrb[108].mxu1  ;;  %v13333_v46 = vadd.f32 %v9450_v55, %v9338_v36 }
 0x3bd   :  { %v9343_v37 = vpop.f32.mrb[109].mxu1 }
 0x3be   :  { %v9344_v56 = vadd.f32 %v9343_v37, %v9342_v62  ;;  %v9345_v31 = vpop.f32.mrb[110].mxu1  ;;  %v13335_v17 = vadd.f32 %v9453_v5, %v9341_v60 }
 0x3bf   :  { %v9346_v2 = vpop.f32.mrb[111].mxu1 }
 0x3c0   :  { %v9347_v3 = vadd.f32 %v9346_v2, %v9345_v31  ;;  %v9454_v48 = vpop.f32.mrb[156].mxu0 }
 0x3c1   :  { %v9455_v16 = vpop.f32.mrb[157].mxu0 }
 0x3c2   :  { %v9456_v4 = vadd.f32 %v9455_v16, %v9454_v48  ;;  %v9457_v53 = vpop.f32.mrb[158].mxu0 }
 0x3c3   :  { %v9458_v30 = vpop.f32.mrb[159].mxu0 }
 0x3c4   :  { %v9459_v18 = vadd.f32 %v9458_v30, %v9457_v53  ;;  %v9348_v52 = vpop.f32.mrb[112].mxu1  ;;  %v13337_v39 = vadd.f32 %v9456_v4, %v9344_v56 }
 0x3c5   :  { %v9349_v1 = vpop.f32.mrb[113].mxu1 }
 0x3c6   :  { %v9350_v38 = vadd.f32 %v9349_v1, %v9348_v52  ;;  %v9351_v49 = vpop.f32.mrb[114].mxu1  ;;  %v13339_v42 = vadd.f32 %v9459_v18, %v9347_v3 }
 0x3c7   :  { %v9352_v61 = vpop.f32.mrb[115].mxu1 }
 0x3c8   :  { %v9353_v34 = vadd.f32 %v9352_v61, %v9351_v49  ;;  %v9460_v7 = vpop.f32.mrb[160].mxu0 }
 0x3c9   :  { %v9461_v47 = vpop.f32.mrb[161].mxu0 }
 0x3ca   :  { %v9462_v12 = vadd.f32 %v9461_v47, %v9460_v7  ;;  %v9463_v35 = vpop.f32.mrb[162].mxu0 }
 0x3cb   :  { %v9464_v40 = vpop.f32.mrb[163].mxu0 }
 0x3cc   :  { %v9465_v22 = vadd.f32 %v9464_v40, %v9463_v35  ;;  %v9354_v33 = vpop.f32.mrb[116].mxu1  ;;  %v13341_v15 = vadd.f32 %v9462_v12, %v9350_v38 }
 0x3cd   :  { %v9355_v36 = vpop.f32.mrb[117].mxu1 }
 0x3ce   :  { %v9356_v41 = vadd.f32 %v9355_v36, %v9354_v33  ;;  %v9357_v19 = vpop.f32.mrb[118].mxu1  ;;  %v13343_v60 = vadd.f32 %v9465_v22, %v9353_v34 }
 0x3cf   :  { %v9358_v20 = vpop.f32.mrb[119].mxu1 }
 0x3d0   :  { %v9359_v14 = vadd.f32 %v9358_v20, %v9357_v19  ;;  %v9466_v55 = vpop.f32.mrb[164].mxu0 }
 0x3d1   :  { %v9467_v43 = vpop.f32.mrb[165].mxu0 }
 0x3d2   :  { %v9468_v6 = vadd.f32 %v9467_v43, %v9466_v55  ;;  %v9469_v5 = vpop.f32.mrb[166].mxu0 }
 0x3d3   :  { %v9470_v62 = vpop.f32.mrb[167].mxu0 }
 0x3d4   :  { %v9471_v37 = vadd.f32 %v9470_v62, %v9469_v5  ;;  %v10066_v56 = vpop.f32.mrb[120].mxu1  ;;  %v13345_v31 = vadd.f32 %v9468_v6, %v9356_v41 }
 0x3d5   :  { %v13348_v2 = vadd.f32 %v10066_v56, %v13289_v25  ;;  %v4033_v3 = vpop.f32.mrb[121].mxu1 }
 0x3d6   :  { %v13351_v48 = vadd.f32 %v4033_v3, %v13284_v58  ;;  %v10067_v16 = vpop.f32.mrb[122].mxu1  ;;  %v13353_v4 = vadd.f32 %v9471_v37, %v9359_v14 }
 0x3d7   :  { %v13356_v53 = vadd.f32 %v10067_v16, %v13291_v54  ;;  %v4036_v30 = vpop.f32.mrb[123].mxu1 }
 0x3d8   :  { %v13359_v18 = vadd.f32 %v4036_v30, %v13287_v50  ;;  %v9508_v52 = vpop.f32.mrb[168].mxu0 }
 0x3d9   :  { %v9509_v1 = vpop.f32.mrb[169].mxu0 }
 0x3da   :  { %v13361_v38 = vadd.f32 %v9509_v1, %v9508_v52  ;;  %v9511_v25 = vpop.f32.mrb[170].mxu0 }
 0x3db   :  { %v9512_v49 = vpop.f32.mrb[171].mxu0 }
 0x3dc   :  { %v13363_v61 = vadd.f32 %v9512_v49, %v9511_v25  ;;  %v10070_v58 = vpop.f32.mrb[124].mxu1 }
 0x3dd   :  { %v13366_v34 = vadd.f32 %v10070_v58, %v13297_v28  ;;  %v4049_v7 = vpop.f32.mrb[125].mxu1 }
 0x3de   :  { %v13369_v54 = vadd.f32 %v4049_v7, %v13293_v27  ;;  %v10071_v47 = vpop.f32.mrb[126].mxu1 }
 0x3df   :  { %v13372_v50 = vadd.f32 %v10071_v47, %v13299_v21  ;;  %v4052_v12 = vpop.f32.mrb[127].mxu1 }
 0x3e0   :  { %v13375_v35 = vadd.f32 %v4052_v12, %v13295_v59  ;;  %v9514_v40 = vpop.f32.mrb[172].mxu0 }
 0x3e1   :  { %v9515_v22 = vpop.f32.mrb[173].mxu0 }
 0x3e2   :  { %v13377_v33 = vadd.f32 %v9515_v22, %v9514_v40  ;;  %v9517_v36 = vpop.f32.mrb[174].mxu0 }
 0x3e3   :  { %v9518_v41 = vpop.f32.mrb[175].mxu0 }
 0x3e4   :  { %v13379_v28 = vadd.f32 %v9518_v41, %v9517_v36  ;;  %v10074_v19 = vpop.f32.mrb[128].mxu1 }
 0x3e5   :  { %v13382_v27 = vadd.f32 %v10074_v19, %v13305_v24  ;;  %v4065_v20 = vpop.f32.mrb[129].mxu1 }
 0x3e6   :  { %v13385_v21 = vadd.f32 %v4065_v20, %v13301_v51  ;;  %v10075_v14 = vpop.f32.mrb[130].mxu1 }
 0x3e7   :  { %v13388_v59 = vadd.f32 %v10075_v14, %v13307_v32  ;;  %v4068_v55 = vpop.f32.mrb[131].mxu1 }
 0x3e8   :  { %v13391_v43 = vadd.f32 %v4068_v55, %v13303_v29  ;;  %v9520_v6 = vpop.f32.mrb[176].mxu0 }
 0x3e9   :  { %v9521_v5 = vpop.f32.mrb[177].mxu0 }
 0x3ea   :  { %v13393_v62 = vadd.f32 %v9521_v5, %v9520_v6  ;;  %v9523_v37 = vpop.f32.mrb[178].mxu0 }
 0x3eb   :  { %v9524_v56 = vpop.f32.mrb[179].mxu0 }
 0x3ec   :  { %v13395_v24 = vadd.f32 %v9524_v56, %v9523_v37  ;;  %v10078_v3 = vpop.f32.mrb[132].mxu1 }
 0x3ed   :  { %v13398_v51 = vadd.f32 %v10078_v3, %v13313_v45  ;;  %v4081_v16 = vpop.f32.mrb[133].mxu1 }
 0x3ee   :  { %v13401_v32 = vadd.f32 %v4081_v16, %v13309_v26  ;;  %v10079_v30 = vpop.f32.mrb[134].mxu1  ;;  %v10247_v16 = vld [vmem:[%s15364_s11 + $0x40] sm:$0xff]  }
 0x3ef   :  { %v13404_v29 = vadd.f32 %v10079_v30, %v13315_v57  ;;  %v4084_v52 = vpop.f32.mrb[135].mxu1  ;;  %9632 = vmatprep.subr.bf16.mxu1 %v10247_v16 }
 0x3f0   :  { %v13407_v1 = vadd.f32 %v4084_v52, %v13311_v10  ;;  %v9526_v25 = vpop.f32.mrb[180].mxu0 }
 0x3f1   :  { %15372 = vst [vmem:[#allocation9_spill] sm:$0xff] %v13404_v29  ;;  %v9527_v49 = vpop.f32.mrb[181].mxu0 }
 0x3f2   :  { %v13409_v58 = vadd.f32 %v9527_v49, %v9526_v25  ;;  %v9529_v7 = vpop.f32.mrb[182].mxu0 }
 0x3f3   :  { %v9530_v47 = vpop.f32.mrb[183].mxu0 }
 0x3f4   :  { %v13411_v45 = vadd.f32 %v9530_v47, %v9529_v7  ;;  %v10082_v12 = vpop.f32.mrb[136].mxu1 }
 0x3f5   :  { %v13414_v26 = vadd.f32 %v10082_v12, %v13321_v9  ;;  %v4097_v40 = vpop.f32.mrb[137].mxu1 }
 0x3f6   :  { %v13417_v57 = vadd.f32 %v4097_v40, %v13317_v44  ;;  %v10083_v22 = vpop.f32.mrb[138].mxu1 }
 0x3f7   :  { %v13420_v10 = vadd.f32 %v10083_v22, %v13323_v0  ;;  %v4100_v36 = vpop.f32.mrb[139].mxu1 }
 0x3f8   :  { %v13423_v41 = vadd.f32 %v4100_v36, %v13319_v63  ;;  %v9532_v19 = vpop.f32.mrb[184].mxu0  ;;  %v10249_v36 = vld [vmem:[%s15364_s11 + $0x48] sm:$0xff]  }
 0x3f9   :  { %v9533_v20 = vpop.f32.mrb[185].mxu0 }
 0x3fa   :  { %v13425_v14 = vadd.f32 %v9533_v20, %v9532_v19  ;;  %v9535_v55 = vpop.f32.mrb[186].mxu0  ;;  %v10250_v19 = vld [vmem:[%s15364_s11 + $0x8] sm:$0xff]  }
 0x3fb   :  { %v9536_v6 = vpop.f32.mrb[187].mxu0 }
 0x3fc   :  { %v13427_v9 = vadd.f32 %v9536_v6, %v9535_v55  ;;  %v10086_v5 = vpop.f32.mrb[140].mxu1 }
 0x3fd   :  { %v13430_v44 = vadd.f32 %v10086_v5, %v13329_v11  ;;  %v4113_v37 = vpop.f32.mrb[141].mxu1  ;;  %v10248_v11 = vld [vmem:[%s15364_s11] sm:$0xff]  }
 0x3fe   :  { %v13433_v0 = vadd.f32 %v4113_v37, %v13325_v13  ;;  %v10087_v56 = vpop.f32.mrb[142].mxu1  ;;  %9633 = vmatpush3.bf16.msra.mxu1 %v10248_v11 }
 0x3ff   :  { %v13436_v63 = vadd.f32 %v10087_v56, %v13331_v23  ;;  %v4116_v3 = vpop.f32.mrb[143].mxu1  ;;  %9634 = vmatprep.subr.bf16.mxu1 %v10249_v36 }
 0x400   :  { %v13442_v30 = vadd.f32 %v4116_v3, %v13327_v8  ;;  %v9538_v52 = vpop.f32.mrb[188].mxu0 }
 0x401   :  { %v9539_v25 = vpop.f32.mrb[189].mxu0 }
 0x402   :  { %v13447_v13 = vadd.f32 %v9539_v25, %v9538_v52  ;;  %v9541_v49 = vpop.f32.mrb[190].mxu0  ;;  %9635 = vmatpush3.bf16.msra.mxu1 %v10250_v19  ;;  %v10251_v25 = vld [vmem:[%s15364_s11 + $0x50] sm:$0xff]  }
 0x403   :  { %v9542_v23 = vpop.f32.mrb[191].mxu0  ;;  %9636 = vmatprep.subr.bf16.mxu1 %v10251_v25 }
 0x404   :  { %v13449_v7 = vadd.f32 %v9542_v23, %v9541_v49  ;;  %v10090_v47 = vpop.f32.mrb[144].mxu1  ;;  %v10252_v49 = vld [vmem:[%s15364_s11 + $0x10] sm:$0xff]  }
 0x405   :  { %v13452_v12 = vadd.f32 %v10090_v47, %v13337_v39  ;;  %v4129_v8 = vpop.f32.mrb[145].mxu1 }
 0x406   :  { %v13455_v40 = vadd.f32 %v4129_v8, %v13333_v46  ;;  %v10091_v22 = vpop.f32.mrb[146].mxu1  ;;  %9637 = vmatpush3.bf16.msra.mxu1 %v10252_v49 }
 0x407   :  { %v13464_v20 = vadd.f32 %v10091_v22, %v13339_v42  ;;  %v4132_v55 = vpop.f32.mrb[147].mxu1 }
 0x408   :  { %v13467_v39 = vadd.f32 %v4132_v55, %v13335_v17  ;;  %v9544_v6 = vpop.f32.mrb[192].mxu0 }
 0x409   :  { %v9545_v46 = vpop.f32.mrb[193].mxu0 }
 0x40a   :  { %v13469_v5 = vadd.f32 %v9545_v46, %v9544_v6  ;;  %v9547_v37 = vpop.f32.mrb[194].mxu0 }
 0x40b   :  { %v9548_v56 = vpop.f32.mrb[195].mxu0 }
 0x40c   :  { %v13471_v3 = vadd.f32 %v9548_v56, %v9547_v37  ;;  %v10094_v16 = vpop.f32.mrb[148].mxu1 }
 0x40d   :  { %v13474_v52 = vadd.f32 %v10094_v16, %v13345_v31  ;;  %v4145_v42 = vpop.f32.mrb[149].mxu1 }
 0x40e   :  { %v13477_v11 = vadd.f32 %v4145_v42, %v13341_v15  ;;  %v10095_v17 = vpop.f32.mrb[150].mxu1 }
 0x40f   :  { %15373 = vst [vmem:[#allocation10_spill] sm:$0xff] %v13474_v52  ;;  %v13486_v23 = vadd.f32 %v10095_v17, %v13353_v4  ;;  %v4148_v47 = vpop.f32.mrb[151].mxu1  ;;  %v10253_v4 = vld [vmem:[%s15364_s11 + $0x58] sm:$0xff]  }
 0x410   :  { %v13489_v31 = vadd.f32 %v4148_v47, %v13343_v60  ;;  %v9550_v8 = vpop.f32.mrb[196].mxu0  ;;  %v10254_v60 = vld [vmem:[%s15364_s11 + $0x18] sm:$0xff]   ;;  %9638 = vmatprep.subr.bf16.mxu1 %v10253_v4  ;;  %v13505_v47 = vld [vmem:[%s15365_s8] ss:$0 sm:$0xff] }
 0x411   :  { %15374 = vst [vmem:[#allocation11_spill] sm:$0xff] %v13486_v23  ;;  %v9551_v15 = vpop.f32.mrb[197].mxu0  ;;  %9639 = vmatpush3.bf16.msra.mxu1 %v10254_v60 }
 0x412   :  { %v13491_v22 = vadd.f32 %v9551_v15, %v9550_v8  ;;  %v9553_v36 = vpop.f32.mrb[198].mxu0 }
 0x413   :  { %v9554_v19 = vpop.f32.mrb[199].mxu0 }
 0x414   :  { %v13493_v55 = vadd.f32 %v9554_v19, %v9553_v36  ;;  %v9572_v6 = vpop.f32.mrb[152].mxu1  ;;  %v13511_v19 = vld [vmem:[%s15366_s9] ss:$0 sm:$0xff] }
 0x415   :  { %v9573_v46 = vpop.f32.mrb[153].mxu1 }
 0x416   :  { %v9574_v37 = vadd.f32 %v9573_v46, %v9572_v6  ;;  %v9575_v56 = vpop.f32.mrb[154].mxu1 }
 0x417   :  { %v9576_v16 = vpop.f32.mrb[155].mxu1 }
 0x418   :  { %v9577_v42 = vadd.f32 %v9576_v16, %v9575_v56  ;;  %v10106_v17 = vpop.f32.mrb[200].mxu0  ;;  %v4644_v25 = vadd.f32 %v9574_v37, %v13361_v38 }
 0x419   :  { %v4740_v49 = vpop.f32.mrb[201].mxu0 }
 0x41a   :  { %v4741_v8 = vadd.f32 %v4740_v49, %v4644_v25  ;;  %v10107_v15 = vpop.f32.mrb[202].mxu0  ;;  %v4647_v36 = vadd.f32 %v9577_v42, %v13363_v61  ;;  %v10255_v49 = vld [vmem:[%s15364_s11 + $0x60] sm:$0xff]  }
 0x41b   :  { %v4743_v6 = vpop.f32.mrb[203].mxu0  ;;  %9640 = vmatprep.subr.bf16.mxu1 %v10255_v49 }
 0x41c   :  { %v4803_v38 = vadd.f32 %v4741_v8, %v13351_v48  ;;  %v4819_v46 = vadd.f32 %v4741_v8, %v13417_v57  ;;  %v4744_v37 = vadd.f32 %v4743_v6, %v4647_v36  ;;  %v9578_v56 = vpop.f32.mrb[156].mxu1  ;;  %v10256_v48 = vld [vmem:[%s15364_s11 + $0x20] sm:$0xff]   ;;  %v13528_v57 = vstv %s15367_s10 }
 0x41d   :  { %v9579_v4 = vpop.f32.mrb[157].mxu1  ;;  %9641 = vmatpush3.bf16.msra.mxu1 %v10256_v48 }
 0x41e   :  { %v4842_v16 = vmul.f32 %v13505_v47, %v4803_v38  ;;  %v4858_v60 = vmul.f32 %v13505_v47, %v4819_v46  ;;  %v4804_v25 = vadd.f32 %v4744_v37, %v13359_v18  ;;  %v4820_v61 = vadd.f32 %v4744_v37, %v13423_v41  ;;  %v9581_v42 = vpop.f32.mrb[158].mxu1 }
 0x41f   :  { %v9580_v8 = vadd.f32 %v9579_v4, %v9578_v56  ;;  %v9582_v36 = vpop.f32.mrb[159].mxu1 }
 0x420   :  { %v4881_v18 = vadd.f32 %v13511_v19, %v4842_v16  ;;  %v4897_v41 = vadd.f32 %v13511_v19, %v4858_v60  ;;  %v4843_v6 = vmul.f32 %v13505_v47, %v4804_v25  ;;  %v4859_v38 = vmul.f32 %v13505_v47, %v4820_v61  ;;  %v13534_v46 = vpop.f32.mrb[204].mxu0 }
 0x421   :  { %v4652_v37 = vadd.f32 %v9580_v8, %v13377_v33  ;;  %v9583_v23 = vadd.f32 %v9582_v36, %v9581_v42  ;;  %v4756_v29 = vpop.f32.mrb[205].mxu0 }
 0x422   :  { %vm4914_vm4 = vcmp.ge.f32.partialorder %v4881_v18, 0.0  ;;  %vm4930_vm5 = vcmp.ge.f32.partialorder %v4897_v41, 0.0  ;;  %v4947_v56 = vmul.f32 %v13528_v57, %v4881_v18  ;;  %v4963_v4 = vmul.f32 %v13528_v57, %v4897_v41  ;;  %v13539_v16 = vpop.f32.mrb[206].mxu0 }
 0x423   :  { %v4882_v60 = vadd.f32 %v13511_v19, %v4843_v6  ;;  %v4898_v25 = vadd.f32 %v13511_v19, %v4859_v38  ;;  %v4749_v61 = vadd.f32 %v10106_v17, %v4652_v37  ;;  %v4655_v49 = vadd.f32 %v9583_v23, %v13379_v28  ;;  %v4759_v52 = vpop.f32.mrb[207].mxu0  ;;  %v10258_v37 = vld [vmem:[%s15364_s11 + $0x28] sm:$0xff]  }
 0x424   :  { %v4979_v33 = vsel %vm4914_vm4, %v4881_v18, %v4947_v56  ;;  %v4995_v42 = vsel %vm4930_vm5, %v4897_v41, %v4963_v4  ;;  %v9584_v8 = vpop.f32.mrb[160].mxu1  ;;  %v10257_v41 = vld [vmem:[%s15364_s11 + $0x68] sm:$0xff]  }
 0x425   :  { %5012 = vst.msk [vmem:[#allocation7 + $0x11] sm:$0xff] %vm97_vm0, %v4979_v33  ;;  %5028 = vst.msk [vmem:[#allocation7 + $0x151] sm:$0xff] %vm97_vm0, %v4995_v42  ;;  %vm4915_vm6 = vcmp.ge.f32.partialorder %v4882_v60, 0.0  ;;  %vm4931_vm7 = vcmp.ge.f32.partialorder %v4898_v25, 0.0  ;;  %v4948_v48 = vmul.f32 %v13528_v57, %v4882_v60  ;;  %v4964_v36 = vmul.f32 %v13528_v57, %v4898_v25  ;;  %v9585_v6 = vpop.f32.mrb[161].mxu1  ;;  %9642 = vmatprep.subr.bf16.mxu1 %v10257_v41 }
 0x426   :  { %v4805_v38 = vadd.f32 %v4749_v61, %v13348_v2  ;;  %v4821_v17 = vadd.f32 %v4749_v61, %v13414_v26  ;;  %v4752_v28 = vadd.f32 %v10107_v15, %v4655_v49  ;;  %v9586_v23 = vadd.f32 %v9585_v6, %v9584_v8  ;;  %v9587_v18 = vpop.f32.mrb[162].mxu1  ;;  %9643 = vmatpush3.bf16.msra.mxu1 %v10258_v37 }
 0x427   :  { %v4980_v56 = vsel %vm4915_vm6, %v4882_v60, %v4948_v48  ;;  %v4996_v4 = vsel %vm4931_vm7, %v4898_v25, %v4964_v36  ;;  %v9588_v33 = vpop.f32.mrb[163].mxu1 }
 0x428   :  { %5013 = vst.msk [vmem:[#allocation7 + $0x21] sm:$0xff] %vm97_vm0, %v4980_v56  ;;  %5029 = vst.msk [vmem:[#allocation7 + $0x161] sm:$0xff] %vm97_vm0, %v4996_v4  ;;  %v4844_v2 = vmul.f32 %v13505_v47, %v4805_v38  ;;  %v4860_v26 = vmul.f32 %v13505_v47, %v4821_v17  ;;  %v4806_v15 = vadd.f32 %v4752_v28, %v13356_v53  ;;  %v13562_v49 = vpop.f32.mrb[208].mxu0 }
 0x429   :  { %v4822_v61 = vadd.f32 %v4752_v28, %v13420_v10  ;;  %v9589_v42 = vadd.f32 %v9588_v33, %v9587_v18  ;;  %v4660_v60 = vadd.f32 %v9586_v23, %v13393_v62  ;;  %v13565_v25 = vpop.f32.mrb[209].mxu0 }
 0x42a   :  { %v4883_v8 = vadd.f32 %v13511_v19, %v4844_v2  ;;  %v4899_v48 = vadd.f32 %v13511_v19, %v4860_v26  ;;  %v4845_v36 = vmul.f32 %v13505_v47, %v4806_v15  ;;  %v13571_v53 = vpop.f32.mrb[210].mxu0 }
 0x42b   :  { %v4861_v6 = vmul.f32 %v13505_v47, %v4822_v61  ;;  %v4757_v10 = vadd.f32 %v4756_v29, %v4660_v60  ;;  %v4663_v38 = vadd.f32 %v9589_v42, %v13395_v24  ;;  %v13574_v17 = vpop.f32.mrb[211].mxu0 }
 0x42c   :  { %vm4916_vm8 = vcmp.ge.f32.partialorder %v4883_v8, 0.0  ;;  %vm4932_vm9 = vcmp.ge.f32.partialorder %v4899_v48, 0.0  ;;  %v4949_v62 = vmul.f32 %v13528_v57, %v4883_v8  ;;  %v4965_v28 = vmul.f32 %v13528_v57, %v4899_v48  ;;  %v9590_v23 = vpop.f32.mrb[164].mxu1  ;;  %v5060_v18 = vld [vmem:[#allocation7 + $0x152] sm:$0x1] }
 0x42d   :  { %v4884_v41 = vadd.f32 %v13511_v19, %v4845_v36  ;;  %v4900_v37 = vadd.f32 %v13511_v19, %v4861_v6  ;;  %v4807_v56 = vadd.f32 %v4757_v10, %v13369_v54  ;;  %v4823_v29 = vadd.f32 %v4757_v10, %v13433_v0  ;;  %v9591_v4 = vpop.f32.mrb[165].mxu1  ;;  %5092 = vst.msk [vmem:[#allocation7 + $0x150] sm:$0x1] %vm2331_vm2, %v5060_v18  ;;  %v5124_v24 = vld [vmem:[#allocation7 + $0x157] sm:$0x1] }
 0x42e   :  { %v5108_v33 = vld [vmem:[#allocation7 + $0x17] sm:$0x1]  ;;  %v4981_v2 = vsel %vm4916_vm8, %v4883_v8, %v4949_v62  ;;  %v4997_v26 = vsel %vm4932_vm9, %v4899_v48, %v4965_v28  ;;  %v4760_v15 = vadd.f32 %v4759_v52, %v4663_v38  ;;  %v9592_v61 = vadd.f32 %v9591_v4, %v9590_v23  ;;  %v9593_v42 = vpop.f32.mrb[166].mxu1  ;;  %5156 = vst.msk [vmem:[#allocation7 + $0x159] sm:$0x1] %vm2331_vm2, %v5124_v24 }
 0x42f   :  { %5140 = vst.msk [vmem:[#allocation7 + $0x19] sm:$0x1] %vm2331_vm2, %v5108_v33  ;;  %v5044_v60 = vld [vmem:[#allocation7 + $0x12] sm:$0x1]  ;;  %v5045_v0 = vld [vmem:[#allocation7 + $0x22] sm:$0x1]  ;;  %v4950_v52 = vmul.f32 %v13528_v57, %v4884_v41  ;;  %v4966_v8 = vmul.f32 %v13528_v57, %v4900_v37  ;;  %v4846_v48 = vmul.f32 %v13505_v47, %v4807_v56  ;;  %v4862_v10 = vmul.f32 %v13505_v47, %v4823_v29 }
 0x430   :  { %v10259_v54 = vld [vmem:[%s15364_s11 + $0x70] sm:$0xff]   ;;  %v5109_v36 = vld [vmem:[#allocation7 + $0x27] sm:$0x1]  ;;  %5014 = vst.msk [vmem:[#allocation7 + $0x31] sm:$0xff] %vm97_vm0, %v4981_v2  ;;  %5030 = vst.msk [vmem:[#allocation7 + $0x171] sm:$0xff] %vm97_vm0, %v4997_v26  ;;  %vm4917_vm10 = vcmp.ge.f32.partialorder %v4884_v41, 0.0  ;;  %v4808_v38 = vadd.f32 %v4760_v15, %v13375_v35  ;;  %v4824_v62 = vadd.f32 %v4760_v15, %v13442_v30 }
 0x431   :  { %v5125_v6 = vld [vmem:[#allocation7 + $0x167] sm:$0x1]  ;;  %5076 = vst.msk [vmem:[#allocation7 + $0x10] sm:$0x1] %vm2331_vm2, %v5044_v60  ;;  %5077 = vst.msk [vmem:[#allocation7 + $0x20] sm:$0x1] %vm2331_vm2, %v5045_v0  ;;  %9644 = vmatprep.subr.bf16.mxu1 %v10259_v54  ;;  %v4982_v18 = vsel %vm4917_vm10, %v4884_v41, %v4950_v52  ;;  %v4885_v29 = vadd.f32 %v13511_v19, %v4846_v48  ;;  %v4901_v4 = vadd.f32 %v13511_v19, %v4862_v10 }
 0x432   :  { %5141 = vst.msk [vmem:[#allocation7 + $0x29] sm:$0x1] %vm2331_vm2, %v5109_v36  ;;  %5157 = vst.msk [vmem:[#allocation7 + $0x169] sm:$0x1] %vm2331_vm2, %v5125_v6  ;;  %vm4933_vm11 = vcmp.ge.f32.partialorder %v4900_v37, 0.0  ;;  %v9594_v28 = vpop.f32.mrb[167].mxu1  ;;  %v4847_v35 = vmul.f32 %v13505_v47, %v4808_v38  ;;  %v4863_v30 = vmul.f32 %v13505_v47, %v4824_v62  ;;  %v4668_v41 = vadd.f32 %v9592_v61, %v13409_v58 }
 0x433   :  { %v5061_v23 = vld [vmem:[#allocation7 + $0x162] sm:$0x1]  ;;  %v4998_v56 = vsel %vm4933_vm11, %v4900_v37, %v4966_v8  ;;  %v13603_v24 = vpop.f32.mrb[212].mxu0  ;;  %v10260_v33 = vld [vmem:[%s15364_s11 + $0x30] sm:$0xff]   ;;  %5015 = vst.msk [vmem:[#allocation7 + $0x41] sm:$0xff] %vm97_vm0, %v4982_v18  ;;  %v9595_v37 = vadd.f32 %v9594_v28, %v9593_v42  ;;  %vm4918_vm12 = vcmp.ge.f32.partialorder %v4885_v29, 0.0  ;;  %v4951_v15 = vmul.f32 %v13528_v57, %v4885_v29 }
 0x434   :  { %5093 = vst.msk [vmem:[#allocation7 + $0x160] sm:$0x1] %vm2331_vm2, %v5061_v23  ;;  %v13613_v2 = vpop.f32.mrb[213].mxu0  ;;  %v5787_v26 = vld [vmem:[#allocation7 + $0x161] sm:$0xff]  ;;  %vm4934_vm13 = vcmp.ge.f32.partialorder %v4901_v4, 0.0  ;;  %v4967_v60 = vmul.f32 %v13528_v57, %v4901_v4  ;;  %9645 = vmatpush3.bf16.msra.mxu1 %v10260_v33  ;;  %v4886_v0 = vadd.f32 %v13511_v19, %v4847_v35  ;;  %v4902_v36 = vadd.f32 %v13511_v19, %v4863_v30  ;;  %v9596_v61 = vpop.f32.mrb[168].mxu1 }
 0x435   :  { %5031 = vst.msk [vmem:[#allocation7 + $0x181] sm:$0xff] %vm97_vm0, %v4998_v56  ;;  %v13617_v54 = vpop.f32.mrb[214].mxu0  ;;  %v4765_v6 = vadd.f32 %v13534_v46, %v4668_v41  ;;  %v4671_v58 = vadd.f32 %v9595_v37, %v13411_v45  ;;  %v5786_v52 = vld [vmem:[#allocation7 + $0x151] sm:$0xff]  ;;  %v4983_v8 = vsel %vm4918_vm12, %v4885_v29, %v4951_v15  ;;  %v9597_v10 = vpop.f32.mrb[169].mxu1 }
 0x436   :  { %v13623_v42 = vpop.f32.mrb[215].mxu0  ;;  %v4999_v48 = vsel %vm4934_vm13, %v4901_v4, %v4967_v60  ;;  %v5802_v38 = vpack.c.bf16 %v5787_v26, %v5786_v52  ;;  %5016 = vst.msk [vmem:[#allocation7 + $0x51] sm:$0xff] %vm97_vm0, %v4983_v8  ;;  %vm4919_vm14 = vcmp.ge.f32.partialorder %v4886_v0, 0.0  ;;  %vm4935_vm15 = vcmp.ge.f32.partialorder %v4902_v36, 0.0  ;;  %v9599_v28 = vpop.f32.mrb[170].mxu1  ;;  %v13632_v33 = vld [vmem:[#allocation7 + $0x150] sm:$0xff] }
 0x437   :  { %5032 = vst.msk [vmem:[#allocation7 + $0x191] sm:$0xff] %vm97_vm0, %v4999_v48  ;;  %v4952_v62 = vmul.f32 %v13528_v57, %v4886_v0  ;;  %v4968_v46 = vmul.f32 %v13528_v57, %v4902_v36  ;;  %v5062_v45 = vld [vmem:[#allocation7 + $0x172] sm:$0x1]  ;;  %v4809_v23 = vadd.f32 %v4765_v6, %v13366_v34  ;;  %v4825_v18 = vadd.f32 %v4765_v6, %v13430_v44  ;;  %v9600_v4 = vpop.f32.mrb[171].mxu1 }
 0x438   :  { %v4768_v56 = vadd.f32 %v13539_v16, %v4671_v58  ;;  %v9598_v29 = vadd.f32 %v9597_v10, %v9596_v61  ;;  %5094 = vst.msk [vmem:[#allocation7 + $0x170] sm:$0x1] %vm2331_vm2, %v5062_v45  ;;  %v13635_v30 = vld [vmem:[#allocation7 + $0x20] sm:$0xff]  ;;  %v9601_v34 = vadd.f32 %v9600_v4, %v9599_v28  ;;  %v5126_v16 = vld [vmem:[#allocation7 + $0x177] sm:$0x1] }
 0x439   :  { %v5178_v35 = vld [vmem:[#allocation7 + $0x168] sm:$0x3]  ;;  %5810 = vst.msk [vmem:[#allocation5 + $0x10] sm:$0xff] %vm97_vm0, %v5802_v38  ;;  %v4984_v41 = vsel %vm4919_vm14, %v4886_v0, %v4952_v62  ;;  %v5000_v37 = vsel %vm4935_vm15, %v4902_v36, %v4968_v46  ;;  %5181 = vst.msk [vmem:[#allocation7] sm:$0xff] %vm97_vm0, %v13635_v30  ;;  %v4848_v15 = vmul.f32 %v13505_v47, %v4809_v23  ;;  %v5339_v58 = vld [vmem:[#allocation7 + $0x171] sm:$0xff] }
 0x43a   :  { %5186 = vst.msk [vmem:[#allocation7 + $0x148] sm:$0x3] %vm2313_vm3, %v5178_v35  ;;  %v5174_v44 = vld [vmem:[#allocation7 + $0x28] sm:$0x3]  ;;  %v4864_v60 = vmul.f32 %v13505_v47, %v4825_v18  ;;  %v4810_v0 = vadd.f32 %v4768_v56, %v13372_v50  ;;  %v4826_v36 = vadd.f32 %v4768_v56, %v13436_v63  ;;  %v4676_v52 = vadd.f32 %v9598_v29, %v13425_v14  ;;  %v5110_v63 = vld [vmem:[#allocation7 + $0x37] sm:$0x1] }
 0x43b   :  { %v5626_v26 = vld [vmem:[#allocation7 + $0x160] sm:$0xff]  ;;  %5017 = vst.msk [vmem:[#allocation7 + $0x61] sm:$0xff] %vm97_vm0, %v4984_v41  ;;  %5033 = vst.msk [vmem:[#allocation7 + $0x1a1] sm:$0xff] %vm97_vm0, %v5000_v37  ;;  %v4679_v8 = vadd.f32 %v9601_v34, %v13427_v9  ;;  %v4887_v10 = vadd.f32 %v13511_v19, %v4848_v15  ;;  %v5046_v14 = vld [vmem:[#allocation7 + $0x32] sm:$0x1] }
 0x43c   :  { %5185 = vst.msk [vmem:[#allocation7 + $0x140] sm:$0xff] %vm97_vm0, %v5626_v26  ;;  %v5063_v6 = vld [vmem:[#allocation7 + $0x182] sm:$0x1]  ;;  %v5127_v61 = vld [vmem:[#allocation7 + $0x187] sm:$0x1]  ;;  %v5641_v48 = vpack.c.bf16 %v5626_v26, %v13632_v33  ;;  %v4903_v38 = vadd.f32 %v13511_v19, %v4864_v60  ;;  %v4849_v62 = vmul.f32 %v13505_v47, %v4810_v0  ;;  %v4865_v46 = vmul.f32 %v13505_v47, %v4826_v36  ;;  %v9602_v18 = vpop.f32.mrb[172].mxu1 }
 0x43d   :  { %5182 = vst.msk [vmem:[#allocation7 + $0x8] sm:$0x3] %vm2313_vm3, %v5174_v44  ;;  %v5338_v50 = vld [vmem:[#allocation7 + $0x161] sm:$0xff]  ;;  %v4773_v45 = vadd.f32 %v13565_v25, %v4676_v52  ;;  %v4776_v23 = vadd.f32 %v13574_v17, %v4679_v8  ;;  %v10261_v29 = vld [vmem:[%s15364_s11 + $0x78] sm:$0xff]   ;;  %vm4920_vm4 = vcmp.ge.f32.partialorder %v4887_v10, 0.0  ;;  %v4953_v17 = vmul.f32 %v13528_v57, %v4887_v10  ;;  %v9603_v35 = vpop.f32.mrb[173].mxu1 }
 0x43e   :  { %5158 = vst.msk [vmem:[#allocation7 + $0x179] sm:$0x1] %vm2331_vm2, %v5126_v16  ;;  %5095 = vst.msk [vmem:[#allocation7 + $0x180] sm:$0x1] %vm2331_vm2, %v5063_v6  ;;  %v5111_v9 = vld [vmem:[#allocation7 + $0x47] sm:$0x1]  ;;  %5657 = vrot.lane.b32.xlu0 %v5641_v48, %s10485_s15  ;;  %v13665_v56 = vpack.c.bf16 %v5339_v58, %v5338_v50  ;;  %v4969_v4 = vmul.f32 %v13528_v57, %v4903_v38  ;;  %v4888_v37 = vadd.f32 %v13511_v19, %v4849_v62 }
 0x43f   :  { %5159 = vst.msk [vmem:[#allocation7 + $0x189] sm:$0x1] %vm2331_vm2, %v5127_v61  ;;  %5142 = vst.msk [vmem:[#allocation7 + $0x39] sm:$0x1] %vm2331_vm2, %v5110_v63  ;;  %v5047_v28 = vld [vmem:[#allocation7 + $0x42] sm:$0x1]  ;;  %v4904_v34 = vadd.f32 %v13511_v19, %v4865_v46  ;;  %v4811_v26 = vadd.f32 %v4773_v45, %v13385_v21  ;;  %v4827_v44 = vadd.f32 %v4773_v45, %v13455_v40  ;;  %9646 = vmatprep.subr.bf16.mxu1 %v10261_v29 }
 0x440   :  { %5078 = vst.msk [vmem:[#allocation7 + $0x30] sm:$0x1] %vm2331_vm2, %v5046_v14  ;;  %5143 = vst.msk [vmem:[#allocation7 + $0x49] sm:$0x1] %vm2331_vm2, %v5111_v9  ;;  %v10262_v25 = vld [vmem:[%s15364_s11 + $0x38] sm:$0xff]   ;;  %vm4936_vm5 = vcmp.ge.f32.partialorder %v4903_v38, 0.0  ;;  %v4985_v0 = vsel %vm4920_vm4, %v4887_v10, %v4953_v17  ;;  %v4812_v6 = vadd.f32 %v4776_v23, %v13391_v43  ;;  %v4828_v58 = vadd.f32 %v4776_v23, %v13467_v39 }
 0x441   :  { %5079 = vst.msk [vmem:[#allocation7 + $0x40] sm:$0x1] %vm2331_vm2, %v5047_v28  ;;  %v5064_v41 = vld [vmem:[#allocation7 + $0x192] sm:$0x1]  ;;  %v9605_v16 = vpop.f32.mrb[174].mxu1  ;;  %v5001_v36 = vsel %vm4936_vm5, %v4903_v38, %v4969_v4  ;;  %9647 = vmatpush3.bf16.msra.mxu1 %v10262_v25  ;;  %vm4921_vm6 = vcmp.ge.f32.partialorder %v4888_v37, 0.0  ;;  %v4954_v40 = vmul.f32 %v13528_v57, %v4888_v37  ;;  %v4970_v52 = vmul.f32 %v13528_v57, %v4904_v34 }
 0x442   :  { %5096 = vst.msk [vmem:[#allocation7 + $0x190] sm:$0x1] %vm2331_vm2, %v5064_v41  ;;  %v5128_v15 = vld [vmem:[#allocation7 + $0x197] sm:$0x1]  ;;  %v9606_v61 = vpop.f32.mrb[175].mxu1  ;;  %vm4937_vm7 = vcmp.ge.f32.partialorder %v4904_v34, 0.0  ;;  %v4850_v39 = vmul.f32 %v13505_v47, %v4811_v26  ;;  %v4866_v8 = vmul.f32 %v13505_v47, %v4827_v44  ;;  %v4851_v48 = vmul.f32 %v13505_v47, %v4812_v6 }
 0x443   :  { %v5112_v60 = vld [vmem:[#allocation7 + $0x57] sm:$0x1]  ;;  %5160 = vst.msk [vmem:[#allocation7 + $0x199] sm:$0x1] %vm2331_vm2, %v5128_v15  ;;  %v5048_v21 = vld [vmem:[#allocation7 + $0x52] sm:$0x1]  ;;  %v4867_v50 = vmul.f32 %v13505_v47, %v4828_v58  ;;  %v4986_v38 = vsel %vm4921_vm6, %v4888_v37, %v4954_v40  ;;  %v5002_v62 = vsel %vm4937_vm7, %v4904_v34, %v4970_v52  ;;  %v9604_v46 = vadd.f32 %v9603_v35, %v9602_v18 }
 0x444   :  { %5144 = vst.msk [vmem:[#allocation7 + $0x59] sm:$0x1] %vm2331_vm2, %v5112_v60  ;;  %v5065_v43 = vld [vmem:[#allocation7 + $0x1a2] sm:$0x1]  ;;  %5080 = vst.msk [vmem:[#allocation7 + $0x50] sm:$0x1] %vm2331_vm2, %v5048_v21  ;;  %v9607_v14 = vadd.f32 %v9606_v61, %v9605_v16  ;;  %v4889_v28 = vadd.f32 %v13511_v19, %v4850_v39  ;;  %v4905_v45 = vadd.f32 %v13511_v19, %v4866_v8 }
 0x445   :  { %5018 = vst.msk [vmem:[#allocation7 + $0x71] sm:$0xff] %vm97_vm0, %v4985_v0  ;;  %5034 = vst.msk [vmem:[#allocation7 + $0x1b1] sm:$0xff] %vm97_vm0, %v5001_v36  ;;  %v5336_v63 = vld [vmem:[#allocation7 + $0x141] sm:$0xff]  ;;  %v4890_v23 = vadd.f32 %v13511_v19, %v4851_v48  ;;  %v4906_v29 = vadd.f32 %v13511_v19, %v4867_v50  ;;  %v5337_v25 = vld [vmem:[#allocation7 + $0x151] sm:$0xff]  ;;  %v4684_v18 = vadd.f32 %v9604_v46, %v13447_v13  ;;  %v9608_v37 = vpop.f32.mrb[176].mxu1 }
 0x446   :  { %v13696_v10 = vld [vmem:[#allocation7 + $0x180] sm:$0xff]  ;;  %5097 = vst.msk [vmem:[#allocation7 + $0x1a0] sm:$0x1] %vm2331_vm2, %v5065_v43  ;;  %v13705_v17 = vld [vmem:[#allocation7 + $0x170] sm:$0xff]  ;;  %v4687_v4 = vadd.f32 %v9607_v14, %v13449_v7  ;;  %v5352_v35 = vpack.c.bf16 %v5337_v25, %v5336_v63  ;;  %vm4922_vm8 = vcmp.ge.f32.partialorder %v4889_v28, 0.0  ;;  %vm4938_vm9 = vcmp.ge.f32.partialorder %v4905_v45, 0.0 }
 0x447   :  { %v5129_v9 = vld [vmem:[#allocation7 + $0x1a7] sm:$0x1]  ;;  %5019 = vst.msk [vmem:[#allocation7 + $0x81] sm:$0xff] %vm97_vm0, %v4986_v38  ;;  %5035 = vst.msk [vmem:[#allocation7 + $0x1c1] sm:$0xff] %vm97_vm0, %v5002_v62  ;;  %v5642_v41 = vpack.c.bf16 %v13696_v10, %v13705_v17  ;;  %v5049_v26 = vld [vmem:[#allocation7 + $0x62] sm:$0x1]  ;;  %v4955_v44 = vmul.f32 %v13528_v57, %v4889_v28  ;;  %v4971_v16 = vmul.f32 %v13528_v57, %v4905_v45 }
 0x448   :  { %5161 = vst.msk [vmem:[#allocation7 + $0x1a9] sm:$0x1] %vm2331_vm2, %v5129_v9  ;;  %v5113_v34 = vld [vmem:[#allocation7 + $0x67] sm:$0x1]  ;;  %v9609_v15 = vpop.f32.mrb[177].mxu1  ;;  %vm4923_vm10 = vcmp.ge.f32.partialorder %v4890_v23, 0.0  ;;  %v4956_v13 = vmul.f32 %v13528_v57, %v4890_v23  ;;  %v4972_v7 = vmul.f32 %v13528_v57, %v4906_v29  ;;  %5368 = vrot.lane.b32.xlu1 %v5352_v35, %s10485_s15  ;;  %v4781_v6 = vadd.f32 %v13562_v49, %v4684_v18 }
 0x449   :  { %5145 = vst.msk [vmem:[#allocation7 + $0x69] sm:$0x1] %vm2331_vm2, %v5113_v34  ;;  %5081 = vst.msk [vmem:[#allocation7 + $0x60] sm:$0x1] %vm2331_vm2, %v5049_v26  ;;  %vm4939_vm11 = vcmp.ge.f32.partialorder %v4906_v29, 0.0  ;;  %5659 = vrot.lane.b32.xlu0 %v5642_v41, %s10485_s15  ;;  %v9611_v60 = vpop.f32.mrb[178].mxu1  ;;  %v4987_v0 = vsel %vm4922_vm8, %v4889_v28, %v4955_v44  ;;  %v5003_v36 = vsel %vm4938_vm9, %v4905_v45, %v4971_v16 }
 0x44a   :  { %v4784_v58 = vadd.f32 %v13571_v53, %v4687_v4  ;;  %v9612_v61 = vpop.f32.mrb[179].mxu1  ;;  %v5341_v21 = vld [vmem:[#allocation7 + $0x191] sm:$0xff]  ;;  %5020 = vst.msk [vmem:[#allocation7 + $0xb1] sm:$0xff] %vm97_vm0, %v4987_v0  ;;  %5036 = vst.msk [vmem:[#allocation7 + $0x1f1] sm:$0xff] %vm97_vm0, %v5003_v36  ;;  %v4988_v43 = vsel %vm4923_vm10, %v4890_v23, %v4956_v13  ;;  %v5004_v39 = vsel %vm4939_vm11, %v4906_v29, %v4972_v7  ;;  %v10263_v28 = vld [vmem:[%s15364_s11 + $0x140] sm:$0xff]  }
 0x44b   :  { %v9610_v8 = vadd.f32 %v9609_v15, %v9608_v37  ;;  %v9613_v48 = vadd.f32 %v9612_v61, %v9611_v60  ;;  %v13726_v50 = vld [vmem:[#allocation7 + $0x190] sm:$0xff]  ;;  %5021 = vst.msk [vmem:[#allocation7 + $0xc1] sm:$0xff] %vm97_vm0, %v4988_v43  ;;  %5037 = vst.msk [vmem:[#allocation7 + $0x201] sm:$0xff] %vm97_vm0, %v5004_v39  ;;  %v4813_v53 = vadd.f32 %v4781_v6, %v13382_v27  ;;  %v5340_v4 = vld [vmem:[#allocation7 + $0x181] sm:$0xff]  ;;  %9760 = vmatprep.subr.bf16.mxu1 %v10263_v28 }
 0x44c   :  { %v5066_v40 = vld [vmem:[#allocation7 + $0x1b2] sm:$0x1]  ;;  %v5130_v52 = vld [vmem:[#allocation7 + $0x1b7] sm:$0x1]  ;;  %v4829_v38 = vadd.f32 %v4781_v6, %v13452_v12  ;;  %v4814_v62 = vadd.f32 %v4784_v58, %v13388_v59  ;;  %v4830_v46 = vadd.f32 %v4784_v58, %v13464_v20  ;;  %5370 = vrot.lane.b32.xlu1 %v13665_v56, %s10485_s15  ;;  %v5342_v35 = vld [vmem:[#allocation7 + $0x1a1] sm:$0xff]  ;;  %v9614_v37 = vpop.f32.mrb[180].mxu1 }
 0x44d   :  { %v13728_v63 = vld [vmem:[#allocation7 + $0x1a0] sm:$0xff]  ;;  %5098 = vst.msk [vmem:[#allocation7 + $0x1b0] sm:$0x1] %vm2331_vm2, %v5066_v40  ;;  %5162 = vst.msk [vmem:[#allocation7 + $0x1b9] sm:$0x1] %vm2331_vm2, %v5130_v52  ;;  %v5343_v14 = vld [vmem:[#allocation7 + $0x1b1] sm:$0xff]  ;;  %v4692_v45 = vadd.f32 %v9610_v8, %v13469_v5  ;;  %v4695_v59 = vadd.f32 %v9613_v48, %v13471_v3  ;;  %v4852_v23 = vmul.f32 %v13505_v47, %v4813_v53 }
 0x44e   :  { %v5114_v49 = vld [vmem:[#allocation7 + $0x77] sm:$0x1]  ;;  %v5050_v9 = vld [vmem:[#allocation7 + $0x72] sm:$0x1]  ;;  %v5643_v27 = vpack.c.bf16 %v13728_v63, %v13726_v50  ;;  %v5067_v12 = vld [vmem:[#allocation7 + $0x1c2] sm:$0x1]  ;;  %v4868_v29 = vmul.f32 %v13505_v47, %v4829_v38  ;;  %v4853_v25 = vmul.f32 %v13505_v47, %v4814_v62  ;;  %v4869_v18 = vmul.f32 %v13505_v47, %v4830_v46 }
 0x44f   :  { %5146 = vst.msk [vmem:[#allocation7 + $0x79] sm:$0x1] %vm2331_vm2, %v5114_v49  ;;  %v5131_v20 = vld [vmem:[#allocation7 + $0x1c7] sm:$0x1]  ;;  %5082 = vst.msk [vmem:[#allocation7 + $0x70] sm:$0x1] %vm2331_vm2, %v5050_v9  ;;  %v4789_v5 = vadd.f32 %v13613_v2, %v4692_v45  ;;  %v13756_v3 = vpack.c.bf16 %v5341_v21, %v5340_v4  ;;  %v4792_v41 = vadd.f32 %v13623_v42, %v4695_v59 }
 0x450   :  { %5099 = vst.msk [vmem:[#allocation7 + $0x1c0] sm:$0x1] %vm2331_vm2, %v5067_v12  ;;  %5163 = vst.msk [vmem:[#allocation7 + $0x1c9] sm:$0x1] %vm2331_vm2, %v5131_v20  ;;  %5661 = vrot.lane.b32.xlu0 %v5643_v27, %s10485_s15  ;;  %v13760_v34 = vpack.c.bf16 %v5343_v14, %v5342_v35  ;;  %v4891_v26 = vadd.f32 %v13511_v19, %v4852_v23  ;;  %v4907_v44 = vadd.f32 %v13511_v19, %v4868_v29  ;;  %v9615_v13 = vpop.f32.mrb[181].mxu1 }
 0x451   :  { %v4892_v16 = vadd.f32 %v13511_v19, %v4853_v25  ;;  %v4908_v15 = vadd.f32 %v13511_v19, %v4869_v18  ;;  %v4815_v2 = vadd.f32 %v4789_v5, %v13401_v32  ;;  %v4831_v7 = vadd.f32 %v4789_v5, %v13477_v11  ;;  %5372 = vrot.lane.b32.xlu1 %v13756_v3, %s10485_s15  ;;  %v9617_v0 = vpop.f32.mrb[182].mxu1  ;;  %v5068_v32 = vld [vmem:[#allocation7 + $0x1f2] sm:$0x1]  ;;  %v5132_v59 = vld [vmem:[#allocation7 + $0x1f7] sm:$0x1] }
 0x452   :  { %v4816_v42 = vadd.f32 %v4792_v41, %v13407_v1  ;;  %v4832_v60 = vadd.f32 %v4792_v41, %v13489_v31  ;;  %vm4924_vm12 = vcmp.ge.f32.partialorder %v4891_v26, 0.0  ;;  %vm4940_vm13 = vcmp.ge.f32.partialorder %v4907_v44, 0.0  ;;  %v9618_v58 = vpop.f32.mrb[183].mxu1  ;;  %v5053_v21 = vld [vmem:[#allocation7 + $0xc2] sm:$0x1] }
 0x453   :  { %v4957_v36 = vmul.f32 %v13528_v57, %v4891_v26  ;;  %v4973_v6 = vmul.f32 %v13528_v57, %v4907_v44  ;;  %v5117_v11 = vld [vmem:[#allocation7 + $0xc7] sm:$0x1]  ;;  %v4958_v52 = vmul.f32 %v13528_v57, %v4892_v16  ;;  %v4974_v1 = vmul.f32 %v13528_v57, %v4908_v15  ;;  %5100 = vst.msk [vmem:[#allocation7 + $0x1f0] sm:$0x1] %vm2331_vm2, %v5068_v32  ;;  %v5069_v48 = vld [vmem:[#allocation7 + $0x202] sm:$0x1] }
 0x454   :  { %v13774_v61 = vld [vmem:[#allocation7 + $0x1b0] sm:$0xff]  ;;  %v5133_v40 = vld [vmem:[#allocation7 + $0x207] sm:$0x1]  ;;  %v4854_v31 = vmul.f32 %v13505_v47, %v4815_v2  ;;  %v4870_v43 = vmul.f32 %v13505_v47, %v4831_v7  ;;  %5085 = vst.msk [vmem:[#allocation7 + $0xc0] sm:$0x1] %vm2331_vm2, %v5053_v21  ;;  %vm4925_vm14 = vcmp.ge.f32.partialorder %v4892_v16, 0.0  ;;  %v4855_v46 = vmul.f32 %v13505_v47, %v4816_v42 }
 0x455   :  { %5203 = vst.msk [vmem:[#allocation7 + $0x1d0] sm:$0xff] %vm97_vm0, %v13774_v61  ;;  %v4989_v39 = vsel %vm4924_vm12, %v4891_v26, %v4957_v36  ;;  %v5005_v8 = vsel %vm4940_vm13, %v4907_v44, %v4973_v6  ;;  %vm4941_vm15 = vcmp.ge.f32.partialorder %v4908_v15, 0.0  ;;  %v4990_v49 = vsel %vm4925_vm14, %v4892_v16, %v4958_v52  ;;  %5374 = vrot.lane.b32.xlu1 %v13760_v34, %s10485_s15  ;;  %v5195_v27 = vld [vmem:[#allocation7 + $0x1b8] sm:$0x3]  ;;  %v5116_v29 = vld [vmem:[#allocation7 + $0xb7] sm:$0x1] }
 0x456   :  { %5149 = vst.msk [vmem:[#allocation7 + $0xc9] sm:$0x1] %vm2331_vm2, %v5117_v11  ;;  %5165 = vst.msk [vmem:[#allocation7 + $0x209] sm:$0x1] %vm2331_vm2, %v5133_v40  ;;  %v5006_v53 = vsel %vm4941_vm15, %v4908_v15, %v4974_v1  ;;  %v4893_v38 = vadd.f32 %v13511_v19, %v4854_v31  ;;  %v4909_v62 = vadd.f32 %v13511_v19, %v4870_v43  ;;  %v13803_v23 = vld [vmem:[#allocation7 + $0x70] sm:$0xff]  ;;  %v15376_v21 = vld [vmem:[#allocation9_spill] sm:$0xff] }
 0x457   :  { %5022 = vst.msk [vmem:[#allocation7 + $0xd1] sm:$0xff] %vm97_vm0, %v4989_v39  ;;  %5038 = vst.msk [vmem:[#allocation7 + $0x211] sm:$0xff] %vm97_vm0, %v5005_v8  ;;  %v4871_v14 = vmul.f32 %v13505_v47, %v4832_v60  ;;  %v9616_v9 = vadd.f32 %v9615_v13, %v9614_v37  ;;  %v9619_v28 = vadd.f32 %v9618_v58, %v9617_v0  ;;  %v5632_v45 = vld [vmem:[#allocation7 + $0x1c0] sm:$0xff]  ;;  %v5052_v5 = vld [vmem:[#allocation7 + $0xb2] sm:$0x1] }
 0x458   :  { %5101 = vst.msk [vmem:[#allocation7 + $0x200] sm:$0x1] %vm2331_vm2, %v5069_v48  ;;  %vm4926_vm4 = vcmp.ge.f32.partialorder %v4893_v38, 0.0  ;;  %vm4942_vm5 = vcmp.ge.f32.partialorder %v4909_v62, 0.0  ;;  %v4959_v12 = vmul.f32 %v13528_v57, %v4893_v38  ;;  %v4975_v20 = vmul.f32 %v13528_v57, %v4909_v62  ;;  %5164 = vst.msk [vmem:[#allocation7 + $0x1f9] sm:$0x1] %vm2331_vm2, %v5132_v59 }
 0x459   :  { %5023 = vst.msk [vmem:[#allocation7 + $0xe1] sm:$0xff] %vm97_vm0, %v4990_v49  ;;  %5039 = vst.msk [vmem:[#allocation7 + $0x221] sm:$0xff] %vm97_vm0, %v5006_v53  ;;  %v4894_v25 = vadd.f32 %v13511_v19, %v4855_v46  ;;  %v4910_v18 = vadd.f32 %v13511_v19, %v4871_v14  ;;  %v4700_v4 = vadd.f32 %v9616_v9, %v13491_v22  ;;  %v5115_v44 = vld [vmem:[#allocation7 + $0x87] sm:$0x1]  ;;  %v5191_v16 = vld [vmem:[#allocation7 + $0x78] sm:$0x3] }
 0x45a   :  { %5204 = vst.msk [vmem:[#allocation7 + $0x1d8] sm:$0x3] %vm2313_vm3, %v5195_v27  ;;  %v4703_v35 = vadd.f32 %v9619_v28, %v13493_v55  ;;  %v4991_v41 = vsel %vm4926_vm4, %v4893_v38, %v4959_v12  ;;  %v5007_v37 = vsel %vm4942_vm5, %v4909_v62, %v4975_v20  ;;  %v5644_v26 = vpack.c.bf16 %v5632_v45, %v13774_v61  ;;  %v5051_v15 = vld [vmem:[#allocation7 + $0x82] sm:$0x1]  ;;  %v15377_v40 = vld [vmem:[#allocation11_spill] sm:$0xff] }
 0x45b   :  { %5148 = vst.msk [vmem:[#allocation7 + $0xb9] sm:$0x1] %vm2331_vm2, %v5116_v29  ;;  %5084 = vst.msk [vmem:[#allocation7 + $0xb0] sm:$0x1] %vm2331_vm2, %v5052_v5  ;;  %vm4927_vm6 = vcmp.ge.f32.partialorder %v4894_v25, 0.0  ;;  %vm4943_vm7 = vcmp.ge.f32.partialorder %v4910_v18, 0.0  ;;  %v4960_v22 = vmul.f32 %v13528_v57, %v4894_v25  ;;  %v4976_v55 = vmul.f32 %v13528_v57, %v4910_v18 }
 0x45c   :  { %5199 = vst.msk [vmem:[#allocation7 + $0x90] sm:$0xff] %vm97_vm0, %v13803_v23  ;;  %5024 = vst.msk [vmem:[#allocation7 + $0xf1] sm:$0xff] %vm97_vm0, %v4991_v41  ;;  %v10269_v13 = vld [vmem:[%s15364_s11 + $0xc0] sm:$0xff]   ;;  %v4797_v2 = vadd.f32 %v13603_v24, %v4700_v4  ;;  %v4800_v7 = vadd.f32 %v13617_v54, %v4703_v35  ;;  %5663 = vrot.lane.b32.xlu0 %v5644_v26, %s10485_s15  ;;  %v15375_v54 = vld [vmem:[#allocation10_spill] sm:$0xff] }
 0x45d   :  { %5040 = vst.msk [vmem:[#allocation7 + $0x231] sm:$0xff] %vm97_vm0, %v5007_v37  ;;  %v5180_v42 = vld [vmem:[#allocation7 + $0x208] sm:$0x3]  ;;  %v13826_v60 = vld [vmem:[#allocation7 + $0xc0] sm:$0xff]  ;;  %v4992_v0 = vsel %vm4927_vm6, %v4894_v25, %v4960_v22  ;;  %v5008_v36 = vsel %vm4943_vm7, %v4910_v18, %v4976_v55  ;;  %9696 = vmatprep.subr.bf16.mxu0 %v10269_v13  ;;  %v13838_v1 = vld [vmem:[#allocation7 + $0x1f0] sm:$0xff] }
 0x45e   :  { %5147 = vst.msk [vmem:[#allocation7 + $0x89] sm:$0x1] %vm2331_vm2, %v5115_v44  ;;  %5083 = vst.msk [vmem:[#allocation7 + $0x80] sm:$0x1] %vm2331_vm2, %v5051_v15  ;;  %v5070_v58 = vld [vmem:[#allocation7 + $0x212] sm:$0x1]  ;;  %v4817_v24 = vadd.f32 %v4797_v2, %v13398_v51  ;;  %v4833_v32 = vadd.f32 %v4797_v2, %v15375_v54  ;;  %v4818_v11 = vadd.f32 %v4800_v7, %v15376_v21 }
 0x45f   :  { %5200 = vst.msk [vmem:[#allocation7 + $0x98] sm:$0x3] %vm2313_vm3, %v5191_v16  ;;  %v5634_v6 = vld [vmem:[#allocation7 + $0x200] sm:$0xff]  ;;  %5188 = vst.msk [vmem:[#allocation7 + $0x1e8] sm:$0x3] %vm2313_vm3, %v5180_v42  ;;  %v4834_v52 = vadd.f32 %v4800_v7, %v15377_v40  ;;  %v13857_v12 = vld [vmem:[#allocation7 + $0x152] sm:$0xff] }
 0x460   :  { %5183 = vst.msk [vmem:[#allocation7 + $0xa0] sm:$0xff] %vm97_vm0, %v13826_v60  ;;  %5025 = vst.msk [vmem:[#allocation7 + $0x101] sm:$0xff] %vm97_vm0, %v4992_v0  ;;  %v5071_v31 = vld [vmem:[#allocation7 + $0x222] sm:$0x1]  ;;  %v5176_v43 = vld [vmem:[#allocation7 + $0xc8] sm:$0x3]  ;;  %v5645_v39 = vpack.c.bf16 %v5634_v6, %v13838_v1  ;;  %v4856_v48 = vmul.f32 %v13505_v47, %v4817_v24  ;;  %v4872_v49 = vmul.f32 %v13505_v47, %v4833_v32 }
 0x461   :  { %5041 = vst.msk [vmem:[#allocation7 + $0x241] sm:$0xff] %vm97_vm0, %v5008_v36  ;;  %5187 = vst.msk [vmem:[#allocation7 + $0x1e0] sm:$0xff] %vm97_vm0, %v5634_v6  ;;  %v5134_v51 = vld [vmem:[#allocation7 + $0x217] sm:$0x1]  ;;  %v5496_v8 = vld [vmem:[#allocation7 + $0x142] sm:$0xff]  ;;  %v4857_v53 = vmul.f32 %v13505_v47, %v4818_v11  ;;  %v4873_v38 = vmul.f32 %v13505_v47, %v4834_v52 }
 0x462   :  { %5102 = vst.msk [vmem:[#allocation7 + $0x210] sm:$0x1] %vm2331_vm2, %v5070_v58  ;;  %5103 = vst.msk [vmem:[#allocation7 + $0x220] sm:$0x1] %vm2331_vm2, %v5071_v31  ;;  %v5135_v62 = vld [vmem:[#allocation7 + $0x227] sm:$0x1]  ;;  %5665 = vrot.lane.b32.xlu0 %v5645_v39, %s10485_s15  ;;  %v4895_v28 = vadd.f32 %v13511_v19, %v4856_v48  ;;  %v4911_v45 = vadd.f32 %v13511_v19, %v4872_v49  ;;  %v5512_v35 = vpack.c.bf16 %v13857_v12, %v5496_v8 }
 0x463   :  { %5184 = vst.msk [vmem:[#allocation7 + $0xa8] sm:$0x3] %vm2313_vm3, %v5176_v43  ;;  %v5118_v46 = vld [vmem:[#allocation7 + $0xd7] sm:$0x1]  ;;  %v5208_v14 = vld [vmem:[#allocation7 + $0x140] sm:$0xff]  ;;  %v4896_v27 = vadd.f32 %v13511_v19, %v4857_v53  ;;  %v4912_v47 = vadd.f32 %v13511_v19, %v4873_v38 }
 0x464   :  { %5166 = vst.msk [vmem:[#allocation7 + $0x219] sm:$0x1] %vm2331_vm2, %v5134_v51  ;;  %5167 = vst.msk [vmem:[#allocation7 + $0x229] sm:$0x1] %vm2331_vm2, %v5135_v62  ;;  %v5054_v9 = vld [vmem:[#allocation7 + $0xd2] sm:$0x1]  ;;  %v5224_v5 = vpack.c.bf16 %v13632_v33, %v5208_v14  ;;  %v4961_v19 = vmul.f32 %v13528_v57, %v4895_v28  ;;  %v4977_v41 = vmul.f32 %v13528_v57, %v4911_v45 }
 0x465   :  { %5150 = vst.msk [vmem:[#allocation7 + $0xd9] sm:$0x1] %vm2331_vm2, %v5118_v46  ;;  %v5072_v59 = vld [vmem:[#allocation7 + $0x232] sm:$0x1]  ;;  %v5136_v20 = vld [vmem:[#allocation7 + $0x237] sm:$0x1]  ;;  %v4962_v33 = vmul.f32 %v13528_v57, %v4896_v27  ;;  %v4978_v16 = vmul.f32 %v13528_v57, %v4912_v47  ;;  %v5226_v62 = vpack.c.bf16 %v13726_v50, %v13696_v10 }
 0x466   :  { %5086 = vst.msk [vmem:[#allocation7 + $0xd0] sm:$0x1] %vm2331_vm2, %v5054_v9  ;;  %5104 = vst.msk [vmem:[#allocation7 + $0x230] sm:$0x1] %vm2331_vm2, %v5072_v59  ;;  %v13861_v29 = vld [vmem:[#allocation7 + $0x172] sm:$0xff]  ;;  %vm4928_vm8 = vcmp.ge.f32.partialorder %v4895_v28, 0.0 }
 0x467   :  { %5168 = vst.msk [vmem:[#allocation7 + $0x239] sm:$0x1] %vm2331_vm2, %v5136_v20  ;;  %v5119_v25 = vld [vmem:[#allocation7 + $0xe7] sm:$0x1]  ;;  %v5120_v18 = vld [vmem:[#allocation7 + $0xf7] sm:$0x1]  ;;  %v4993_v42 = vsel %vm4928_vm8, %v4895_v28, %v4961_v19 }
 0x468   :  { %v5055_v4 = vld [vmem:[#allocation7 + $0xe2] sm:$0x1]  ;;  %vm4944_vm9 = vcmp.ge.f32.partialorder %v4911_v45, 0.0  ;;  %v13868_v37 = vld [vmem:[#allocation7 + $0x192] sm:$0xff]  ;;  %5151 = vst.msk [vmem:[#allocation7 + $0xe9] sm:$0x1] %vm2331_vm2, %v5119_v25 }
 0x469   :  { %5152 = vst.msk [vmem:[#allocation7 + $0xf9] sm:$0x1] %vm2331_vm2, %v5120_v18  ;;  %v5056_v26 = vld [vmem:[#allocation7 + $0xf2] sm:$0x1]  ;;  %5087 = vst.msk [vmem:[#allocation7 + $0xe0] sm:$0x1] %vm2331_vm2, %v5055_v4  ;;  %v5009_v0 = vsel %vm4944_vm9, %v4911_v45, %v4977_v41  ;;  %v5227_v45 = vpack.c.bf16 %v13774_v61, %v13728_v63 }
 0x46a   :  { %v13873_v44 = vld [vmem:[#allocation7 + $0x41] sm:$0xff]  ;;  %vm4929_vm10 = vcmp.ge.f32.partialorder %v4896_v27, 0.0  ;;  %vm4945_vm11 = vcmp.ge.f32.partialorder %v4912_v47, 0.0  ;;  %v5345_v55 = vld [vmem:[#allocation7 + $0x1f1] sm:$0xff]  ;;  %5088 = vst.msk [vmem:[#allocation7 + $0xf0] sm:$0x1] %vm2331_vm2, %v5056_v26 }
 0x46b   :  { %v5344_v22 = vld [vmem:[#allocation7 + $0x1e1] sm:$0xff]  ;;  %5520 = vst.msk [vmem:[#allocation5 + $0x8] sm:$0xff] %vm97_vm0, %v5512_v35  ;;  %5232 = vst.msk [vmem:[#allocation5] sm:$0xff] %vm97_vm0, %v5224_v5  ;;  %v13884_v7 = vld [vmem:[#allocation7 + $0x31] sm:$0xff]  ;;  %v4994_v54 = vsel %vm4929_vm10, %v4896_v27, %v4962_v33  ;;  %v5010_v32 = vsel %vm4945_vm11, %v4912_v47, %v4978_v16 }
 0x46c   :  { %v5073_v15 = vld [vmem:[#allocation7 + $0x242] sm:$0x1]  ;;  %v5356_v57 = vpack.c.bf16 %v5345_v55, %v5344_v22  ;;  %v5635_v36 = vld [vmem:[#allocation7 + $0x210] sm:$0xff]  ;;  %5026 = vst.msk [vmem:[#allocation7 + $0x111] sm:$0xff] %vm97_vm0, %v4993_v42  ;;  %5042 = vst.msk [vmem:[#allocation7 + $0x251] sm:$0xff] %vm97_vm0, %v5009_v0  ;;  %v5835_v48 = vpack.c.bf16 %v13873_v44, %v13884_v7 }
 0x46d   :  { %v13877_v13 = vld [vmem:[#allocation7 + $0x162] sm:$0xff]  ;;  %5105 = vst.msk [vmem:[#allocation7 + $0x240] sm:$0x1] %vm2331_vm2, %v5073_v15  ;;  %v5347_v11 = vld [vmem:[#allocation7 + $0x211] sm:$0xff] }
 0x46e   :  { %v13882_v2 = vld [vmem:[#allocation7 + $0x160] sm:$0xff]  ;;  %5027 = vst.msk [vmem:[#allocation7 + $0x121] sm:$0xff] %vm97_vm0, %v4994_v54  ;;  %5043 = vst.msk [vmem:[#allocation7 + $0x261] sm:$0xff] %vm97_vm0, %v5010_v32  ;;  %5376 = vrot.lane.b32.xlu1 %v5356_v57, %s10485_s15  ;;  %v13902_v43 = vld [vmem:[#allocation7 + $0x1b2] sm:$0xff]  ;;  %v5513_v51 = vpack.c.bf16 %v13861_v29, %v13877_v13 }
 0x46f   :  { %v5636_v6 = vld [vmem:[#allocation7 + $0x220] sm:$0xff]  ;;  %v5225_v8 = vpack.c.bf16 %v13705_v17, %v13882_v2  ;;  %v13912_v49 = vld [vmem:[#allocation7 + $0x51] sm:$0xff]  ;;  %5234 = vst.msk [vmem:[#allocation5 + $0xe0] sm:$0xff] %vm97_vm0, %v5226_v62  ;;  %5235 = vst.msk [vmem:[#allocation5 + $0x150] sm:$0xff] %vm97_vm0, %v5227_v45  ;;  %v5930_v45 = vpack.c.bf16 %v13877_v13, %v13857_v12 }
 0x470   :  { %v13889_v58 = vld [vmem:[#allocation7 + $0x182] sm:$0xff]  ;;  %v5646_v21 = vpack.c.bf16 %v5636_v6, %v5635_v36  ;;  %v13915_v38 = vld [vmem:[#allocation7 + $0x212] sm:$0xff]  ;;  %5521 = vst.msk [vmem:[#allocation5 + $0x78] sm:$0xff] %vm97_vm0, %v5513_v51  ;;  %v5418_v41 = vpack.c.bf16 %v13912_v49, %v13873_v44 }
 0x471   :  { %v13891_v24 = vld [vmem:[#allocation7 + $0x61] sm:$0xff]  ;;  %v5514_v46 = vpack.c.bf16 %v13868_v37, %v13889_v58  ;;  %v13924_v9 = vld [vmem:[#allocation7 + $0x1f2] sm:$0xff]  ;;  %5233 = vst.msk [vmem:[#allocation5 + $0x70] sm:$0xff] %vm97_vm0, %v5225_v8 }
 0x472   :  { %v5137_v40 = vld [vmem:[#allocation7 + $0x247] sm:$0x1]  ;;  %v5057_v39 = vld [vmem:[#allocation7 + $0x102] sm:$0x1]  ;;  %5667 = vrot.lane.b32.xlu0 %v5646_v21, %s10485_s15  ;;  %v13926_v28 = vld [vmem:[#allocation7 + $0x232] sm:$0xff]  ;;  %v5836_v10 = vpack.c.bf16 %v13891_v24, %v13912_v49  ;;  %5426 = vst.msk [vmem:[#allocation5 + $0x108] sm:$0xff] %vm97_vm0, %v5418_v41 }
 0x473   :  { %v5121_v52 = vld [vmem:[#allocation7 + $0x107] sm:$0x1]  ;;  %5169 = vst.msk [vmem:[#allocation7 + $0x249] sm:$0x1] %vm2331_vm2, %v5137_v40  ;;  %5089 = vst.msk [vmem:[#allocation7 + $0x100] sm:$0x1] %vm2331_vm2, %v5057_v39 }
 0x474   :  { %v13900_v31 = vld [vmem:[#allocation7 + $0x1a2] sm:$0xff]  ;;  %5153 = vst.msk [vmem:[#allocation7 + $0x109] sm:$0x1] %vm2331_vm2, %v5121_v52  ;;  %v13934_v50 = vld [vmem:[#allocation7 + $0x71] sm:$0xff] }
 0x475   :  { %v5346_v53 = vld [vmem:[#allocation7 + $0x201] sm:$0xff]  ;;  %v5349_v27 = vld [vmem:[#allocation7 + $0x231] sm:$0xff]  ;;  %5522 = vst.msk [vmem:[#allocation5 + $0xe8] sm:$0xff] %vm97_vm0, %v5514_v46  ;;  %v5515_v20 = vpack.c.bf16 %v13902_v43, %v13900_v31  ;;  %v5419_v55 = vpack.c.bf16 %v13934_v50, %v13891_v24 }
 0x476   :  { %v5504_v14 = vld [vmem:[#allocation7 + $0x1e2] sm:$0xff]  ;;  %v13922_v17 = vpack.c.bf16 %v5347_v11, %v5346_v53  ;;  %v5637_v35 = vld [vmem:[#allocation7 + $0x230] sm:$0xff] }
 0x477   :  { %v13936_v47 = vld [vmem:[#allocation7 + $0x202] sm:$0xff]  ;;  %v5516_v25 = vpack.c.bf16 %v13924_v9, %v5504_v14  ;;  %5523 = vst.msk [vmem:[#allocation5 + $0x158] sm:$0xff] %vm97_vm0, %v5515_v20  ;;  %v5074_v16 = vld [vmem:[#allocation7 + $0x252] sm:$0x1]  ;;  %v5138_v22 = vld [vmem:[#allocation7 + $0x257] sm:$0x1] }
 0x478   :  { %v13938_v59 = vld [vmem:[#allocation7 + $0x222] sm:$0xff]  ;;  %5378 = vrot.lane.b32.xlu1 %v13922_v17, %s10485_s15  ;;  %v5517_v61 = vpack.c.bf16 %v13915_v38, %v13936_v47  ;;  %v5351_v15 = vld [vmem:[#allocation7 + $0x251] sm:$0xff]  ;;  %5106 = vst.msk [vmem:[#allocation7 + $0x250] sm:$0x1] %vm2331_vm2, %v5074_v16  ;;  %5170 = vst.msk [vmem:[#allocation7 + $0x259] sm:$0x1] %vm2331_vm2, %v5138_v22 }
 0x479   :  { %v13947_v63 = vld [vmem:[#allocation7 + $0x21] sm:$0xff]  ;;  %v5518_v18 = vpack.c.bf16 %v13926_v28, %v13938_v59  ;;  %5524 = vst.msk [vmem:[#allocation5 + $0x1c8] sm:$0xff] %vm97_vm0, %v5516_v25  ;;  %v5122_v57 = vld [vmem:[#allocation7 + $0x117] sm:$0x1]  ;;  %5427 = vst.msk [vmem:[#allocation5 + $0x178] sm:$0xff] %vm97_vm0, %v5419_v55 }
 0x47a   :  { %v5348_v4 = vld [vmem:[#allocation7 + $0x221] sm:$0xff]  ;;  %v5417_v19 = vpack.c.bf16 %v13884_v7, %v13947_v63  ;;  %5525 = vst.msk [vmem:[#allocation5 + $0x238] sm:$0xff] %vm97_vm0, %v5517_v61  ;;  %v5058_v6 = vld [vmem:[#allocation7 + $0x112] sm:$0x1] }
 0x47b   :  { %v5638_v5 = vld [vmem:[#allocation7 + $0x240] sm:$0xff]  ;;  %v13960_v26 = vpack.c.bf16 %v5349_v27, %v5348_v4  ;;  %5526 = vst.msk [vmem:[#allocation5 + $0x2a8] sm:$0xff] %vm97_vm0, %v5518_v18  ;;  %v10273_v52 = vld [vmem:[%s15364_s11 + $0xc8] sm:$0xff]   ;;  %v5219_v53 = vld [vmem:[#allocation7 + $0x210] sm:$0xff] }
 0x47c   :  { %v5647_v33 = vpack.c.bf16 %v5638_v5, %v5637_v35  ;;  %v5075_v42 = vld [vmem:[#allocation7 + $0x262] sm:$0x1]  ;;  %v5139_v0 = vld [vmem:[#allocation7 + $0x267] sm:$0x1]  ;;  %5425 = vst.msk [vmem:[#allocation5 + $0x98] sm:$0xff] %vm97_vm0, %v5417_v19  ;;  %v10274_v51 = vld [vmem:[%s15364_s11 + $0x88] sm:$0xff]  }
 0x47d   :  { %5380 = vrot.lane.b32.xlu1 %v13960_v26, %s10485_s15  ;;  %5107 = vst.msk [vmem:[#allocation7 + $0x260] sm:$0x1] %vm2331_vm2, %v5075_v42  ;;  %5171 = vst.msk [vmem:[#allocation7 + $0x269] sm:$0x1] %vm2331_vm2, %v5139_v0  ;;  %v5350_v36 = vld [vmem:[#allocation7 + $0x241] sm:$0xff]  ;;  %v10275_v62 = vld [vmem:[%s15364_s11 + $0xd0] sm:$0xff]  }
 0x47e   :  { %5669 = vrot.lane.b32.xlu0 %v5647_v33, %s10485_s15  ;;  %5154 = vst.msk [vmem:[#allocation7 + $0x119] sm:$0x1] %vm2331_vm2, %v5122_v57  ;;  %v13977_v54 = vpack.c.bf16 %v5351_v15, %v5350_v36  ;;  %5090 = vst.msk [vmem:[#allocation7 + $0x110] sm:$0x1] %vm2331_vm2, %v5058_v6  ;;  %v10270_v32 = vld [vmem:[%s15364_s11 + $0x80] sm:$0xff]   ;;  %v14000_v46 = vld [vmem:[#allocation7 + $0xd1] sm:$0xff] }
 0x47f   :  { %v5216_v21 = vld [vmem:[#allocation7 + $0x1e0] sm:$0xff]  ;;  %9697 = vmatpush3.bf16.msra.mxu0 %v10270_v32  ;;  %v5639_v27 = vld [vmem:[#allocation7 + $0x250] sm:$0xff]  ;;  %v5197_v25 = vld [vmem:[#allocation7 + $0x258] sm:$0x3] }
 0x480   :  { %v13983_v11 = vld [vmem:[#allocation7 + $0xc1] sm:$0xff]  ;;  %v5228_v40 = vpack.c.bf16 %v13838_v1, %v5216_v21  ;;  %9698 = vmatprep.subr.bf16.mxu0 %v10273_v52  ;;  %v14006_v20 = vld [vmem:[#allocation7 + $0x252] sm:$0xff]  ;;  %5205 = vst.msk [vmem:[#allocation7 + $0x270] sm:$0xff] %vm97_vm0, %v5639_v27 }
 0x481   :  { %5382 = vrot.lane.b32.xlu1 %v13977_v54, %s10485_s15  ;;  %v13991_v39 = vld [vmem:[#allocation7 + $0x242] sm:$0xff]  ;;  %v5421_v18 = vpack.c.bf16 %v14000_v46, %v13983_v11  ;;  %5206 = vst.msk [vmem:[#allocation7 + $0x278] sm:$0x3] %vm2313_vm3, %v5197_v25  ;;  %v5529_v5 = vld [vmem:[#allocation7 + $0x12] sm:$0xff] }
 0x482   :  { %v5218_v8 = vld [vmem:[#allocation7 + $0x200] sm:$0xff]  ;;  %5236 = vst.msk [vmem:[#allocation5 + $0x1c0] sm:$0xff] %vm97_vm0, %v5228_v40  ;;  %v5519_v12 = vpack.c.bf16 %v14006_v20, %v13991_v39  ;;  %v10276_v19 = vld [vmem:[%s15364_s11 + $0x90] sm:$0xff]   ;;  %v10279_v15 = vld [vmem:[%s15364_s11 + $0xd8] sm:$0xff]  }
 0x483   :  { %v5229_v1 = vpack.c.bf16 %v5219_v53, %v5218_v8  ;;  %v14002_v14 = vld [vmem:[#allocation7 + $0xe1] sm:$0xff]  ;;  %9699 = vmatpush3.bf16.msra.mxu0 %v10274_v51  ;;  %5429 = vst.msk [vmem:[#allocation5 + $0x258] sm:$0xff] %vm97_vm0, %v5421_v18  ;;  %v5221_v16 = vld [vmem:[#allocation7 + $0x230] sm:$0xff]  ;;  %v10280_v57 = vld [vmem:[%s15364_s11 + $0x98] sm:$0xff]   ;;  %v5931_v8 = vpack.c.bf16 %v13889_v58, %v13861_v29 }
 0x484   :  { %v5839_v61 = vpack.c.bf16 %v14002_v14, %v14000_v46  ;;  %v5640_v4 = vld [vmem:[#allocation7 + $0x260] sm:$0xff]  ;;  %9700 = vmatprep.subr.bf16.mxu0 %v10275_v62  ;;  %5527 = vst.msk [vmem:[#allocation5 + $0x318] sm:$0xff] %vm97_vm0, %v5519_v12  ;;  %v5223_v0 = vld [vmem:[#allocation7 + $0x250] sm:$0xff]  ;;  %v10265_v7 = vld [vmem:[%s15364_s11 + $0x148] sm:$0xff]  }
 0x485   :  { %v5528_v35 = vld [vmem:[#allocation7 + $0x2] sm:$0xff]  ;;  %5237 = vst.msk [vmem:[#allocation5 + $0x230] sm:$0xff] %vm97_vm0, %v5229_v1  ;;  %6103 = vst.msk [vmem:[#allocation5 + $0x1d8] sm:$0xff] %vm97_vm0, %v5229_v1  ;;  %5946 = vrot.lane.b32.xlu1 %v5930_v45, %s10485_s15  ;;  %v5648_v13 = vpack.c.bf16 %v5640_v4, %v5639_v27  ;;  %v14023_v41 = vld [vmem:[#allocation7 + $0x110] sm:$0xff] }
 0x486   :  { %v5220_v33 = vld [vmem:[#allocation7 + $0x220] sm:$0xff]  ;;  %v5544_v22 = vpack.c.bf16 %v5529_v5, %v5528_v35  ;;  %5201 = vst.msk [vmem:[#allocation7 + $0x130] sm:$0xff] %vm97_vm0, %v14023_v41  ;;  %v14037_v6 = vld [vmem:[#allocation7 + $0xf1] sm:$0xff]  ;;  %v10285_v35 = vld [vmem:[%s15364_s11 + $0xe8] sm:$0xff]  }
 0x487   :  { %5671 = vrot.lane.b32.xlu0 %v5648_v13, %s10485_s15  ;;  %v5230_v55 = vpack.c.bf16 %v5221_v16, %v5220_v33  ;;  %v5222_v42 = vld [vmem:[#allocation7 + $0x240] sm:$0xff]  ;;  %9701 = vmatpush3.bf16.msra.mxu0 %v10276_v19  ;;  %v5422_v51 = vpack.c.bf16 %v14037_v6, %v14002_v14  ;;  %v5241_v53 = vld [vmem:[#allocation7 + $0x10] sm:$0xff]  ;;  %v10286_v33 = vld [vmem:[%s15364_s11 + $0xa8] sm:$0xff]  }
 0x488   :  { %v5231_v36 = vpack.c.bf16 %v5223_v0, %v5222_v42  ;;  %v14039_v32 = vld [vmem:[#allocation7 + $0x101] sm:$0xff]  ;;  %9702 = vmatprep.subr.bf16.mxu0 %v10279_v15  ;;  %v14053_v1 = vld [vmem:[#allocation7 + $0x11] sm:$0xff]  ;;  %v5932_v0 = vpack.c.bf16 %v13900_v31, %v13868_v37 }
 0x489   :  { %5560 = vrot.lane.b32.xlu1 %v5544_v22, %s10485_s15  ;;  %5238 = vst.msk [vmem:[#allocation5 + $0x2a0] sm:$0xff] %vm97_vm0, %v5230_v55  ;;  %6104 = vst.msk [vmem:[#allocation5 + $0x248] sm:$0xff] %vm97_vm0, %v5230_v55  ;;  %v5240_v21 = vld [vmem:[#allocation7] sm:$0xff]  ;;  %v5840_v52 = vpack.c.bf16 %v14039_v32, %v14037_v6  ;;  %v5531_v62 = vld [vmem:[#allocation7 + $0x32] sm:$0xff] }
 0x48a   :  { %v10281_v40 = vld [vmem:[%s15364_s11 + $0xe0] sm:$0xff]   ;;  %5239 = vst.msk [vmem:[#allocation5 + $0x310] sm:$0xff] %vm97_vm0, %v5231_v36  ;;  %6105 = vst.msk [vmem:[#allocation5 + $0x2b8] sm:$0xff] %vm97_vm0, %v5231_v36  ;;  %v6076_v45 = vld [vmem:[#allocation7 + $0x170] sm:$0xff]  ;;  %v5256_v25 = vpack.c.bf16 %v5241_v53, %v5240_v21 }
 0x48b   :  { %6236 = vrot.lane.b32.xlu0 %v13665_v56, %s10485_s15  ;;  %v5400_v27 = vld [vmem:[#allocation7 + $0x1] sm:$0xff]  ;;  %5430 = vst.msk [vmem:[#allocation5 + $0x2c8] sm:$0xff] %vm97_vm0, %v5422_v51  ;;  %9703 = vmatpush3.bf16.msra.mxu0 %v10280_v57  ;;  %v6091_v29 = vpack.c.bf16 %v6076_v45, %v13882_v2  ;;  %v5832_v18 = vld [vmem:[#allocation7 + $0x111] sm:$0xff] }
 0x48c   :  { %v10282_v56 = vld [vmem:[%s15364_s11 + $0xa0] sm:$0xff]   ;;  %v5416_v58 = vpack.c.bf16 %v14053_v1, %v5400_v27  ;;  %9704 = vmatprep.subr.bf16.mxu0 %v10281_v40  ;;  %v5423_v12 = vpack.c.bf16 %v5832_v18, %v14039_v32  ;;  %v5788_v2 = vld [vmem:[#allocation7 + $0x171] sm:$0xff] }
 0x48d   :  { %5948 = vrot.lane.b32.xlu1 %v5931_v8, %s10485_s15  ;;  %v5530_v4 = vld [vmem:[#allocation7 + $0x22] sm:$0xff]  ;;  %6099 = vst.msk [vmem:[#allocation5 + $0x18] sm:$0xff] %vm97_vm0, %v6091_v29  ;;  %v5243_v19 = vld [vmem:[#allocation7 + $0x30] sm:$0xff]  ;;  %v5193_v15 = vld [vmem:[#allocation7 + $0x118] sm:$0x3] }
 0x48e   :  { %v14069_v13 = vpack.c.bf16 %v5531_v62, %v5530_v4  ;;  %5424 = vst.msk [vmem:[#allocation5 + $0x28] sm:$0xff] %vm97_vm0, %v5416_v58  ;;  %v5789_v5 = vld [vmem:[#allocation7 + $0x181] sm:$0xff]  ;;  %5431 = vst.msk [vmem:[#allocation5 + $0x338] sm:$0xff] %vm97_vm0, %v5423_v12  ;;  %v10287_v22 = vld [vmem:[%s15364_s11 + $0xf0] sm:$0xff]   ;;  %v14092_v40 = vpack.c.bf16 %v5243_v19, %v13635_v30 }
 0x48f   :  { %5272 = vrot.lane.b32.xlu0 %v5256_v25, %s10485_s15  ;;  %v5803_v16 = vpack.c.bf16 %v5789_v5, %v5788_v2  ;;  %9705 = vmatpush3.bf16.msra.mxu0 %v10282_v56  ;;  %v5123_v55 = vld [vmem:[#allocation7 + $0x127] sm:$0x1]  ;;  %v5059_v42 = vld [vmem:[#allocation7 + $0x122] sm:$0x1]  ;;  %5202 = vst.msk [vmem:[#allocation7 + $0x138] sm:$0x3] %vm2313_vm3, %v5193_v15 }
 0x490   :  { %9706 = vmatprep.subr.bf16.mxu0 %v10285_v35  ;;  %5155 = vst.msk [vmem:[#allocation7 + $0x129] sm:$0x1] %vm2331_vm2, %v5123_v55  ;;  %5091 = vst.msk [vmem:[#allocation7 + $0x120] sm:$0x1] %vm2331_vm2, %v5059_v42  ;;  %v5533_v57 = vld [vmem:[#allocation7 + $0x52] sm:$0xff]  ;;  %v6077_v36 = vld [vmem:[#allocation7 + $0x180] sm:$0xff]  ;;  %v5934_v42 = vpack.c.bf16 %v13936_v47, %v13924_v9 }
 0x491   :  { %5562 = vrot.lane.b32.xlu1 %v14069_v13, %s10485_s15  ;;  %5811 = vst.msk [vmem:[#allocation5 + $0x80] sm:$0xff] %vm97_vm0, %v5803_v16  ;;  %v6078_v21 = vld [vmem:[#allocation7 + $0x190] sm:$0xff]  ;;  %v5532_v31 = vld [vmem:[#allocation7 + $0x42] sm:$0xff]  ;;  %v10291_v51 = vld [vmem:[%s15364_s11 + $0xf8] sm:$0xff]  }
 0x492   :  { %v6092_v37 = vpack.c.bf16 %v6078_v21, %v6077_v36  ;;  %v14102_v8 = vpack.c.bf16 %v5533_v57, %v5532_v31  ;;  %v5790_v30 = vld [vmem:[#allocation7 + $0x191] sm:$0xff]  ;;  %v5791_v53 = vld [vmem:[#allocation7 + $0x1a1] sm:$0xff] }
 0x493   :  { %6238 = vrot.lane.b32.xlu0 %v13756_v3, %s10485_s15  ;;  %9707 = vmatpush3.bf16.msra.mxu0 %v10286_v33  ;;  %v10288_v3 = vld [vmem:[%s15364_s11 + $0xb0] sm:$0xff]   ;;  %v5921_v62 = vld [vmem:[#allocation7 + $0x1c2] sm:$0xff]  ;;  %v5804_v45 = vpack.c.bf16 %v5791_v53, %v5790_v30  ;;  %v10292_v27 = vld [vmem:[%s15364_s11 + $0xb8] sm:$0xff]  }
 0x494   :  { %9708 = vmatprep.subr.bf16.mxu0 %v10287_v22  ;;  %6100 = vst.msk [vmem:[#allocation5 + $0x88] sm:$0xff] %vm97_vm0, %v6092_v37  ;;  %v5245_v25 = vld [vmem:[#allocation7 + $0x50] sm:$0xff]  ;;  %v5933_v56 = vpack.c.bf16 %v5921_v62, %v13902_v43  ;;  %v5244_v29 = vld [vmem:[#allocation7 + $0x40] sm:$0xff] }
 0x495   :  { %5950 = vrot.lane.b32.xlu1 %v5932_v0, %s10485_s15  ;;  %5812 = vst.msk [vmem:[#allocation5 + $0xf0] sm:$0xff] %vm97_vm0, %v5804_v45  ;;  %v10295_v58 = vld [vmem:[%s15364_s11 + $0x1c0] sm:$0xff]   ;;  %v5535_v18 = vld [vmem:[#allocation7 + $0x72] sm:$0xff]  ;;  %v14118_v4 = vpack.c.bf16 %v5245_v25, %v5244_v29  ;;  %v5935_v25 = vpack.c.bf16 %v13938_v59, %v13915_v38 }
 0x496   :  { %v5534_v35 = vld [vmem:[#allocation7 + $0x62] sm:$0xff]  ;;  %v6080_v2 = vld [vmem:[#allocation7 + $0x1b0] sm:$0xff] }
 0x497   :  { %5274 = vrot.lane.b32.xlu0 %v14092_v40, %s10485_s15  ;;  %9709 = vmatpush3.bf16.msra.mxu0 %v10288_v3  ;;  %v6079_v12 = vld [vmem:[#allocation7 + $0x1a0] sm:$0xff]  ;;  %v6211_v5 = vld [vmem:[#allocation7 + $0x1d1] sm:$0xff] }
 0x498   :  { %9710 = vmatprep.subr.bf16.mxu0 %v10291_v51  ;;  %v6093_v19 = vpack.c.bf16 %v6080_v2, %v6079_v12  ;;  %v5792_v43 = vld [vmem:[#allocation7 + $0x1b1] sm:$0xff]  ;;  %v5793_v33 = vld [vmem:[#allocation7 + $0x1c1] sm:$0xff] }
 0x499   :  { %5564 = vrot.lane.b32.xlu1 %v14102_v8, %s10485_s15  ;;  %v6210_v16 = vld [vmem:[#allocation7 + $0x1c1] sm:$0xff]  ;;  %v5805_v22 = vpack.c.bf16 %v5793_v33, %v5792_v43  ;;  %v14134_v0 = vld [vmem:[%s15368_s2 + $0x30] sm:$0xff] }
 0x49a   :  { %6101 = vst.msk [vmem:[#allocation5 + $0xf8] sm:$0xff] %vm97_vm0, %v6093_v19  ;;  %v6223_v55 = vpack.c.bf16 %v6211_v5, %v6210_v16  ;;  %v5246_v15 = vld [vmem:[#allocation7 + $0x60] sm:$0xff]  ;;  %v6082_v9 = vld [vmem:[#allocation7 + $0x1d0] sm:$0xff] }
 0x49b   :  { %6240 = vrot.lane.b32.xlu0 %v13760_v34, %s10485_s15  ;;  %9711 = vmatpush3.bf16.msra.mxu0 %v10292_v27  ;;  %v14122_v34 = vpack.c.bf16 %v5535_v18, %v5534_v35  ;;  %5813 = vst.msk [vmem:[#allocation5 + $0x160] sm:$0xff] %vm97_vm0, %v5805_v22  ;;  %v14139_v57 = vld [vmem:[%s15368_s2 + $0x40] sm:$0xff]  ;;  %v14145_v37 = vpack.c.bf16 %v13803_v23, %v5246_v15  ;;  %v5794_v47 = vld [vmem:[#allocation7 + $0x1f1] sm:$0xff] }
 0x49c   :  { %9824 = vmatprep.subr.bf16.mxu0 %v10295_v58  ;;  %v5536_v36 = vld [vmem:[#allocation7 + $0xa2] sm:$0xff]  ;;  %v5739_v21 = vpack.c.bf16 %v14139_v57, %v14134_v0  ;;  %v5537_v51 = vld [vmem:[#allocation7 + $0xb2] sm:$0xff] }
 0x49d   :  { %5952 = vrot.lane.b32.xlu1 %v5933_v56, %s10485_s15  ;;  %v6081_v3 = vld [vmem:[#allocation7 + $0x1c0] sm:$0xff]  ;;  %v5548_v62 = vpack.c.bf16 %v5537_v51, %v5536_v36  ;;  %v5249_v27 = vld [vmem:[#allocation7 + $0xb0] sm:$0xff] }
 0x49e   :  { %v5795_v31 = vld [vmem:[#allocation7 + $0x201] sm:$0xff]  ;;  %v6094_v30 = vpack.c.bf16 %v6082_v9, %v6081_v3  ;;  %v5539_v23 = vld [vmem:[#allocation7 + $0xd2] sm:$0xff] }
 0x49f   :  { %5276 = vrot.lane.b32.xlu0 %v14118_v4, %s10485_s15  ;;  %v5806_v53 = vpack.c.bf16 %v5795_v31, %v5794_v47  ;;  %v5248_v45 = vld [vmem:[#allocation7 + $0xa0] sm:$0xff]  ;;  %v14156_v56 = vld [vmem:[#allocation7 + $0xb1] sm:$0xff] }
 0x4a0   :  { %6102 = vst.msk [vmem:[#allocation5 + $0x168] sm:$0xff] %vm97_vm0, %v6094_v30  ;;  %v5408_v29 = vld [vmem:[#allocation7 + $0xa1] sm:$0xff]  ;;  %v5796_v58 = vld [vmem:[#allocation7 + $0x211] sm:$0xff]  ;;  %v5260_v35 = vpack.c.bf16 %v5249_v27, %v5248_v45 }
 0x4a1   :  { %5566 = vrot.lane.b32.xlu1 %v14122_v34, %s10485_s15  ;;  %5814 = vst.msk [vmem:[#allocation5 + $0x1d0] sm:$0xff] %vm97_vm0, %v5806_v53  ;;  %v5797_v18 = vld [vmem:[#allocation7 + $0x221] sm:$0xff]  ;;  %v5420_v12 = vpack.c.bf16 %v14156_v56, %v5408_v29  ;;  %v5251_v38 = vld [vmem:[#allocation7 + $0xd0] sm:$0xff]  ;;  %v5834_v29 = vpack.c.bf16 %v13947_v63, %v14053_v1 }
 0x4a2   :  { %v5807_v2 = vpack.c.bf16 %v5797_v18, %v5796_v58  ;;  %v5538_v5 = vld [vmem:[#allocation7 + $0xc2] sm:$0xff]  ;;  %v5541_v59 = vld [vmem:[#allocation7 + $0xf2] sm:$0xff]  ;;  %v14173_v16 = vpack.c.bf16 %v5251_v38, %v13826_v60 }
 0x4a3   :  { %6242 = vrot.lane.b32.xlu0 %v6223_v55, %s10485_s15  ;;  %v14161_v19 = vpack.c.bf16 %v5539_v23, %v5538_v5  ;;  %5428 = vst.msk [vmem:[#allocation5 + $0x1e8] sm:$0xff] %vm97_vm0, %v5420_v12  ;;  %v5798_v43 = vld [vmem:[#allocation7 + $0x231] sm:$0xff]  ;;  %v5799_v33 = vld [vmem:[#allocation7 + $0x241] sm:$0xff] }
 0x4a4   :  { %5815 = vst.msk [vmem:[#allocation5 + $0x240] sm:$0xff] %vm97_vm0, %v5807_v2  ;;  %v5808_v22 = vpack.c.bf16 %v5799_v33, %v5798_v43  ;;  %v5540_v55 = vld [vmem:[#allocation7 + $0xe2] sm:$0xff]  ;;  %v5543_v9 = vld [vmem:[#allocation7 + $0x112] sm:$0xff] }
 0x4a5   :  { %5954 = vrot.lane.b32.xlu1 %v5934_v42, %s10485_s15  ;;  %v14177_v15 = vpack.c.bf16 %v5541_v59, %v5540_v55  ;;  %v5801_v42 = vld [vmem:[#allocation7 + $0x261] sm:$0xff]  ;;  %v6219_v51 = vld [vmem:[#allocation7 + $0x271] sm:$0xff] }
 0x4a6   :  { %5816 = vst.msk [vmem:[#allocation5 + $0x2b0] sm:$0xff] %vm97_vm0, %v5808_v22  ;;  %v5252_v3 = vld [vmem:[#allocation7 + $0xe0] sm:$0xff]  ;;  %v6090_v45 = vld [vmem:[#allocation7 + $0x270] sm:$0xff] }
 0x4a7   :  { %5278 = vrot.lane.b32.xlu0 %v14145_v37, %s10485_s15  ;;  %v5542_v31 = vld [vmem:[#allocation7 + $0x102] sm:$0xff]  ;;  %v6269_v5 = vld [vmem:[#allocation7 + $0x31] sm:$0xff] }
 0x4a8   :  { %v14191_v53 = vpack.c.bf16 %v5543_v9, %v5542_v31  ;;  %v5690_v27 = vld [vmem:[#allocation7 + $0x20] sm:$0xff]  ;;  %v5978_v33 = vld [vmem:[#allocation7 + $0x12] sm:$0xff] }
 0x4a9   :  { %5568 = vrot.lane.b32.xlu1 %v5548_v62, %s10485_s15  ;;  %v6089_v62 = vld [vmem:[#allocation7 + $0x260] sm:$0xff]  ;;  %v5691_v55 = vld [vmem:[#allocation7 + $0x30] sm:$0xff] }
 0x4aa   :  { %v6098_v23 = vpack.c.bf16 %v6090_v45, %v6089_v62  ;;  %v5254_v18 = vld [vmem:[#allocation7 + $0x100] sm:$0xff]  ;;  %v5435_v44 = vld [vmem:[%s15368_s2 + $0x31] sm:$0xff] }
 0x4ab   :  { %6244 = vrot.lane.b32.xlu0 %v13922_v17, %s10485_s15  ;;  %v5936_v17 = vpack.c.bf16 %v13991_v39, %v13926_v28  ;;  %v5253_v28 = vld [vmem:[#allocation7 + $0xf0] sm:$0xff]  ;;  %v5432_v12 = vld [vmem:[%s15368_s2 + $0x1] sm:$0xff] }
 0x4ac   :  { %v5800_v39 = vld [vmem:[#allocation7 + $0x251] sm:$0xff]  ;;  %v14186_v47 = vpack.c.bf16 %v5253_v28, %v5252_v3  ;;  %6106 = vst.msk [vmem:[#allocation5 + $0x328] sm:$0xff] %vm97_vm0, %v6098_v23  ;;  %v6268_v2 = vld [vmem:[#allocation7 + $0x21] sm:$0xff] }
 0x4ad   :  { %5956 = vrot.lane.b32.xlu1 %v5935_v25, %s10485_s15  ;;  %v5809_v36 = vpack.c.bf16 %v5801_v42, %v5800_v39  ;;  %v5689_v25 = vld [vmem:[#allocation7 + $0x10] sm:$0xff]  ;;  %v14213_v1 = vld [vmem:[%s15368_s2 + $0x20] sm:$0xff]  ;;  %v6284_v43 = vpack.c.bf16 %v6269_v5, %v6268_v2 }
 0x4ae   :  { %v5705_v58 = vpack.c.bf16 %v5690_v27, %v5689_v25  ;;  %v5321_v38 = vpack.c.bf16 %v14134_v0, %v14213_v1  ;;  %v5979_v22 = vld [vmem:[#allocation7 + $0x22] sm:$0xff]  ;;  %v10268_v5 = vld [vmem:[%s15364_s11 + $0x110] sm:$0xff]  }
 0x4af   :  { %5280 = vrot.lane.b32.xlu0 %v5260_v35, %s10485_s15  ;;  %5817 = vst.msk [vmem:[#allocation5 + $0x320] sm:$0xff] %vm97_vm0, %v5809_v36  ;;  %v14202_v35 = vpack.c.bf16 %v14023_v41, %v5254_v18  ;;  %v5433_v41 = vld [vmem:[%s15368_s2 + $0x11] sm:$0xff]  ;;  %v5692_v28 = vld [vmem:[#allocation7 + $0x40] sm:$0xff]  ;;  %6292 = vst.msk [vmem:[#allocation5 + $0x40] sm:$0xff] %vm97_vm0, %v6284_v43 }
 0x4b0   :  { %v5658_v30 = vpop.permute.xlu0 %5657  ;;  %5713 = vst.msk [vmem:[#allocation5 + $0x30] sm:$0xff] %vm97_vm0, %v5705_v58  ;;  %5329 = vst.msk [vmem:[#allocation5 + $0xb8] sm:$0xff] %vm97_vm0, %v5321_v38  ;;  %v5448_v39 = vpack.c.bf16 %v5433_v41, %v5432_v12  ;;  %v5706_v42 = vpack.c.bf16 %v5692_v28, %v5691_v55  ;;  %v5434_v31 = vld [vmem:[%s15368_s2 + $0x21] sm:$0xff]  ;;  %v5693_v58 = vld [vmem:[#allocation7 + $0x50] sm:$0xff] }
 0x4b1   :  { %5570 = vrot.lane.b32.xlu1 %v14161_v19, %s10485_s15  ;;  %5681 = vst.msk [vmem:[#allocation5 + $0x8] sm:$0xff] %vm258_vm1, %v5658_v30  ;;  %v6271_v30 = vld [vmem:[#allocation7 + $0x51] sm:$0xff]  ;;  %v5981_v25 = vld [vmem:[#allocation7 + $0x42] sm:$0xff] }
 0x4b2   :  { %5714 = vst.msk [vmem:[#allocation5 + $0xa0] sm:$0xff] %vm97_vm0, %v5706_v42  ;;  %v5694_v18 = vld [vmem:[#allocation7 + $0x60] sm:$0xff]  ;;  %v10266_v12 = vld [vmem:[%s15364_s11 + $0x108] sm:$0xff]   ;;  %v10271_v38 = vld [vmem:[%s15364_s11 + $0x158] sm:$0xff]  }
 0x4b3   :  { %6246 = vrot.lane.b32.xlu0 %v13960_v26, %s10485_s15  ;;  %v5929_v26 = vld [vmem:[#allocation7 + $0x262] sm:$0xff]  ;;  %v5707_v2 = vpack.c.bf16 %v5694_v18, %v5693_v58  ;;  %v14434_v46 = vld [vmem:[%s15368_s2 + $0xf0] sm:$0xff] }
 0x4b4   :  { %v5937_v60 = vpack.c.bf16 %v5929_v26, %v14006_v20  ;;  %v5994_v26 = vpack.c.bf16 %v5979_v22, %v5978_v33  ;;  %v5436_v24 = vld [vmem:[%s15368_s2 + $0x41] sm:$0xff]  ;;  %v5982_v22 = vld [vmem:[#allocation7 + $0x52] sm:$0xff] }
 0x4b5   :  { %5958 = vrot.lane.b32.xlu1 %v5936_v17, %s10485_s15  ;;  %5715 = vst.msk [vmem:[#allocation5 + $0x110] sm:$0xff] %vm97_vm0, %v5707_v2  ;;  %v14300_v49 = vld [vmem:[%s15368_s2 + $0x60] sm:$0xff]  ;;  %v10283_v58 = vld [vmem:[%s15364_s11 + $0x168] sm:$0xff]   ;;  %v5697_v2 = vld [vmem:[#allocation7 + $0xb0] sm:$0xff] }
 0x4b6   :  { %6002 = vst.msk [vmem:[#allocation5 + $0x38] sm:$0xff] %vm97_vm0, %v5994_v26  ;;  %v5983_v55 = vld [vmem:[#allocation7 + $0x62] sm:$0xff]  ;;  %v5445_v6 = vld [vmem:[%s15368_s2 + $0xf1] sm:$0xff] }
 0x4b7   :  { %5282 = vrot.lane.b32.xlu0 %v14173_v16, %s10485_s15  ;;  %v5996_v42 = vpack.c.bf16 %v5983_v55, %v5982_v22  ;;  %v14474_v32 = vld [vmem:[%s15368_s2 + $0x110] sm:$0xff] }
 0x4b8   :  { %v6493_v63 = vld [vmem:[#allocation5 + $0x8] sm:$0xff] }
 0x4b9   :  { %5572 = vrot.lane.b32.xlu1 %v14177_v15, %s10485_s15  ;;  %7524 = vmatprep.mubr.bf16.mxu1 %v6493_v63  ;;  %v10267_v63 = vld [vmem:[%s15364_s11 + $0x150] sm:$0xff]   ;;  %6004 = vst.msk [vmem:[#allocation5 + $0x118] sm:$0xff] %vm97_vm0, %v5996_v42 }
 0x4ba   :  { %v5369_v17 = vpop.permute.xlu1 %5368  ;;  %v5699_v42 = vld [vmem:[#allocation7 + $0xd0] sm:$0xff] }
 0x4bb   :  { %6248 = vrot.lane.b32.xlu0 %v13977_v54, %s10485_s15  ;;  %v6218_v54 = vld [vmem:[#allocation7 + $0x261] sm:$0xff]  ;;  %v5660_v59 = vpop.permute.xlu0 %5659  ;;  %5392 = vst.msk [vmem:[#allocation5] sm:$0xff] %vm258_vm1, %v5369_v17 }
 0x4bc   :  { %v6227_v20 = vpack.c.bf16 %v6219_v51, %v6218_v54  ;;  %5682 = vst.msk [vmem:[#allocation5 + $0x78] sm:$0xff] %vm258_vm1, %v5660_v59  ;;  %v6270_v51 = vld [vmem:[#allocation7 + $0x41] sm:$0xff]  ;;  %v5980_v54 = vld [vmem:[#allocation7 + $0x32] sm:$0xff] }
 0x4bd   :  { %5960 = vrot.lane.b32.xlu1 %v5937_v60, %s10485_s15  ;;  %v5304_v60 = vld [vmem:[%s15368_s2] sm:$0xff]  ;;  %v6285_v23 = vpack.c.bf16 %v6271_v30, %v6270_v51  ;;  %v6273_v59 = vld [vmem:[#allocation7 + $0x71] sm:$0xff] }
 0x4be   :  { %v5371_v3 = vpop.permute.xlu1 %5370  ;;  %v6272_v17 = vld [vmem:[#allocation7 + $0x61] sm:$0xff]  ;;  %v6275_v30 = vld [vmem:[#allocation7 + $0x91] sm:$0xff] }
 0x4bf   :  { %5284 = vrot.lane.b32.xlu0 %v14186_v47, %s10485_s15  ;;  %5393 = vst.msk [vmem:[#allocation5 + $0x70] sm:$0xff] %vm258_vm1, %v5371_v3  ;;  %v6286_v43 = vpack.c.bf16 %v6273_v59, %v6272_v17  ;;  %v5696_v3 = vld [vmem:[#allocation7 + $0x80] sm:$0xff]  ;;  %v6277_v59 = vld [vmem:[#allocation7 + $0xd1] sm:$0xff] }
 0x4c0   :  { %6293 = vst.msk [vmem:[#allocation5 + $0xb0] sm:$0xff] %vm97_vm0, %v6285_v23  ;;  %v6274_v51 = vld [vmem:[#allocation7 + $0x81] sm:$0xff] }
 0x4c1   :  { %5574 = vrot.lane.b32.xlu1 %v14191_v53, %s10485_s15  ;;  %6294 = vst.msk [vmem:[#allocation5 + $0x120] sm:$0xff] %vm97_vm0, %v6286_v43  ;;  %v6113_v23 = vld [vmem:[#allocation7 + $0x80] sm:$0xff]  ;;  %v5838_v43 = vpack.c.bf16 %v13983_v11, %v14156_v56  ;;  %v10290_v11 = vld [vmem:[%s15364_s11 + $0x130] sm:$0xff]  }
 0x4c2   :  { %v5662_v9 = vpop.permute.xlu0 %5661  ;;  %v6492_v45 = vld [vmem:[#allocation5] sm:$0xff] }
 0x4c3   :  { %6250 = vrot.lane.b32.xlu0 %v6227_v20, %s10485_s15  ;;  %5683 = vst.msk [vmem:[#allocation5 + $0xe8] sm:$0xff] %vm258_vm1, %v5662_v9  ;;  %v5373_v62 = vpop.permute.xlu1 %5372  ;;  %v6507_v27 = vld [vmem:[#allocation5 + $0x78] sm:$0xff]  ;;  %7525 = vmatmul.mubr.bf16.vlgmr.msra.gmra.mrb[184].mxu1 %v6492_v45  ;;  %v5985_v45 = vld [vmem:[#allocation7 + $0x82] sm:$0xff] }
 0x4c4   :  { %5394 = vst.msk [vmem:[#allocation5 + $0xe0] sm:$0xff] %vm258_vm1, %v5373_v62  ;;  %7532 = vmatprep.mubr.bf16.mxu1 %v6507_v27  ;;  %v5984_v62 = vld [vmem:[#allocation7 + $0x72] sm:$0xff]  ;;  %v14375_v56 = vld [vmem:[%s15368_s2 + $0xc0] sm:$0xff] }
 0x4c5   :  { %5850 = vrot.lane.b32.xlu1 %v5834_v29, %s10485_s15  ;;  %v5995_v29 = vpack.c.bf16 %v5981_v25, %v5980_v54  ;;  %v6114_v54 = vld [vmem:[#allocation7 + $0x90] sm:$0xff]  ;;  %v5438_v25 = vld [vmem:[%s15368_s2 + $0x61] sm:$0xff]  ;;  %v5997_v18 = vpack.c.bf16 %v5985_v45, %v5984_v62 }
 0x4c6   :  { %v6506_v28 = vld [vmem:[#allocation5 + $0x70] sm:$0xff]  ;;  %v6126_v17 = vpack.c.bf16 %v6114_v54, %v6113_v23 }
 0x4c7   :  { %5286 = vrot.lane.b32.xlu0 %v14202_v35, %s10485_s15  ;;  %6003 = vst.msk [vmem:[#allocation5 + $0xa8] sm:$0xff] %vm97_vm0, %v5995_v29  ;;  %v5375_v41 = vpop.permute.xlu1 %5374  ;;  %v5439_v29 = vld [vmem:[%s15368_s2 + $0x71] sm:$0xff]  ;;  %6005 = vst.msk [vmem:[#allocation5 + $0x188] sm:$0xff] %vm97_vm0, %v5997_v18 }
 0x4c8   :  { %5395 = vst.msk [vmem:[#allocation5 + $0x150] sm:$0xff] %vm258_vm1, %v5375_v41  ;;  %v14361_v55 = vpack.c.bf16 %v5439_v29, %v5438_v25  ;;  %v6279_v45 = vld [vmem:[#allocation7 + $0xf1] sm:$0xff]  ;;  %v5989_v29 = vld [vmem:[#allocation7 + $0xe2] sm:$0xff] }
 0x4c9   :  { %6428 = vrot.lane.b32.xlu1 %v14069_v13, %s10485_s15  ;;  %v14230_v13 = vld [vmem:[%s15368_s2 + $0x10] sm:$0xff] }
 0x4ca   :  { %v5320_v36 = vpack.c.bf16 %v14230_v13, %v5304_v60  ;;  %v6521_v33 = vld [vmem:[#allocation5 + $0xe8] sm:$0xff]  ;;  %v5695_v60 = vld [vmem:[#allocation7 + $0x70] sm:$0xff] }
 0x4cb   :  { %6139 = vrot.lane.b32.xlu0 %v14092_v40, %s10485_s15  ;;  %v10264_v40 = vld [vmem:[%s15364_s11 + $0x100] sm:$0xff]   ;;  %7533 = vmatmul.mubr.bf16.gmra.mrb[188].mxu1 %v6506_v28  ;;  %v5986_v28 = vld [vmem:[#allocation7 + $0xb2] sm:$0xff] }
 0x4cc   :  { %5328 = vst.msk [vmem:[#allocation5 + $0x48] sm:$0xff] %vm97_vm0, %v5320_v36  ;;  %9761 = vmatpush3.bf16.msra.mxu1 %v10264_v40  ;;  %v6403_v36 = vld [vmem:[#allocation7 + $0x92] sm:$0xff]  ;;  %7540 = vmatprep.mubr.bf16.mxu1 %v6521_v33  ;;  %v6520_v41 = vld [vmem:[#allocation5 + $0xe0] sm:$0xff] }
 0x4cd   :  { %5852 = vrot.lane.b32.xlu1 %v5835_v48, %s10485_s15  ;;  %v14261_v48 = vld [vmem:[%s15368_s2 + $0x50] sm:$0xff]  ;;  %9762 = vmatprep.subr.bf16.mxu1 %v10265_v7  ;;  %v6402_v7 = vld [vmem:[#allocation7 + $0x82] sm:$0xff] }
 0x4ce   :  { %v5322_v20 = vpack.c.bf16 %v14261_v48, %v14139_v57  ;;  %v5664_v40 = vpop.permute.xlu0 %5663  ;;  %v6415_v27 = vpack.c.bf16 %v6403_v36, %v6402_v7  ;;  %v10289_v33 = vld [vmem:[%s15364_s11 + $0x170] sm:$0xff]   ;;  %v10293_v36 = vld [vmem:[%s15364_s11 + $0x178] sm:$0xff]  }
 0x4cf   :  { %5464 = vrot.lane.b32.xlu0 %v5448_v39, %s10485_s15  ;;  %v5437_v39 = vld [vmem:[%s15368_s2 + $0x51] sm:$0xff]  ;;  %5684 = vst.msk [vmem:[#allocation5 + $0x158] sm:$0xff] %vm258_vm1, %v5664_v40 }
 0x4d0   :  { %5330 = vst.msk [vmem:[#allocation5 + $0x128] sm:$0xff] %vm97_vm0, %v5322_v20  ;;  %9763 = vmatpush3.bf16.msra.mxu1 %v10266_v12  ;;  %v6287_v20 = vpack.c.bf16 %v6275_v30, %v6274_v51  ;;  %v5441_v7 = vld [vmem:[%s15368_s2 + $0xb1] sm:$0xff] }
 0x4d1   :  { %6430 = vrot.lane.b32.xlu1 %v14102_v8, %s10485_s15  ;;  %v14276_v8 = vpack.c.bf16 %v5435_v44, %v5434_v31  ;;  %9764 = vmatprep.subr.bf16.mxu1 %v10267_v63  ;;  %v5708_v31 = vpack.c.bf16 %v5696_v3, %v5695_v60  ;;  %v14326_v44 = vpack.c.bf16 %v5437_v39, %v5436_v24  ;;  %v5698_v63 = vld [vmem:[#allocation7 + $0xc0] sm:$0xff]  ;;  %v6534_v54 = vld [vmem:[#allocation5 + $0x150] sm:$0xff] }
 0x4d2   :  { %6295 = vst.msk [vmem:[#allocation5 + $0x190] sm:$0xff] %vm97_vm0, %v6287_v20  ;;  %v5987_v39 = vld [vmem:[#allocation7 + $0xc2] sm:$0xff]  ;;  %v5988_v25 = vld [vmem:[#allocation7 + $0xd2] sm:$0xff] }
 0x4d3   :  { %6141 = vrot.lane.b32.xlu0 %v14118_v4, %s10485_s15  ;;  %v5825_v4 = vld [vmem:[#allocation7 + $0x81] sm:$0xff]  ;;  %5716 = vst.msk [vmem:[#allocation5 + $0x180] sm:$0xff] %vm97_vm0, %v5708_v31  ;;  %7541 = vmatmul.mubr.bf16.gmra.mrb[192].mxu1 %v6520_v41  ;;  %v5998_v3 = vpack.c.bf16 %v5987_v39, %v5986_v28  ;;  %v5999_v18 = vpack.c.bf16 %v5989_v29, %v5988_v25  ;;  %v6365_v29 = vld [vmem:[#allocation7 + $0x172] sm:$0xff] }
 0x4d4   :  { %v5837_v9 = vpack.c.bf16 %v5825_v4, %v13934_v50  ;;  %9765 = vmatpush3.bf16.msra.mxu1 %v10268_v5  ;;  %v10277_v50 = vld [vmem:[%s15364_s11 + $0x160] sm:$0xff]   ;;  %v5666_v12 = vpop.permute.xlu0 %5665  ;;  %v10284_v5 = vld [vmem:[%s15364_s11 + $0x128] sm:$0xff]   ;;  %v5709_v4 = vpack.c.bf16 %v5698_v63, %v5697_v2  ;;  %v5701_v2 = vld [vmem:[#allocation7 + $0xf0] sm:$0xff] }
 0x4d5   :  { %5854 = vrot.lane.b32.xlu1 %v5836_v10, %s10485_s15  ;;  %v14305_v10 = vld [vmem:[%s15368_s2 + $0x70] sm:$0xff]  ;;  %9766 = vmatprep.subr.bf16.mxu1 %v10271_v38  ;;  %5685 = vst.msk [vmem:[#allocation5 + $0x1c8] sm:$0xff] %vm258_vm1, %v5666_v12  ;;  %v6276_v38 = vld [vmem:[#allocation7 + $0xc1] sm:$0xff] }
 0x4d6   :  { %v5323_v26 = vpack.c.bf16 %v14305_v10, %v14300_v49  ;;  %v6535_v24 = vld [vmem:[#allocation5 + $0x158] sm:$0xff]  ;;  %5717 = vst.msk [vmem:[#allocation5 + $0x1f0] sm:$0xff] %vm97_vm0, %v5709_v4  ;;  %v6288_v22 = vpack.c.bf16 %v6277_v59, %v6276_v38  ;;  %v5700_v60 = vld [vmem:[#allocation7 + $0xe0] sm:$0xff]  ;;  %6006 = vst.msk [vmem:[#allocation5 + $0x1f8] sm:$0xff] %vm97_vm0, %v5998_v3 }
 0x4d7   :  { %5466 = vrot.lane.b32.xlu0 %v14276_v8, %s10485_s15  ;;  %7548 = vmatprep.mubr.bf16.mxu1 %v6535_v24  ;;  %v5710_v40 = vpack.c.bf16 %v5700_v60, %v5699_v42  ;;  %v5440_v31 = vld [vmem:[%s15368_s2 + $0xa1] sm:$0xff]  ;;  %6007 = vst.msk [vmem:[#allocation5 + $0x268] sm:$0xff] %vm97_vm0, %v5999_v18  ;;  %v6281_v4 = vld [vmem:[#allocation7 + $0x111] sm:$0xff] }
 0x4d8   :  { %5331 = vst.msk [vmem:[#allocation5 + $0x198] sm:$0xff] %vm97_vm0, %v5323_v26  ;;  %v14366_v26 = vld [vmem:[%s15368_s2 + $0xb0] sm:$0xff]  ;;  %6296 = vst.msk [vmem:[#allocation5 + $0x200] sm:$0xff] %vm97_vm0, %v6288_v22  ;;  %v5452_v12 = vpack.c.bf16 %v5441_v7, %v5440_v31  ;;  %v5702_v63 = vld [vmem:[#allocation7 + $0x100] sm:$0xff] }
 0x4d9   :  { %6432 = vrot.lane.b32.xlu1 %v14122_v34, %s10485_s15  ;;  %v10272_v34 = vld [vmem:[%s15364_s11 + $0x118] sm:$0xff]   ;;  %5718 = vst.msk [vmem:[#allocation5 + $0x260] sm:$0xff] %vm97_vm0, %v5710_v40  ;;  %v14425_v41 = vld [vmem:[%s15368_s2 + $0xe0] sm:$0xff] }
 0x4da   :  { %9767 = vmatpush3.bf16.msra.mxu1 %v10272_v34  ;;  %v5442_v24 = vld [vmem:[%s15368_s2 + $0xc1] sm:$0xff]  ;;  %v5990_v22 = vld [vmem:[#allocation7 + $0xf2] sm:$0xff] }
 0x4db   :  { %6143 = vrot.lane.b32.xlu0 %v14145_v37, %s10485_s15  ;;  %v10278_v37 = vld [vmem:[%s15364_s11 + $0x120] sm:$0xff]   ;;  %9768 = vmatprep.subr.bf16.mxu1 %v10277_v50  ;;  %v14393_v50 = vld [vmem:[%s15368_s2 + $0xd0] sm:$0xff] }
 0x4dc   :  { %v6549_v20 = vld [vmem:[#allocation5 + $0x1c8] sm:$0xff]  ;;  %v5325_v62 = vpack.c.bf16 %v14393_v50, %v14375_v56  ;;  %7549 = vmatmul.mubr.bf16.gmra.mrb[196].mxu1 %v6534_v54  ;;  %v5704_v42 = vld [vmem:[#allocation7 + $0x120] sm:$0xff]  ;;  %v6283_v40 = vld [vmem:[#allocation7 + $0x131] sm:$0xff] }
 0x4dd   :  { %5856 = vrot.lane.b32.xlu1 %v5837_v9, %s10485_s15  ;;  %v5312_v9 = vld [vmem:[%s15368_s2 + $0xa0] sm:$0xff]  ;;  %7556 = vmatprep.mubr.bf16.mxu1 %v6549_v20  ;;  %v5992_v31 = vld [vmem:[#allocation7 + $0x112] sm:$0xff] }
 0x4de   :  { %9769 = vmatpush3.bf16.msra.mxu1 %v10278_v37  ;;  %v5324_v51 = vpack.c.bf16 %v14366_v26, %v5312_v9  ;;  %v6278_v37 = vld [vmem:[#allocation7 + $0xe1] sm:$0xff]  ;;  %5333 = vst.msk [vmem:[#allocation5 + $0x278] sm:$0xff] %vm97_vm0, %v5325_v62 }
 0x4df   :  { %5468 = vrot.lane.b32.xlu0 %v14326_v44, %s10485_s15  ;;  %9770 = vmatprep.subr.bf16.mxu1 %v10283_v58  ;;  %v6289_v23 = vpack.c.bf16 %v6279_v45, %v6278_v37  ;;  %v5991_v28 = vld [vmem:[#allocation7 + $0x102] sm:$0xff] }
 0x4e0   :  { %v5377_v34 = vpop.permute.xlu1 %5376  ;;  %5332 = vst.msk [vmem:[#allocation5 + $0x208] sm:$0xff] %vm97_vm0, %v5324_v51  ;;  %v6000_v39 = vpack.c.bf16 %v5991_v28, %v5990_v22  ;;  %v5833_v9 = vld [vmem:[#allocation7 + $0x121] sm:$0xff]  ;;  %v5738_v28 = vpack.c.bf16 %v14213_v1, %v14230_v13  ;;  %v8823_v1 = vld [vmem:[%s15368_s2 + $0x30] sm:$0xff] }
 0x4e1   :  { %6434 = vrot.lane.b32.xlu1 %v6415_v27, %s10485_s15  ;;  %5396 = vst.msk [vmem:[#allocation5 + $0x1c0] sm:$0xff] %vm258_vm1, %v5377_v34  ;;  %v10294_v27 = vld [vmem:[%s15364_s11 + $0x138] sm:$0xff]   ;;  %v5993_v7 = vld [vmem:[#allocation7 + $0x122] sm:$0xff] }
 0x4e2   :  { %9771 = vmatpush3.bf16.msra.mxu1 %v10284_v5  ;;  %6297 = vst.msk [vmem:[#allocation5 + $0x270] sm:$0xff] %vm97_vm0, %v6289_v23  ;;  %v6280_v5 = vld [vmem:[#allocation7 + $0x101] sm:$0xff]  ;;  %6008 = vst.msk [vmem:[#allocation5 + $0x2d8] sm:$0xff] %vm97_vm0, %v6000_v39 }
 0x4e3   :  { %6145 = vrot.lane.b32.xlu0 %v6126_v17, %s10485_s15  ;;  %9772 = vmatprep.subr.bf16.mxu1 %v10289_v33  ;;  %v6290_v14 = vpack.c.bf16 %v6281_v4, %v6280_v5  ;;  %v5326_v33 = vpack.c.bf16 %v14434_v46, %v14425_v41  ;;  %v5444_v54 = vld [vmem:[%s15368_s2 + $0xe1] sm:$0xff] }
 0x4e4   :  { %v5668_v30 = vpop.permute.xlu0 %5667  ;;  %v14490_v25 = vpack.c.bf16 %v5445_v6, %v5444_v54  ;;  %v8791_v18 = vld [vmem:[%s15368_s2 + $0x21] sm:$0xff] }
 0x4e5   :  { %5858 = vrot.lane.b32.xlu1 %v5838_v43, %s10485_s15  ;;  %5686 = vst.msk [vmem:[#allocation5 + $0x238] sm:$0xff] %vm258_vm1, %v5668_v30  ;;  %v5443_v43 = vld [vmem:[%s15368_s2 + $0xd1] sm:$0xff]  ;;  %v6121_v4 = vld [vmem:[#allocation7 + $0x120] sm:$0xff]  ;;  %v10299_v6 = vld [vmem:[%s15364_s11 + $0x1c8] sm:$0xff]  }
 0x4e6   :  { %9773 = vmatpush3.bf16.msra.mxu1 %v10290_v11  ;;  %6298 = vst.msk [vmem:[#allocation5 + $0x2e0] sm:$0xff] %vm97_vm0, %v6290_v14  ;;  %v5703_v11 = vld [vmem:[#allocation7 + $0x110] sm:$0xff]  ;;  %5334 = vst.msk [vmem:[#allocation5 + $0x2e8] sm:$0xff] %vm97_vm0, %v5326_v33  ;;  %v14452_v3 = vpack.c.bf16 %v5443_v43, %v5442_v24 }
 0x4e7   :  { %5470 = vrot.lane.b32.xlu0 %v14361_v55, %s10485_s15  ;;  %9774 = vmatprep.subr.bf16.mxu1 %v10293_v36  ;;  %v5712_v36 = vpack.c.bf16 %v5704_v42, %v5703_v11  ;;  %v5593_v24 = vld [vmem:[%s15368_s2 + $0x12] sm:$0xff]  ;;  %v8809_v42 = vld [vmem:[%s15368_s2 + $0x42] sm:$0xff] }
 0x4e8   :  { %v6548_v59 = vld [vmem:[#allocation5 + $0x1c0] sm:$0xff]  ;;  %v8808_v11 = vld [vmem:[%s15368_s2 + $0x32] sm:$0xff] }
 0x4e9   :  { %6436 = vrot.lane.b32.xlu1 %v14161_v19, %s10485_s15  ;;  %v10297_v19 = vld [vmem:[%s15364_s11 + $0x240] sm:$0xff]   ;;  %7557 = vmatmul.mubr.bf16.gmra.mrb[200].mxu1 %v6548_v59  ;;  %5720 = vst.msk [vmem:[#allocation5 + $0x340] sm:$0xff] %vm97_vm0, %v5712_v36  ;;  %v8806_v36 = vld [vmem:[%s15368_s2 + $0x12] sm:$0xff]  ;;  %v6027_v54 = vpack.c.bf16 %v8809_v42, %v8808_v11 }
 0x4ea   :  { %v5379_v58 = vpop.permute.xlu1 %5378  ;;  %9775 = vmatpush3.bf16.msra.mxu1 %v10294_v27  ;;  %v10484_v27 = vld [vmem:[#allocation7 + $0x111] sm:$0xff]  ;;  %v5592_v59 = vld [vmem:[%s15368_s2 + $0x2] sm:$0xff] }
 0x4eb   :  { %6147 = vrot.lane.b32.xlu0 %v14173_v16, %s10485_s15  ;;  %5397 = vst.msk [vmem:[#allocation5 + $0x230] sm:$0xff] %vm258_vm1, %v5379_v58  ;;  %v5711_v16 = vpack.c.bf16 %v5702_v63, %v5701_v2  ;;  %9888 = vmatprep.subr.bf16.mxu1 %v10297_v19  ;;  %v5841_v23 = vpack.c.bf16 %v5833_v9, %v10484_v27  ;;  %v6411_v58 = vld [vmem:[#allocation7 + $0x132] sm:$0xff]  ;;  %v6364_v63 = vld [vmem:[#allocation7 + $0x162] sm:$0xff] }
 0x4ec   :  { %v8790_v19 = vld [vmem:[%s15368_s2 + $0x11] sm:$0xff]  ;;  %v5608_v14 = vpack.c.bf16 %v5593_v24, %v5592_v59  ;;  %v10296_v9 = vld [vmem:[%s15364_s11 + $0x180] sm:$0xff]  }
 0x4ed   :  { %5860 = vrot.lane.b32.xlu1 %v5839_v61, %s10485_s15  ;;  %5719 = vst.msk [vmem:[#allocation5 + $0x2d0] sm:$0xff] %vm97_vm0, %v5711_v16  ;;  %v6563_v61 = vld [vmem:[#allocation5 + $0x238] sm:$0xff]  ;;  %v6122_v2 = vld [vmem:[#allocation7 + $0x130] sm:$0xff]  ;;  %v5594_v27 = vld [vmem:[%s15368_s2 + $0x22] sm:$0xff] }
 0x4ee   :  { %7564 = vmatprep.mubr.bf16.mxu1 %v6563_v61  ;;  %v6380_v61 = vpack.c.bf16 %v6365_v29, %v6364_v63  ;;  %v6130_v39 = vpack.c.bf16 %v6122_v2, %v6121_v4  ;;  %5616 = vst.msk [vmem:[#allocation5 + $0x50] sm:$0xff] %vm97_vm0, %v5608_v14  ;;  %v10303_v63 = vld [vmem:[%s15364_s11 + $0x1d0] sm:$0xff]   ;;  %v5596_v59 = vld [vmem:[%s15368_s2 + $0x42] sm:$0xff]  ;;  %v10307_v11 = vld [vmem:[%s15364_s11 + $0x1d8] sm:$0xff]  }
 0x4ef   :  { %v5381_v38 = vpop.permute.xlu1 %5380  ;;  %5472 = vrot.lane.b32.xlu0 %v5452_v12, %s10485_s15  ;;  %v8794_v4 = vld [vmem:[%s15368_s2 + $0x51] sm:$0xff] }
 0x4f0   :  { %v5670_v17 = vpop.permute.xlu0 %5669  ;;  %5398 = vst.msk [vmem:[#allocation5 + $0x2a0] sm:$0xff] %vm258_vm1, %v5381_v38  ;;  %v5446_v38 = vld [vmem:[%s15368_s2 + $0x101] sm:$0xff]  ;;  %v10304_v24 = vld [vmem:[%s15364_s11 + $0x190] sm:$0xff]  }
 0x4f1   :  { %5687 = vst.msk [vmem:[#allocation5 + $0x2a8] sm:$0xff] %vm258_vm1, %v5670_v17  ;;  %6438 = vrot.lane.b32.xlu1 %v14177_v15, %s10485_s15  ;;  %v6282_v15 = vld [vmem:[#allocation7 + $0x121] sm:$0xff]  ;;  %v5447_v17 = vld [vmem:[%s15368_s2 + $0x111] sm:$0xff] }
 0x4f2   :  { %v6291_v34 = vpack.c.bf16 %v6283_v40, %v6282_v15  ;;  %v6562_v30 = vld [vmem:[#allocation5 + $0x230] sm:$0xff]  ;;  %v14539_v40 = vpack.c.bf16 %v5447_v17, %v5446_v38  ;;  %v8795_v17 = vld [vmem:[%s15368_s2 + $0x61] sm:$0xff] }
 0x4f3   :  { %v5383_v60 = vpop.permute.xlu1 %5382  ;;  %6149 = vrot.lane.b32.xlu0 %v14186_v47, %s10485_s15  ;;  %v14463_v47 = vld [vmem:[%s15368_s2 + $0x100] sm:$0xff]  ;;  %7565 = vmatmul.mubr.bf16.gmra.mrb[204].mxu1 %v6562_v30  ;;  %v5900_v14 = vpack.c.bf16 %v8795_v17, %v8794_v4 }
 0x4f4   :  { %5399 = vst.msk [vmem:[#allocation5 + $0x310] sm:$0xff] %vm258_vm1, %v5383_v60  ;;  %v5327_v37 = vpack.c.bf16 %v14474_v32, %v14463_v47  ;;  %v8822_v60 = vld [vmem:[%s15368_s2 + $0x20] sm:$0xff] }
 0x4f5   :  { %5862 = vrot.lane.b32.xlu1 %v5840_v52, %s10485_s15  ;;  %v6001_v52 = vpack.c.bf16 %v5993_v7, %v5992_v31  ;;  %6299 = vst.msk [vmem:[#allocation5 + $0x350] sm:$0xff] %vm97_vm0, %v6291_v34  ;;  %v6188_v15 = vpack.c.bf16 %v8823_v1, %v8822_v60  ;;  %v8792_v34 = vld [vmem:[%s15368_s2 + $0x31] sm:$0xff]  ;;  %v8793_v31 = vld [vmem:[%s15368_s2 + $0x41] sm:$0xff]  ;;  %5908 = vst.msk [vmem:[#allocation5 + $0x138] sm:$0xff] %vm97_vm0, %v5900_v14 }
 0x4f6   :  { %5335 = vst.msk [vmem:[#allocation5 + $0x358] sm:$0xff] %vm97_vm0, %v5327_v37  ;;  %v8807_v30 = vld [vmem:[%s15368_s2 + $0x22] sm:$0xff]  ;;  %v6367_v37 = vld [vmem:[#allocation7 + $0x192] sm:$0xff] }
 0x4f7   :  { %v5947_v51 = vpop.permute.xlu1 %5946  ;;  %5474 = vrot.lane.b32.xlu0 %v14452_v3, %s10485_s15  ;;  %6009 = vst.msk [vmem:[#allocation5 + $0x348] sm:$0xff] %vm97_vm0, %v6001_v52  ;;  %v6576_v33 = vld [vmem:[#allocation5 + $0x2a0] sm:$0xff]  ;;  %6196 = vst.msk [vmem:[#allocation5 + $0x60] sm:$0xff] %vm97_vm0, %v6188_v15  ;;  %v5899_v52 = vpack.c.bf16 %v8793_v31, %v8792_v34  ;;  %v6026_v29 = vpack.c.bf16 %v8807_v30, %v8806_v36  ;;  %v8812_v1 = vld [vmem:[%s15368_s2 + $0x72] sm:$0xff] }
 0x4f8   :  { %5970 = vst.msk [vmem:[#allocation5 + $0x10] sm:$0xff] %vm258_vm1, %v5947_v51  ;;  %v6577_v20 = vld [vmem:[#allocation5 + $0x2a8] sm:$0xff]  ;;  %v14628_v36 = vld [vmem:[%s15368_s2 + $0x52] sm:$0xff]  ;;  %v14702_v17 = vld [vmem:[%s15368_s2 + $0x80] sm:$0xff] }
 0x4f9   :  { %v5672_v62 = vpop.permute.xlu0 %5671  ;;  %6440 = vrot.lane.b32.xlu1 %v14191_v53, %s10485_s15  ;;  %7572 = vmatprep.mubr.bf16.mxu1 %v6577_v20  ;;  %v6410_v53 = vld [vmem:[#allocation7 + $0x122] sm:$0xff]  ;;  %5907 = vst.msk [vmem:[#allocation5 + $0xc8] sm:$0xff] %vm97_vm0, %v5899_v52  ;;  %v8845_v30 = vld [vmem:[%s15368_s2 + $0x91] sm:$0xff] }
 0x4fa   :  { %5688 = vst.msk [vmem:[#allocation5 + $0x318] sm:$0xff] %vm258_vm1, %v5672_v62  ;;  %v6419_v5 = vpack.c.bf16 %v6411_v58, %v6410_v53  ;;  %v10300_v53 = vld [vmem:[%s15364_s11 + $0x188] sm:$0xff]   ;;  %v8826_v52 = vld [vmem:[%s15368_s2 + $0x60] sm:$0xff] }
 0x4fb   :  { %v5561_v45 = vpop.permute.xlu1 %5560  ;;  %6151 = vrot.lane.b32.xlu0 %v14202_v35, %s10485_s15  ;;  %v5898_v35 = vpack.c.bf16 %v8791_v18, %v8790_v19  ;;  %7573 = vmatmul.mubr.bf16.gmra.mrb[208].mxu1 %v6576_v33  ;;  %v8824_v19 = vld [vmem:[%s15368_s2 + $0x40] sm:$0xff]  ;;  %v8825_v18 = vld [vmem:[%s15368_s2 + $0x50] sm:$0xff] }
 0x4fc   :  { %5584 = vst.msk [vmem:[#allocation5 + $0x28] sm:$0xff] %vm258_vm1, %v5561_v45  ;;  %v6366_v45 = vld [vmem:[#allocation7 + $0x182] sm:$0xff] }
 0x4fd   :  { %v6237_v12 = vpop.permute.xlu0 %6236  ;;  %5864 = vrot.lane.b32.xlu1 %v5841_v23, %s10485_s15  ;;  %5906 = vst.msk [vmem:[#allocation5 + $0x58] sm:$0xff] %vm97_vm0, %v5898_v35  ;;  %v5595_v23 = vld [vmem:[%s15368_s2 + $0x32] sm:$0xff]  ;;  %v6368_v60 = vld [vmem:[#allocation7 + $0x1a2] sm:$0xff] }
 0x4fe   :  { %6260 = vst.msk [vmem:[#allocation5 + $0x18] sm:$0xff] %vm258_vm1, %v6237_v12  ;;  %v5609_v58 = vpack.c.bf16 %v5595_v23, %v5594_v27  ;;  %v6381_v12 = vpack.c.bf16 %v6367_v37, %v6366_v45  ;;  %v6590_v35 = vld [vmem:[#allocation5 + $0x310] sm:$0xff]  ;;  %v8811_v15 = vld [vmem:[%s15368_s2 + $0x62] sm:$0xff] }
 0x4ff   :  { %v5949_v16 = vpop.permute.xlu1 %5948  ;;  %5476 = vrot.lane.b32.xlu0 %v14490_v25, %s10485_s15  ;;  %v6494_v20 = vld [vmem:[#allocation5 + $0x10] sm:$0xff]  ;;  %v14644_v34 = vld [vmem:[%s15368_s2 + $0x81] sm:$0xff] }
 0x500   :  { %5971 = vst.msk [vmem:[#allocation5 + $0x80] sm:$0xff] %vm258_vm1, %v5949_v16  ;;  %v6189_v16 = vpack.c.bf16 %v8825_v18, %v8824_v19  ;;  %v8796_v27 = vld [vmem:[%s15368_s2 + $0x71] sm:$0xff]  ;;  %v8797_v23 = vld [vmem:[%s15368_s2 + $0x81] sm:$0xff] }
 0x501   :  { %v5273_v43 = vpop.permute.xlu0 %5272  ;;  %v6591_v22 = vld [vmem:[#allocation5 + $0x318] sm:$0xff]  ;;  %6442 = vrot.lane.b32.xlu1 %v6419_v5, %s10485_s15  ;;  %5617 = vst.msk [vmem:[#allocation5 + $0xc0] sm:$0xff] %vm97_vm0, %v5609_v58  ;;  %6484 = vst.msk [vmem:[#allocation5 + $0x68] sm:$0xff] %vm97_vm0, %v5609_v58  ;;  %v5901_v58 = vpack.c.bf16 %v8797_v23, %v8796_v27  ;;  %v5598_v19 = vld [vmem:[%s15368_s2 + $0x62] sm:$0xff] }
 0x502   :  { %5296 = vst.msk [vmem:[#allocation5 + $0x20] sm:$0xff] %vm258_vm1, %v5273_v43  ;;  %7580 = vmatprep.mubr.bf16.mxu1 %v6591_v22  ;;  %v6369_v22 = vld [vmem:[#allocation7 + $0x1b2] sm:$0xff]  ;;  %v8817_v14 = vld [vmem:[%s15368_s2 + $0xe2] sm:$0xff] }
 0x503   :  { %6388 = vst.msk [vmem:[#allocation5 + $0x20] sm:$0xff] %vm97_vm0, %v6380_v61  ;;  %v5563_v13 = vpop.permute.xlu1 %5562  ;;  %6153 = vrot.lane.b32.xlu0 %v6130_v39, %s10485_s15  ;;  %7581 = vmatmul.mubr.bf16.gmra.mrb[212].mxu1 %v6590_v35  ;;  %v6497_v5 = vld [vmem:[#allocation5 + $0x28] sm:$0xff]  ;;  %6197 = vst.msk [vmem:[#allocation5 + $0xd0] sm:$0xff] %vm97_vm0, %v6189_v16  ;;  %v5597_v61 = vld [vmem:[%s15368_s2 + $0x52] sm:$0xff]  ;;  %v6382_v31 = vpack.c.bf16 %v6369_v22, %v6368_v60 }
 0x504   :  { %5585 = vst.msk [vmem:[#allocation5 + $0x98] sm:$0xff] %vm258_vm1, %v5563_v13  ;;  %7718 = vmatprep.mubr.bf16.mxu1 %v6497_v5  ;;  %v5610_v39 = vpack.c.bf16 %v5597_v61, %v5596_v59  ;;  %v10301_v13 = vld [vmem:[%s15364_s11 + $0x248] sm:$0xff]   ;;  %v5599_v18 = vld [vmem:[%s15368_s2 + $0x72] sm:$0xff]  ;;  %v8828_v61 = vld [vmem:[%s15368_s2 + $0x80] sm:$0xff] }
 0x505   :  { %v6239_v7 = vpop.permute.xlu0 %6238  ;;  %v6495_v51 = vld [vmem:[#allocation5 + $0x18] sm:$0xff]  ;;  %5754 = vrot.lane.b32.xlu1 %v5738_v28, %s10485_s15  ;;  %v5740_v28 = vpack.c.bf16 %v14300_v49, %v14261_v48  ;;  %v10298_v49 = vld [vmem:[%s15364_s11 + $0x200] sm:$0xff]   ;;  %v10315_v5 = vld [vmem:[%s15364_s11 + $0x1e8] sm:$0xff]   ;;  %5909 = vst.msk [vmem:[#allocation5 + $0x1a8] sm:$0xff] %vm97_vm0, %v5901_v58 }
 0x506   :  { %6261 = vst.msk [vmem:[#allocation5 + $0x88] sm:$0xff] %vm258_vm1, %v6239_v7  ;;  %7621 = vmatprep.mubr.bf16.mxu0 %v6495_v51  ;;  %v6371_v16 = vld [vmem:[#allocation7 + $0x1d2] sm:$0xff]  ;;  %v10327_v58 = vld [vmem:[%s15364_s11 + $0x2c0] sm:$0xff]  }
 0x507   :  { %7622 = vmatmul.mubr.bf16.vlgmr.msra.gmra.mrb[216].mxu0 %v6494_v20  ;;  %v5951_v62 = vpop.permute.xlu1 %5950  ;;  %5478 = vrot.lane.b32.xlu0 %v14539_v40, %s10485_s15  ;;  %v6508_v42 = vld [vmem:[#allocation5 + $0x80] sm:$0xff]  ;;  %5618 = vst.msk [vmem:[#allocation5 + $0x130] sm:$0xff] %vm97_vm0, %v5610_v39  ;;  %6485 = vst.msk [vmem:[#allocation5 + $0xd8] sm:$0xff] %vm97_vm0, %v5610_v39  ;;  %v8827_v20 = vld [vmem:[%s15368_s2 + $0x70] sm:$0xff] }
 0x508   :  { %5972 = vst.msk [vmem:[#allocation5 + $0xf0] sm:$0xff] %vm258_vm1, %v5951_v62  ;;  %9825 = vmatpush3.bf16.msra.mxu0 %v10296_v9  ;;  %v10308_v9 = vld [vmem:[%s15364_s11 + $0x198] sm:$0xff]   ;;  %v10302_v62 = vld [vmem:[%s15364_s11 + $0x208] sm:$0xff]   ;;  %v6190_v45 = vpack.c.bf16 %v8827_v20, %v8826_v52  ;;  %v10314_v20 = vld [vmem:[%s15364_s11 + $0x220] sm:$0xff]  }
 0x509   :  { %v5275_v2 = vpop.permute.xlu0 %5274  ;;  %6044 = vrot.lane.b32.xlu1 %v6027_v54, %s10485_s15  ;;  %9826 = vmatprep.subr.bf16.mxu0 %v10299_v6  ;;  %v10311_v54 = vld [vmem:[%s15364_s11 + $0x1e0] sm:$0xff]   ;;  %v10309_v59 = vld [vmem:[%s15364_s11 + $0x258] sm:$0xff]   ;;  %v10316_v39 = vld [vmem:[%s15364_s11 + $0x1a8] sm:$0xff]  }
 0x50a   :  { %5297 = vst.msk [vmem:[#allocation5 + $0x90] sm:$0xff] %vm258_vm1, %v5275_v2  ;;  %v6496_v51 = vld [vmem:[#allocation5 + $0x20] sm:$0xff]  ;;  %v5611_v2 = vpack.c.bf16 %v5599_v18, %v5598_v19 }
 0x50b   :  { %6389 = vst.msk [vmem:[#allocation5 + $0x90] sm:$0xff] %vm97_vm0, %v6381_v12  ;;  %v5565_v38 = vpop.permute.xlu1 %5564  ;;  %6042 = vrot.lane.b32.xlu0 %v6026_v29, %s10485_s15  ;;  %7719 = vmatmul.mubr.bf16.vlgmr.msra.gmra.mrb[216].mxu1 %v6496_v51  ;;  %v6511_v6 = vld [vmem:[#allocation5 + $0x98] sm:$0xff]  ;;  %v6028_v29 = vpack.c.bf16 %v8811_v15, %v14628_v36  ;;  %v10312_v12 = vld [vmem:[%s15364_s11 + $0x1a0] sm:$0xff]   ;;  %6198 = vst.msk [vmem:[#allocation5 + $0x140] sm:$0xff] %vm97_vm0, %v6190_v45  ;;  %v5741_v15 = vpack.c.bf16 %v14702_v17, %v14305_v10 }
 0x50c   :  { %5586 = vst.msk [vmem:[#allocation5 + $0x108] sm:$0xff] %vm258_vm1, %v5565_v38  ;;  %9827 = vmatpush3.bf16.msra.mxu0 %v10300_v53  ;;  %9889 = vmatpush3.bf16.msra.mxu1 %v10298_v49  ;;  %v10305_v53 = vld [vmem:[%s15364_s11 + $0x250] sm:$0xff]   ;;  %v10317_v45 = vld [vmem:[%s15364_s11 + $0x268] sm:$0xff]   ;;  %v8830_v18 = vld [vmem:[%s15368_s2 + $0xc0] sm:$0xff] }
 0x50d   :  { %v6241_v43 = vpop.permute.xlu0 %6240  ;;  %v6509_v33 = vld [vmem:[#allocation5 + $0x88] sm:$0xff]  ;;  %6334 = vrot.lane.b32.xlu1 %v14326_v44, %s10485_s15  ;;  %9828 = vmatprep.subr.bf16.mxu0 %v10303_v63  ;;  %v10306_v38 = vld [vmem:[%s15364_s11 + $0x210] sm:$0xff]   ;;  %5619 = vst.msk [vmem:[#allocation5 + $0x1a0] sm:$0xff] %vm97_vm0, %v5611_v2  ;;  %6486 = vst.msk [vmem:[#allocation5 + $0x148] sm:$0xff] %vm97_vm0, %v5611_v2 }
 0x50e   :  { %6262 = vst.msk [vmem:[#allocation5 + $0xf8] sm:$0xff] %vm258_vm1, %v6241_v43  ;;  %7629 = vmatprep.mubr.bf16.mxu0 %v6509_v33  ;;  %v8813_v44 = vld [vmem:[%s15368_s2 + $0x82] sm:$0xff]  ;;  %7726 = vmatprep.mubr.bf16.mxu1 %v6511_v6  ;;  %v8829_v43 = vld [vmem:[%s15368_s2 + $0x90] sm:$0xff]  ;;  %v10323_v6 = vld [vmem:[%s15364_s11 + $0x1f8] sm:$0xff]  }
 0x50f   :  { %7630 = vmatmul.mubr.bf16.gmra.mrb[220].mxu0 %v6508_v42  ;;  %v5953_v48 = vpop.permute.xlu1 %5952  ;;  %6332 = vrot.lane.b32.xlu0 %v14276_v8, %s10485_s15  ;;  %v6029_v8 = vpack.c.bf16 %v8813_v44, %v8812_v1  ;;  %v6522_v35 = vld [vmem:[#allocation5 + $0xf0] sm:$0xff]  ;;  %v6370_v63 = vld [vmem:[#allocation7 + $0x1c2] sm:$0xff]  ;;  %v6191_v60 = vpack.c.bf16 %v8829_v43, %v8828_v61 }
 0x510   :  { %5973 = vst.msk [vmem:[#allocation5 + $0x160] sm:$0xff] %vm258_vm1, %v5953_v48  ;;  %9829 = vmatpush3.bf16.msra.mxu0 %v10304_v24  ;;  %9890 = vmatprep.subr.bf16.mxu1 %v10301_v13  ;;  %v14714_v24 = vld [vmem:[%s15368_s2 + $0xd2] sm:$0xff]  ;;  %v6383_v33 = vpack.c.bf16 %v6371_v16, %v6370_v63  ;;  %v5600_v13 = vld [vmem:[%s15368_s2 + $0xa2] sm:$0xff] }
 0x511   :  { %v5277_v7 = vpop.permute.xlu0 %5276  ;;  %5758 = vrot.lane.b32.xlu1 %v5740_v28, %s10485_s15  ;;  %9830 = vmatprep.subr.bf16.mxu0 %v10307_v11  ;;  %v5742_v11 = vpack.c.bf16 %v14375_v56, %v14366_v26  ;;  %v10319_v42 = vld [vmem:[%s15364_s11 + $0x1f0] sm:$0xff]   ;;  %v8799_v26 = vld [vmem:[%s15368_s2 + $0xc1] sm:$0xff]  ;;  %v10310_v48 = vld [vmem:[%s15364_s11 + $0x218] sm:$0xff]   ;;  %6199 = vst.msk [vmem:[#allocation5 + $0x1b0] sm:$0xff] %vm97_vm0, %v6191_v60  ;;  %v6031_v10 = vpack.c.bf16 %v8817_v14, %v14714_v24 }
 0x512   :  { %5298 = vst.msk [vmem:[#allocation5 + $0x100] sm:$0xff] %vm258_vm1, %v5277_v7  ;;  %9891 = vmatpush3.bf16.msra.mxu1 %v10302_v62  ;;  %v6510_v28 = vld [vmem:[#allocation5 + $0x90] sm:$0xff]  ;;  %v8819_v61 = vld [vmem:[%s15368_s2 + $0x102] sm:$0xff] }
 0x513   :  { %6390 = vst.msk [vmem:[#allocation5 + $0x100] sm:$0xff] %vm97_vm0, %v6382_v31  ;;  %v5567_v37 = vpop.permute.xlu1 %5566  ;;  %5756 = vrot.lane.b32.xlu0 %v5739_v21, %s10485_s15  ;;  %v6319_v21 = vpack.c.bf16 %v8845_v30, %v14644_v34  ;;  %9892 = vmatprep.subr.bf16.mxu1 %v10305_v53  ;;  %v6525_v1 = vld [vmem:[#allocation5 + $0x108] sm:$0xff]  ;;  %v8798_v44 = vld [vmem:[%s15368_s2 + $0xb1] sm:$0xff]  ;;  %v10313_v34 = vld [vmem:[%s15364_s11 + $0x260] sm:$0xff]  }
 0x514   :  { %5587 = vst.msk [vmem:[#allocation5 + $0x178] sm:$0xff] %vm258_vm1, %v5567_v37  ;;  %9831 = vmatpush3.bf16.msra.mxu0 %v10308_v9  ;;  %7727 = vmatmul.mubr.bf16.gmra.mrb[220].mxu1 %v6510_v28  ;;  %v5902_v49 = vpack.c.bf16 %v8799_v26, %v8798_v44  ;;  %v5601_v36 = vld [vmem:[%s15368_s2 + $0xb2] sm:$0xff]  ;;  %v6372_v37 = vld [vmem:[#allocation7 + $0x202] sm:$0xff] }
 0x515   :  { %v6243_v0 = vpop.permute.xlu0 %6242  ;;  %v6523_v57 = vld [vmem:[#allocation5 + $0xf8] sm:$0xff]  ;;  %6048 = vrot.lane.b32.xlu1 %v6029_v8, %s10485_s15  ;;  %9832 = vmatprep.subr.bf16.mxu0 %v10311_v54  ;;  %v5612_v31 = vpack.c.bf16 %v5601_v36, %v5600_v13  ;;  %v8815_v8 = vld [vmem:[%s15368_s2 + $0xc2] sm:$0xff]  ;;  %v10322_v43 = vld [vmem:[%s15364_s11 + $0x230] sm:$0xff]  }
 0x516   :  { %6263 = vst.msk [vmem:[#allocation5 + $0x168] sm:$0xff] %vm258_vm1, %v6243_v0  ;;  %7637 = vmatprep.mubr.bf16.mxu0 %v6523_v57  ;;  %7734 = vmatprep.mubr.bf16.mxu1 %v6525_v1  ;;  %v8814_v9 = vld [vmem:[%s15368_s2 + $0xb2] sm:$0xff]  ;;  %v8832_v26 = vld [vmem:[%s15368_s2 + $0xe0] sm:$0xff] }
 0x517   :  { %7638 = vmatmul.mubr.bf16.gmra.mrb[224].mxu0 %v6522_v35  ;;  %v5955_v4 = vpop.permute.xlu1 %5954  ;;  %6046 = vrot.lane.b32.xlu0 %v6028_v29, %s10485_s15  ;;  %5910 = vst.msk [vmem:[#allocation5 + $0x218] sm:$0xff] %vm97_vm0, %v5902_v49  ;;  %v6536_v30 = vld [vmem:[#allocation5 + $0x160] sm:$0xff]  ;;  %v6373_v54 = vld [vmem:[#allocation7 + $0x212] sm:$0xff]  ;;  %5620 = vst.msk [vmem:[#allocation5 + $0x210] sm:$0xff] %vm97_vm0, %v5612_v31  ;;  %v6030_v62 = vpack.c.bf16 %v8815_v8, %v8814_v9 }
 0x518   :  { %5974 = vst.msk [vmem:[#allocation5 + $0x1d0] sm:$0xff] %vm258_vm1, %v5955_v4  ;;  %9833 = vmatpush3.bf16.msra.mxu0 %v10312_v12  ;;  %9893 = vmatpush3.bf16.msra.mxu1 %v10306_v38  ;;  %v6384_v27 = vpack.c.bf16 %v6373_v54, %v6372_v37  ;;  %v10324_v53 = vld [vmem:[%s15364_s11 + $0x1b8] sm:$0xff]   ;;  %v8831_v0 = vld [vmem:[%s15368_s2 + $0xd0] sm:$0xff]  ;;  %v8801_v38 = vld [vmem:[%s15368_s2 + $0xe1] sm:$0xff] }
 0x519   :  { %v5279_v22 = vpop.permute.xlu0 %5278  ;;  %6338 = vrot.lane.b32.xlu1 %v6319_v21, %s10485_s15  ;;  %9834 = vmatprep.subr.bf16.mxu0 %v10315_v5  ;;  %v10318_v21 = vld [vmem:[%s15364_s11 + $0x228] sm:$0xff]   ;;  %v6192_v12 = vpack.c.bf16 %v8831_v0, %v8830_v18  ;;  %v6375_v2 = vld [vmem:[#allocation7 + $0x232] sm:$0xff]  ;;  %v5744_v5 = vpack.c.bf16 %v14463_v47, %v14434_v46 }
 0x51a   :  { %5299 = vst.msk [vmem:[#allocation5 + $0x170] sm:$0xff] %vm258_vm1, %v5279_v22  ;;  %9894 = vmatprep.subr.bf16.mxu1 %v10309_v59  ;;  %v6524_v29 = vld [vmem:[#allocation5 + $0x100] sm:$0xff]  ;;  %v10321_v35 = vld [vmem:[%s15364_s11 + $0x270] sm:$0xff]  }
 0x51b   :  { %6391 = vst.msk [vmem:[#allocation5 + $0x170] sm:$0xff] %vm97_vm0, %v6383_v33  ;;  %v5569_v56 = vpop.permute.xlu1 %5568  ;;  %6336 = vrot.lane.b32.xlu0 %v14361_v55, %s10485_s15  ;;  %v10320_v55 = vld [vmem:[%s15364_s11 + $0x1b0] sm:$0xff]   ;;  %v6539_v19 = vld [vmem:[#allocation5 + $0x178] sm:$0xff]  ;;  %6200 = vst.msk [vmem:[#allocation5 + $0x220] sm:$0xff] %vm97_vm0, %v6192_v12 }
 0x51c   :  { %5588 = vst.msk [vmem:[#allocation5 + $0x1e8] sm:$0xff] %vm258_vm1, %v5569_v56  ;;  %9835 = vmatpush3.bf16.msra.mxu0 %v10316_v39  ;;  %9895 = vmatpush3.bf16.msra.mxu1 %v10310_v48  ;;  %v8800_v4 = vld [vmem:[%s15368_s2 + $0xd1] sm:$0xff]  ;;  %v6374_v59 = vld [vmem:[#allocation7 + $0x222] sm:$0xff] }
 0x51d   :  { %v6245_v7 = vpop.permute.xlu0 %6244  ;;  %v6537_v51 = vld [vmem:[#allocation5 + $0x168] sm:$0xff]  ;;  %5762 = vrot.lane.b32.xlu1 %v5742_v11, %s10485_s15  ;;  %9836 = vmatprep.subr.bf16.mxu0 %v10319_v42  ;;  %v8820_v46 = vld [vmem:[%s15368_s2 + $0x112] sm:$0xff]  ;;  %v5743_v11 = vpack.c.bf16 %v14425_v41, %v14393_v50  ;;  %v6385_v1 = vpack.c.bf16 %v6375_v2, %v6374_v59 }
 0x51e   :  { %6264 = vst.msk [vmem:[#allocation5 + $0x1d8] sm:$0xff] %vm258_vm1, %v6245_v7  ;;  %7645 = vmatprep.mubr.bf16.mxu0 %v6537_v51  ;;  %9896 = vmatprep.subr.bf16.mxu1 %v10313_v34  ;;  %v8821_v47 = vld [vmem:[%s15368_s2 + $0x122] sm:$0xff]  ;;  %v8818_v14 = vld [vmem:[%s15368_s2 + $0xf2] sm:$0xff] }
 0x51f   :  { %7646 = vmatmul.mubr.bf16.gmra.mrb[228].mxu0 %v6536_v30  ;;  %v5957_v52 = vpop.permute.xlu1 %5956  ;;  %5760 = vrot.lane.b32.xlu0 %v5741_v15, %s10485_s15  ;;  %v6550_v17 = vld [vmem:[#allocation5 + $0x1d0] sm:$0xff]  ;;  %v5602_v33 = vld [vmem:[%s15368_s2 + $0xc2] sm:$0xff]  ;;  %v10325_v39 = vld [vmem:[%s15364_s11 + $0x278] sm:$0xff]   ;;  %v6032_v34 = vpack.c.bf16 %v8819_v61, %v8818_v14 }
 0x520   :  { %5975 = vst.msk [vmem:[#allocation5 + $0x240] sm:$0xff] %vm258_vm1, %v5957_v52  ;;  %9837 = vmatpush3.bf16.msra.mxu0 %v10320_v55  ;;  %7735 = vmatmul.mubr.bf16.gmra.mrb[224].mxu1 %v6524_v29  ;;  %v5603_v22 = vld [vmem:[%s15368_s2 + $0xd2] sm:$0xff]  ;;  %v14852_v42 = vld [vmem:[%s15368_s2 + $0x121] sm:$0xff] }
 0x521   :  { %v5281_v23 = vpop.permute.xlu0 %5280  ;;  %6052 = vrot.lane.b32.xlu1 %v6031_v10, %s10485_s15  ;;  %9838 = vmatprep.subr.bf16.mxu0 %v10323_v6  ;;  %v5613_v60 = vpack.c.bf16 %v5603_v22, %v5602_v33  ;;  %v8860_v50 = vld [vmem:[%s15368_s2 + $0x82] sm:$0xff]  ;;  %v8861_v41 = vld [vmem:[%s15368_s2 + $0x92] sm:$0xff] }
 0x522   :  { %5300 = vst.msk [vmem:[#allocation5 + $0x1e0] sm:$0xff] %vm258_vm1, %v5281_v23  ;;  %7742 = vmatprep.mubr.bf16.mxu1 %v6539_v19  ;;  %9897 = vmatpush3.bf16.msra.mxu1 %v10314_v20  ;;  %v6538_v28 = vld [vmem:[#allocation5 + $0x170] sm:$0xff]  ;;  %v6479_v49 = vpack.c.bf16 %v8861_v41, %v8860_v50  ;;  %v10326_v15 = vld [vmem:[%s15364_s11 + $0x238] sm:$0xff]   ;;  %v8803_v10 = vld [vmem:[%s15368_s2 + $0x101] sm:$0xff] }
 0x523   :  { %6392 = vst.msk [vmem:[#allocation5 + $0x1e0] sm:$0xff] %vm97_vm0, %v6384_v27  ;;  %v5571_v57 = vpop.permute.xlu1 %5570  ;;  %6050 = vrot.lane.b32.xlu0 %v6030_v62, %s10485_s15  ;;  %9898 = vmatprep.subr.bf16.mxu1 %v10317_v45  ;;  %v6553_v56 = vld [vmem:[#allocation5 + $0x1e8] sm:$0xff]  ;;  %v8853_v48 = vld [vmem:[%s15368_s2 + $0x131] sm:$0xff]  ;;  %5621 = vst.msk [vmem:[#allocation5 + $0x280] sm:$0xff] %vm97_vm0, %v5613_v60  ;;  %v10487_v62 = vmov 0  }
 0x524   :  { %5589 = vst.msk [vmem:[#allocation5 + $0x258] sm:$0xff] %vm258_vm1, %v5571_v57  ;;  %9839 = vmatpush3.bf16.msra.mxu0 %v10324_v53  ;;  %v8833_v13 = vld [vmem:[%s15368_s2 + $0xf0] sm:$0xff]  ;;  %v6323_v51 = vpack.c.bf16 %v8853_v48, %v14852_v42  ;;  %v5604_v52 = vld [vmem:[%s15368_s2 + $0xe2] sm:$0xff] }
 0x525   :  { %v6247_v63 = vpop.permute.xlu0 %6246  ;;  %v6551_v16 = vld [vmem:[#allocation5 + $0x1d8] sm:$0xff]  ;;  %6342 = vrot.lane.b32.xlu1 %v14490_v25, %s10485_s15  ;;  %9952 = vmatprep.subr.bf16.mxu0 %v10327_v58  ;;  %v5903_v25 = vpack.c.bf16 %v8801_v38, %v8800_v4  ;;  %6488 = vst.msk [vmem:[#allocation5 + $0x228] sm:$0xff] %vm97_vm0, %v5613_v60  ;;  %v6193_v9 = vpack.c.bf16 %v8833_v13, %v8832_v26  ;;  %6487 = vst.msk [vmem:[#allocation5 + $0x1b8] sm:$0xff] %vm97_vm0, %v6479_v49  ;;  %v6376_v37 = vld [vmem:[#allocation7 + $0x242] sm:$0xff] }
 0x526   :  { %6265 = vst.msk [vmem:[#allocation5 + $0x248] sm:$0xff] %vm258_vm1, %v6247_v63  ;;  %7653 = vmatprep.mubr.bf16.mxu0 %v6551_v16  ;;  %9899 = vmatpush3.bf16.msra.mxu1 %v10318_v21  ;;  %v8802_v8 = vld [vmem:[%s15368_s2 + $0xf1] sm:$0xff]  ;;  %v8789_v53 = vld [vmem:[%s15368_s2 + $0x120] sm:$0xff]  ;;  %v10330_v50 = vld [vmem:[%s15364_s11 + $0x2c8] sm:$0xff]  }
 0x527   :  { %7654 = vmatmul.mubr.bf16.gmra.mrb[232].mxu0 %v6550_v17  ;;  %v5959_v24 = vpop.permute.xlu1 %5958  ;;  %6340 = vrot.lane.b32.xlu0 %v14452_v3, %s10485_s15  ;;  %5911 = vst.msk [vmem:[#allocation5 + $0x288] sm:$0xff] %vm97_vm0, %v5903_v25  ;;  %v6033_v3 = vpack.c.bf16 %v8821_v47, %v8820_v46  ;;  %6201 = vst.msk [vmem:[#allocation5 + $0x290] sm:$0xff] %vm97_vm0, %v6193_v9  ;;  %v6564_v55 = vld [vmem:[#allocation5 + $0x240] sm:$0xff]  ;;  %v6377_v30 = vld [vmem:[#allocation7 + $0x252] sm:$0xff]  ;;  %v5904_v54 = vpack.c.bf16 %v8803_v10, %v8802_v8 }
 0x528   :  { %5976 = vst.msk [vmem:[#allocation5 + $0x2b0] sm:$0xff] %vm258_vm1, %v5959_v24  ;;  %9900 = vmatprep.subr.bf16.mxu1 %v10321_v35  ;;  %7743 = vmatmul.mubr.bf16.gmra.mrb[228].mxu1 %v6538_v28  ;;  %v5605_v20 = vld [vmem:[%s15368_s2 + $0xf2] sm:$0xff]  ;;  %v6386_v27 = vpack.c.bf16 %v6377_v30, %v6376_v37  ;;  %v8834_v19 = vld [vmem:[%s15368_s2 + $0x100] sm:$0xff]  ;;  %v5745_v21 = vpack.c.bf16 %v8789_v53, %v14474_v32  ;;  %v10331_v49 = vld [vmem:[%s15364_s11 + $0x288] sm:$0xff]  }
 0x529   :  { %v5283_v44 = vpop.permute.xlu0 %5282  ;;  %5766 = vrot.lane.b32.xlu1 %v5744_v5, %s10485_s15  ;;  %7750 = vmatprep.mubr.bf16.mxu1 %v6553_v56  ;;  %5912 = vst.msk [vmem:[#allocation5 + $0x2f8] sm:$0xff] %vm97_vm0, %v5904_v54  ;;  %v5614_v45 = vpack.c.bf16 %v5605_v20, %v5604_v52  ;;  %v8835_v18 = vld [vmem:[%s15368_s2 + $0x110] sm:$0xff]  ;;  %v5606_v32 = vld [vmem:[%s15368_s2 + $0x102] sm:$0xff]  ;;  %v10338_v20 = vld [vmem:[%s15364_s11 + $0x298] sm:$0xff]  }
 0x52a   :  { %5301 = vst.msk [vmem:[#allocation5 + $0x250] sm:$0xff] %vm258_vm1, %v5283_v44  ;;  %9901 = vmatpush3.bf16.msra.mxu1 %v10322_v43  ;;  %v6552_v29 = vld [vmem:[#allocation5 + $0x1e0] sm:$0xff]  ;;  %v6194_v57 = vpack.c.bf16 %v8835_v18, %v8834_v19  ;;  %v8804_v35 = vld [vmem:[%s15368_s2 + $0x111] sm:$0xff]  ;;  %v10344_v18 = vld [vmem:[%s15364_s11 + $0x2e8] sm:$0xff]  }
 0x52b   :  { %6393 = vst.msk [vmem:[#allocation5 + $0x250] sm:$0xff] %vm97_vm0, %v6385_v1  ;;  %v5573_v36 = vpop.permute.xlu1 %5572  ;;  %5764 = vrot.lane.b32.xlu0 %v5743_v11, %s10485_s15  ;;  %9902 = vmatprep.subr.bf16.mxu1 %v10325_v39  ;;  %v6567_v58 = vld [vmem:[#allocation5 + $0x258] sm:$0xff]  ;;  %5622 = vst.msk [vmem:[#allocation5 + $0x2f0] sm:$0xff] %vm97_vm0, %v5614_v45  ;;  %v5905_v5 = vpack.c.bf16 %v14852_v42, %v8804_v35  ;;  %v6378_v38 = vld [vmem:[#allocation7 + $0x262] sm:$0xff] }
 0x52c   :  { %5590 = vst.msk [vmem:[#allocation5 + $0x2c8] sm:$0xff] %vm258_vm1, %v5573_v36  ;;  %v6379_v16 = vld [vmem:[#allocation7 + $0x272] sm:$0xff]  ;;  %v8836_v11 = vld [vmem:[%s15368_s2 + $0x120] sm:$0xff] }
 0x52d   :  { %v6249_v31 = vpop.permute.xlu0 %6248  ;;  %v6565_v7 = vld [vmem:[#allocation5 + $0x248] sm:$0xff]  ;;  %6056 = vrot.lane.b32.xlu1 %v6033_v3, %s10485_s15  ;;  %6489 = vst.msk [vmem:[#allocation5 + $0x298] sm:$0xff] %vm97_vm0, %v5614_v45  ;;  %6202 = vst.msk [vmem:[#allocation5 + $0x300] sm:$0xff] %vm97_vm0, %v6194_v57  ;;  %v6387_v59 = vpack.c.bf16 %v6379_v16, %v6378_v38  ;;  %v8837_v39 = vld [vmem:[%s15368_s2 + $0x130] sm:$0xff] }
 0x52e   :  { %6266 = vst.msk [vmem:[#allocation5 + $0x2b8] sm:$0xff] %vm258_vm1, %v6249_v31  ;;  %7661 = vmatprep.mubr.bf16.mxu0 %v6565_v7  ;;  %9903 = vmatpush3.bf16.msra.mxu1 %v10326_v15  ;;  %v6195_v60 = vpack.c.bf16 %v8837_v39, %v8836_v11  ;;  %v10328_v44 = vld [vmem:[%s15364_s11 + $0x280] sm:$0xff]   ;;  %v10333_v13 = vld [vmem:[%s15364_s11 + $0x2d0] sm:$0xff]  }
 0x52f   :  { %7662 = vmatmul.mubr.bf16.gmra.mrb[236].mxu0 %v6564_v55  ;;  %v5961_v6 = vpop.permute.xlu1 %5960  ;;  %6054 = vrot.lane.b32.xlu0 %v6032_v34, %s10485_s15  ;;  %v6578_v63 = vld [vmem:[#allocation5 + $0x2b0] sm:$0xff]  ;;  %5913 = vst.msk [vmem:[#allocation5 + $0x368] sm:$0xff] %vm97_vm0, %v5905_v5  ;;  %v8868_v15 = vld [vmem:[%s15368_s2 + $0x122] sm:$0xff]  ;;  %v10337_v55 = vld [vmem:[%s15364_s11 + $0x2d8] sm:$0xff]  }
 0x530   :  { %5977 = vst.msk [vmem:[#allocation5 + $0x320] sm:$0xff] %vm258_vm1, %v5961_v6  ;;  %8074 = vmatprep.subr.bf16.mxu1 %v10487_v62  ;;  %7751 = vmatmul.mubr.bf16.gmra.mrb[232].mxu1 %v6552_v29  ;;  %v8869_v9 = vld [vmem:[%s15368_s2 + $0x132] sm:$0xff]  ;;  %v10329_v6 = vld [vmem:[%s15364_s11 + $0x300] sm:$0xff]   ;;  %v10332_v29 = vld [vmem:[%s15364_s11 + $0x308] sm:$0xff]  }
 0x531   :  { %v5285_v23 = vpop.permute.xlu0 %5284  ;;  %6346 = vrot.lane.b32.xlu1 %v6323_v51, %s10485_s15  ;;  %7758 = vmatprep.mubr.bf16.mxu1 %v6567_v58  ;;  %6203 = vst.msk [vmem:[#allocation5 + $0x370] sm:$0xff] %vm97_vm0, %v6195_v60  ;;  %v6483_v31 = vpack.c.bf16 %v8869_v9, %v8868_v15  ;;  %v10334_v51 = vld [vmem:[%s15364_s11 + $0x290] sm:$0xff]   ;;  %v10341_v53 = vld [vmem:[%s15364_s11 + $0x2a0] sm:$0xff]  }
 0x532   :  { %5302 = vst.msk [vmem:[#allocation5 + $0x2c0] sm:$0xff] %vm258_vm1, %v5285_v23  ;;  %v6566_v47 = vld [vmem:[#allocation5 + $0x250] sm:$0xff] }
 0x533   :  { %6394 = vst.msk [vmem:[#allocation5 + $0x2c0] sm:$0xff] %vm97_vm0, %v6386_v27  ;;  %v5575_v0 = vpop.permute.xlu1 %5574  ;;  %6344 = vrot.lane.b32.xlu0 %v14539_v40, %s10485_s15  ;;  %v5607_v40 = vld [vmem:[%s15368_s2 + $0x112] sm:$0xff]  ;;  %v6581_v25 = vld [vmem:[#allocation5 + $0x2c8] sm:$0xff]  ;;  %6491 = vst.msk [vmem:[#allocation5 + $0x378] sm:$0xff] %vm97_vm0, %v6483_v31 }
 0x534   :  { %5591 = vst.msk [vmem:[#allocation5 + $0x338] sm:$0xff] %vm258_vm1, %v5575_v0  ;;  %v5615_v17 = vpack.c.bf16 %v5607_v40, %v5606_v32  ;;  %v10340_v27 = vld [vmem:[%s15364_s11 + $0x2e0] sm:$0xff]   ;;  %v10347_v16 = vld [vmem:[%s15364_s11 + $0x2f0] sm:$0xff]  }
 0x535   :  { %v6251_v12 = vpop.permute.xlu0 %6250  ;;  %v6579_v2 = vld [vmem:[#allocation5 + $0x2b8] sm:$0xff]  ;;  %v10348_v32 = vld [vmem:[%s15364_s11 + $0x2b0] sm:$0xff]  }
 0x536   :  { %6267 = vst.msk [vmem:[#allocation5 + $0x328] sm:$0xff] %vm258_vm1, %v6251_v12  ;;  %7669 = vmatprep.mubr.bf16.mxu0 %v6579_v2  ;;  %v10345_v2 = vld [vmem:[%s15364_s11 + $0x2a8] sm:$0xff]  }
 0x537   :  { %7670 = vmatmul.mubr.bf16.gmra.mrb[240].mxu0 %v6578_v63  ;;  %v5851_v4 = vpop.permute.xlu1 %5850  ;;  %5768 = vrot.lane.b32.xlu0 %v5745_v21, %s10485_s15  ;;  %5623 = vst.msk [vmem:[#allocation5 + $0x360] sm:$0xff] %vm97_vm0, %v5615_v17  ;;  %6490 = vst.msk [vmem:[#allocation5 + $0x308] sm:$0xff] %vm97_vm0, %v5615_v17  ;;  %v6592_v43 = vld [vmem:[#allocation5 + $0x320] sm:$0xff]  ;;  %v10335_v21 = vld [vmem:[%s15364_s11 + $0x310] sm:$0xff]  }
 0x538   :  { %5874 = vst.msk [vmem:[#allocation5 + $0x30] sm:$0xff] %vm258_vm1, %v5851_v4  ;;  %7759 = vmatmul.mubr.bf16.gmra.mrb[236].mxu1 %v6566_v47  ;;  %v10336_v4 = vld [vmem:[%s15364_s11 + $0x318] sm:$0xff]   ;;  %v10339_v47 = vld [vmem:[%s15364_s11 + $0x320] sm:$0xff]  }
 0x539   :  { %v5287_v46 = vpop.permute.xlu0 %5286  ;;  %7766 = vmatprep.mubr.bf16.mxu1 %v6581_v25  ;;  %v10351_v17 = vld [vmem:[%s15364_s11 + $0x2f8] sm:$0xff]  }
 0x53a   :  { %5303 = vst.msk [vmem:[#allocation5 + $0x330] sm:$0xff] %vm258_vm1, %v5287_v46  ;;  %v6580_v28 = vld [vmem:[#allocation5 + $0x2c0] sm:$0xff] }
 0x53b   :  { %6395 = vst.msk [vmem:[#allocation5 + $0x330] sm:$0xff] %vm97_vm0, %v6387_v59  ;;  %v6429_v24 = vpop.permute.xlu1 %6428  ;;  %v6595_v42 = vld [vmem:[#allocation5 + $0x338] sm:$0xff] }
 0x53c   :  { %6452 = vst.msk [vmem:[#allocation5 + $0x40] sm:$0xff] %vm258_vm1, %v6429_v24  ;;  %v10352_v24 = vld [vmem:[%s15364_s11 + $0x2b8] sm:$0xff]  }
 0x53d   :  { %v6140_v14 = vpop.permute.xlu0 %6139  ;;  %v6593_v61 = vld [vmem:[#allocation5 + $0x328] sm:$0xff] }
 0x53e   :  { %6163 = vst.msk [vmem:[#allocation5 + $0x38] sm:$0xff] %vm258_vm1, %v6140_v14  ;;  %7677 = vmatprep.mubr.bf16.mxu0 %v6593_v61 }
 0x53f   :  { %7678 = vmatmul.mubr.bf16.gmra.mrb[244].mxu0 %v6592_v43  ;;  %v5853_v33 = vpop.permute.xlu1 %5852  ;;  %v6498_v26 = vld [vmem:[#allocation5 + $0x30] sm:$0xff] }
 0x540   :  { %5875 = vst.msk [vmem:[#allocation5 + $0xa0] sm:$0xff] %vm258_vm1, %v5853_v33  ;;  %7767 = vmatmul.mubr.bf16.gmra.mrb[240].mxu1 %v6580_v28  ;;  %v10342_v33 = vld [vmem:[%s15364_s11 + $0x328] sm:$0xff]  }
 0x541   :  { %v5465_v22 = vpop.permute.xlu0 %5464  ;;  %7774 = vmatprep.mubr.bf16.mxu1 %v6595_v42  ;;  %v10343_v42 = vld [vmem:[%s15364_s11 + $0x330] sm:$0xff]  }
 0x542   :  { %5488 = vst.msk [vmem:[#allocation5 + $0x48] sm:$0xff] %vm258_vm1, %v5465_v22  ;;  %v6594_v48 = vld [vmem:[#allocation5 + $0x330] sm:$0xff] }
 0x543   :  { %v6431_v1 = vpop.permute.xlu1 %6430  ;;  %v6500_v52 = vld [vmem:[#allocation5 + $0x40] sm:$0xff] }
 0x544   :  { %6453 = vst.msk [vmem:[#allocation5 + $0xb0] sm:$0xff] %vm258_vm1, %v6431_v1 }
 0x545   :  { %v6499_v3 = vld [vmem:[#allocation5 + $0x38] sm:$0xff]  ;;  %v6142_v41 = vpop.permute.xlu0 %6141 }
 0x546   :  { %7815 = vmatprep.mubr.bf16.mxu0 %v6499_v3  ;;  %6164 = vst.msk [vmem:[#allocation5 + $0xa8] sm:$0xff] %vm258_vm1, %v6142_v41 }
 0x547   :  { %7816 = vmatmul.mubr.bf16.vlgmr.msra.gmra.mrb[248].mxu0 %v6498_v26  ;;  %v5855_v56 = vpop.permute.xlu1 %5854  ;;  %v6512_v30 = vld [vmem:[#allocation5 + $0xa0] sm:$0xff] }
 0x548   :  { %5876 = vst.msk [vmem:[#allocation5 + $0x110] sm:$0xff] %vm258_vm1, %v5855_v56  ;;  %9953 = vmatpush3.bf16.msra.mxu0 %v10328_v44  ;;  %7775 = vmatmul.mubr.bf16.gmra.mrb[244].mxu1 %v6594_v48 }
 0x549   :  { %v6501_v36 = vld [vmem:[#allocation5 + $0x48] sm:$0xff]  ;;  %9954 = vmatprep.subr.bf16.mxu0 %v10330_v50  ;;  %v5467_v34 = vpop.permute.xlu0 %5466  ;;  %v10346_v50 = vld [vmem:[%s15364_s11 + $0x338] sm:$0xff]  }
 0x54a   :  { %5489 = vst.msk [vmem:[#allocation5 + $0xb8] sm:$0xff] %vm258_vm1, %v5467_v34  ;;  %7912 = vmatprep.mubr.bf16.mxu1 %v6501_v36  ;;  %v10350_v34 = vld [vmem:[%s15364_s11 + $0x348] sm:$0xff]  }
 0x54b   :  { %v6433_v7 = vpop.permute.xlu1 %6432  ;;  %v6514_v12 = vld [vmem:[#allocation5 + $0xb0] sm:$0xff] }
 0x54c   :  { %6454 = vst.msk [vmem:[#allocation5 + $0x120] sm:$0xff] %vm258_vm1, %v6433_v7  ;;  %9955 = vmatpush3.bf16.msra.mxu0 %v10331_v49  ;;  %v10349_v49 = vld [vmem:[%s15364_s11 + $0x340] sm:$0xff]  }
 0x54d   :  { %9956 = vmatprep.subr.bf16.mxu0 %v10333_v13  ;;  %v6144_v8 = vpop.permute.xlu0 %6143  ;;  %v6513_v10 = vld [vmem:[#allocation5 + $0xa8] sm:$0xff] }
 0x54e   :  { %6165 = vst.msk [vmem:[#allocation5 + $0x118] sm:$0xff] %vm258_vm1, %v6144_v8  ;;  %7823 = vmatprep.mubr.bf16.mxu0 %v6513_v10  ;;  %v10353_v10 = vld [vmem:[%s15364_s11 + $0x350] sm:$0xff]  }
 0x54f   :  { %v5857_v54 = vpop.permute.xlu1 %5856  ;;  %7824 = vmatmul.mubr.bf16.gmra.mrb[252].mxu0 %v6512_v30  ;;  %v6526_v0 = vld [vmem:[#allocation5 + $0x110] sm:$0xff] }
 0x550   :  { %5877 = vst.msk [vmem:[#allocation5 + $0x180] sm:$0xff] %vm258_vm1, %v5857_v54  ;;  %9957 = vmatpush3.bf16.msra.mxu0 %v10334_v51  ;;  %7913 = vmatmul.mubr.bf16.vlgmr.msra.gmra.mrb[248].mxu1 %v6500_v52  ;;  %v10354_v52 = vld [vmem:[%s15364_s11 + $0x358] sm:$0xff]  }
 0x551   :  { %v5469_v37 = vpop.permute.xlu0 %5468  ;;  %v6515_v45 = vld [vmem:[#allocation5 + $0xb8] sm:$0xff]  ;;  %9958 = vmatprep.subr.bf16.mxu0 %v10337_v55  ;;  %8075 = vmatpush1.bf16.msra.mxu1 %v10329_v6 }
 0x552   :  { %5490 = vst.msk [vmem:[#allocation5 + $0x128] sm:$0xff] %vm258_vm1, %v5469_v37  ;;  %7920 = vmatprep.mubr.bf16.mxu1 %v6515_v45  ;;  %8076 = vmatprep.subr.bf16.mxu1 %v10487_v62 }
 0x553   :  { %v6435_v23 = vpop.permute.xlu1 %6434  ;;  %v6528_v25 = vld [vmem:[#allocation5 + $0x120] sm:$0xff] }
 0x554   :  { %6455 = vst.msk [vmem:[#allocation5 + $0x190] sm:$0xff] %vm258_vm1, %v6435_v23  ;;  %9959 = vmatpush3.bf16.msra.mxu0 %v10338_v20 }
 0x555   :  { %v6146_v58 = vpop.permute.xlu0 %6145  ;;  %v6527_v19 = vld [vmem:[#allocation5 + $0x118] sm:$0xff]  ;;  %9960 = vmatprep.subr.bf16.mxu0 %v10340_v27  ;;  %8077 = vmatpush1.bf16.msra.mxu1 %v10332_v29 }
 0x556   :  { %6166 = vst.msk [vmem:[#allocation5 + $0x188] sm:$0xff] %vm258_vm1, %v6146_v58  ;;  %7831 = vmatprep.mubr.bf16.mxu0 %v6527_v19  ;;  %8078 = vmatprep.subr.bf16.mxu1 %v10487_v62 }
 0x557   :  { %v5859_v57 = vpop.permute.xlu1 %5858  ;;  %7832 = vmatmul.mubr.bf16.gmra.mrb[0].mxu0 %v6526_v0  ;;  %v6540_v59 = vld [vmem:[#allocation5 + $0x180] sm:$0xff] }
 0x558   :  { %5878 = vst.msk [vmem:[#allocation5 + $0x1f0] sm:$0xff] %vm258_vm1, %v5859_v57  ;;  %9961 = vmatpush3.bf16.msra.mxu0 %v10341_v53  ;;  %7921 = vmatmul.mubr.bf16.gmra.mrb[252].mxu1 %v6514_v12 }
 0x559   :  { %v5471_v35 = vpop.permute.xlu0 %5470  ;;  %v6529_v63 = vld [vmem:[#allocation5 + $0x128] sm:$0xff]  ;;  %9962 = vmatprep.subr.bf16.mxu0 %v10344_v18  ;;  %8079 = vmatpush1.bf16.msra.mxu1 %v10335_v21 }
 0x55a   :  { %5491 = vst.msk [vmem:[#allocation5 + $0x198] sm:$0xff] %vm258_vm1, %v5471_v35  ;;  %7928 = vmatprep.mubr.bf16.mxu1 %v6529_v63  ;;  %8080 = vmatprep.subr.bf16.mxu1 %v10487_v62  ;;  %v6505_v21 = vld [vmem:[#allocation5 + $0x68] sm:$0xff] }
 0x55b   :  { %v6437_v5 = vpop.permute.xlu1 %6436  ;;  %v6542_v60 = vld [vmem:[#allocation5 + $0x190] sm:$0xff] }
 0x55c   :  { %6456 = vst.msk [vmem:[#allocation5 + $0x200] sm:$0xff] %vm258_vm1, %v6437_v5  ;;  %9963 = vmatpush3.bf16.msra.mxu0 %v10345_v2 }
 0x55d   :  { %v6148_v40 = vpop.permute.xlu0 %6147  ;;  %v6541_v38 = vld [vmem:[#allocation5 + $0x188] sm:$0xff]  ;;  %9964 = vmatprep.subr.bf16.mxu0 %v10347_v16  ;;  %8081 = vmatpush1.bf16.msra.mxu1 %v10336_v4 }
 0x55e   :  { %6167 = vst.msk [vmem:[#allocation5 + $0x1f8] sm:$0xff] %vm258_vm1, %v6148_v40  ;;  %7839 = vmatprep.mubr.bf16.mxu0 %v6541_v38  ;;  %8082 = vmatprep.subr.bf16.mxu1 %v10487_v62 }
 0x55f   :  { %v5861_v46 = vpop.permute.xlu1 %5860  ;;  %7840 = vmatmul.mubr.bf16.gmra.mrb[4].mxu0 %v6540_v59  ;;  %v6554_v11 = vld [vmem:[#allocation5 + $0x1f0] sm:$0xff] }
 0x560   :  { %5879 = vst.msk [vmem:[#allocation5 + $0x260] sm:$0xff] %vm258_vm1, %v5861_v46  ;;  %9965 = vmatpush3.bf16.msra.mxu0 %v10348_v32  ;;  %7929 = vmatmul.mubr.bf16.gmra.mrb[0].mxu1 %v6528_v25  ;;  %v6519_v32 = vld [vmem:[#allocation5 + $0xd8] sm:$0xff] }
 0x561   :  { %v5473_v14 = vpop.permute.xlu0 %5472  ;;  %v6543_v61 = vld [vmem:[#allocation5 + $0x198] sm:$0xff]  ;;  %9966 = vmatprep.subr.bf16.mxu0 %v10351_v17  ;;  %8083 = vmatpush1.bf16.msra.mxu1 %v10339_v47 }
 0x562   :  { %5492 = vst.msk [vmem:[#allocation5 + $0x208] sm:$0xff] %vm258_vm1, %v5473_v14  ;;  %7936 = vmatprep.mubr.bf16.mxu1 %v6543_v61  ;;  %8084 = vmatprep.subr.bf16.mxu1 %v10487_v62  ;;  %v6533_v14 = vld [vmem:[#allocation5 + $0x148] sm:$0xff] }
 0x563   :  { %v6439_v43 = vpop.permute.xlu1 %6438  ;;  %v6556_v13 = vld [vmem:[#allocation5 + $0x200] sm:$0xff] }
 0x564   :  { %6457 = vst.msk [vmem:[#allocation5 + $0x270] sm:$0xff] %vm258_vm1, %v6439_v43  ;;  %9967 = vmatpush3.bf16.msra.mxu0 %v10352_v24 }
 0x565   :  { %v6150_v22 = vpop.permute.xlu0 %6149  ;;  %v6555_v28 = vld [vmem:[#allocation5 + $0x1f8] sm:$0xff]  ;;  %8085 = vmatpush1.bf16.msra.mxu1 %v10342_v33 }
 0x566   :  { %6168 = vst.msk [vmem:[#allocation5 + $0x268] sm:$0xff] %vm258_vm1, %v6150_v22  ;;  %7847 = vmatprep.mubr.bf16.mxu0 %v6555_v28  ;;  %8086 = vmatprep.subr.bf16.mxu1 %v10487_v62 }
 0x567   :  { %v5863_v39 = vpop.permute.xlu1 %5862  ;;  %7848 = vmatmul.mubr.bf16.gmra.mrb[8].mxu0 %v6554_v11  ;;  %v6568_v56 = vld [vmem:[#allocation5 + $0x260] sm:$0xff] }
 0x568   :  { %5880 = vst.msk [vmem:[#allocation5 + $0x2d0] sm:$0xff] %vm258_vm1, %v5863_v39  ;;  %7937 = vmatmul.mubr.bf16.gmra.mrb[4].mxu1 %v6542_v60 }
 0x569   :  { %v5475_v1 = vpop.permute.xlu0 %5474  ;;  %v6557_v44 = vld [vmem:[#allocation5 + $0x208] sm:$0xff]  ;;  %8087 = vmatpush1.bf16.msra.mxu1 %v10343_v42  ;;  %v6547_v42 = vld [vmem:[#allocation5 + $0x1b8] sm:$0xff] }
 0x56a   :  { %5493 = vst.msk [vmem:[#allocation5 + $0x278] sm:$0xff] %vm258_vm1, %v5475_v1  ;;  %7944 = vmatprep.mubr.bf16.mxu1 %v6557_v44  ;;  %8088 = vmatprep.subr.bf16.mxu1 %v10487_v62 }
 0x56b   :  { %v6441_v3 = vpop.permute.xlu1 %6440  ;;  %v6570_v55 = vld [vmem:[#allocation5 + $0x270] sm:$0xff] }
 0x56c   :  { %6458 = vst.msk [vmem:[#allocation5 + $0x2e0] sm:$0xff] %vm258_vm1, %v6441_v3 }
 0x56d   :  { %v6152_v41 = vpop.permute.xlu0 %6151  ;;  %v6569_v26 = vld [vmem:[#allocation5 + $0x268] sm:$0xff]  ;;  %8089 = vmatpush1.bf16.msra.mxu1 %v10346_v50 }
 0x56e   :  { %6169 = vst.msk [vmem:[#allocation5 + $0x2d8] sm:$0xff] %vm258_vm1, %v6152_v41  ;;  %7855 = vmatprep.mubr.bf16.mxu0 %v6569_v26  ;;  %8090 = vmatprep.subr.bf16.mxu1 %v10487_v62 }
 0x56f   :  { %v5865_v48 = vpop.permute.xlu1 %5864  ;;  %7856 = vmatmul.mubr.bf16.gmra.mrb[12].mxu0 %v6568_v56  ;;  %v6582_v51 = vld [vmem:[#allocation5 + $0x2d0] sm:$0xff] }
 0x570   :  { %5881 = vst.msk [vmem:[#allocation5 + $0x340] sm:$0xff] %vm258_vm1, %v5865_v48  ;;  %7945 = vmatmul.mubr.bf16.gmra.mrb[8].mxu1 %v6556_v13 }
 0x571   :  { %v5477_v36 = vpop.permute.xlu0 %5476  ;;  %v6571_v15 = vld [vmem:[#allocation5 + $0x278] sm:$0xff]  ;;  %8091 = vmatpush1.bf16.msra.mxu1 %v10349_v49 }
 0x572   :  { %5494 = vst.msk [vmem:[#allocation5 + $0x2e8] sm:$0xff] %vm258_vm1, %v5477_v36  ;;  %7952 = vmatprep.mubr.bf16.mxu1 %v6571_v15  ;;  %8092 = vmatprep.subr.bf16.mxu1 %v10487_v62  ;;  %v6561_v36 = vld [vmem:[#allocation5 + $0x228] sm:$0xff] }
 0x573   :  { %v6443_v9 = vpop.permute.xlu1 %6442  ;;  %v6584_v23 = vld [vmem:[#allocation5 + $0x2e0] sm:$0xff] }
 0x574   :  { %6459 = vst.msk [vmem:[#allocation5 + $0x350] sm:$0xff] %vm258_vm1, %v6443_v9 }
 0x575   :  { %v6154_v31 = vpop.permute.xlu0 %6153  ;;  %v6583_v7 = vld [vmem:[#allocation5 + $0x2d8] sm:$0xff]  ;;  %8093 = vmatpush1.bf16.msra.mxu1 %v10350_v34 }
 0x576   :  { %6170 = vst.msk [vmem:[#allocation5 + $0x348] sm:$0xff] %vm258_vm1, %v6154_v31  ;;  %7863 = vmatprep.mubr.bf16.mxu0 %v6583_v7  ;;  %8094 = vmatprep.subr.bf16.mxu1 %v10487_v62 }
 0x577   :  { %v5755_v8 = vpop.permute.xlu1 %5754  ;;  %7864 = vmatmul.mubr.bf16.gmra.mrb[16].mxu0 %v6582_v51  ;;  %v6596_v45 = vld [vmem:[#allocation5 + $0x340] sm:$0xff] }
 0x578   :  { %5778 = vst.msk [vmem:[#allocation5 + $0x50] sm:$0xff] %vm258_vm1, %v5755_v8  ;;  %7953 = vmatmul.mubr.bf16.gmra.mrb[12].mxu1 %v6570_v55 }
 0x579   :  { %v5479_v30 = vpop.permute.xlu0 %5478  ;;  %v6585_v54 = vld [vmem:[#allocation5 + $0x2e8] sm:$0xff]  ;;  %8095 = vmatpush1.bf16.msra.mxu1 %v10353_v10 }
 0x57a   :  { %5495 = vst.msk [vmem:[#allocation5 + $0x358] sm:$0xff] %vm258_vm1, %v5479_v30  ;;  %7960 = vmatprep.mubr.bf16.mxu1 %v6585_v54  ;;  %8096 = vmatprep.subr.bf16.mxu1 %v10487_v62  ;;  %v6575_v54 = vld [vmem:[#allocation5 + $0x298] sm:$0xff] }
 0x57b   :  { %v6045_v6 = vpop.permute.xlu1 %6044  ;;  %v6598_v12 = vld [vmem:[#allocation5 + $0x350] sm:$0xff] }
 0x57c   :  { %6067 = vst.msk [vmem:[#allocation5 + $0xc8] sm:$0xff] %vm258_vm1, %v6045_v6 }
 0x57d   :  { %v6043_v20 = vpop.permute.xlu0 %6042  ;;  %v6597_v37 = vld [vmem:[#allocation5 + $0x348] sm:$0xff]  ;;  %8097 = vmatpush1.bf16.msra.mxu1 %v10354_v52 }
 0x57e   :  { %6066 = vst.msk [vmem:[#allocation5 + $0x58] sm:$0xff] %vm258_vm1, %v6043_v20  ;;  %7871 = vmatprep.mubr.bf16.mxu0 %v6597_v37 }
 0x57f   :  { %v6335_v27 = vpop.permute.xlu1 %6334  ;;  %7872 = vmatmul.mubr.bf16.gmra.mrb[20].mxu0 %v6596_v45  ;;  %v6502_v62 = vld [vmem:[#allocation5 + $0x50] sm:$0xff] }
 0x580   :  { %6357 = vst.msk [vmem:[#allocation5 + $0xd0] sm:$0xff] %vm258_vm1, %v6335_v27  ;;  %7961 = vmatmul.mubr.bf16.gmra.mrb[16].mxu1 %v6584_v23 }
 0x581   :  { %v6333_v29 = vpop.permute.xlu0 %6332  ;;  %v6599_v53 = vld [vmem:[#allocation5 + $0x358] sm:$0xff] }
 0x582   :  { %6356 = vst.msk [vmem:[#allocation5 + $0x60] sm:$0xff] %vm258_vm1, %v6333_v29  ;;  %7968 = vmatprep.mubr.bf16.mxu1 %v6599_v53 }
 0x583   :  { %v5759_v58 = vpop.permute.xlu1 %5758  ;;  %v6517_v0 = vld [vmem:[#allocation5 + $0xc8] sm:$0xff] }
 0x584   :  { %5780 = vst.msk [vmem:[#allocation5 + $0x130] sm:$0xff] %vm258_vm1, %v5759_v58  ;;  %v6589_v58 = vld [vmem:[#allocation5 + $0x308] sm:$0xff] }
 0x585   :  { %v6503_v19 = vld [vmem:[#allocation5 + $0x58] sm:$0xff]  ;;  %v5757_v18 = vpop.permute.xlu0 %5756 }
 0x586   :  { %8009 = vmatprep.mubr.bf16.mxu0 %v6503_v19  ;;  %5779 = vst.msk [vmem:[#allocation5 + $0xc0] sm:$0xff] %vm258_vm1, %v5757_v18 }
 0x587   :  { %v6049_v57 = vpop.permute.xlu1 %6048  ;;  %8010 = vmatmul.mubr.bf16.vlgmr.msra.gmra.mrb[24].mxu0 %v6502_v62  ;;  %v6518_v25 = vld [vmem:[#allocation5 + $0xd0] sm:$0xff] }
 0x588   :  { %6069 = vst.msk [vmem:[#allocation5 + $0x1a8] sm:$0xff] %vm258_vm1, %v6049_v57  ;;  %8017 = vmatprep.mubr.bf16.mxu0 %v6517_v0  ;;  %7969 = vmatmul.mubr.bf16.gmra.mrb[20].mxu1 %v6598_v12 }
 0x589   :  { %v6047_v2 = vpop.permute.xlu0 %6046  ;;  %8978 = vmatprep.mubr.msk.bf16.mxu1 %vm97_vm0, %v6505_v21  ;;  %v6504_v5 = vld [vmem:[#allocation5 + $0x60] sm:$0xff] }
 0x58a   :  { %6068 = vst.msk [vmem:[#allocation5 + $0x138] sm:$0xff] %vm258_vm1, %v6047_v2 }
 0x58b   :  { %v6339_v35 = vpop.permute.xlu1 %6338  ;;  %v6530_v59 = vld [vmem:[#allocation5 + $0x130] sm:$0xff] }
 0x58c   :  { %6359 = vst.msk [vmem:[#allocation5 + $0x1b0] sm:$0xff] %vm258_vm1, %v6339_v35  ;;  %v6603_v35 = vld [vmem:[#allocation5 + $0x378] sm:$0xff] }
 0x58d   :  { %v6516_v63 = vld [vmem:[#allocation5 + $0xc0] sm:$0xff]  ;;  %v6337_v16 = vpop.permute.xlu0 %6336 }
 0x58e   :  { %6358 = vst.msk [vmem:[#allocation5 + $0x140] sm:$0xff] %vm258_vm1, %v6337_v16 }
 0x58f   :  { %v5763_v4 = vpop.permute.xlu1 %5762  ;;  %8018 = vmatmul.mubr.bf16.gmra.mrb[28].mxu0 %v6516_v63  ;;  %v6545_v47 = vld [vmem:[#allocation5 + $0x1a8] sm:$0xff] }
 0x590   :  { %5782 = vst.msk [vmem:[#allocation5 + $0x210] sm:$0xff] %vm258_vm1, %v5763_v4  ;;  %8107 = vmatmul.mubr.bf16.vlgmr.msra.gmra.mrb[24].mxu1 %v6504_v5 }
 0x591   :  { %v6531_v40 = vld [vmem:[#allocation5 + $0x138] sm:$0xff]  ;;  %v5761_v38 = vpop.permute.xlu0 %5760  ;;  %8979 = vmatprep.mubr.msk.bf16.mxu1 %vm97_vm0, %v6519_v32 }
 0x592   :  { %8025 = vmatprep.mubr.bf16.mxu0 %v6531_v40  ;;  %5781 = vst.msk [vmem:[#allocation5 + $0x1a0] sm:$0xff] %vm258_vm1, %v5761_v38 }
 0x593   :  { %v6053_v17 = vpop.permute.xlu1 %6052  ;;  %v6546_v49 = vld [vmem:[#allocation5 + $0x1b0] sm:$0xff] }
 0x594   :  { %6071 = vst.msk [vmem:[#allocation5 + $0x288] sm:$0xff] %vm258_vm1, %v6053_v17 }
 0x595   :  { %v6051_v46 = vpop.permute.xlu0 %6050  ;;  %v6532_v11 = vld [vmem:[#allocation5 + $0x140] sm:$0xff] }
 0x596   :  { %6070 = vst.msk [vmem:[#allocation5 + $0x218] sm:$0xff] %vm258_vm1, %v6051_v46  ;;  %v9648_v44 = vpop.f32.mrb[184].mxu1 }
 0x597   :  { %v6343_v24 = vpop.permute.xlu1 %6342  ;;  %8026 = vmatmul.mubr.bf16.gmra.mrb[32].mxu0 %v6530_v59  ;;  %v6558_v3 = vld [vmem:[#allocation5 + $0x210] sm:$0xff]  ;;  %v9649_v50 = vpop.f32.mrb[185].mxu1 }
 0x598   :  { %6361 = vst.msk [vmem:[#allocation5 + $0x290] sm:$0xff] %vm258_vm1, %v6343_v24  ;;  %8033 = vmatprep.mubr.bf16.mxu0 %v6545_v47  ;;  %8115 = vmatmul.mubr.bf16.gmra.mrb[28].mxu1 %v6518_v25  ;;  %v15101_v56 = vadd.f32 %v9649_v50, %v9648_v44  ;;  %v9651_v48 = vpop.f32.mrb[186].mxu1 }
 0x599   :  { %v6341_v61 = vpop.permute.xlu0 %6340  ;;  %8980 = vmatprep.mubr.msk.bf16.mxu1 %vm97_vm0, %v6533_v14  ;;  %v6544_v33 = vld [vmem:[#allocation5 + $0x1a0] sm:$0xff]  ;;  %v9652_v13 = vpop.f32.mrb[187].mxu1 }
 0x59a   :  { %6360 = vst.msk [vmem:[#allocation5 + $0x220] sm:$0xff] %vm258_vm1, %v6341_v61  ;;  %v15104_v15 = vadd.f32 %v9652_v13, %v9651_v48 }
 0x59b   :  { %v5767_v43 = vpop.permute.xlu1 %5766  ;;  %v6573_v41 = vld [vmem:[#allocation5 + $0x288] sm:$0xff] }
 0x59c   :  { %5784 = vst.msk [vmem:[#allocation5 + $0x2f0] sm:$0xff] %vm258_vm1, %v5767_v43 }
 0x59d   :  { %v6559_v22 = vld [vmem:[#allocation5 + $0x218] sm:$0xff]  ;;  %v5765_v28 = vpop.permute.xlu0 %5764 }
 0x59e   :  { %5783 = vst.msk [vmem:[#allocation5 + $0x280] sm:$0xff] %vm258_vm1, %v5765_v28  ;;  %v9654_v34 = vpop.f32.mrb[188].mxu1 }
 0x59f   :  { %v6057_v39 = vpop.permute.xlu1 %6056  ;;  %8034 = vmatmul.mubr.bf16.gmra.mrb[36].mxu0 %v6544_v33  ;;  %v9655_v7 = vpop.f32.mrb[189].mxu1  ;;  %v6574_v29 = vld [vmem:[#allocation5 + $0x290] sm:$0xff] }
 0x5a0   :  { %6073 = vst.msk [vmem:[#allocation5 + $0x368] sm:$0xff] %vm258_vm1, %v6057_v39  ;;  %8041 = vmatprep.mubr.bf16.mxu0 %v6559_v22  ;;  %8123 = vmatmul.mubr.bf16.gmra.mrb[32].mxu1 %v6532_v11  ;;  %v15108_v8 = vadd.f32 %v9655_v7, %v9654_v34  ;;  %v9657_v10 = vpop.f32.mrb[190].mxu1 }
 0x5a1   :  { %v6055_v60 = vpop.permute.xlu0 %6054  ;;  %8981 = vmatprep.mubr.msk.bf16.mxu1 %vm97_vm0, %v6547_v42  ;;  %v6560_v55 = vld [vmem:[#allocation5 + $0x220] sm:$0xff]  ;;  %v9658_v30 = vpop.f32.mrb[191].mxu1 }
 0x5a2   :  { %6072 = vst.msk [vmem:[#allocation5 + $0x2f8] sm:$0xff] %vm258_vm1, %v6055_v60  ;;  %v15110_v6 = vadd.f32 %v9658_v30, %v9657_v10 }
 0x5a3   :  { %v6347_v1 = vpop.permute.xlu1 %6346  ;;  %v6586_v20 = vld [vmem:[#allocation5 + $0x2f0] sm:$0xff] }
 0x5a4   :  { %6363 = vst.msk [vmem:[#allocation5 + $0x370] sm:$0xff] %vm258_vm1, %v6347_v1 }
 0x5a5   :  { %v6345_v26 = vpop.permute.xlu0 %6344  ;;  %v6572_v31 = vld [vmem:[#allocation5 + $0x280] sm:$0xff] }
 0x5a6   :  { %6362 = vst.msk [vmem:[#allocation5 + $0x300] sm:$0xff] %vm258_vm1, %v6345_v26  ;;  %v9660_v52 = vpop.f32.mrb[192].mxu1 }
 0x5a7   :  { %8042 = vmatmul.mubr.bf16.gmra.mrb[40].mxu0 %v6558_v3  ;;  %v9661_v37 = vpop.f32.mrb[193].mxu1  ;;  %v6601_v45 = vld [vmem:[#allocation5 + $0x368] sm:$0xff] }
 0x5a8   :  { %8049 = vmatprep.mubr.bf16.mxu0 %v6573_v41  ;;  %8131 = vmatmul.mubr.bf16.gmra.mrb[36].mxu1 %v6546_v49  ;;  %v15113_v27 = vadd.f32 %v9661_v37, %v9660_v52  ;;  %v9663_v23 = vpop.f32.mrb[194].mxu1 }
 0x5a9   :  { %v5769_v9 = vpop.permute.xlu0 %5768  ;;  %8982 = vmatprep.mubr.msk.bf16.mxu1 %vm97_vm0, %v6561_v36  ;;  %v6587_v51 = vld [vmem:[#allocation5 + $0x2f8] sm:$0xff]  ;;  %v9664_v53 = vpop.f32.mrb[195].mxu1 }
 0x5aa   :  { %5785 = vst.msk [vmem:[#allocation5 + $0x360] sm:$0xff] %vm258_vm1, %v5769_v9  ;;  %v15115_v62 = vadd.f32 %v9664_v53, %v9663_v23 }
 0x5ab   :  { %v6602_v40 = vld [vmem:[#allocation5 + $0x370] sm:$0xff] }
 0x5ad   :  { %v6588_v12 = vld [vmem:[#allocation5 + $0x300] sm:$0xff] }
 0x5af   :  { %8050 = vmatmul.mubr.bf16.gmra.mrb[44].mxu0 %v6572_v31  ;;  %v9666_v19 = vpop.f32.mrb[196].mxu1 }
 0x5b0   :  { %8057 = vmatprep.mubr.bf16.mxu0 %v6587_v51  ;;  %8139 = vmatmul.mubr.bf16.gmra.mrb[40].mxu1 %v6560_v55  ;;  %v9667_v0 = vpop.f32.mrb[197].mxu1 }
 0x5b1   :  { %8983 = vmatprep.mubr.msk.bf16.mxu1 %vm97_vm0, %v6575_v54  ;;  %v6600_v18 = vld [vmem:[#allocation5 + $0x360] sm:$0xff]  ;;  %v15118_v57 = vadd.f32 %v9667_v0, %v9666_v19  ;;  %v9669_v21 = vpop.f32.mrb[198].mxu1 }
 0x5b2   :  { %v9670_v2 = vpop.f32.mrb[199].mxu1 }
 0x5b3   :  { %v15120_v63 = vadd.f32 %v9670_v2, %v9669_v21 }
 0x5b7   :  { %8058 = vmatmul.mubr.bf16.gmra.mrb[48].mxu0 %v6586_v20 }
 0x5b8   :  { %8065 = vmatprep.mubr.bf16.mxu0 %v6601_v45  ;;  %8147 = vmatmul.mubr.bf16.gmra.mrb[44].mxu1 %v6574_v29 }
 0x5b9   :  { %8984 = vmatprep.mubr.msk.bf16.mxu1 %vm97_vm0, %v6589_v58 }
 0x5bc   :  { %v9672_v16 = vpop.f32.mrb[200].mxu1 }
 0x5bd   :  { %v9673_v5 = vpop.f32.mrb[201].mxu1 }
 0x5be   :  { %v15123_v4 = vadd.f32 %v9673_v5, %v9672_v16  ;;  %v9675_v32 = vpop.f32.mrb[202].mxu1 }
 0x5bf   :  { %8066 = vmatmul.mubr.bf16.gmra.mrb[52].mxu0 %v6600_v18  ;;  %v9676_v38 = vpop.f32.mrb[203].mxu1 }
 0x5c0   :  { %8155 = vmatmul.mubr.bf16.gmra.mrb[48].mxu1 %v6588_v12  ;;  %v15125_v17 = vadd.f32 %v9676_v38, %v9675_v32 }
 0x5c1   :  { %8985 = vmatprep.mubr.msk.bf16.mxu1 %vm97_vm0, %v6603_v35  ;;  %vm8313_vm0 = vcmask 64512  }
 0x5c6   :  { %v9678_v59 = vpop.f32.mrb[204].mxu1 }
 0x5c7   :  { %v9679_v46 = vpop.f32.mrb[205].mxu1 }
 0x5c8   :  { %8163 = vmatmul.mubr.bf16.gmra.mrb[52].mxu1 %v6602_v40  ;;  %v15127_v47 = vadd.f32 %v9679_v46, %v9678_v59  ;;  %v9681_v25 = vpop.f32.mrb[206].mxu1 }
 0x5c9   :  { %v9682_v24 = vpop.f32.mrb[207].mxu1 }
 0x5ca   :  { %v15129_v14 = vadd.f32 %v9682_v24, %v9681_v25 }
 0x5ce   :  { %v9684_v61 = vpop.f32.mrb[208].mxu1 }
 0x5cf   :  { %v9685_v43 = vpop.f32.mrb[209].mxu1 }
 0x5d0   :  { %v15131_v33 = vadd.f32 %v9685_v43, %v9684_v61  ;;  %v9687_v22 = vpop.f32.mrb[210].mxu1 }
 0x5d1   :  { %v9688_v28 = vpop.f32.mrb[211].mxu1 }
 0x5d2   :  { %v15133_v11 = vadd.f32 %v9688_v28, %v9687_v22 }
 0x5d6   :  { %v9690_v44 = vpop.f32.mrb[212].mxu1 }
 0x5d7   :  { %v9691_v26 = vpop.f32.mrb[213].mxu1 }
 0x5d8   :  { %v15136_v48 = vadd.f32 %v9691_v26, %v9690_v44  ;;  %v9693_v49 = vpop.f32.mrb[214].mxu1 }
 0x5d9   :  { %v9694_v36 = vpop.f32.mrb[215].mxu1 }
 0x5da   :  { %v9712_v39 = vpop.f32.mrb[216].mxu0  ;;  %v15139_v9 = vadd.f32 %v9694_v36, %v9693_v49 }
 0x5db   :  { %v9713_v42 = vpop.f32.mrb[217].mxu0 }
 0x5dc   :  { %v9714_v60 = vadd.f32 %v9713_v42, %v9712_v39  ;;  %v9715_v1 = vpop.f32.mrb[218].mxu0 }
 0x5dd   :  { %v9716_v3 = vpop.f32.mrb[219].mxu0 }
 0x5de   :  { %v7624_v50 = vadd.f32 %v9714_v60, %v15101_v56  ;;  %v9717_v41 = vadd.f32 %v9716_v3, %v9715_v1  ;;  %v9776_v55 = vpop.f32.mrb[216].mxu1 }
 0x5df   :  { %v9777_v56 = vpop.f32.mrb[217].mxu1 }
 0x5e0   :  { %v7627_v13 = vadd.f32 %v9717_v41, %v15104_v15  ;;  %v9778_v52 = vadd.f32 %v9777_v56, %v9776_v55  ;;  %v9779_v20 = vpop.f32.mrb[218].mxu1 }
 0x5e1   :  { %v9780_v45 = vpop.f32.mrb[219].mxu1 }
 0x5e2   :  { %v9718_v34 = vpop.f32.mrb[220].mxu0  ;;  %v15143_v23 = vadd.f32 %v9778_v52, %v7624_v50  ;;  %v9781_v15 = vadd.f32 %v9780_v45, %v9779_v20 }
 0x5e3   :  { %v9719_v31 = vpop.f32.mrb[221].mxu0 }
 0x5e4   :  { %v9720_v7 = vadd.f32 %v9719_v31, %v9718_v34  ;;  %v9721_v51 = vpop.f32.mrb[222].mxu0  ;;  %v15145_v53 = vadd.f32 %v9781_v15, %v7627_v13 }
 0x5e5   :  { %v9722_v10 = vpop.f32.mrb[223].mxu0 }
 0x5e6   :  { %v7632_v30 = vadd.f32 %v9720_v7, %v15108_v8  ;;  %v9723_v54 = vadd.f32 %v9722_v10, %v9721_v51 }
 0x5e7   :  { %v9782_v21 = vpop.f32.mrb[220].mxu1 }
 0x5e8   :  { %v7635_v37 = vadd.f32 %v9723_v54, %v15110_v6  ;;  %v9783_v2 = vpop.f32.mrb[221].mxu1 }
 0x5e9   :  { %v9784_v35 = vadd.f32 %v9783_v2, %v9782_v21  ;;  %v9785_v16 = vpop.f32.mrb[222].mxu1 }
 0x5ea   :  { %v9724_v29 = vpop.f32.mrb[224].mxu0  ;;  %v9786_v5 = vpop.f32.mrb[223].mxu1 }
 0x5eb   :  { %v9725_v58 = vpop.f32.mrb[225].mxu0  ;;  %v15149_v32 = vadd.f32 %v9784_v35, %v7632_v30  ;;  %v9787_v40 = vadd.f32 %v9786_v5, %v9785_v16 }
 0x5ec   :  { %v9726_v19 = vadd.f32 %v9725_v58, %v9724_v29  ;;  %v9727_v18 = vpop.f32.mrb[226].mxu0 }
 0x5ed   :  { %v9728_v0 = vpop.f32.mrb[227].mxu0  ;;  %v15151_v59 = vadd.f32 %v9787_v40, %v7635_v37 }
 0x5ee   :  { %v7640_v8 = vadd.f32 %v9726_v19, %v15113_v27  ;;  %v9729_v12 = vadd.f32 %v9728_v0, %v9727_v18 }
 0x5f0   :  { %v7643_v6 = vadd.f32 %v9729_v12, %v15115_v62 }
 0x5f2   :  { %v9730_v38 = vpop.f32.mrb[228].mxu0 }
 0x5f3   :  { %v9731_v46 = vpop.f32.mrb[229].mxu0  ;;  %v9788_v43 = vpop.f32.mrb[224].mxu1 }
 0x5f4   :  { %v9732_v25 = vadd.f32 %v9731_v46, %v9730_v38  ;;  %v9733_v24 = vpop.f32.mrb[230].mxu0  ;;  %v9789_v28 = vpop.f32.mrb[225].mxu1 }
 0x5f5   :  { %v9734_v61 = vpop.f32.mrb[231].mxu0  ;;  %v9790_v39 = vadd.f32 %v9789_v28, %v9788_v43  ;;  %v9791_v42 = vpop.f32.mrb[226].mxu1 }
 0x5f6   :  { %v7648_v27 = vadd.f32 %v9732_v25, %v15118_v57  ;;  %v9735_v22 = vadd.f32 %v9734_v61, %v9733_v24  ;;  %v9792_v60 = vpop.f32.mrb[227].mxu1 }
 0x5f7   :  { %v15155_v1 = vadd.f32 %v9790_v39, %v7640_v8  ;;  %v9793_v44 = vadd.f32 %v9792_v60, %v9791_v42 }
 0x5f8   :  { %v7651_v62 = vadd.f32 %v9735_v22, %v15120_v63 }
 0x5f9   :  { %v15157_v50 = vadd.f32 %v9793_v44, %v7643_v6 }
 0x5fa   :  { %v9736_v3 = vpop.f32.mrb[232].mxu0 }
 0x5fb   :  { %v9737_v41 = vpop.f32.mrb[233].mxu0  ;;  %v9794_v36 = vpop.f32.mrb[228].mxu1 }
 0x5fc   :  { %v9738_v26 = vadd.f32 %v9737_v41, %v9736_v3  ;;  %v9739_v49 = vpop.f32.mrb[234].mxu0  ;;  %v9795_v31 = vpop.f32.mrb[229].mxu1 }
 0x5fd   :  { %v9740_v13 = vpop.f32.mrb[235].mxu0  ;;  %v9796_v7 = vadd.f32 %v9795_v31, %v9794_v36  ;;  %v9797_v51 = vpop.f32.mrb[230].mxu1 }
 0x5fe   :  { %v7656_v57 = vadd.f32 %v9738_v26, %v15123_v4  ;;  %v9741_v34 = vadd.f32 %v9740_v13, %v9739_v49  ;;  %v9798_v10 = vpop.f32.mrb[231].mxu1 }
 0x5ff   :  { %v15161_v55 = vadd.f32 %v9796_v7, %v7648_v27  ;;  %v9799_v30 = vadd.f32 %v9798_v10, %v9797_v51 }
 0x600   :  { %v7659_v63 = vadd.f32 %v9741_v34, %v15125_v17 }
 0x601   :  { %v15163_v56 = vadd.f32 %v9799_v30, %v7651_v62 }
 0x602   :  { %v9742_v54 = vpop.f32.mrb[236].mxu0 }
 0x603   :  { %v9743_v52 = vpop.f32.mrb[237].mxu0  ;;  %v9800_v15 = vpop.f32.mrb[232].mxu1 }
 0x604   :  { %v9744_v20 = vadd.f32 %v9743_v52, %v9742_v54  ;;  %v9745_v37 = vpop.f32.mrb[238].mxu0  ;;  %v9801_v58 = vpop.f32.mrb[233].mxu1 }
 0x605   :  { %v9746_v45 = vpop.f32.mrb[239].mxu0  ;;  %v9802_v19 = vadd.f32 %v9801_v58, %v9800_v15  ;;  %v9803_v18 = vpop.f32.mrb[234].mxu1 }
 0x606   :  { %v7664_v4 = vadd.f32 %v9744_v20, %v15127_v47  ;;  %v9747_v29 = vadd.f32 %v9746_v45, %v9745_v37  ;;  %v9804_v0 = vpop.f32.mrb[235].mxu1 }
 0x607   :  { %v15167_v21 = vadd.f32 %v9802_v19, %v7656_v57  ;;  %v9805_v8 = vadd.f32 %v9804_v0, %v9803_v18 }
 0x608   :  { %v7667_v17 = vadd.f32 %v9747_v29, %v15129_v14 }
 0x609   :  { %v15169_v2 = vadd.f32 %v9805_v8, %v7659_v63 }
 0x60a   :  { %v9748_v12 = vpop.f32.mrb[240].mxu0 }
 0x60b   :  { %v9749_v35 = vpop.f32.mrb[241].mxu0  ;;  %v9806_v40 = vpop.f32.mrb[236].mxu1 }
 0x60c   :  { %v9750_v16 = vadd.f32 %v9749_v35, %v9748_v12  ;;  %v9751_v6 = vpop.f32.mrb[242].mxu0  ;;  %v9807_v46 = vpop.f32.mrb[237].mxu1 }
 0x60d   :  { %v9752_v5 = vpop.f32.mrb[243].mxu0  ;;  %v9808_v25 = vadd.f32 %v9807_v46, %v9806_v40  ;;  %v9809_v24 = vpop.f32.mrb[238].mxu1 }
 0x60e   :  { %v7672_v47 = vadd.f32 %v9750_v16, %v15131_v33  ;;  %v9753_v38 = vadd.f32 %v9752_v5, %v9751_v6  ;;  %v9810_v61 = vpop.f32.mrb[239].mxu1 }
 0x60f   :  { %v15173_v43 = vadd.f32 %v9808_v25, %v7664_v4  ;;  %v9811_v27 = vadd.f32 %v9810_v61, %v9809_v24 }
 0x610   :  { %v7675_v14 = vadd.f32 %v9753_v38, %v15133_v11 }
 0x611   :  { %v15175_v28 = vadd.f32 %v9811_v27, %v7667_v17 }
 0x612   :  { %v9754_v22 = vpop.f32.mrb[244].mxu0 }
 0x613   :  { %v9755_v39 = vpop.f32.mrb[245].mxu0  ;;  %v9812_v44 = vpop.f32.mrb[240].mxu1 }
 0x614   :  { %v9756_v42 = vadd.f32 %v9755_v39, %v9754_v22  ;;  %v9757_v62 = vpop.f32.mrb[246].mxu0  ;;  %v9813_v41 = vpop.f32.mrb[241].mxu1 }
 0x615   :  { %v9758_v60 = vpop.f32.mrb[247].mxu0  ;;  %v9814_v26 = vadd.f32 %v9813_v41, %v9812_v44  ;;  %v9815_v49 = vpop.f32.mrb[242].mxu1 }
 0x616   :  { %v7680_v33 = vadd.f32 %v9756_v42, %v15136_v48  ;;  %v9759_v3 = vadd.f32 %v9758_v60, %v9757_v62  ;;  %v9816_v13 = vpop.f32.mrb[243].mxu1 }
 0x617   :  { %v15179_v36 = vadd.f32 %v9814_v26, %v7672_v47  ;;  %v9817_v57 = vadd.f32 %v9816_v13, %v9815_v49 }
 0x618   :  { %v7683_v11 = vadd.f32 %v9759_v3, %v15139_v9 }
 0x619   :  { %v15181_v31 = vadd.f32 %v9817_v57, %v7675_v14 }
 0x61a   :  { %v9840_v34 = vpop.f32.mrb[248].mxu0 }
 0x61b   :  { %v9841_v7 = vpop.f32.mrb[249].mxu0  ;;  %v9818_v10 = vpop.f32.mrb[244].mxu1 }
 0x61c   :  { %v9842_v51 = vadd.f32 %v9841_v7, %v9840_v34  ;;  %v9843_v63 = vpop.f32.mrb[250].mxu0  ;;  %v9819_v52 = vpop.f32.mrb[245].mxu1 }
 0x61d   :  { %v9844_v30 = vpop.f32.mrb[251].mxu0  ;;  %v9820_v20 = vadd.f32 %v9819_v52, %v9818_v10  ;;  %v9821_v37 = vpop.f32.mrb[246].mxu1 }
 0x61e   :  { %v7818_v48 = vadd.f32 %v9842_v51, %v15143_v23  ;;  %v9845_v54 = vadd.f32 %v9844_v30, %v9843_v63  ;;  %v9822_v45 = vpop.f32.mrb[247].mxu1 }
 0x61f   :  { %v15185_v15 = vadd.f32 %v9820_v20, %v7680_v33  ;;  %v9823_v4 = vadd.f32 %v9822_v45, %v9821_v37 }
 0x620   :  { %v7821_v9 = vadd.f32 %v9845_v54, %v15145_v53 }
 0x621   :  { %v15187_v29 = vadd.f32 %v9823_v4, %v7683_v11 }
 0x622   :  { %v9846_v58 = vpop.f32.mrb[252].mxu0 }
 0x623   :  { %v9847_v19 = vpop.f32.mrb[253].mxu0  ;;  %v9904_v0 = vpop.f32.mrb[248].mxu1 }
 0x624   :  { %v9848_v18 = vadd.f32 %v9847_v19, %v9846_v58  ;;  %v9849_v17 = vpop.f32.mrb[254].mxu0  ;;  %v9905_v12 = vpop.f32.mrb[249].mxu1 }
 0x625   :  { %v9850_v8 = vpop.f32.mrb[255].mxu0  ;;  %v9906_v16 = vadd.f32 %v9905_v12, %v9904_v0  ;;  %v9907_v6 = vpop.f32.mrb[250].mxu1 }
 0x626   :  { %v7826_v23 = vadd.f32 %v9848_v18, %v15149_v32  ;;  %v9851_v35 = vadd.f32 %v9850_v8, %v9849_v17  ;;  %v9908_v5 = vpop.f32.mrb[251].mxu1 }
 0x627   :  { %v15191_v40 = vadd.f32 %v9906_v16, %v7818_v48  ;;  %v9909_v47 = vadd.f32 %v9908_v5, %v9907_v6 }
 0x628   :  { %v7829_v53 = vadd.f32 %v9851_v35, %v15151_v59 }
 0x629   :  { %v15193_v38 = vadd.f32 %v9909_v47, %v7821_v9 }
 0x62a   :  { %v9852_v46 = vpop.f32.mrb[0].mxu0 }
 0x62b   :  { %v9853_v25 = vpop.f32.mrb[1].mxu0  ;;  %v9910_v61 = vpop.f32.mrb[252].mxu1 }
 0x62c   :  { %v9854_v24 = vadd.f32 %v9853_v25, %v9852_v46  ;;  %v9855_v14 = vpop.f32.mrb[2].mxu0  ;;  %v9911_v22 = vpop.f32.mrb[253].mxu1 }
 0x62d   :  { %v9856_v27 = vpop.f32.mrb[3].mxu0  ;;  %v9912_v42 = vadd.f32 %v9911_v22, %v9910_v61  ;;  %v9913_v62 = vpop.f32.mrb[254].mxu1 }
 0x62e   :  { %v7834_v32 = vadd.f32 %v9854_v24, %v15155_v1  ;;  %v9857_v39 = vadd.f32 %v9856_v27, %v9855_v14  ;;  %v9914_v60 = vpop.f32.mrb[255].mxu1 }
 0x62f   :  { %v15197_v44 = vadd.f32 %v9912_v42, %v7826_v23  ;;  %v9915_v33 = vadd.f32 %v9914_v60, %v9913_v62 }
 0x630   :  { %v7837_v59 = vadd.f32 %v9857_v39, %v15157_v50 }
 0x631   :  { %v15199_v3 = vadd.f32 %v9915_v33, %v7829_v53 }
 0x632   :  { %v9858_v41 = vpop.f32.mrb[4].mxu0 }
 0x633   :  { %v9859_v26 = vpop.f32.mrb[5].mxu0  ;;  %v9916_v13 = vpop.f32.mrb[0].mxu1 }
 0x634   :  { %v9860_v49 = vadd.f32 %v9859_v26, %v9858_v41  ;;  %v9861_v11 = vpop.f32.mrb[6].mxu0  ;;  %v9917_v34 = vpop.f32.mrb[1].mxu1 }
 0x635   :  { %v9862_v57 = vpop.f32.mrb[7].mxu0  ;;  %v9918_v51 = vadd.f32 %v9917_v34, %v9916_v13  ;;  %v9919_v63 = vpop.f32.mrb[2].mxu1 }
 0x636   :  { %v7842_v1 = vadd.f32 %v9860_v49, %v15161_v55  ;;  %v9863_v7 = vadd.f32 %v9862_v57, %v9861_v11  ;;  %v9920_v10 = vpop.f32.mrb[3].mxu1 }
 0x637   :  { %v15203_v30 = vadd.f32 %v9918_v51, %v7834_v32  ;;  %v9921_v48 = vadd.f32 %v9920_v10, %v9919_v63 }
 0x638   :  { %v7845_v50 = vadd.f32 %v9863_v7, %v15163_v56 }
 0x639   :  { %v15205_v54 = vadd.f32 %v9921_v48, %v7837_v59 }
 0x63a   :  { %v9864_v52 = vpop.f32.mrb[8].mxu0 }
 0x63b   :  { %v9865_v20 = vpop.f32.mrb[9].mxu0  ;;  %v9922_v45 = vpop.f32.mrb[4].mxu1 }
 0x63c   :  { %v9866_v37 = vadd.f32 %v9865_v20, %v9864_v52  ;;  %v9867_v9 = vpop.f32.mrb[10].mxu0  ;;  %v9923_v58 = vpop.f32.mrb[5].mxu1 }
 0x63d   :  { %v9868_v4 = vpop.f32.mrb[11].mxu0  ;;  %v9924_v18 = vadd.f32 %v9923_v58, %v9922_v45  ;;  %v9925_v17 = vpop.f32.mrb[6].mxu1 }
 0x63e   :  { %v7850_v55 = vadd.f32 %v9866_v37, %v15167_v21  ;;  %v9869_v19 = vadd.f32 %v9868_v4, %v9867_v9  ;;  %v9926_v0 = vpop.f32.mrb[7].mxu1 }
 0x63f   :  { %v15209_v8 = vadd.f32 %v9924_v18, %v7842_v1  ;;  %v9927_v12 = vadd.f32 %v9926_v0, %v9925_v17 }
 0x640   :  { %v7853_v56 = vadd.f32 %v9869_v19, %v15169_v2 }
 0x641   :  { %v15211_v23 = vadd.f32 %v9927_v12, %v7845_v50 }
 0x642   :  { %v9870_v35 = vpop.f32.mrb[12].mxu0 }
 0x643   :  { %v9871_v16 = vpop.f32.mrb[13].mxu0  ;;  %v9928_v53 = vpop.f32.mrb[8].mxu1 }
 0x644   :  { %v9872_v6 = vadd.f32 %v9871_v16, %v9870_v35  ;;  %v9873_v5 = vpop.f32.mrb[14].mxu0  ;;  %v9929_v46 = vpop.f32.mrb[9].mxu1 }
 0x645   :  { %v9874_v47 = vpop.f32.mrb[15].mxu0  ;;  %v9930_v24 = vadd.f32 %v9929_v46, %v9928_v53  ;;  %v9931_v14 = vpop.f32.mrb[10].mxu1 }
 0x646   :  { %v7858_v21 = vadd.f32 %v9872_v6, %v15173_v43  ;;  %v9875_v25 = vadd.f32 %v9874_v47, %v9873_v5  ;;  %v9932_v61 = vpop.f32.mrb[11].mxu1 }
 0x647   :  { %v15215_v27 = vadd.f32 %v9930_v24, %v7850_v55  ;;  %v9933_v22 = vadd.f32 %v9932_v61, %v9931_v14 }
 0x648   :  { %v7861_v2 = vadd.f32 %v9875_v25, %v15175_v28 }
 0x649   :  { %v15217_v32 = vadd.f32 %v9933_v22, %v7853_v56  ;;  %v15240_v22 = vld [vmem:[%s15369_s12] ss:$0 sm:$0xff] }
 0x64a   :  { %v9876_v39 = vpop.f32.mrb[16].mxu0 }
 0x64b   :  { %v9877_v42 = vpop.f32.mrb[17].mxu0  ;;  %v9934_v59 = vpop.f32.mrb[12].mxu1 }
 0x64c   :  { %v9878_v62 = vadd.f32 %v9877_v42, %v9876_v39  ;;  %v9879_v60 = vpop.f32.mrb[18].mxu0  ;;  %v9935_v41 = vpop.f32.mrb[13].mxu1 }
 0x64d   :  { %v9880_v33 = vpop.f32.mrb[19].mxu0  ;;  %v9936_v49 = vadd.f32 %v9935_v41, %v9934_v59  ;;  %v9937_v11 = vpop.f32.mrb[14].mxu1 }
 0x64e   :  { %v7866_v43 = vadd.f32 %v9878_v62, %v15179_v36  ;;  %v9881_v26 = vadd.f32 %v9880_v33, %v9879_v60  ;;  %v9938_v13 = vpop.f32.mrb[15].mxu1 }
 0x64f   :  { %v15221_v57 = vadd.f32 %v9936_v49, %v7858_v21  ;;  %v9939_v34 = vadd.f32 %v9938_v13, %v9937_v11 }
 0x650   :  { %v7869_v28 = vadd.f32 %v9881_v26, %v15181_v31 }
 0x651   :  { %v15223_v1 = vadd.f32 %v9939_v34, %v7861_v2 }
 0x652   :  { %v9882_v7 = vpop.f32.mrb[20].mxu0 }
 0x653   :  { %v9883_v51 = vpop.f32.mrb[21].mxu0  ;;  %v9940_v50 = vpop.f32.mrb[16].mxu1 }
 0x654   :  { %v9884_v63 = vadd.f32 %v9883_v51, %v9882_v7  ;;  %v9885_v10 = vpop.f32.mrb[22].mxu0  ;;  %v9941_v52 = vpop.f32.mrb[17].mxu1 }
 0x655   :  { %v9886_v48 = vpop.f32.mrb[23].mxu0  ;;  %v9942_v37 = vadd.f32 %v9941_v52, %v9940_v50  ;;  %v9943_v9 = vpop.f32.mrb[18].mxu1 }
 0x656   :  { %v7874_v36 = vadd.f32 %v9884_v63, %v15185_v15  ;;  %v9887_v20 = vadd.f32 %v9886_v48, %v9885_v10  ;;  %v9944_v45 = vpop.f32.mrb[19].mxu1 }
 0x657   :  { %v15227_v4 = vadd.f32 %v9942_v37, %v7866_v43  ;;  %v9945_v58 = vadd.f32 %v9944_v45, %v9943_v9 }
 0x658   :  { %v7877_v31 = vadd.f32 %v9887_v20, %v15187_v29 }
 0x659   :  { %v15229_v55 = vadd.f32 %v9945_v58, %v7869_v28 }
 0x65a   :  { %v9968_v19 = vpop.f32.mrb[24].mxu0 }
 0x65b   :  { %v9969_v18 = vpop.f32.mrb[25].mxu0  ;;  %v9946_v56 = vpop.f32.mrb[20].mxu1 }
 0x65c   :  { %v9970_v17 = vadd.f32 %v9969_v18, %v9968_v19  ;;  %v9971_v0 = vpop.f32.mrb[26].mxu0  ;;  %v9947_v35 = vpop.f32.mrb[21].mxu1 }
 0x65d   :  { %v9972_v12 = vpop.f32.mrb[27].mxu0  ;;  %v9948_v15 = vadd.f32 %v9947_v35, %v9946_v56  ;;  %v9949_v6 = vpop.f32.mrb[22].mxu1 }
 0x65e   :  { %v9973_v16 = vadd.f32 %v9972_v12, %v9971_v0  ;;  %v8012_v5 = vadd.f32 %v9970_v17, %v15191_v40  ;;  %v9950_v53 = vpop.f32.mrb[23].mxu1 }
 0x65f   :  { %v15232_v47 = vadd.f32 %v9948_v15, %v7874_v36  ;;  %v9951_v29 = vadd.f32 %v9950_v53, %v9949_v6 }
 0x660   :  { %v8015_v46 = vadd.f32 %v9973_v16, %v15193_v38  ;;  %v15245_v38 = vld [vmem:[%s15370_s13] ss:$0 sm:$0xff] }
 0x661   :  { %v15235_v21 = vadd.f32 %v9951_v29, %v7877_v31 }
 0x662   :  { %v9974_v25 = vpop.f32.mrb[28].mxu0 }
 0x663   :  { %v9975_v24 = vpop.f32.mrb[29].mxu0  ;;  %v8108_v2 = vpop.f32.mrb[24].mxu1 }
 0x664   :  { %v9976_v14 = vadd.f32 %v9975_v24, %v9974_v25  ;;  %v9977_v61 = vpop.f32.mrb[30].mxu0  ;;  %v8109_v40 = vadd.f32 %v8108_v2, %v8012_v5  ;;  %v8110_v42 = vpop.f32.mrb[25].mxu1 }
 0x665   :  { %v9978_v39 = vpop.f32.mrb[31].mxu0  ;;  %v8111_v60 = vpop.f32.mrb[26].mxu1 }
 0x666   :  { %v9979_v62 = vadd.f32 %v9978_v39, %v9977_v61  ;;  %v8020_v59 = vadd.f32 %v9976_v14, %v15197_v44  ;;  %v8178_v33 = vmul.f32 %v15240_v22, %v8109_v40  ;;  %v8112_v41 = vadd.f32 %v8111_v60, %v8015_v46  ;;  %v8113_v43 = vpop.f32.mrb[27].mxu1 }
 0x668   :  { %v8023_v26 = vadd.f32 %v9979_v62, %v15199_v3  ;;  %v8201_v49 = vadd.f32 %v15245_v38, %v8178_v33  ;;  %v8179_v11 = vmul.f32 %v15240_v22, %v8112_v41 }
 0x66a   :  { %v9980_v13 = vpop.f32.mrb[32].mxu0  ;;  %v8988_v28 = vmul.f32 -1.442695, %v8201_v49  ;;  %v8202_v34 = vadd.f32 %v15245_v38, %v8179_v11 }
 0x66b   :  { %v9981_v7 = vpop.f32.mrb[33].mxu0  ;;  %v8116_v10 = vpop.f32.mrb[28].mxu1 }
 0x66c   :  { %v9982_v51 = vadd.f32 %v9981_v7, %v9980_v13  ;;  %v9983_v63 = vpop.f32.mrb[34].mxu0  ;;  %10419 = vpow2.f32 %v8988_v28  ;;  %v8989_v44 = vmul.f32 -1.442695, %v8202_v34  ;;  %v8117_v48 = vadd.f32 %v8116_v10, %v8020_v59  ;;  %v8118_v52 = vpop.f32.mrb[29].mxu1 }
 0x66d   :  { %v9984_v50 = vpop.f32.mrb[35].mxu0  ;;  %v8119_v20 = vpop.f32.mrb[30].mxu1 }
 0x66e   :  { %v9985_v36 = vadd.f32 %v9984_v50, %v9983_v63  ;;  %v8028_v3 = vadd.f32 %v9982_v51, %v15203_v30  ;;  %10421 = vpow2.f32 %v8989_v44  ;;  %v8180_v37 = vmul.f32 %v15240_v22, %v8117_v48  ;;  %v8121_v45 = vpop.f32.mrb[31].mxu1 }
 0x66f   :  { %v8120_v9 = vadd.f32 %v8119_v20, %v8023_v26 }
 0x670   :  { %v8031_v31 = vadd.f32 %v9985_v36, %v15205_v54  ;;  %v8203_v58 = vadd.f32 %v15245_v38, %v8180_v37 }
 0x671   :  { %v8181_v19 = vmul.f32 %v15240_v22, %v8120_v9 }
 0x672   :  { %v9986_v18 = vpop.f32.mrb[36].mxu0  ;;  %v8990_v17 = vmul.f32 -1.442695, %v8203_v58 }
 0x673   :  { %v8204_v0 = vadd.f32 %v15245_v38, %v8181_v19  ;;  %v9987_v56 = vpop.f32.mrb[37].mxu0  ;;  %v8124_v16 = vpop.f32.mrb[32].mxu1 }
 0x674   :  { %v9988_v12 = vadd.f32 %v9987_v56, %v9986_v18  ;;  %v9989_v35 = vpop.f32.mrb[38].mxu0  ;;  %10423 = vpow2.f32 %v8990_v17  ;;  %v8125_v6 = vadd.f32 %v8124_v16, %v8028_v3  ;;  %v8126_v5 = vpop.f32.mrb[33].mxu1 }
 0x675   :  { %v8991_v30 = vmul.f32 -1.442695, %v8204_v0  ;;  %v9990_v15 = vpop.f32.mrb[39].mxu0  ;;  %v8127_v29 = vpop.f32.mrb[34].mxu1 }
 0x676   :  { %v9991_v53 = vadd.f32 %v9990_v15, %v9989_v35  ;;  %v8036_v54 = vadd.f32 %v9988_v12, %v15209_v8  ;;  %v10420_v46 = vpop.eup %10419  ;;  %v8182_v25 = vmul.f32 %v15240_v22, %v8125_v6  ;;  %v8128_v24 = vadd.f32 %v8127_v29, %v8031_v31  ;;  %v8129_v14 = vpop.f32.mrb[35].mxu1 }
 0x677   :  { %10425 = vpow2.f32 %v8991_v30  ;;  %v8265_v61 = vadd.f32 1.0, %v10420_v46 }
 0x678   :  { %v8039_v2 = vadd.f32 %v9991_v53, %v15211_v23  ;;  %v10422_v39 = vpop.eup %10421  ;;  %v8205_v40 = vadd.f32 %v15245_v38, %v8182_v25  ;;  %v8183_v42 = vmul.f32 %v15240_v22, %v8128_v24 }
 0x679   :  { %10427 = vrcp.f32 %v8265_v61  ;;  %v8266_v62 = vadd.f32 1.0, %v10422_v39 }
 0x67a   :  { %v9992_v60 = vpop.f32.mrb[40].mxu0  ;;  %v8992_v59 = vmul.f32 -1.442695, %v8205_v40  ;;  %v8206_v8 = vadd.f32 %v15245_v38, %v8183_v42 }
 0x67b   :  { %v9993_v33 = vpop.f32.mrb[41].mxu0  ;;  %10429 = vrcp.f32 %v8266_v62  ;;  %v8132_v26 = vpop.f32.mrb[36].mxu1 }
 0x67c   :  { %v9994_v41 = vadd.f32 %v9993_v33, %v9992_v60  ;;  %v9995_v43 = vpop.f32.mrb[42].mxu0  ;;  %10431 = vpow2.f32 %v8992_v59  ;;  %v8993_v49 = vmul.f32 -1.442695, %v8206_v8  ;;  %v8133_v23 = vadd.f32 %v8132_v26, %v8036_v54  ;;  %v8134_v13 = vpop.f32.mrb[37].mxu1 }
 0x67d   :  { %v9996_v11 = vpop.f32.mrb[43].mxu0  ;;  %v8135_v34 = vpop.f32.mrb[38].mxu1 }
 0x67e   :  { %v9997_v28 = vadd.f32 %v9996_v11, %v9995_v43  ;;  %v8044_v7 = vadd.f32 %v9994_v41, %v15215_v27  ;;  %v10424_v51 = vpop.eup %10423  ;;  %10433 = vpow2.f32 %v8993_v49  ;;  %v8184_v63 = vmul.f32 %v15240_v22, %v8133_v23  ;;  %v8137_v44 = vpop.f32.mrb[39].mxu1 }
 0x67f   :  { %v8136_v10 = vadd.f32 %v8135_v34, %v8039_v2  ;;  %v8267_v50 = vadd.f32 1.0, %v10424_v51 }
 0x680   :  { %v8047_v48 = vadd.f32 %v9997_v28, %v15217_v32  ;;  %v8207_v36 = vadd.f32 %v15245_v38, %v8184_v63 }
 0x681   :  { %v10426_v52 = vpop.eup %10425  ;;  %v8185_v20 = vmul.f32 %v15240_v22, %v8136_v10  ;;  %10435 = vrcp.f32 %v8267_v50 }
 0x682   :  { %v8268_v3 = vadd.f32 1.0, %v10426_v52  ;;  %v9998_v37 = vpop.f32.mrb[44].mxu0  ;;  %v8994_v9 = vmul.f32 -1.442695, %v8207_v36 }
 0x683   :  { %v8208_v27 = vadd.f32 %v15245_v38, %v8185_v20  ;;  %v9999_v45 = vpop.f32.mrb[45].mxu0  ;;  %v10428_v31 = vpop.eup %10427 }
 0x684   :  { %10437 = vrcp.f32 %v8268_v3  ;;  %v10000_v58 = vadd.f32 %v9999_v45, %v9998_v37  ;;  %v10001_v19 = vpop.f32.mrb[46].mxu0  ;;  %v8140_v18 = vpop.f32.mrb[40].mxu1  ;;  %8314 = vst.msk [vmem:[%s15371_s14] sm:$0xff] %vm8313_vm0, %v10428_v31 }
 0x685   :  { %10439 = vpow2.f32 %v8994_v9  ;;  %v8995_v32 = vmul.f32 -1.442695, %v8208_v27  ;;  %v10002_v17 = vpop.f32.mrb[47].mxu0  ;;  %v8141_v0 = vadd.f32 %v8140_v18, %v8044_v7  ;;  %v8142_v56 = vpop.f32.mrb[41].mxu1 }
 0x686   :  { %v10430_v12 = vpop.eup %10429  ;;  %v10003_v35 = vadd.f32 %v10002_v17, %v10001_v19  ;;  %v8143_v16 = vpop.f32.mrb[42].mxu1  ;;  %v8052_v30 = vadd.f32 %v10000_v58, %v15221_v57 }
 0x687   :  { %v10432_v15 = vpop.eup %10431  ;;  %8315 = vst.msk [vmem:[%s15371_s14 + $0x8] sm:$0xff] %vm8313_vm0, %v10430_v12  ;;  %10441 = vpow2.f32 %v8995_v32  ;;  %v8186_v6 = vmul.f32 %v15240_v22, %v8141_v0  ;;  %v8144_v5 = vadd.f32 %v8143_v16, %v8047_v48  ;;  %v8145_v53 = vpop.f32.mrb[43].mxu1 }
 0x688   :  { %v8269_v29 = vadd.f32 1.0, %v10432_v15  ;;  %v8055_v54 = vadd.f32 %v10003_v35, %v15223_v1  ;;  %v10434_v46 = vpop.eup %10433 }
 0x689   :  { %v8209_v25 = vadd.f32 %v15245_v38, %v8186_v6  ;;  %v8187_v24 = vmul.f32 %v15240_v22, %v8144_v5  ;;  %v8270_v57 = vadd.f32 1.0, %v10434_v46 }
 0x68a   :  { %10443 = vrcp.f32 %v8269_v29  ;;  %v10004_v14 = vpop.f32.mrb[48].mxu0 }
 0x68b   :  { %v8996_v61 = vmul.f32 -1.442695, %v8209_v25  ;;  %v8210_v2 = vadd.f32 %v15245_v38, %v8187_v24  ;;  %v10005_v39 = vpop.f32.mrb[49].mxu0  ;;  %v10436_v40 = vpop.eup %10435  ;;  %10445 = vrcp.f32 %v8270_v57 }
 0x68c   :  { %v10006_v42 = vadd.f32 %v10005_v39, %v10004_v14  ;;  %v10007_v62 = vpop.f32.mrb[50].mxu0  ;;  %v8148_v60 = vpop.f32.mrb[44].mxu1  ;;  %8316 = vst.msk [vmem:[%s15371_s14 + $0x10] sm:$0xff] %vm8313_vm0, %v10436_v40 }
 0x68d   :  { %10447 = vpow2.f32 %v8996_v61  ;;  %v8997_v1 = vmul.f32 -1.442695, %v8210_v2  ;;  %v10008_v59 = vpop.f32.mrb[51].mxu0  ;;  %v8149_v8 = vadd.f32 %v8148_v60, %v8052_v30  ;;  %v8150_v33 = vpop.f32.mrb[45].mxu1 }
 0x68e   :  { %v10438_v41 = vpop.eup %10437  ;;  %v10009_v43 = vadd.f32 %v10008_v59, %v10007_v62  ;;  %v8151_v26 = vpop.f32.mrb[46].mxu1  ;;  %v8060_v49 = vadd.f32 %v10006_v42, %v15227_v4 }
 0x68f   :  { %v10440_v11 = vpop.eup %10439  ;;  %8317 = vst.msk [vmem:[%s15371_s14 + $0x18] sm:$0xff] %vm8313_vm0, %v10438_v41  ;;  %10449 = vpow2.f32 %v8997_v1  ;;  %v8188_v23 = vmul.f32 %v15240_v22, %v8149_v8  ;;  %v8152_v13 = vadd.f32 %v8151_v26, %v8055_v54  ;;  %v8153_v28 = vpop.f32.mrb[47].mxu1 }
 0x690   :  { %v8271_v34 = vadd.f32 1.0, %v10440_v11  ;;  %v8063_v7 = vadd.f32 %v10009_v43, %v15229_v55 }
 0x691   :  { %v10442_v51 = vpop.eup %10441  ;;  %v8211_v63 = vadd.f32 %v15245_v38, %v8188_v23  ;;  %v8189_v10 = vmul.f32 %v15240_v22, %v8152_v13 }
 0x692   :  { %10451 = vrcp.f32 %v8271_v34  ;;  %v8272_v4 = vadd.f32 1.0, %v10442_v51  ;;  %v10010_v44 = vpop.f32.mrb[52].mxu0 }
 0x693   :  { %v8998_v50 = vmul.f32 -1.442695, %v8211_v63  ;;  %v8212_v48 = vadd.f32 %v15245_v38, %v8189_v10  ;;  %v10011_v52 = vpop.f32.mrb[53].mxu0  ;;  %v8156_v37 = vpop.f32.mrb[48].mxu1 }
 0x694   :  { %v10444_v36 = vpop.eup %10443  ;;  %10453 = vrcp.f32 %v8272_v4  ;;  %v10012_v20 = vadd.f32 %v10011_v52, %v10010_v44  ;;  %v10013_v3 = vpop.f32.mrb[54].mxu0  ;;  %v8157_v27 = vadd.f32 %v8156_v37, %v8060_v49 }
 0x695   :  { %8318 = vst.msk [vmem:[%s15371_s14 + $0x20] sm:$0xff] %vm8313_vm0, %v10444_v36  ;;  %10455 = vpow2.f32 %v8998_v50  ;;  %v8999_v55 = vmul.f32 -1.442695, %v8212_v48  ;;  %v10014_v9 = vpop.f32.mrb[55].mxu0  ;;  %v8158_v45 = vpop.f32.mrb[49].mxu1 }
 0x696   :  { %v10446_v31 = vpop.eup %10445  ;;  %v10015_v58 = vadd.f32 %v10014_v9, %v10013_v3  ;;  %v8159_v19 = vpop.f32.mrb[50].mxu1  ;;  %v8068_v18 = vadd.f32 %v10012_v20, %v15232_v47  ;;  %v8190_v17 = vmul.f32 %v15240_v22, %v8157_v27 }
 0x697   :  { %v10448_v32 = vpop.eup %10447  ;;  %8319 = vst.msk [vmem:[%s15371_s14 + $0x28] sm:$0xff] %vm8313_vm0, %v10446_v31  ;;  %10457 = vpow2.f32 %v8999_v55  ;;  %v8160_v0 = vadd.f32 %v8159_v19, %v8063_v7  ;;  %v8161_v56 = vpop.f32.mrb[51].mxu1 }
 0x698   :  { %v8273_v12 = vadd.f32 1.0, %v10448_v32  ;;  %v8071_v35 = vadd.f32 %v10015_v58, %v15235_v21  ;;  %v8213_v30 = vadd.f32 %v15245_v38, %v8190_v17 }
 0x699   :  { %v10450_v16 = vpop.eup %10449  ;;  %v8191_v15 = vmul.f32 %v15240_v22, %v8160_v0 }
 0x69a   :  { %10459 = vrcp.f32 %v8273_v12  ;;  %v8274_v47 = vadd.f32 1.0, %v10450_v16  ;;  %v9000_v6 = vmul.f32 -1.442695, %v8213_v30 }
 0x69b   :  { %v8214_v5 = vadd.f32 %v15245_v38, %v8191_v15  ;;  %v8164_v29 = vpop.f32.mrb[52].mxu1 }
 0x69c   :  { %v10452_v53 = vpop.eup %10451  ;;  %10461 = vrcp.f32 %v8274_v47  ;;  %v8165_v54 = vadd.f32 %v8164_v29, %v8068_v18  ;;  %v8166_v46 = vpop.f32.mrb[53].mxu1 }
 0x69d   :  { %8320 = vst.msk [vmem:[%s15371_s14 + $0x30] sm:$0xff] %vm8313_vm0, %v10452_v53  ;;  %10463 = vpow2.f32 %v9000_v6  ;;  %v9001_v21 = vmul.f32 -1.442695, %v8214_v5  ;;  %v8167_v24 = vpop.f32.mrb[54].mxu1 }
 0x69e   :  { %v10454_v25 = vpop.eup %10453  ;;  %v8192_v14 = vmul.f32 %v15240_v22, %v8165_v54  ;;  %v8168_v61 = vadd.f32 %v8167_v24, %v8071_v35  ;;  %v8169_v2 = vpop.f32.mrb[55].mxu1 }
 0x69f   :  { %v10456_v57 = vpop.eup %10455  ;;  %8321 = vst.msk [vmem:[%s15371_s14 + $0x38] sm:$0xff] %vm8313_vm0, %v10454_v25  ;;  %10465 = vpow2.f32 %v9001_v21 }
 0x6a0   :  { %v8275_v39 = vadd.f32 1.0, %v10456_v57  ;;  %v8215_v42 = vadd.f32 %v15245_v38, %v8192_v14  ;;  %v8193_v62 = vmul.f32 %v15240_v22, %v8168_v61 }
 0x6a1   :  { %v10458_v40 = vpop.eup %10457 }
 0x6a2   :  { %10467 = vrcp.f32 %v8275_v39  ;;  %v8276_v60 = vadd.f32 1.0, %v10458_v40  ;;  %v9002_v1 = vmul.f32 -1.442695, %v8215_v42  ;;  %v8216_v59 = vadd.f32 %v15245_v38, %v8193_v62 }
 0x6a4   :  { %v10460_v8 = vpop.eup %10459  ;;  %10469 = vrcp.f32 %v8276_v60  ;;  %v9003_v33 = vmul.f32 -1.442695, %v8216_v59 }
 0x6a5   :  { %8322 = vst.msk [vmem:[%s15371_s14 + $0x40] sm:$0xff] %vm8313_vm0, %v10460_v8  ;;  %10471 = vpow2.f32 %v9002_v1 }
 0x6a6   :  { %v10462_v41 = vpop.eup %10461  ;;  %10473 = vpow2.f32 %v9003_v33 }
 0x6a7   :  { %v10464_v43 = vpop.eup %10463  ;;  %8323 = vst.msk [vmem:[%s15371_s14 + $0x48] sm:$0xff] %vm8313_vm0, %v10462_v41 }
 0x6a8   :  { %v8277_v22 = vadd.f32 1.0, %v10464_v43 }
 0x6a9   :  { %v10466_v26 = vpop.eup %10465 }
 0x6aa   :  { %10475 = vrcp.f32 %v8277_v22  ;;  %v8278_v38 = vadd.f32 1.0, %v10466_v26 }
 0x6ac   :  { %v10468_v49 = vpop.eup %10467  ;;  %10477 = vrcp.f32 %v8278_v38 }
 0x6ad   :  { %8324 = vst.msk [vmem:[%s15371_s14 + $0x50] sm:$0xff] %vm8313_vm0, %v10468_v49 }
 0x6ae   :  { %v10470_v11 = vpop.eup %10469 }
 0x6af   :  { %v10472_v23 = vpop.eup %10471  ;;  %8325 = vst.msk [vmem:[%s15371_s14 + $0x58] sm:$0xff] %vm8313_vm0, %v10470_v11 }
 0x6b0   :  { %v8279_v13 = vadd.f32 1.0, %v10472_v23  ;;  %v10474_v28 = vpop.eup %10473 }
 0x6b1   :  { %v8280_v34 = vadd.f32 1.0, %v10474_v28 }
 0x6b2   :  { %10479 = vrcp.f32 %v8279_v13 }
 0x6b3   :  { %10481 = vrcp.f32 %v8280_v34 }
 0x6b4   :  { %v10476_v7 = vpop.eup %10475 }
 0x6b5   :  { %8326 = vst.msk [vmem:[%s15371_s14 + $0x60] sm:$0xff] %vm8313_vm0, %v10476_v7 }
 0x6b6   :  { %v10478_v51 = vpop.eup %10477 }
 0x6b7   :  { %8327 = vst.msk [vmem:[%s15371_s14 + $0x68] sm:$0xff] %vm8313_vm0, %v10478_v51 }
 0x6bc   :  { %v10480_v63 = vpop.eup %10479 }
 0x6bd   :  { %8328 = vst.msk [vmem:[%s15371_s14 + $0x70] sm:$0xff] %vm8313_vm0, %v10480_v63  ;;  %v10482_v10 = vpop.eup %10481 }
 0x6be   :  { %8329 = vst.msk [vmem:[%s15371_s14 + $0x78] sm:$0xff] %vm8313_vm0, %v10482_v10 }

</bundles_post_ra>
